<compile_context>
chip_gen: v6e
topology: v6e:2x2x1
jax: 0.10.0
libtpu: 0.0.40
codegen_flags: <defaults>
</compile_context>

<pallas_src>
import jax
import jax.numpy as jnp
from jax import lax
from jax.experimental import pallas as pl
from jax.experimental.pallas import tpu as pltpu


def _make_kernel(bn, H, W, Cin_p):
    Wp = W + 4                 # pad-2 columns
    HT = H + 6                 # 1 slack + 2 pad + H + 2 pad + 1 slack rows
    L = HT * Wp                # flattened padded plane length (per image)
    Mw = H * Wp                # "wide window": every padded column of the H real rows
    W0 = 3 * Wp                # flat offset of the window start
    GC = 32 + Cin_p            # channels per tap group in stage B: [t5 | t3 | x]

    def kernel(x_ref, mask_ref, wa_ref, wb_ref, wc_ref, out_ref, pa_ref, pb_ref):
        f32 = jnp.float32
        maskb = mask_ref[...]            # (8, Mw): row 0 = interior mask, rows 1-7 zero
        mask = maskb[0:1, :]             # (1, Mw)
        wa = wa_ref[...]
        wb = wb_ref[...]
        wc = wc_ref[...]

        # Zero only the thin top/bottom strips of the plane scratches; the window
        # store below overwrites everything else every image.
        pa_ref[:, 0:W0] = jnp.zeros((32, W0), f32)
        pa_ref[:, W0 + Mw:L] = jnp.zeros((32, L - W0 - Mw), f32)
        pb_ref[:, 0:W0] = jnp.zeros((24, W0), f32)
        pb_ref[:, W0 + Mw:L] = jnp.zeros((24, L - W0 - Mw), f32)

        for b in range(bn):
            xf = x_ref[b]                # (Cin_p, L) zero-padded plane of image b

            # ---- stage A: branch1x1 / branch5x5_1 / branch3x3_1 (all 1x1) fused.
            # Bias is applied through the mask row, so pad positions stay exactly 0.
            xa = jnp.concatenate([xf[:, W0:W0 + Mw], maskb], axis=0)   # (Cin_p+8, Mw)
            t = jnp.dot(wa, xa, preferred_element_type=f32)            # (48, Mw)
            br1 = t[0:16, :]
            pa_ref[:, W0:W0 + Mw] = t[16:48, :]        # [t5|t3] plane, borders stay 0

            # ---- stage B: single im2col + single matmul for
            #      branch5x5_2(t5)  (+)  branch3x3_2(t3)  (+)  branch_pool (3x3 of x, w/9)
            taps = []
            for dy in range(5):
                for dx in range(5):
                    off = W0 + (dy - 2) * Wp + (dx - 2)
                    taps.append(pa_ref[:, off:off + Mw])   # (32, Mw)     t5|t3 tap
                    taps.append(xf[:, off:off + Mw])       # (Cin_p, Mw)  x tap
            taps.append(maskb)
            patch = jnp.concatenate(taps, axis=0)          # (25*GC+8, Mw)
            u = jnp.dot(wb, patch, preferred_element_type=f32)        # (72, Mw)
            br5 = u[0:24, :]
            brp = u[48:72, :]
            # t3b feeds the next conv: mask it so pad columns are exactly zero.
            pb_ref[:, W0:W0 + Mw] = u[24:48, :] * mask

            # ---- stage C: branch3x3_3 (3x3, 24 -> 24)
            taps = []
            for dy in range(3):
                for dx in range(3):
                    off = W0 + (dy - 1) * Wp + (dx - 1)
                    taps.append(pb_ref[:, off:off + Mw])   # (24, Mw)
            taps.append(maskb)
            patch = jnp.concatenate(taps, axis=0)          # (9*24+8, Mw)
            br3 = jnp.dot(wc, patch, preferred_element_type=f32)      # (24, Mw)

            # ---- PyTorch channel order, lane-dense (Mw-wide) store.
            out_ref[b] = jnp.concatenate([br1, br5, br3, brp], axis=0)  # (88, Mw)

    return kernel


def inception_a_pallas(x_nchw, params, block_n=4):
    """Forward pass of InceptionA. x_nchw: (N, Cin, H, W) f32 -> (N, 88, H, W) f32."""
    N, Cin, H, W = x_nchw.shape
    f32 = jnp.float32
    x = x_nchw.astype(f32)

    Cin_p = ((Cin + 7) // 8) * 8
    Wp, HT = W + 4, H + 6
    L, Mw = HT * Wp, H * Wp
    GC = 32 + Cin_p

    # Batch tiling: a few images per step, but keep >= 2 grid steps when N >= 2
    # so the "parallel" grid axis can span both TensorCores on v7x.
    bn = max(1, min(block_n, pl.cdiv(N, 2)))
    Np = pl.cdiv(N, bn) * bn

    # Zero-padded plane per image, channels padded to a multiple of 8, flattened.
    xpad = jnp.pad(x, ((0, Np - N), (0, Cin_p - Cin), (3, 3), (2, 2)))
    xpad = xpad.reshape(Np, Cin_p, L)

    # Interior mask over the window (1 at real-image columns, 0 at pad columns),
    # stored in row 0 of an 8-row block so patches stay sublane-aligned.
    col = jnp.arange(Wp, dtype=jnp.int32)
    mrow = ((col >= 2) & (col < 2 + W)).astype(f32)
    maskb = jnp.zeros((8, Mw), f32).at[0, :].set(jnp.tile(mrow, H))

    def c2d(w):            # torch (Cout, Cin, 1, 1) -> (Cout, Cin)
        return w[:, :, 0, 0].astype(f32)

    def biascols(b, rows):  # bias -> (rows, 8) block with bias in column 0
        return jnp.zeros((rows, 8), f32).at[:, 0].set(b.astype(f32))

    # Stage A weight: fused 1x1s.                         (48, Cin_p + 8)
    wa_core = jnp.concatenate(
        [c2d(params["w_b1"]), c2d(params["w_b5_1"]), c2d(params["w_b3_1"])], axis=0)
    ba = jnp.concatenate([params["b_b1"], params["b_b5_1"], params["b_b3_1"]])
    wa = jnp.concatenate(
        [wa_core, jnp.zeros((48, Cin_p - Cin), f32), biascols(ba, 48)], axis=1)

    # Stage B weight: block structure over 25 taps x GC channels.  (72, 25*GC + 8)
    wb3 = jnp.zeros((72, 25, GC), f32)
    w5 = params["w_b5_2"].astype(f32)                                      # (24,16,5,5)
    wb3 = wb3.at[0:24, :, 0:16].set(jnp.transpose(w5, (0, 2, 3, 1)).reshape(24, 25, 16))
    w32 = jnp.pad(params["w_b3_2"].astype(f32), ((0, 0), (0, 0), (1, 1), (1, 1)))
    wb3 = wb3.at[24:48, :, 16:32].set(jnp.transpose(w32, (0, 2, 3, 1)).reshape(24, 25, 16))
    wbp = c2d(params["w_bp"]) / 9.0                                        # (24, Cin)
    wbp_taps = jnp.pad(jnp.broadcast_to(wbp[:, None, None, :], (24, 3, 3, Cin)),
                       ((0, 0), (1, 1), (1, 1), (0, 0)))                   # (24,5,5,Cin)
    wb3 = wb3.at[48:72, :, 32:32 + Cin].set(wbp_taps.reshape(24, 25, Cin))
    bb = jnp.concatenate([params["b_b5_2"], params["b_b3_2"], params["b_bp"]])
    wb = jnp.concatenate([wb3.reshape(72, 25 * GC), biascols(bb, 72)], axis=1)

    # Stage C weight: 3x3, 24 -> 24.                      (24, 9*24 + 8)
    w33 = params["w_b3_3"].astype(f32)
    wc = jnp.concatenate(
        [jnp.transpose(w33, (0, 2, 3, 1)).reshape(24, 9 * 24),
         biascols(params["b_b3_3"], 24)], axis=1)

    grid = Np // bn
    out = pl.pallas_call(
        _make_kernel(bn, H, W, Cin_p),
        out_shape=jax.ShapeDtypeStruct((Np, 88, Mw), f32),
        grid=(grid,),
        in_specs=[
            pl.BlockSpec((bn, Cin_p, L), lambda n: (n, 0, 0)),   # padded input planes
            pl.BlockSpec((8, Mw), lambda n: (0, 0)),             # interior mask block
            pl.BlockSpec(wa.shape, lambda n: (0, 0)),
            pl.BlockSpec(wb.shape, lambda n: (0, 0)),
            pl.BlockSpec(wc.shape, lambda n: (0, 0)),
        ],
        out_specs=pl.BlockSpec((bn, 88, Mw), lambda n: (n, 0, 0)),
        scratch_shapes=[
            pltpu.VMEM((32, L), f32),    # [t5|t3] padded plane
            pltpu.VMEM((24, L), f32),    # t3b padded plane
        ],
        compiler_params=pltpu.CompilerParams(
            dimension_semantics=("parallel",),
            vmem_limit_bytes=32 * 1024 * 1024),
    )(xpad, maskb, wa, wb, wc)

    # (Np, 88, H*Wp) -> (N, 88, H, W): reshape + slice only, no transpose.
    return out.reshape(Np, 88, H, Wp)[:N, :, :, 2:2 + W]


# ---------------- pure-JAX reference (for verification only) ----------------
def _conv2d_ref(x, w, b, pad):
    out = lax.conv_general_dilated(
        x, w, window_strides=(1, 1), padding=[(pad, pad), (pad, pad)],
        dimension_numbers=("NCHW", "OIHW", "NCHW"))
    return out + b[None, :, None, None]


def inception_a_ref(x, p):
    b1 = _conv2d_ref(x, p["w_b1"], p["b_b1"], 0)
    b5 = _conv2d_ref(x, p["w_b5_1"], p["b_b5_1"], 0)
    b5 = _conv2d_ref(b5, p["w_b5_2"], p["b_b5_2"], 2)
    b3 = _conv2d_ref(x, p["w_b3_1"], p["b_b3_1"], 0)
    b3 = _conv2d_ref(b3, p["w_b3_2"], p["b_b3_2"], 1)
    b3 = _conv2d_ref(b3, p["w_b3_3"], p["b_b3_3"], 1)
    pool = lax.reduce_window(x, 0.0, lax.add, (1, 1, 3, 3), (1, 1, 1, 1),
                             padding=((0, 0), (0, 0), (1, 1), (1, 1))) / 9.0
    bp = _conv2d_ref(pool, p["w_bp"], p["b_bp"], 0)
    return jnp.concatenate([b1, b5, b3, bp], axis=1)


def _init_params(key, in_channels):
    def conv_init(k, cout, cin, kh, kw):
        k1, k2 = jax.random.split(k)
        bound = 1.0 / jnp.sqrt(cin * kh * kw)
        w = jax.random.uniform(k1, (cout, cin, kh, kw), jnp.float32, -bound, bound)
        b = jax.random.uniform(k2, (cout,), jnp.float32, -bound, bound)
        return w, b

    ks = jax.random.split(key, 7)
    p = {}
    p["w_b1"], p["b_b1"] = conv_init(ks[0], 16, in_channels, 1, 1)
    p["w_b5_1"], p["b_b5_1"] = conv_init(ks[1], 16, in_channels, 1, 1)
    p["w_b5_2"], p["b_b5_2"] = conv_init(ks[2], 24, 16, 5, 5)
    p["w_b3_1"], p["b_b3_1"] = conv_init(ks[3], 16, in_channels, 1, 1)
    p["w_b3_2"], p["b_b3_2"] = conv_init(ks[4], 24, 16, 3, 3)
    p["w_b3_3"], p["b_b3_3"] = conv_init(ks[5], 24, 24, 3, 3)
    p["w_bp"], p["b_bp"] = conv_init(ks[6], 24, in_channels, 1, 1)
    return p


if __name__ == "__main__":
    key = jax.random.PRNGKey(0)
    k_x, k_p = jax.random.split(key)

    N, Cin, H, W = 2, 4, 16, 16
    x = jax.random.normal(k_x, (N, Cin, H, W), jnp.float32)
    params = _init_params(k_p, Cin)

    out = inception_a_pallas(x, params)
    out = jax.block_until_ready(out)

    ref = inception_a_ref(x, params)
    ref = jax.block_until_ready(ref)

    assert out.shape == (N, 88, H, W), out.shape
    assert jnp.allclose(out, ref, atol=1e-4, rtol=1e-4), (
        float(jnp.max(jnp.abs(out - ref))))

    print("KERNEL_OK")
</pallas_src>

<mosaic_0001>
module attributes {stable_mosaic.version = 11 : i64} {
  func.func @kernel(%arg0: i32, %arg1: memref<1x8x440xf32, #tpu.memory_space<vmem>>, %arg2: memref<8x320xf32, #tpu.memory_space<vmem>>, %arg3: memref<48x16xf32, #tpu.memory_space<vmem>>, %arg4: memref<72x1008xf32, #tpu.memory_space<vmem>>, %arg5: memref<24x224xf32, #tpu.memory_space<vmem>>, %arg6: memref<1x88x320xf32, #tpu.memory_space<vmem>>, %arg7: memref<32x440xf32, #tpu.memory_space<vmem>>, %arg8: memref<24x440xf32, #tpu.memory_space<vmem>>) attributes {dimension_semantics = [#tpu.dimension_semantics<parallel>], iteration_bounds = array<i64: 2>, scalar_prefetch = 0 : i64, scratch_operands = 2 : i64, tpu.core_type = #tpu.core_type<tc>, window_params = [{transform_indices = @transform_0, window_bounds = array<i64: 1, 8, 440>}, {pipeline_mode = #tpu.pipeline_mode<synchronous>, transform_indices = @transform_1, window_bounds = array<i64: 8, 320>}, {pipeline_mode = #tpu.pipeline_mode<synchronous>, transform_indices = @transform_2, window_bounds = array<i64: 48, 16>}, {pipeline_mode = #tpu.pipeline_mode<synchronous>, transform_indices = @transform_3, window_bounds = array<i64: 72, 1008>}, {pipeline_mode = #tpu.pipeline_mode<synchronous>, transform_indices = @transform_4, window_bounds = array<i64: 24, 224>}, {transform_indices = @transform_5, window_bounds = array<i64: 1, 88, 320>}]} {
    %c0 = arith.constant 0 : index
    %c0_0 = arith.constant 0 : index
    %0 = vector.load %arg2[%c0, %c0_0] : memref<8x320xf32, #tpu.memory_space<vmem>>, vector<8x320xf32>
    %1 = vector.extract_strided_slice %0 {offsets = [0, 0], sizes = [1, 320], strides = [1, 1]} : vector<8x320xf32> to vector<1x320xf32>
    %c0_1 = arith.constant 0 : index
    %c0_2 = arith.constant 0 : index
    %2 = vector.load %arg3[%c0_1, %c0_2] : memref<48x16xf32, #tpu.memory_space<vmem>>, vector<48x16xf32>
    %c0_3 = arith.constant 0 : index
    %c0_4 = arith.constant 0 : index
    %3 = vector.load %arg4[%c0_3, %c0_4] : memref<72x1008xf32, #tpu.memory_space<vmem>>, vector<72x1008xf32>
    %c0_5 = arith.constant 0 : index
    %c0_6 = arith.constant 0 : index
    %4 = vector.load %arg5[%c0_5, %c0_6] : memref<24x224xf32, #tpu.memory_space<vmem>>, vector<24x224xf32>
    %cst = arith.constant 0.000000e+00 : f32
    %5 = vector.broadcast %cst : f32 to vector<32x60xf32>
    %c0_7 = arith.constant 0 : index
    %c0_8 = arith.constant 0 : index
    %6 = vector.load %arg7[%c0_7, %c0_8] : memref<32x440xf32, #tpu.memory_space<vmem>>, vector<32x60xf32>
    tpu.vector_store %arg7[%c0_7, %c0_8], %5 {strides = array<i32>} : memref<32x440xf32, #tpu.memory_space<vmem>>, vector<32x60xf32>,
    %cst_9 = arith.constant 0.000000e+00 : f32
    %7 = vector.broadcast %cst_9 : f32 to vector<32x60xf32>
    %c0_10 = arith.constant 0 : index
    %c380 = arith.constant 380 : index
    %8 = vector.load %arg7[%c0_10, %c380] : memref<32x440xf32, #tpu.memory_space<vmem>>, vector<32x60xf32>
    tpu.vector_store %arg7[%c0_10, %c380], %7 {strides = array<i32>} : memref<32x440xf32, #tpu.memory_space<vmem>>, vector<32x60xf32>,
    %cst_11 = arith.constant 0.000000e+00 : f32
    %9 = vector.broadcast %cst_11 : f32 to vector<24x60xf32>
    %c0_12 = arith.constant 0 : index
    %c0_13 = arith.constant 0 : index
    %10 = vector.load %arg8[%c0_12, %c0_13] : memref<24x440xf32, #tpu.memory_space<vmem>>, vector<24x60xf32>
    tpu.vector_store %arg8[%c0_12, %c0_13], %9 {strides = array<i32>} : memref<24x440xf32, #tpu.memory_space<vmem>>, vector<24x60xf32>,
    %cst_14 = arith.constant 0.000000e+00 : f32
    %11 = vector.broadcast %cst_14 : f32 to vector<24x60xf32>
    %c0_15 = arith.constant 0 : index
    %c380_16 = arith.constant 380 : index
    %12 = vector.load %arg8[%c0_15, %c380_16] : memref<24x440xf32, #tpu.memory_space<vmem>>, vector<24x60xf32>
    tpu.vector_store %arg8[%c0_15, %c380_16], %11 {strides = array<i32>} : memref<24x440xf32, #tpu.memory_space<vmem>>, vector<24x60xf32>,
    %c0_17 = arith.constant 0 : index
    %c0_18 = arith.constant 0 : index
    %c0_19 = arith.constant 0 : index
    %13 = vector.load %arg1[%c0_17, %c0_18, %c0_19] : memref<1x8x440xf32, #tpu.memory_space<vmem>>, vector<1x8x440xf32>
    %14 = vector.shape_cast %13 : vector<1x8x440xf32> to vector<8x440xf32>
    %15 = vector.extract_strided_slice %14 {offsets = [0, 60], sizes = [8, 320], strides = [1, 1]} : vector<8x440xf32> to vector<8x320xf32>
    %16 = tpu.concatenate %15, %0 in 0 : vector<8x320xf32>, vector<8x320xf32> -> vector<16x320xf32>
    %cst_20 = arith.constant dense<0.000000e+00> : vector<48x320xf32>
    %17 = tpu.matmul %2, %16, %cst_20 {dimension_numbers = #tpu.dot_dimension_numbers<[1], [0], [0], [1], [0, 0, 1, 1], [], []>} : vector<48x16xf32>, vector<16x320xf32>, vector<48x320xf32> -> vector<48x320xf32>
    %18 = vector.extract_strided_slice %17 {offsets = [0, 0], sizes = [16, 320], strides = [1, 1]} : vector<48x320xf32> to vector<16x320xf32>
    %19 = vector.extract_strided_slice %17 {offsets = [16, 0], sizes = [32, 320], strides = [1, 1]} : vector<48x320xf32> to vector<32x320xf32>
    %c0_21 = arith.constant 0 : index
    %c60 = arith.constant 60 : index
    %20 = vector.load %arg7[%c0_21, %c60] : memref<32x440xf32, #tpu.memory_space<vmem>>, vector<32x320xf32>
    tpu.vector_store %arg7[%c0_21, %c60], %19 {strides = array<i32>} : memref<32x440xf32, #tpu.memory_space<vmem>>, vector<32x320xf32>,
    %c0_22 = arith.constant 0 : index
    %c18 = arith.constant 18 : index
    %21 = vector.load %arg7[%c0_22, %c18] : memref<32x440xf32, #tpu.memory_space<vmem>>, vector<32x320xf32>
    %22 = vector.extract_strided_slice %14 {offsets = [0, 18], sizes = [8, 320], strides = [1, 1]} : vector<8x440xf32> to vector<8x320xf32>
    %c0_23 = arith.constant 0 : index
    %c19 = arith.constant 19 : index
    %23 = vector.load %arg7[%c0_23, %c19] : memref<32x440xf32, #tpu.memory_space<vmem>>, vector<32x320xf32>
    %24 = vector.extract_strided_slice %14 {offsets = [0, 19], sizes = [8, 320], strides = [1, 1]} : vector<8x440xf32> to vector<8x320xf32>
    %c0_24 = arith.constant 0 : index
    %c20 = arith.constant 20 : index
    %25 = vector.load %arg7[%c0_24, %c20] : memref<32x440xf32, #tpu.memory_space<vmem>>, vector<32x320xf32>
    %26 = vector.extract_strided_slice %14 {offsets = [0, 20], sizes = [8, 320], strides = [1, 1]} : vector<8x440xf32> to vector<8x320xf32>
    %c0_25 = arith.constant 0 : index
    %c21 = arith.constant 21 : index
    %27 = vector.load %arg7[%c0_25, %c21] : memref<32x440xf32, #tpu.memory_space<vmem>>, vector<32x320xf32>
    %28 = vector.extract_strided_slice %14 {offsets = [0, 21], sizes = [8, 320], strides = [1, 1]} : vector<8x440xf32> to vector<8x320xf32>
    %c0_26 = arith.constant 0 : index
    %c22 = arith.constant 22 : index
    %29 = vector.load %arg7[%c0_26, %c22] : memref<32x440xf32, #tpu.memory_space<vmem>>, vector<32x320xf32>
    %30 = vector.extract_strided_slice %14 {offsets = [0, 22], sizes = [8, 320], strides = [1, 1]} : vector<8x440xf32> to vector<8x320xf32>
    %c0_27 = arith.constant 0 : index
    %c38 = arith.constant 38 : index
    %31 = vector.load %arg7[%c0_27, %c38] : memref<32x440xf32, #tpu.memory_space<vmem>>, vector<32x320xf32>
    %32 = vector.extract_strided_slice %14 {offsets = [0, 38], sizes = [8, 320], strides = [1, 1]} : vector<8x440xf32> to vector<8x320xf32>
    %c0_28 = arith.constant 0 : index
    %c39 = arith.constant 39 : index
    %33 = vector.load %arg7[%c0_28, %c39] : memref<32x440xf32, #tpu.memory_space<vmem>>, vector<32x320xf32>
    %34 = vector.extract_strided_slice %14 {offsets = [0, 39], sizes = [8, 320], strides = [1, 1]} : vector<8x440xf32> to vector<8x320xf32>
    %c0_29 = arith.constant 0 : index
    %c40 = arith.constant 40 : index
    %35 = vector.load %arg7[%c0_29, %c40] : memref<32x440xf32, #tpu.memory_space<vmem>>, vector<32x320xf32>
    %36 = vector.extract_strided_slice %14 {offsets = [0, 40], sizes = [8, 320], strides = [1, 1]} : vector<8x440xf32> to vector<8x320xf32>
    %c0_30 = arith.constant 0 : index
    %c41 = arith.constant 41 : index
    %37 = vector.load %arg7[%c0_30, %c41] : memref<32x440xf32, #tpu.memory_space<vmem>>, vector<32x320xf32>
    %38 = vector.extract_strided_slice %14 {offsets = [0, 41], sizes = [8, 320], strides = [1, 1]} : vector<8x440xf32> to vector<8x320xf32>
    %c0_31 = arith.constant 0 : index
    %c42 = arith.constant 42 : index
    %39 = vector.load %arg7[%c0_31, %c42] : memref<32x440xf32, #tpu.memory_space<vmem>>, vector<32x320xf32>
    %40 = vector.extract_strided_slice %14 {offsets = [0, 42], sizes = [8, 320], strides = [1, 1]} : vector<8x440xf32> to vector<8x320xf32>
    %c0_32 = arith.constant 0 : index
    %c58 = arith.constant 58 : index
    %41 = vector.load %arg7[%c0_32, %c58] : memref<32x440xf32, #tpu.memory_space<vmem>>, vector<32x320xf32>
    %42 = vector.extract_strided_slice %14 {offsets = [0, 58], sizes = [8, 320], strides = [1, 1]} : vector<8x440xf32> to vector<8x320xf32>
    %c0_33 = arith.constant 0 : index
    %c59 = arith.constant 59 : index
    %43 = vector.load %arg7[%c0_33, %c59] : memref<32x440xf32, #tpu.memory_space<vmem>>, vector<32x320xf32>
    %44 = vector.extract_strided_slice %14 {offsets = [0, 59], sizes = [8, 320], strides = [1, 1]} : vector<8x440xf32> to vector<8x320xf32>
    %c0_34 = arith.constant 0 : index
    %c60_35 = arith.constant 60 : index
    %45 = vector.load %arg7[%c0_34, %c60_35] : memref<32x440xf32, #tpu.memory_space<vmem>>, vector<32x320xf32>
    %46 = vector.extract_strided_slice %14 {offsets = [0, 60], sizes = [8, 320], strides = [1, 1]} : vector<8x440xf32> to vector<8x320xf32>
    %c0_36 = arith.constant 0 : index
    %c61 = arith.constant 61 : index
    %47 = vector.load %arg7[%c0_36, %c61] : memref<32x440xf32, #tpu.memory_space<vmem>>, vector<32x320xf32>
    %48 = vector.extract_strided_slice %14 {offsets = [0, 61], sizes = [8, 320], strides = [1, 1]} : vector<8x440xf32> to vector<8x320xf32>
    %c0_37 = arith.constant 0 : index
    %c62 = arith.constant 62 : index
    %49 = vector.load %arg7[%c0_37, %c62] : memref<32x440xf32, #tpu.memory_space<vmem>>, vector<32x320xf32>
    %50 = vector.extract_strided_slice %14 {offsets = [0, 62], sizes = [8, 320], strides = [1, 1]} : vector<8x440xf32> to vector<8x320xf32>
    %c0_38 = arith.constant 0 : index
    %c78 = arith.constant 78 : index
    %51 = vector.load %arg7[%c0_38, %c78] : memref<32x440xf32, #tpu.memory_space<vmem>>, vector<32x320xf32>
    %52 = vector.extract_strided_slice %14 {offsets = [0, 78], sizes = [8, 320], strides = [1, 1]} : vector<8x440xf32> to vector<8x320xf32>
    %c0_39 = arith.constant 0 : index
    %c79 = arith.constant 79 : index
    %53 = vector.load %arg7[%c0_39, %c79] : memref<32x440xf32, #tpu.memory_space<vmem>>, vector<32x320xf32>
    %54 = vector.extract_strided_slice %14 {offsets = [0, 79], sizes = [8, 320], strides = [1, 1]} : vector<8x440xf32> to vector<8x320xf32>
    %c0_40 = arith.constant 0 : index
    %c80 = arith.constant 80 : index
    %55 = vector.load %arg7[%c0_40, %c80] : memref<32x440xf32, #tpu.memory_space<vmem>>, vector<32x320xf32>
    %56 = vector.extract_strided_slice %14 {offsets = [0, 80], sizes = [8, 320], strides = [1, 1]} : vector<8x440xf32> to vector<8x320xf32>
    %c0_41 = arith.constant 0 : index
    %c81 = arith.constant 81 : index
    %57 = vector.load %arg7[%c0_41, %c81] : memref<32x440xf32, #tpu.memory_space<vmem>>, vector<32x320xf32>
    %58 = vector.extract_strided_slice %14 {offsets = [0, 81], sizes = [8, 320], strides = [1, 1]} : vector<8x440xf32> to vector<8x320xf32>
    %c0_42 = arith.constant 0 : index
    %c82 = arith.constant 82 : index
    %59 = vector.load %arg7[%c0_42, %c82] : memref<32x440xf32, #tpu.memory_space<vmem>>, vector<32x320xf32>
    %60 = vector.extract_strided_slice %14 {offsets = [0, 82], sizes = [8, 320], strides = [1, 1]} : vector<8x440xf32> to vector<8x320xf32>
    %c0_43 = arith.constant 0 : index
    %c98 = arith.constant 98 : index
    %61 = vector.load %arg7[%c0_43, %c98] : memref<32x440xf32, #tpu.memory_space<vmem>>, vector<32x320xf32>
    %62 = vector.extract_strided_slice %14 {offsets = [0, 98], sizes = [8, 320], strides = [1, 1]} : vector<8x440xf32> to vector<8x320xf32>
    %c0_44 = arith.constant 0 : index
    %c99 = arith.constant 99 : index
    %63 = vector.load %arg7[%c0_44, %c99] : memref<32x440xf32, #tpu.memory_space<vmem>>, vector<32x320xf32>
    %64 = vector.extract_strided_slice %14 {offsets = [0, 99], sizes = [8, 320], strides = [1, 1]} : vector<8x440xf32> to vector<8x320xf32>
    %c0_45 = arith.constant 0 : index
    %c100 = arith.constant 100 : index
    %65 = vector.load %arg7[%c0_45, %c100] : memref<32x440xf32, #tpu.memory_space<vmem>>, vector<32x320xf32>
    %66 = vector.extract_strided_slice %14 {offsets = [0, 100], sizes = [8, 320], strides = [1, 1]} : vector<8x440xf32> to vector<8x320xf32>
    %c0_46 = arith.constant 0 : index
    %c101 = arith.constant 101 : index
    %67 = vector.load %arg7[%c0_46, %c101] : memref<32x440xf32, #tpu.memory_space<vmem>>, vector<32x320xf32>
    %68 = vector.extract_strided_slice %14 {offsets = [0, 101], sizes = [8, 320], strides = [1, 1]} : vector<8x440xf32> to vector<8x320xf32>
    %c0_47 = arith.constant 0 : index
    %c102 = arith.constant 102 : index
    %69 = vector.load %arg7[%c0_47, %c102] : memref<32x440xf32, #tpu.memory_space<vmem>>, vector<32x320xf32>
    %70 = vector.extract_strided_slice %14 {offsets = [0, 102], sizes = [8, 320], strides = [1, 1]} : vector<8x440xf32> to vector<8x320xf32>
    %71 = tpu.concatenate %21, %22, %23, %24, %25, %26, %27, %28, %29, %30, %31, %32, %33, %34, %35, %36 in 0 : vector<32x320xf32>, vector<8x320xf32>, vector<32x320xf32>, vector<8x320xf32>, vector<32x320xf32>, vector<8x320xf32>, vector<32x320xf32>, vector<8x320xf32>, vector<32x320xf32>, vector<8x320xf32>, vector<32x320xf32>, vector<8x320xf32>, vector<32x320xf32>, vector<8x320xf32>, vector<32x320xf32>, vector<8x320xf32> -> vector<320x320xf32>
    %72 = tpu.concatenate %37, %38, %39, %40, %41, %42, %43, %44, %45, %46, %47, %48, %49, %50, %51, %52 in 0 : vector<32x320xf32>, vector<8x320xf32>, vector<32x320xf32>, vector<8x320xf32>, vector<32x320xf32>, vector<8x320xf32>, vector<32x320xf32>, vector<8x320xf32>, vector<32x320xf32>, vector<8x320xf32>, vector<32x320xf32>, vector<8x320xf32>, vector<32x320xf32>, vector<8x320xf32>, vector<32x320xf32>, vector<8x320xf32> -> vector<320x320xf32>
    %73 = tpu.concatenate %53, %54, %55, %56, %57, %58, %59, %60, %61, %62, %63, %64, %65, %66, %67, %68 in 0 : vector<32x320xf32>, vector<8x320xf32>, vector<32x320xf32>, vector<8x320xf32>, vector<32x320xf32>, vector<8x320xf32>, vector<32x320xf32>, vector<8x320xf32>, vector<32x320xf32>, vector<8x320xf32>, vector<32x320xf32>, vector<8x320xf32>, vector<32x320xf32>, vector<8x320xf32>, vector<32x320xf32>, vector<8x320xf32> -> vector<320x320xf32>
    %74 = tpu.concatenate %69, %70, %0 in 0 : vector<32x320xf32>, vector<8x320xf32>, vector<8x320xf32> -> vector<48x320xf32>
    %75 = tpu.concatenate %71, %72, %73, %74 in 0 : vector<320x320xf32>, vector<320x320xf32>, vector<320x320xf32>, vector<48x320xf32> -> vector<1008x320xf32>
    %cst_48 = arith.constant dense<0.000000e+00> : vector<72x320xf32>
    %76 = tpu.matmul %3, %75, %cst_48 {dimension_numbers = #tpu.dot_dimension_numbers<[1], [0], [0], [1], [0, 0, 1, 1], [], []>} : vector<72x1008xf32>, vector<1008x320xf32>, vector<72x320xf32> -> vector<72x320xf32>
    %77 = vector.extract_strided_slice %76 {offsets = [0, 0], sizes = [24, 320], strides = [1, 1]} : vector<72x320xf32> to vector<24x320xf32>
    %78 = vector.extract_strided_slice %76 {offsets = [48, 0], sizes = [24, 320], strides = [1, 1]} : vector<72x320xf32> to vector<24x320xf32>
    %79 = vector.extract_strided_slice %76 {offsets = [24, 0], sizes = [24, 320], strides = [1, 1]} : vector<72x320xf32> to vector<24x320xf32>
    %80 = vector.broadcast %1 : vector<1x320xf32> to vector<24x320xf32>
    %81 = arith.mulf %79, %80 : vector<24x320xf32>
    %c0_49 = arith.constant 0 : index
    %c60_50 = arith.constant 60 : index
    %82 = vector.load %arg8[%c0_49, %c60_50] : memref<24x440xf32, #tpu.memory_space<vmem>>, vector<24x320xf32>
    tpu.vector_store %arg8[%c0_49, %c60_50], %81 {strides = array<i32>} : memref<24x440xf32, #tpu.memory_space<vmem>>, vector<24x320xf32>,
    %c0_51 = arith.constant 0 : index
    %c39_52 = arith.constant 39 : index
    %83 = vector.load %arg8[%c0_51, %c39_52] : memref<24x440xf32, #tpu.memory_space<vmem>>, vector<24x320xf32>
    %c0_53 = arith.constant 0 : index
    %c40_54 = arith.constant 40 : index
    %84 = vector.load %arg8[%c0_53, %c40_54] : memref<24x440xf32, #tpu.memory_space<vmem>>, vector<24x320xf32>
    %c0_55 = arith.constant 0 : index
    %c41_56 = arith.constant 41 : index
    %85 = vector.load %arg8[%c0_55, %c41_56] : memref<24x440xf32, #tpu.memory_space<vmem>>, vector<24x320xf32>
    %c0_57 = arith.constant 0 : index
    %c59_58 = arith.constant 59 : index
    %86 = vector.load %arg8[%c0_57, %c59_58] : memref<24x440xf32, #tpu.memory_space<vmem>>, vector<24x320xf32>
    %c0_59 = arith.constant 0 : index
    %c60_60 = arith.constant 60 : index
    %87 = vector.load %arg8[%c0_59, %c60_60] : memref<24x440xf32, #tpu.memory_space<vmem>>, vector<24x320xf32>
    %c0_61 = arith.constant 0 : index
    %c61_62 = arith.constant 61 : index
    %88 = vector.load %arg8[%c0_61, %c61_62] : memref<24x440xf32, #tpu.memory_space<vmem>>, vector<24x320xf32>
    %c0_63 = arith.constant 0 : index
    %c79_64 = arith.constant 79 : index
    %89 = vector.load %arg8[%c0_63, %c79_64] : memref<24x440xf32, #tpu.memory_space<vmem>>, vector<24x320xf32>
    %c0_65 = arith.constant 0 : index
    %c80_66 = arith.constant 80 : index
    %90 = vector.load %arg8[%c0_65, %c80_66] : memref<24x440xf32, #tpu.memory_space<vmem>>, vector<24x320xf32>
    %c0_67 = arith.constant 0 : index
    %c81_68 = arith.constant 81 : index
    %91 = vector.load %arg8[%c0_67, %c81_68] : memref<24x440xf32, #tpu.memory_space<vmem>>, vector<24x320xf32>
    %92 = tpu.concatenate %83, %84, %85, %86, %87, %88, %89, %90, %91, %0 in 0 : vector<24x320xf32>, vector<24x320xf32>, vector<24x320xf32>, vector<24x320xf32>, vector<24x320xf32>, vector<24x320xf32>, vector<24x320xf32>, vector<24x320xf32>, vector<24x320xf32>, vector<8x320xf32> -> vector<224x320xf32>
    %cst_69 = arith.constant dense<0.000000e+00> : vector<24x320xf32>
    %93 = tpu.matmul %4, %92, %cst_69 {dimension_numbers = #tpu.dot_dimension_numbers<[1], [0], [0], [1], [0, 0, 1, 1], [], []>} : vector<24x224xf32>, vector<224x320xf32>, vector<24x320xf32> -> vector<24x320xf32>
    %94 = tpu.concatenate %18, %77, %93, %78 in 0 : vector<16x320xf32>, vector<24x320xf32>, vector<24x320xf32>, vector<24x320xf32> -> vector<88x320xf32>
    %c0_70 = arith.constant 0 : index
    %c0_71 = arith.constant 0 : index
    %c0_72 = arith.constant 0 : index
    %95 = vector.load %arg6[%c0_70, %c0_71, %c0_72] : memref<1x88x320xf32, #tpu.memory_space<vmem>>, vector<1x88x320xf32>
    %96 = vector.shape_cast %95 : vector<1x88x320xf32> to vector<88x320xf32>
    %97 = vector.shape_cast %94 : vector<88x320xf32> to vector<1x88x320xf32>
    tpu.vector_store %arg6[%c0_70, %c0_71, %c0_72], %97 {strides = array<i32>} : memref<1x88x320xf32, #tpu.memory_space<vmem>>, vector<1x88x320xf32>,
    return
  }
  func.func @transform_0(%arg0: i32) -> (i32, i32, i32) {
    %c0_i32 = arith.constant 0 : i32
    %c0_i32_0 = arith.constant 0 : i32
    %c0_i32_1 = arith.constant 0 : i32
    return %arg0, %c0_i32, %c0_i32_0 : i32, i32, i32
  }
  func.func @transform_1(%arg0: i32) -> (i32, i32) {
    %c0_i32 = arith.constant 0 : i32
    %c0_i32_0 = arith.constant 0 : i32
    %c0_i32_1 = arith.constant 0 : i32
    return %c0_i32, %c0_i32_0 : i32, i32
  }
  func.func @transform_2(%arg0: i32) -> (i32, i32) {
    %c0_i32 = arith.constant 0 : i32
    %c0_i32_0 = arith.constant 0 : i32
    %c0_i32_1 = arith.constant 0 : i32
    return %c0_i32, %c0_i32_0 : i32, i32
  }
  func.func @transform_3(%arg0: i32) -> (i32, i32) {
    %c0_i32 = arith.constant 0 : i32
    %c0_i32_0 = arith.constant 0 : i32
    %c0_i32_1 = arith.constant 0 : i32
    return %c0_i32, %c0_i32_0 : i32, i32
  }
  func.func @transform_4(%arg0: i32) -> (i32, i32) {
    %c0_i32 = arith.constant 0 : i32
    %c0_i32_0 = arith.constant 0 : i32
    %c0_i32_1 = arith.constant 0 : i32
    return %c0_i32, %c0_i32_0 : i32, i32
  }
  func.func @transform_5(%arg0: i32) -> (i32, i32, i32) {
    %c0_i32 = arith.constant 0 : i32
    %c0_i32_0 = arith.constant 0 : i32
    %c0_i32_1 = arith.constant 0 : i32
    return %arg0, %c0_i32, %c0_i32_0 : i32, i32, i32
  }
}

</mosaic_0001>

<bundles_post_ra>
// kernel: tpu_custom_call.1
= control target key start
LH: loop header
LB: loop body
LE: loop exit
PB: predicated region body
PF: predicated region fallthrough
CT: control target
= control target key end

     0   :  { %10 = vsyncpa [#allocation5], 0  ;;  %s12114_s0 = inlined_call_operand.vmem [shape: f32[2,8,440], index: 0, kind: input, shape index: {}]   ;;  %s12115_s1 = inlined_call_operand.hbm [shape: f32[8,320], index: 1, kind: input, shape index: {}]   ;;  %s12116_s2 = inlined_call_operand.vmem [shape: f32[48,16], index: 2, kind: input, shape index: {}]   ;;  %s12117_s3 = inlined_call_operand.hbm [shape: f32[72,1008], index: 3, kind: input, shape index: {}]   ;;  %s12118_s4 = inlined_call_operand.hbm [shape: f32[24,224], index: 4, kind: input, shape index: {}]   ;;  %s12119_s5 = inlined_call_operand.hbm [shape: f32[2,88,320], index: 5, kind: output, shape index: {}]  }
   0x1   :  { %11 = vsyncpa [#allocation8], 0 }
   0x2   :  { %12 = vsyncpa [#allocation6], 0 }
   0x3   :  { %14 = vsyncpa [#allocation6 + $0x1], 0  ;;  %s5989_s18 = smov 0   ;;  %s5991_s19 = smov 0  }
   0x4   :  { %s5993_s20 = smov 0   ;;  %s5995_s21 = smov 0  }
   0x5 LB: > { %s6010_s22 = sadd.s32 4294967295, %s5924_s21   ;;  %s5383_s23 = sadd.s32 4294967294, %s5924_s21   ;;  %s5924_s21 = sphi %s5995_s21, %s13711_s21   ;;  %s5920_s20 = sphi %s5993_s20, %s13710_s20   ;;  %s5916_s19 = sphi %s5991_s19, %s13709_s19   ;;  %s5912_s18 = sphi %s5989_s18, %s13708_s18  }
   0x6   : > { %s6014_s24 = sadd.s32 1, %s5924_s21   ;;  %s137_s25 = sadd.s32 1, %s5920_s20 }
   0x7   : > { %s134_s26 = ssub.s32 %s5924_s21, %s6014_s24  ;;  %p147_p0 = scmp.ne.s32.totalorder %s5920_s20, %s5916_s19 }
   0x8   : > { %p135_p1 = scmp.eq.s32.totalorder %s134_s26, 0  ;;  %p148_p2 = scmp.eq.s32.totalorder %s6010_s22, 1 }
   0x9   : > { %p153_p3 = scmp.ne.s32.totalorder %s5916_s19, %s5912_s18  ;;  %p154_p4 = scmp.eq.s32.totalorder %s5383_s23, 1 }
   0xa   : > { %s6025_s27 = scalar_select %p135_p1, %s5920_s20, %s137_s25  }
   0xb   : > { %p6027_p5 = por %p148_p2, %p147_p0  ;;  %p6031_p6 = por %p154_p4, %p153_p3 }
   0xc   : > { %p5384_p7 = scmp.ge.s32.totalorder %s5924_s21, 1  ;;  %p161_p8 = scmp.lt.s32.totalorder %s5924_s21, 3 }
   0xd   : > { %s12559_s28 = scalar_select %p6027_p5, 1, 0 }
   0xe   : > { %s12560_s29 = scalar_select %p6031_p6, 1, 0 }
   0xf   : > { %p12120_p9 = scmp.eq.s32.totalorder %s6010_s22, 0  ;;  %p6038_p10 = pnand %p5384_p7, %p161_p8 }
  0x10   : > { %s5926_s6 = smov [#allocation7]   ;;  %s5927_s9 = smov [#allocation4]  }
  0x11   : > { %s187_s7 = sshll.u32 %s5926_s6, 4  ;;  %p5649_p11 = pneg %p6038_p10  ;;  %s188_s7 = int_to_ptr.vmem [resolvable:$true] %s187_s7 }
  0x12   : > { %s174_s10 = sshll.u32 %s5927_s9, 4  ;;  %s5928_s11 = smov [#allocation9]   ;;  %s175_s10 = int_to_ptr.vmem [resolvable:$true] %s174_s10 }
  0x13   : > { %p6046_p12 = pnand %p12120_p9, %p5649_p11  ;;  %s200_s12 = sshll.u32 %s5928_s11, 4  ;;  %s201_s12 = int_to_ptr.vmem [resolvable:$true] %s200_s12 }
  0x14   : > { %s5789_s13 = scalar_lea.vmem %s188_s7, 9216  ;;  %p5797_p3 = scmp.lt.s32.totalorder %s188_s7, %s188_s7 }
  0x15   : > { %p5780_p13 = pneg %p6046_p12  ;;  %p5790_p0 = scmp.ne.s32.totalorder %s188_s7, %s5789_s13 }
  0x16   : > { %p5798_p4 = scmp.lt.s32.totalorder %s5789_s13, %s5789_s13 }
  0x17   : > { %p5792_p1 = pnand %p5790_p0, %p5780_p13 }
  0x18   : > { %p5799_p7 = por %p5798_p4, %p5797_p3 }
  0x19   : > { %p5793_p2 = pneg %p5792_p1 }
  0x1b   : > { %p5800_p8 = pnand %p5799_p7, %p5793_p2 }
  0x1d   : > { %5803 = shalt.err (!%p5800_p8)
}
  0x1e   : > { %s5929_s14 = smov 1024   ;;  %s5930_s15 = smov 64  }
  0x1f   : > { %5655 = dma.hbm_to_vmem [thread:$0]  (!%p6046_p12), %s12117_s3, 9216, %s188_s7, [#allocation8], %s5929_s14, %s5929_s14, %s5930_s15  }
  0x20   : > { %s5815_s23 = scalar_lea.vmem %s175_s10, 384  ;;  %p5823_p9 = scmp.lt.s32.totalorder %s175_s10, %s175_s10 }
  0x21   : > { %p5816_p11 = scmp.ne.s32.totalorder %s175_s10, %s5815_s23  ;;  %p5824_p6 = scmp.lt.s32.totalorder %s5815_s23, %s5815_s23 }
  0x23   : > { %p5818_p0 = pnand %p5816_p11, %p5780_p13  ;;  %p5825_p3 = por %p5824_p6, %p5823_p9 }
  0x25   : > { %p5819_p1 = pneg %p5818_p0 }
  0x27   : > { %p5826_p2 = pnand %p5825_p3, %p5819_p1 }
  0x29   : > { %5829 = shalt.err (!%p5826_p2)
}
  0x2a   : > { %5652 = dma.hbm_to_vmem [thread:$0]  (!%p6046_p12), %s12115_s1, 384, %s175_s10, [#allocation5]  }
  0x2b   : > { %s5841_s6 = scalar_lea.vmem %s201_s12, 768  ;;  %p5849_p11 = scmp.lt.s32.totalorder %s201_s12, %s201_s12 }
  0x2c   : > { %p5842_p4 = scmp.ne.s32.totalorder %s201_s12, %s5841_s6  ;;  %p5850_p0 = scmp.lt.s32.totalorder %s5841_s6, %s5841_s6 }
  0x2e   : > { %p5844_p7 = pnand %p5842_p4, %p5780_p13  ;;  %p5851_p5 = por %p5850_p0, %p5849_p11 }
  0x30   : > { %p5845_p8 = pneg %p5844_p7 }
  0x32   : > { %p5852_p6 = pnand %p5851_p5, %p5845_p8 }
  0x34   : > { %5855 = shalt.err (!%p5852_p6)
}
  0x35   : > { %s5931_s7 = smov 256   ;;  %s5932_s9 = smov 16  }
  0x36   : > { %5658 = dma.hbm_to_vmem [thread:$0]  (!%p6046_p12), %s12118_s4, 768, %s201_s12, [#allocation8], %s5931_s7, %s5931_s7, %s5932_s9  }
  0x37   : > { %224 = sbr.rel (%p6038_p10) target bundleno = 3395 (0xd43), region = 40 }
  0x3c   : > { %p12563_p9 = scmp.eq.s32.totalorder %s6010_s22, 0 }
  0x3e   : > { %5899 = dma.done.wait (%p12563_p9), [#allocation5], 384   ;;  %p12564_p13 = pmov %p12563_p9 }
  0x3f   : > { %p12565_p5 = pmov %p12563_p9 }
  0x40   : > { %5901 = vsyncadd (%p12564_p13), [#allocation5], 4294966912 }
  0x41   : > { %5903 = dma.done.wait (%p12565_p5), [#allocation8], 9984   ;;  %p12566_p1 = pmov %p12565_p5 }
  0x42   : > { %p260_p3 = scmp.lt.s32.totalorder %s6010_s22, 1  ;;  %vm359_vm0 = vcmask 457728   ;;  %v12130_v0 = vmov 0.0   ;;  %vm352_vm1 = vcmask 490496   ;;  %v6115_v1 = vld [vmem:[#allocation4 + $0x10] sm:$0xff]  ;;  %v6117_v2 = vld [vmem:[#allocation4] sm:$0xff] }
  0x43   : > { %5905 = vsyncadd (%p12566_p1), [#allocation8], 4294957312  ;;  %360 = vst.msk [vmem:[#allocation2 + $0x18] sm:$0xff] %vm359_vm0, %v12130_v0  ;;  %500 = vmatprep.mubr.f32.mxu1 %v12130_v0  ;;  %s5934_s15 = smov 60   ;;  %v6126_v4 = vld [vmem:[#allocation4 + $0x8] sm:$0xff]  ;;  %s5935_s16 = smov 68  }
  0x44   : > { %362 = vst.msk [vmem:[#allocation2 + $0x38] sm:$0xff] %vm359_vm0, %v12130_v0  ;;  %364 = vst.msk [vmem:[#allocation2 + $0x58] sm:$0xff] %vm359_vm0, %v12130_v0  ;;  %s261_s30 = scalar_select %p260_p3, %s6010_s22, 1  ;;  %387 = vrot.lane.b32.xlu1 %v6115_v1, %s5934_s15  ;;  %383 = vrot.lane.b32.xlu0 %v6117_v2, %s5934_s15  ;;  %vm754_vm2 = vcmask 1039360   ;;  %vm1040_vm3 = vcmask 908288   ;;  %vm1081_vm4 = vcmask 900096  }
  0x45   : > { %366 = vst.msk [vmem:[#allocation2 + $0x78] sm:$0xff] %vm359_vm0, %v12130_v0  ;;  %371 = vst.msk [vmem:[#allocation3 + $0x18] sm:$0xff] %vm359_vm0, %v12130_v0  ;;  %s5936_s17 = smov 127   ;;  %s5937_s23 = smov 126   ;;  %vm1122_vm5 = vcmask 891904   ;;  %vm917_vm6 = vcmask 883712  }
  0x46   : > { %373 = vst.msk [vmem:[#allocation3 + $0x38] sm:$0xff] %vm359_vm0, %v12130_v0  ;;  %375 = vst.msk [vmem:[#allocation3 + $0x58] sm:$0xff] %vm359_vm0, %v12130_v0  ;;  %s5434_s8 = sshll.u32 %s261_s30, 5  ;;  %s5938_s25 = smov 125   ;;  %vm958_vm7 = vcmask 875520   ;;  %vm1175_vm8 = vcmask 744448  }
  0x47   : > { %353 = vst.msk [vmem:[#allocation2] sm:$0xff] %vm352_vm1, %v12130_v0  ;;  %354 = vst.msk [vmem:[#allocation2 + $0x20] sm:$0xff] %vm352_vm1, %v12130_v0  ;;  %s6113_s14 = scalar_lea.vmem %s12114_s0, %s5434_s8  ;;  %s5939_s26 = smov 124   ;;  %vm406_vm9 = vcmask 556032   ;;  %vm417_vm10 = vcmask 130048   ;;  %vm357_vm11 = vcmask 1048544  }
  0x48   : > { %355 = vst.msk [vmem:[#allocation2 + $0x40] sm:$0xff] %vm352_vm1, %v12130_v0  ;;  %356 = vst.msk [vmem:[#allocation2 + $0x60] sm:$0xff] %vm352_vm1, %v12130_v0  ;;  %v6124_v3 = vld [vmem:[%s6113_s14] sm:$0xff]  ;;  %385 = vrot.lane.b32.xlu0 %v6126_v4, %s5934_s15  ;;  %v6133_v5 = vld [vmem:[%s6113_s14 + $0x10] sm:$0xff]  ;;  %s5940_s6 = smov 108   ;;  %s5941_s7 = smov 107  }
  0x49   : > { %367 = vst.msk [vmem:[#allocation3] sm:$0xff] %vm352_vm1, %v12130_v0  ;;  %368 = vst.msk [vmem:[#allocation3 + $0x20] sm:$0xff] %vm352_vm1, %v12130_v0  ;;  %394 = vrot.lane.b32.xlu1 %v6124_v3, %s5935_s16  ;;  %v6136_v6 = vld [vmem:[%s6113_s14 + $0x8] sm:$0xff]  ;;  %s5942_s9 = smov 106   ;;  %s5943_s11 = smov 111   ;;  %v6227_v11 = vld [vmem:[%s6113_s14 + $0x18] sm:$0xff] }
  0x4a   : > { %369 = vst.msk [vmem:[#allocation3 + $0x40] sm:$0xff] %vm352_vm1, %v12130_v0  ;;  %s12126_s13 = smov 110   ;;  %s12128_s30 = smov 109   ;;  %v6202_v7 = vld [vmem:[#allocation2 + $0x18] sm:$0xff]  ;;  %vm5244_vm12 = vcmask 523264   ;;  %vm688_vm13 = vcmask 1048032  }
  0x4b   : > { %s12124_s8 = smov 91   ;;  %v6208_v8 = vld [vmem:[#allocation2 + $0x38] sm:$0xff]  ;;  %s5947_s10 = smov 102   ;;  %vm691_vm14 = vcmask 1014784   ;;  %vm795_vm15 = vcmask 1031168   ;;  %vm836_vm0 = vcmask 1022976  }
  0x4c   : > { %396 = vrot.lane.b32.xlu0 %v6136_v6, %s5935_s16  ;;  %v6214_v9 = vld [vmem:[#allocation2 + $0x58] sm:$0xff]  ;;  %s12122_s12 = smov 105   ;;  %p13706_p12 = scmp.ne.s32.totalorder %s12559_s28, 0 }
  0x4d   : > { %398 = vrot.lane.b32.xlu1 %v6133_v5, %s5935_s16  ;;  %v6220_v10 = vld [vmem:[#allocation2 + $0x78] sm:$0xff] }
  0x50   : > { %765 = vrot.lane.b32.xlu0 %v6136_v6, %s5936_s17 }
  0x51   : > { %763 = vrot.lane.b32.xlu1 %v6124_v3, %s5936_s17 }
  0x54   : > { %804 = vrot.lane.b32.xlu0 %v6124_v3, %s5937_s23 }
  0x55   : > { %767 = vrot.lane.b32.xlu1 %v6133_v5, %s5936_s17 }
  0x58   : > { %808 = vrot.lane.b32.xlu0 %v6133_v5, %s5937_s23 }
  0x59   : > { %806 = vrot.lane.b32.xlu1 %v6136_v6, %s5937_s23 }
  0x5c   : > { %847 = vrot.lane.b32.xlu0 %v6136_v6, %s5938_s25 }
  0x5d   : > { %845 = vrot.lane.b32.xlu1 %v6124_v3, %s5938_s25 }
  0x60   : > { %885 = vrot.lane.b32.xlu0 %v6124_v3, %s5939_s26 }
  0x61   : > { %849 = vrot.lane.b32.xlu1 %v6133_v5, %s5938_s25 }
  0x64   : > { %889 = vrot.lane.b32.xlu0 %v6133_v5, %s5939_s26 }
  0x65   : > { %887 = vrot.lane.b32.xlu1 %v6136_v6, %s5939_s26 }
  0x68   : > { %928 = vrot.lane.b32.xlu0 %v6136_v6, %s5940_s6 }
  0x69   : > { %926 = vrot.lane.b32.xlu1 %v6124_v3, %s5940_s6 }
  0x6c   : > { %967 = vrot.lane.b32.xlu0 %v6124_v3, %s5941_s7 }
  0x6d   : > { %930 = vrot.lane.b32.xlu1 %v6133_v5, %s5940_s6 }
  0x70   : > { %971 = vrot.lane.b32.xlu0 %v6133_v5, %s5941_s7 }
  0x71   : > { %969 = vrot.lane.b32.xlu1 %v6136_v6, %s5941_s7 }
  0x74   : > { %1010 = vrot.lane.b32.xlu0 %v6136_v6, %s5942_s9 }
  0x75   : > { %1008 = vrot.lane.b32.xlu1 %v6124_v3, %s5942_s9 }
  0x78   : > { %1049 = vrot.lane.b32.xlu0 %v6124_v3, %s5943_s11 }
  0x79   : > { %1012 = vrot.lane.b32.xlu1 %v6133_v5, %s5942_s9 }
  0x7c   : > { %1053 = vrot.lane.b32.xlu0 %v6133_v5, %s5943_s11 }
  0x7d   : > { %1051 = vrot.lane.b32.xlu1 %v6136_v6, %s5943_s11 }
  0x80   : > { %1092 = vrot.lane.b32.xlu0 %v6136_v6, %s12126_s13 }
  0x81   : > { %1090 = vrot.lane.b32.xlu1 %v6124_v3, %s12126_s13 }
  0x84   : > { %1131 = vrot.lane.b32.xlu0 %v6124_v3, %s12128_s30 }
  0x85   : > { %1094 = vrot.lane.b32.xlu1 %v6133_v5, %s12126_s13  ;;  %s5949_s13 = smov 67  }
  0x88   : > { %1135 = vrot.lane.b32.xlu0 %v6133_v5, %s12128_s30 }
  0x89   : > { %1133 = vrot.lane.b32.xlu1 %v6136_v6, %s12128_s30 }
  0x8c   : > { %1149 = vrot.lane.b32.xlu0 %v6202_v7, %s12124_s8 }
  0x8d   : > { %1189 = vrot.lane.b32.xlu1 %v6124_v3, %s12124_s8 }
  0x90   : > { %1157 = vrot.lane.b32.xlu0 %v6208_v8, %s12124_s8 }
  0x91   : > { %1193 = vrot.lane.b32.xlu1 %v6133_v5, %s12124_s8 }
  0x94   : > { %1165 = vrot.lane.b32.xlu0 %v6214_v9, %s12124_s8 }
  0x95   : > { %1200 = vrot.lane.b32.xlu1 %v6202_v7, %s5936_s17 }
  0x98   : > { %1173 = vrot.lane.b32.xlu0 %v6220_v10, %s12124_s8 }
  0x99   : > { %1204 = vrot.lane.b32.xlu1 %v6214_v9, %s5936_s17 }
  0x9c   : > { %1191 = vrot.lane.b32.xlu0 %v6136_v6, %s12124_s8 }
  0x9d   : > { %1212 = vrot.lane.b32.xlu1 %v6227_v11, %s5936_s17 }
  0xa0   : > { %1195 = vrot.lane.b32.xlu0 %v6227_v11, %s12124_s8 }
  0xa1   : > { %1217 = vrot.lane.b32.xlu1 %v6208_v8, %s5937_s23 }
  0xa4   : > { %1202 = vrot.lane.b32.xlu0 %v6208_v8, %s5936_s17 }
  0xa5   : > { %1221 = vrot.lane.b32.xlu1 %v6220_v10, %s5937_s23 }
  0xa8   : > { %1206 = vrot.lane.b32.xlu0 %v6220_v10, %s5936_s17 }
  0xa9   : > { %1230 = vrot.lane.b32.xlu1 %v6202_v7, %s5938_s25 }
  0xac   : > { %1215 = vrot.lane.b32.xlu0 %v6202_v7, %s5937_s23 }
  0xad   : > { %1234 = vrot.lane.b32.xlu1 %v6214_v9, %s5938_s25 }
  0xb0   : > { %1219 = vrot.lane.b32.xlu0 %v6214_v9, %s5937_s23 }
  0xb4   : > { %1227 = vrot.lane.b32.xlu0 %v6227_v11, %s5937_s23 }
  0xb6   : > { %v388_v12 = vpop.permute.xlu1 %387  ;;  %v384_v13 = vpop.permute.xlu0 %383 }
  0xb8   : > { %1232 = vrot.lane.b32.xlu0 %v6208_v8, %s5938_s25 }
  0xba   : > { %v386_v15 = vpop.permute.xlu0 %385 }
  0xbb   : > { %v6255_v14 = vpop.permute.xlu1 %394  ;;  %v389_v16 = vsel %vm352_vm1, %v384_v13, %v386_v15  ;;  %v390_v19 = vsel %vm352_vm1, %v386_v15, %v388_v12 }
  0xbc   : > { %400 = vrot.lane.b32.xlu0 %v384_v13, %s5935_s16  ;;  %402 = vrot.lane.b32.xlu1 %v389_v16, %s5935_s16 }
  0xbe   : > { %v6262_v18 = vpop.permute.xlu0 %396 }
  0xbf   : > { %v6260_v17 = vpop.permute.xlu1 %398 }
  0xc0   : > { %404 = vrot.lane.b32.xlu0 %v390_v19, %s5935_s16  ;;  %1242 = vrot.lane.b32.xlu1 %v6227_v11, %s5938_s25  ;;  %s12658_s16 = smov 109  }
  0xc2   : > { %v6270_v21 = vpop.permute.xlu0 %765 }
  0xc3   : > { %v6268_v20 = vpop.permute.xlu1 %763 }
  0xc4   : > { %1236 = vrot.lane.b32.xlu0 %v6220_v10, %s5938_s25  ;;  %1247 = vrot.lane.b32.xlu1 %v6208_v8, %s12128_s30  ;;  %v6375_v51 = vsel %vm754_vm2, %v6268_v20, %v6270_v21 }
  0xc5   : > { %12585 = vst [vmem:[#allocation32_spill] sm:$0xff] %v6375_v51 }
  0xc6   : > { %v6278_v23 = vpop.permute.xlu0 %804 }
  0xc7   : > { %v6276_v22 = vpop.permute.xlu1 %767  ;;  %12568 = vst [vmem:[#allocation15_spill] sm:$0xff] %v6278_v23 }
  0xc8   : > { %12567 = vst [vmem:[#allocation14_spill] sm:$0xff] %v6276_v22  ;;  %1245 = vrot.lane.b32.xlu0 %v6202_v7, %s12128_s30  ;;  %1251 = vrot.lane.b32.xlu1 %v6220_v10, %s12128_s30  ;;  %v6364_v48 = vsel %vm754_vm2, %v6270_v21, %v6276_v22 }
  0xc9   : > { %12583 = vst [vmem:[#allocation30_spill] sm:$0xff] %v6364_v48 }
  0xca   : > { %v6286_v25 = vpop.permute.xlu0 %808 }
  0xcb   : > { %v6284_v24 = vpop.permute.xlu1 %806  ;;  %12570 = vst [vmem:[#allocation17_spill] sm:$0xff] %v6286_v25 }
  0xcc   : > { %12569 = vst [vmem:[#allocation16_spill] sm:$0xff] %v6284_v24  ;;  %1249 = vrot.lane.b32.xlu0 %v6214_v9, %s12128_s30  ;;  %1260 = vrot.lane.b32.xlu1 %v6202_v7, %s5940_s6 }
  0xce   : > { %v6294_v27 = vpop.permute.xlu0 %847 }
  0xcf   : > { %v6292_v26 = vpop.permute.xlu1 %845  ;;  %12572 = vst [vmem:[#allocation19_spill] sm:$0xff] %v6294_v27 }
  0xd0   : > { %12571 = vst [vmem:[#allocation18_spill] sm:$0xff] %v6292_v26  ;;  %1257 = vrot.lane.b32.xlu0 %v6227_v11, %s12128_s30  ;;  %1264 = vrot.lane.b32.xlu1 %v6214_v9, %s5940_s6  ;;  %s12172_s30 = sand.u32 1, %s5916_s19  }
  0xd1   : > { %s5633_s8 = smul.u32 264, %s12172_s30  ;;  %s12661_s30 = smov 105  }
  0xd2   : > { %v6302_v29 = vpop.permute.xlu0 %885 }
  0xd3   : > { %v6300_v28 = vpop.permute.xlu1 %849  ;;  %12574 = vst [vmem:[#allocation21_spill] sm:$0xff] %v6302_v29 }
  0xd4   : > { %12573 = vst [vmem:[#allocation20_spill] sm:$0xff] %v6300_v28  ;;  %1262 = vrot.lane.b32.xlu0 %v6208_v8, %s5940_s6  ;;  %1272 = vrot.lane.b32.xlu1 %v6227_v11, %s5940_s6 }
  0xd6   : > { %v6310_v31 = vpop.permute.xlu0 %889 }
  0xd7   : > { %v6308_v30 = vpop.permute.xlu1 %887  ;;  %12576 = vst [vmem:[#allocation23_spill] sm:$0xff] %v6310_v31 }
  0xd8   : > { %12575 = vst [vmem:[#allocation22_spill] sm:$0xff] %v6308_v30  ;;  %1266 = vrot.lane.b32.xlu0 %v6220_v10, %s5940_s6  ;;  %1277 = vrot.lane.b32.xlu1 %v6208_v8, %s5941_s7 }
  0xda   : > { %v6318_v33 = vpop.permute.xlu0 %928 }
  0xdb   : > { %v6316_v32 = vpop.permute.xlu1 %926 }
  0xdc   : > { %1275 = vrot.lane.b32.xlu0 %v6202_v7, %s5941_s7  ;;  %1281 = vrot.lane.b32.xlu1 %v6220_v10, %s5941_s7 }
  0xde   : > { %v6326_v35 = vpop.permute.xlu0 %967 }
  0xdf   : > { %v6324_v34 = vpop.permute.xlu1 %930 }
  0xe0   : > { %12577 = vst [vmem:[#allocation24_spill] sm:$0xff] %v6324_v34  ;;  %1279 = vrot.lane.b32.xlu0 %v6214_v9, %s5941_s7  ;;  %1290 = vrot.lane.b32.xlu1 %v6202_v7, %s5942_s9 }
  0xe2   : > { %v6334_v37 = vpop.permute.xlu0 %971 }
  0xe3   : > { %v6332_v36 = vpop.permute.xlu1 %969  ;;  %12578 = vst [vmem:[#allocation25_spill] sm:$0xff] %v6334_v37 }
  0xe4   : > { %1287 = vrot.lane.b32.xlu0 %v6227_v11, %s5941_s7  ;;  %1294 = vrot.lane.b32.xlu1 %v6214_v9, %s5942_s9  ;;  %v6460_v13 = vsel %vm958_vm7, %v6332_v36, %v6334_v37 }
  0xe5   : > { %12599 = vst [vmem:[#allocation46_spill] sm:$0xff] %v6460_v13 }
  0xe6   : > { %v6342_v39 = vpop.permute.xlu0 %1010 }
  0xe7   : > { %v6340_v38 = vpop.permute.xlu1 %1008  ;;  %12580 = vst [vmem:[#allocation27_spill] sm:$0xff] %v6342_v39 }
  0xe8   : > { %12579 = vst [vmem:[#allocation26_spill] sm:$0xff] %v6340_v38  ;;  %1292 = vrot.lane.b32.xlu0 %v6208_v8, %s5942_s9  ;;  %1302 = vrot.lane.b32.xlu1 %v6227_v11, %s5942_s9  ;;  %v6439_v8 = vsel %vm958_vm7, %v6326_v35, %v6332_v36 }
  0xe9   : > { %12594 = vst [vmem:[#allocation41_spill] sm:$0xff] %v6439_v8 }
  0xea   : > { %v1050_v41 = vpop.permute.xlu0 %1049 }
  0xeb   : > { %v6348_v40 = vpop.permute.xlu1 %1012 }
  0xec   : > { %12581 = vst [vmem:[#allocation28_spill] sm:$0xff] %v6348_v40  ;;  %1296 = vrot.lane.b32.xlu0 %v6220_v10, %s5942_s9  ;;  %1307 = vrot.lane.b32.xlu1 %v6126_v4, %s5947_s10  ;;  %v6425_v4 = vsel %vm917_vm6, %v6318_v33, %v6324_v34 }
  0xed   : > { %12592 = vst [vmem:[#allocation39_spill] sm:$0xff] %v6425_v4 }
  0xee   : > { %v1054_v43 = vpop.permute.xlu0 %1053 }
  0xef   : > { %v1052_v42 = vpop.permute.xlu1 %1051 }
  0xf0   : > { %1305 = vrot.lane.b32.xlu0 %v6117_v2, %s5947_s10  ;;  %1338 = vrot.lane.b32.xlu1 %v6124_v3, %s12122_s12  ;;  %v1055_v52 = vsel %vm1040_vm3, %v1050_v41, %v1052_v42  ;;  %v1056_v57 = vsel %vm1040_vm3, %v1052_v42, %v1054_v43 }
  0xf2   : > { %v1093_v45 = vpop.permute.xlu0 %1092 }
  0xf3   : > { %v1091_v44 = vpop.permute.xlu1 %1090 }
  0xf4   : > { %1309 = vrot.lane.b32.xlu0 %v6115_v1, %s5947_s10  ;;  %1342 = vrot.lane.b32.xlu1 %v6133_v5, %s12122_s12  ;;  %v6399_v60 = vsel %vm1081_vm4, %v1091_v44, %v1093_v45  ;;  %s12659_s10 = smov 110  }
  0xf5   : > { %12587 = vst [vmem:[#allocation34_spill] sm:$0xff] %v6399_v60 }
  0xf6   : > { %v1132_v47 = vpop.permute.xlu0 %1131 }
  0xf7   : > { %v6359_v46 = vpop.permute.xlu1 %1094 }
  0xf8   : > { %12582 = vst [vmem:[#allocation29_spill] sm:$0xff] %v6359_v46  ;;  %1340 = vrot.lane.b32.xlu0 %v6136_v6, %s12122_s12  ;;  %1370 = vrot.lane.b32.xlu1 %v6364_v48, %s12122_s12  ;;  %v6391_v58 = vsel %vm1081_vm4, %v1093_v45, %v6359_v46  ;;  %v6434_v6 = vsel %vm917_vm6, %v6316_v32, %v6318_v33 }
  0xf9   : > { %12586 = vst [vmem:[#allocation33_spill] sm:$0xff] %v6391_v58  ;;  %12593 = vst [vmem:[#allocation40_spill] sm:$0xff] %v6434_v6 }
  0xfa   : > { %v6370_v50 = vpop.permute.xlu0 %1135 }
  0xfb   : > { %v1134_v49 = vpop.permute.xlu1 %1133  ;;  %12584 = vst [vmem:[#allocation31_spill] sm:$0xff] %v6370_v50 }
  0xfc   : > { %1368 = vrot.lane.b32.xlu0 %v6375_v51, %s12122_s12  ;;  %1398 = vrot.lane.b32.xlu1 %v1055_v52, %s12122_s12  ;;  %v6402_v61 = vsel %vm1122_vm5, %v1132_v47, %v1134_v49  ;;  %v6420_v3 = vsel %vm1122_vm5, %v1134_v49, %v6370_v50  ;;  %v408_v49 = vsel %vm406_vm9, %v6262_v18, %v6260_v17  ;;  %v268_v52 = vld [vmem:[%s12116_s2] sm:$0xff] }
  0xfd   : > { %12588 = vst [vmem:[#allocation35_spill] sm:$0xff] %v6402_v61  ;;  %12591 = vst [vmem:[#allocation38_spill] sm:$0xff] %v6420_v3 }
  0xfe   : > { %v6381_v54 = vpop.permute.xlu0 %1149 }
  0xff   : > { %v1190_v53 = vpop.permute.xlu1 %1189 }
 0x100   : > { %1372 = vrot.lane.b32.xlu0 %v6276_v22, %s12122_s12  ;;  %1402 = vrot.lane.b32.xlu1 %v1054_v43, %s12122_s12 }
 0x102   : > { %v6386_v55 = vpop.permute.xlu0 %1157 }
 0x103   : > { %v1194_v56 = vpop.permute.xlu1 %1193 }
 0x104   : > { %1400 = vrot.lane.b32.xlu0 %v1056_v57, %s12122_s12  ;;  %1430 = vrot.lane.b32.xlu1 %v6391_v58, %s12122_s12  ;;  %v273_v57 = vld [vmem:[%s12116_s2 + $0x28] sm:$0xff] }
 0x106   : > { %v6396_v59 = vpop.permute.xlu0 %1165 }
 0x107   : > { %v6408_v62 = vpop.permute.xlu1 %1200 }
 0x108   : > { %1428 = vrot.lane.b32.xlu0 %v6399_v60, %s12122_s12  ;;  %1458 = vrot.lane.b32.xlu1 %v6402_v61, %s12122_s12  ;;  %12589 = vst [vmem:[#allocation36_spill] sm:$0xff] %v6408_v62 }
 0x10a   : > { %v6410_v63 = vpop.permute.xlu0 %1173 }
 0x10b   : > { %v6416_v2 = vpop.permute.xlu1 %1204 }
 0x10c   : > { %1432 = vrot.lane.b32.xlu0 %v6359_v46, %s12122_s12  ;;  %1462 = vrot.lane.b32.xlu1 %v6370_v50, %s12122_s12  ;;  %12590 = vst [vmem:[#allocation37_spill] sm:$0xff] %v6416_v2 }
 0x10e   : > { %v1192_v1 = vpop.permute.xlu0 %1191 }
 0x10f   : > { %v6445_v9 = vpop.permute.xlu1 %1212  ;;  %v1198_v15 = vsel %vm1175_vm8, %v1192_v1, %v1194_v56  ;;  %v1197_v19 = vsel %vm1175_vm8, %v1190_v53, %v1192_v1  ;;  %v407_v53 = vsel %vm406_vm9, %v6255_v14, %v6262_v18  ;;  %v270_v14 = vld [vmem:[%s12116_s2 + $0x10] sm:$0xff]  ;;  %v271_v18 = vld [vmem:[%s12116_s2 + $0x18] sm:$0xff] }
 0x110   : > { %1460 = vrot.lane.b32.xlu0 %v6420_v3, %s12122_s12  ;;  %1490 = vrot.lane.b32.xlu1 %v6425_v4, %s12122_s12  ;;  %12595 = vst [vmem:[#allocation42_spill] sm:$0xff] %v6445_v9 }
 0x112   : > { %v1196_v5 = vpop.permute.xlu0 %1195 }
 0x113   : > { %v6453_v11 = vpop.permute.xlu1 %1217  ;;  %v1199_v32 = vsel %vm1175_vm8, %v1194_v56, %v1196_v5  ;;  %v269_v56 = vld [vmem:[%s12116_s2 + $0x8] sm:$0xff] }
 0x114   : > { %1488 = vrot.lane.b32.xlu0 %v6434_v6, %s12122_s12  ;;  %1518 = vrot.lane.b32.xlu1 %v6439_v8, %s12122_s12  ;;  %12597 = vst [vmem:[#allocation44_spill] sm:$0xff] %v6453_v11 }
 0x116   : > { %v6447_v10 = vpop.permute.xlu0 %1202 }
 0x117   : > { %12596 = vst [vmem:[#allocation43_spill] sm:$0xff] %v6447_v10  ;;  %v6469_v20 = vpop.permute.xlu1 %1221 }
 0x118   : > { %1492 = vrot.lane.b32.xlu0 %v6324_v34, %s12122_s12  ;;  %1522 = vrot.lane.b32.xlu1 %v6334_v37, %s12122_s12  ;;  %12601 = vst [vmem:[#allocation48_spill] sm:$0xff] %v6469_v20 }
 0x11a   : > { %v6455_v12 = vpop.permute.xlu0 %1206 }
 0x11b   : > { %12598 = vst [vmem:[#allocation45_spill] sm:$0xff] %v6455_v12  ;;  %v6476_v33 = vpop.permute.xlu1 %1230 }
 0x11c   : > { %1520 = vrot.lane.b32.xlu0 %v6460_v13, %s12122_s12  ;;  %1550 = vrot.lane.b32.xlu1 %v1198_v15, %s12122_s12  ;;  %12603 = vst [vmem:[#allocation50_spill] sm:$0xff] %v6476_v33 }
 0x11e   : > { %v6466_v16 = vpop.permute.xlu0 %1215 }
 0x11f   : > { %12600 = vst [vmem:[#allocation47_spill] sm:$0xff] %v6466_v16  ;;  %v6482_v41 = vpop.permute.xlu1 %1234 }
 0x120   : > { %1548 = vrot.lane.b32.xlu0 %v1197_v19, %s12122_s12  ;;  %12606 = vst [vmem:[#allocation53_spill] sm:$0xff] %v6482_v41 }
 0x122   : > { %v6472_v21 = vpop.permute.xlu0 %1219 }
 0x123   : > { %12602 = vst [vmem:[#allocation49_spill] sm:$0xff] %v6472_v21 }
 0x124   : > { %1552 = vrot.lane.b32.xlu0 %v1199_v32, %s12122_s12  ;;  %s6550_s12 = scalar_lea.vmem [#allocation10], %s5633_s8  ;;  %s12660_s8 = smov 91  }
 0x126   : > { %v6478_v35 = vpop.permute.xlu0 %1227 }
 0x127   : > { %12604 = vst [vmem:[#allocation51_spill] sm:$0xff] %v6478_v35 }
 0x128   : > { %1641 = vrot.lane.b32.xlu0 %v6202_v7, %s5949_s13 }
 0x12a   : > { %v6480_v36 = vpop.permute.xlu0 %1232 }
 0x12b   : > { %12605 = vst [vmem:[#allocation52_spill] sm:$0xff] %v6480_v36 }
 0x12e   : > { %v401_v42 = vpop.permute.xlu0 %400  ;;  %v403_v43 = vpop.permute.xlu1 %402 }
 0x12f   : > { %v409_v47 = vsel %vm406_vm9, %v401_v42, %v403_v43 }
 0x132   : > { %v405_v44 = vpop.permute.xlu0 %404  ;;  %v6531_v15 = vpop.permute.xlu1 %1242 }
 0x133   : > { %v410_v45 = vsel %vm406_vm9, %v403_v43, %v405_v44  ;;  %12609 = vst [vmem:[#allocation56_spill] sm:$0xff] %v6531_v15  ;;  %vm1955_vm9 = vcmask 547840  }
 0x134   : > { %464 = vmatprep.subr.mxu1 %v410_v45 }
 0x135   : > { %465 = vmatpush1.msra.mxu1 %v409_v47 }
 0x136   : > { %466 = vmatprep.subr.mxu1 %v408_v49  ;;  %v6527_v1 = vpop.permute.xlu0 %1236  ;;  %v6535_v32 = vpop.permute.xlu1 %1247 }
 0x137   : > { %467 = vmatpush1.msra.mxu1 %v407_v53  ;;  %12607 = vst [vmem:[#allocation54_spill] sm:$0xff] %v6527_v1  ;;  %12611 = vst [vmem:[#allocation58_spill] sm:$0xff] %v6535_v32 }
 0x138   : > { %5395 = vmatmul.mubr.msk.f32.vlgmr.msra.gmra.mxu1 %vm417_vm10, %v268_v52  ;;  %5620 = vmatprep.subr.mxu1 %v405_v44 }
 0x139   : > { %5621 = vmatpush3.msra.mxu1 %v405_v44  ;;  %506 = vmatprep.mubr.f32.mxu1 %v12130_v0 }
 0x13a   : > { %5622 = vmatprep.subr.mxu1 %v6260_v17  ;;  %v6529_v5 = vpop.permute.xlu0 %1245  ;;  %v6540_v43 = vpop.permute.xlu1 %1251 }
 0x13b   : > { %5623 = vmatpush3.msra.mxu1 %v6260_v17  ;;  %v272_v17 = vld [vmem:[%s12116_s2 + $0x20] sm:$0xff]  ;;  %12608 = vst [vmem:[#allocation55_spill] sm:$0xff] %v6529_v5  ;;  %12613 = vst [vmem:[#allocation60_spill] sm:$0xff] %v6540_v43 }
 0x13c   : > { %5396 = vmatmul.mubr.msk.f32.gmra.mxu1 %vm417_vm10, %v269_v56 }
 0x13d   : > { %512 = vmatprep.mubr.f32.mxu1 %v12130_v0 }
 0x13e   : > { %v6533_v19 = vpop.permute.xlu0 %1249  ;;  %v6546_v7 = vpop.permute.xlu1 %1260 }
 0x13f   : > { %12610 = vst [vmem:[#allocation57_spill] sm:$0xff] %v6533_v19  ;;  %12615 = vst [vmem:[#allocation62_spill] sm:$0xff] %v6546_v7 }
 0x140   : > { %5397 = vmatmul.mubr.msk.f32.gmra.mxu1 %vm417_vm10, %v270_v14 }
 0x141   : > { %518 = vmatprep.mubr.f32.mxu1 %v12130_v0 }
 0x142   : > { %v6537_v42 = vpop.permute.xlu0 %1257  ;;  %v6554_v53 = vpop.permute.xlu1 %1264 }
 0x143   : > { %12612 = vst [vmem:[#allocation59_spill] sm:$0xff] %v6537_v42  ;;  %12617 = vst [vmem:[#allocation64_spill] sm:$0xff] %v6554_v53 }
 0x144   : > { %5398 = vmatmul.mubr.msk.f32.gmra.mxu1 %vm417_vm10, %v271_v18 }
 0x145   : > { %524 = vmatprep.mubr.f32.mxu1 %v12130_v0 }
 0x146   : > { %v6544_v44 = vpop.permute.xlu0 %1262 }
 0x147   : > { %12614 = vst [vmem:[#allocation61_spill] sm:$0xff] %v6544_v44 }
 0x148   : > { %5399 = vmatmul.mubr.msk.f32.gmra.mxu1 %vm417_vm10, %v272_v17 }
 0x149   : > { %530 = vmatprep.mubr.f32.mxu1 %v12130_v0 }
 0x14a   : > { %v6548_v47 = vpop.permute.xlu0 %1266 }
 0x14b   : > { %12616 = vst [vmem:[#allocation63_spill] sm:$0xff] %v6548_v47 }
 0x14c   : > { %5400 = vmatmul.mubr.msk.f32.gmra.mxu1 %vm417_vm10, %v273_v57 }
 0x14d   : > { %5624 = vmatprep.mubr.msk.f32.mxu1 %vm417_vm10, %v268_v52 }
 0x150   : > { %5625 = vmatmul.mubr.msk.f32.vlgmr.msra.gmra.mxu1 %vm417_vm10, %v269_v56 }
 0x151   : > { %5627 = vmatprep.mubr.msk.f32.mxu1 %vm417_vm10, %v270_v14  ;;  %v6557_v14 = vpop.permute.xlu0 %1275 }
 0x152   : > { %12618 = vst [vmem:[#allocation65_spill] sm:$0xff] %v6557_v14 }
 0x154   : > { %5628 = vmatmul.mubr.msk.f32.gmra.mxu1 %vm417_vm10, %v271_v18 }
 0x155   : > { %5630 = vmatprep.mubr.msk.f32.mxu1 %vm417_vm10, %v272_v17 }
 0x158   : > { %5631 = vmatmul.mubr.msk.f32.gmra.mxu1 %vm417_vm10, %v273_v57  ;;  %v6561_v57 = vpop.permute.xlu1 %1272  ;;  %vm2124_vm10 = vcmask 359424  }
 0x159   : > { %12619 = vst [vmem:[#allocation66_spill] sm:$0xff] %v6561_v57 }
 0x15c   : > { %v6568_v46 = vpop.permute.xlu1 %1277 }
 0x15d   : > { %12621 = vst [vmem:[#allocation68_spill] sm:$0xff] %v6568_v46 }
 0x160   : > { %v6581_v60 = vpop.permute.xlu1 %1281 }
 0x161   : > { %12624 = vst [vmem:[#allocation70_spill] sm:$0xff] %v6581_v60 }
 0x164   : > { %v6591_v29 = vpop.permute.xlu1 %1290 }
 0x165   : > { %12626 = vst [vmem:[#allocation72_spill] sm:$0xff] %v6591_v29 }
 0x168   : > { %v6598_v38 = vpop.permute.xlu1 %1294 }
 0x169   : > { %12628 = vst [vmem:[#allocation74_spill] sm:$0xff] %v6598_v38 }
 0x1f8   : > { %v502_v45 = vpop.f32.mrf.mxu1 }
 0x1f9   : > { %5242 = vst [vmem:[%s6550_s12] sm:$0xff] %v502_v45  ;;  %v6564_v45 = vpop.permute.xlu0 %1279 }
 0x1fa   : > { %v504_v49 = vpop.f32.mrf.mxu1  ;;  %12620 = vst [vmem:[#allocation67_spill] sm:$0xff] %v6564_v45 }
 0x1fb   : > { %5243 = vst [vmem:[%s6550_s12 + $0x8] sm:$0xff] %v504_v49 }
 0x1fc   : > { %v508_v52 = vpop.f32.mrf.mxu1 }
 0x1fd   : > { %5246 = vst [vmem:[%s6550_s12 + $0x18] sm:$0xff] %v508_v52 }
 0x1fe   : > { %v510_v56 = vpop.f32.mrf.mxu1 }
 0x1ff   : > { %5247 = vst [vmem:[%s6550_s12 + $0x20] sm:$0xff] %v510_v56  ;;  %v12622_v56 = vmov 0.0  }
 0x200   : > { %v514_v18 = vpop.f32.mrf.mxu1  ;;  %358 = vst.msk [vmem:[#allocation2 + $0x10] sm:$0xff] %vm357_vm11, %v12622_v56  ;;  %361 = vst.msk [vmem:[#allocation2 + $0x30] sm:$0xff] %vm357_vm11, %v12622_v56 }
 0x201   : > { %644 = vrot.lane.b32.xlu1 %v514_v18, %s5934_s15  ;;  %363 = vst.msk [vmem:[#allocation2 + $0x50] sm:$0xff] %vm357_vm11, %v12622_v56  ;;  %365 = vst.msk [vmem:[#allocation2 + $0x70] sm:$0xff] %vm357_vm11, %v12622_v56  ;;  %v6577_v18 = vpop.permute.xlu0 %1287 }
 0x202   : > { %v516_v17 = vpop.f32.mrf.mxu1  ;;  %370 = vst.msk [vmem:[#allocation3 + $0x10] sm:$0xff] %vm357_vm11, %v12622_v56  ;;  %372 = vst.msk [vmem:[#allocation3 + $0x30] sm:$0xff] %vm357_vm11, %v12622_v56 }
 0x203   : > { %646 = vrot.lane.b32.xlu0 %v516_v17, %s5934_s15  ;;  %374 = vst.msk [vmem:[#allocation3 + $0x50] sm:$0xff] %vm357_vm11, %v12622_v56  ;;  %12623 = vst [vmem:[#allocation69_spill] sm:$0xff] %v6577_v18  ;;  %vm3489_vm11 = vcmask 916480  }
 0x204   : > { %v520_v0 = vpop.f32.mrf.mxu1 }
 0x205   : > { %v6585_v31 = vpop.permute.xlu0 %1292 }
 0x206   : > { %v522_v49 = vpop.f32.mrf.mxu1  ;;  %12625 = vst [vmem:[#allocation71_spill] sm:$0xff] %v6585_v31 }
 0x207   : > { %652 = vrot.lane.b32.xlu1 %v522_v49, %s5934_s15  ;;  %650 = vrot.lane.b32.xlu0 %v520_v0, %s5934_s15 }
 0x208   : > { %v526_v52 = vpop.f32.mrf.mxu1 }
 0x209   : > { %v6594_v30 = vpop.permute.xlu0 %1296 }
 0x20a   : > { %v528_v0 = vpop.f32.mrf.mxu1  ;;  %12627 = vst [vmem:[#allocation73_spill] sm:$0xff] %v6594_v30 }
 0x20b   : > { %656 = vrot.lane.b32.xlu1 %v526_v52, %s5934_s15  ;;  %658 = vrot.lane.b32.xlu0 %v528_v0, %s5934_s15 }
 0x20c   : > { %v532_v17 = vpop.f32.mrf.mxu1 }
 0x20e   : > { %v534_v49 = vpop.f32.mrf.mxu1 }
 0x20f   : > { %664 = vrot.lane.b32.xlu1 %v534_v49, %s5934_s15  ;;  %662 = vrot.lane.b32.xlu0 %v532_v17, %s5934_s15 }
 0x210   : > { %v5626_v58 = vpop.f32.mrf.mxu1 }
 0x211   : > { %5248 = vst.msk [vmem:[%s6550_s12 + $0x28] sm:$0xff] %vm5244_vm12, %v5626_v58  ;;  %v6601_v58 = vpop.permute.xlu0 %1305 }
 0x212   : > { %v603_v56 = vpop.f32.mrf.mxu1  ;;  %12629 = vst [vmem:[#allocation75_spill] sm:$0xff] %v6601_v58 }
 0x213   : > { %5245 = vst.msk [vmem:[%s6550_s12 + $0x10] sm:$0xff] %vm5244_vm12, %v603_v56  ;;  %v6603_v56 = vpop.permute.xlu1 %1302 }
 0x214   : > { %v5629_v52 = vpop.f32.mrf.mxu1  ;;  %12630 = vst [vmem:[#allocation76_spill] sm:$0xff] %v6603_v56 }
 0x215   : > { %654 = vrot.lane.b32.xlu0 %v5629_v52, %s5934_s15  ;;  %v6605_v39 = vpop.permute.xlu0 %1309 }
 0x216   : > { %v613_v0 = vpop.f32.mrf.mxu1  ;;  %12631 = vst [vmem:[#allocation77_spill] sm:$0xff] %v6605_v39 }
 0x217   : > { %648 = vrot.lane.b32.xlu1 %v613_v0, %s5934_s15  ;;  %v6607_v52 = vpop.permute.xlu1 %1307 }
 0x218   : > { %v5632_v49 = vpop.f32.mrf.mxu1  ;;  %12632 = vst [vmem:[#allocation78_spill] sm:$0xff] %v6607_v52 }
 0x219   : > { %666 = vrot.lane.b32.xlu0 %v5632_v49, %s5934_s15  ;;  %v6609_v40 = vpop.permute.xlu0 %1340 }
 0x21a   : > { %v623_v17 = vpop.f32.mrf.mxu1  ;;  %12633 = vst [vmem:[#allocation79_spill] sm:$0xff] %v6609_v40 }
 0x21b   : > { %660 = vrot.lane.b32.xlu1 %v623_v17, %s5934_s15  ;;  %v6611_v30 = vpop.permute.xlu1 %1338 }
 0x21c   : > { %12634 = vst [vmem:[#allocation80_spill] sm:$0xff] %v6611_v30 }
 0x21d   : > { %v6613_v0 = vpop.permute.xlu0 %1368 }
 0x21e   : > { %12635 = vst [vmem:[#allocation81_spill] sm:$0xff] %v6613_v0 }
 0x21f   : > { %v6615_v49 = vpop.permute.xlu1 %1342 }
 0x220   : > { %12636 = vst [vmem:[#allocation82_spill] sm:$0xff] %v6615_v49 }
 0x221   : > { %v6617_v37 = vpop.permute.xlu0 %1372 }
 0x222   : > { %12637 = vst [vmem:[#allocation83_spill] sm:$0xff] %v6617_v37 }
 0x223   : > { %v6619_v38 = vpop.permute.xlu1 %1370 }
 0x224   : > { %12638 = vst [vmem:[#allocation84_spill] sm:$0xff] %v6619_v38 }
 0x225   : > { %v6621_v17 = vpop.permute.xlu0 %1400 }
 0x226   : > { %12639 = vst [vmem:[#allocation85_spill] sm:$0xff] %v6621_v17 }
 0x227   : > { %v6623_v58 = vpop.permute.xlu1 %1398 }
 0x228   : > { %12640 = vst [vmem:[#allocation86_spill] sm:$0xff] %v6623_v58 }
 0x229   : > { %v6625_v56 = vpop.permute.xlu0 %1428 }
 0x22a   : > { %12641 = vst [vmem:[#allocation87_spill] sm:$0xff] %v6625_v56 }
 0x22b   : > { %v6627_v39 = vpop.permute.xlu1 %1402 }
 0x22c   : > { %12642 = vst [vmem:[#allocation88_spill] sm:$0xff] %v6627_v39 }
 0x22d   : > { %v6629_v52 = vpop.permute.xlu0 %1432 }
 0x22e   : > { %12643 = vst [vmem:[#allocation89_spill] sm:$0xff] %v6629_v52 }
 0x22f   : > { %v6631_v40 = vpop.permute.xlu1 %1430 }
 0x230   : > { %12644 = vst [vmem:[#allocation90_spill] sm:$0xff] %v6631_v40 }
 0x231   : > { %v6633_v30 = vpop.permute.xlu0 %1460 }
 0x232   : > { %12645 = vst [vmem:[#allocation91_spill] sm:$0xff] %v6633_v30 }
 0x233   : > { %v6635_v0 = vpop.permute.xlu1 %1458 }
 0x234   : > { %12646 = vst [vmem:[#allocation92_spill] sm:$0xff] %v6635_v0 }
 0x235   : > { %v6637_v49 = vpop.permute.xlu0 %1488 }
 0x236   : > { %12647 = vst [vmem:[#allocation93_spill] sm:$0xff] %v6637_v49 }
 0x237   : > { %v6639_v37 = vpop.permute.xlu1 %1462 }
 0x238   : > { %12648 = vst [vmem:[#allocation94_spill] sm:$0xff] %v6639_v37 }
 0x239   : > { %v6641_v38 = vpop.permute.xlu0 %1492 }
 0x23a   : > { %12649 = vst [vmem:[#allocation95_spill] sm:$0xff] %v6641_v38 }
 0x23b   : > { %v6643_v17 = vpop.permute.xlu1 %1490 }
 0x23c   : > { %12650 = vst [vmem:[#allocation96_spill] sm:$0xff] %v6643_v17 }
 0x23d   : > { %v6645_v58 = vpop.permute.xlu0 %1520 }
 0x23e   : > { %12651 = vst [vmem:[#allocation97_spill] sm:$0xff] %v6645_v58 }
 0x23f   : > { %v6647_v56 = vpop.permute.xlu1 %1518 }
 0x240   : > { %12652 = vst [vmem:[#allocation98_spill] sm:$0xff] %v6647_v56 }
 0x241   : > { %v6649_v39 = vpop.permute.xlu0 %1548 }
 0x242   : > { %12653 = vst [vmem:[#allocation99_spill] sm:$0xff] %v6649_v39 }
 0x243   : > { %v6651_v52 = vpop.permute.xlu1 %1522 }
 0x244   : > { %12654 = vst [vmem:[#allocation100_spill] sm:$0xff] %v6651_v52 }
 0x245   : > { %v6653_v40 = vpop.permute.xlu0 %1552 }
 0x246   : > { %12655 = vst [vmem:[#allocation101_spill] sm:$0xff] %v6653_v40 }
 0x247   : > { %v6655_v30 = vpop.permute.xlu1 %1550 }
 0x248   : > { %12656 = vst [vmem:[#allocation102_spill] sm:$0xff] %v6655_v30 }
 0x249   : > { %v6657_v0 = vpop.permute.xlu0 %1641 }
 0x24a   : > { %12657 = vst [vmem:[#allocation103_spill] sm:$0xff] %v6657_v0 }
 0x273   : > { %v645_v37 = vpop.permute.xlu1 %644 }
 0x274   : > { %689 = vst.msk [vmem:[#allocation2] sm:$0xff] %vm688_vm13, %v645_v37 }
 0x275   : > { %v647_v49 = vpop.permute.xlu0 %646 }
 0x276   : > { %v668_v17 = vsel %vm352_vm1, %v645_v37, %v647_v49 }
 0x277   : > { %690 = vst [vmem:[#allocation2 + $0x8] sm:$0xff] %v668_v17 }
 0x279   : > { %v653_v38 = vpop.permute.xlu1 %652  ;;  %v651_v56 = vpop.permute.xlu0 %650 }
 0x27a   : > { %v6662_v58 = vsel %vm352_vm1, %v651_v56, %v653_v38  ;;  %693 = vst.msk [vmem:[#allocation2 + $0x20] sm:$0xff] %vm688_vm13, %v651_v56 }
 0x27b   : > { %v702_v52 = vld [vmem:[#allocation2] sm:$0xff]  ;;  %694 = vst [vmem:[#allocation2 + $0x28] sm:$0xff] %v6662_v58 }
 0x27c   : > { %771 = vrot.lane.b32.xlu0 %v702_v52, %s5937_s23  ;;  %730 = vrot.lane.b32.xlu1 %v702_v52, %s5936_s17 }
 0x27d   : > { %v657_v0 = vpop.permute.xlu1 %656  ;;  %v659_v39 = vpop.permute.xlu0 %658 }
 0x27e   : > { %696 = vst.msk [vmem:[#allocation2 + $0x40] sm:$0xff] %vm688_vm13, %v657_v0  ;;  %v6670_v37 = vsel %vm352_vm1, %v657_v0, %v659_v39 }
 0x27f   : > { %697 = vst [vmem:[#allocation2 + $0x48] sm:$0xff] %v6670_v37 }
 0x280   : > { %853 = vrot.lane.b32.xlu0 %v702_v52, %s5939_s26  ;;  %812 = vrot.lane.b32.xlu1 %v702_v52, %s5938_s25 }
 0x281   : > { %v665_v56 = vpop.permute.xlu1 %664  ;;  %v663_v30 = vpop.permute.xlu0 %662 }
 0x282   : > { %v6676_v40 = vsel %vm352_vm1, %v663_v30, %v665_v56  ;;  %699 = vst.msk [vmem:[#allocation2 + $0x60] sm:$0xff] %vm688_vm13, %v663_v30 }
 0x283   : > { %700 = vst [vmem:[#allocation2 + $0x68] sm:$0xff] %v6676_v40 }
 0x284   : > { %934 = vrot.lane.b32.xlu0 %v702_v52, %s5941_s7  ;;  %893 = vrot.lane.b32.xlu1 %v702_v52, %s5940_s6 }
 0x287   : > { %v655_v0 = vpop.permute.xlu0 %654 }
 0x288   : > { %1016 = vrot.lane.b32.xlu0 %v702_v52, %s5943_s11  ;;  %975 = vrot.lane.b32.xlu1 %v702_v52, %s5942_s9  ;;  %v671_v31 = vsel %vm352_vm1, %v653_v38, %v655_v0 }
 0x289   : > { %v649_v8 = vpop.permute.xlu1 %648  ;;  %695 = vst.msk [vmem:[#allocation2 + $0x30] sm:$0xff] %vm691_vm14, %v671_v31  ;;  %v6749_v31 = vld [vmem:[#allocation2 + $0x40] sm:$0xff] }
 0x28a   : > { %v669_v29 = vsel %vm352_vm1, %v647_v49, %v649_v8  ;;  %v6839_v46 = vld [vmem:[#allocation2 + $0x60] sm:$0xff] }
 0x28b   : > { %692 = vst.msk [vmem:[#allocation2 + $0x10] sm:$0xff] %vm691_vm14, %v669_v29  ;;  %v667_v30 = vpop.permute.xlu0 %666  ;;  %v705_v29 = vld [vmem:[#allocation2 + $0x20] sm:$0xff] }
 0x28c   : > { %1098 = vrot.lane.b32.xlu0 %v702_v52, %s12658_s16  ;;  %1057 = vrot.lane.b32.xlu1 %v702_v52, %s12659_s10  ;;  %v675_v18 = vsel %vm352_vm1, %v665_v56, %v667_v30 }
 0x28d   : > { %v661_v13 = vpop.permute.xlu1 %660  ;;  %701 = vst.msk [vmem:[#allocation2 + $0x70] sm:$0xff] %vm691_vm14, %v675_v18 }
 0x28e   : > { %v673_v60 = vsel %vm352_vm1, %v659_v39, %v661_v13 }
 0x28f   : > { %698 = vst.msk [vmem:[#allocation2 + $0x50] sm:$0xff] %vm691_vm14, %v673_v60 }
 0x290   : > { %1143 = vrot.lane.b32.xlu1 %v702_v52, %s12660_s8  ;;  %732 = vrot.lane.b32.xlu0 %v668_v17, %s5936_s17  ;;  %v707_v5 = vld [vmem:[#allocation2 + $0x30] sm:$0xff] }
 0x292   : > { %v704_v33 = vld [vmem:[#allocation2 + $0x10] sm:$0xff] }
 0x294   : > { %1314 = vrot.lane.b32.xlu1 %v702_v52, %s12661_s30  ;;  %814 = vrot.lane.b32.xlu0 %v668_v17, %s5938_s25  ;;  %v7003_v25 = vld [vmem:[#allocation2 + $0x70] sm:$0xff] }
 0x295   : > { %12692 = vst [vmem:[#allocation134_spill] sm:$0xff] %v7003_v25 }
 0x296   : > { %v7049_v51 = vld [vmem:[#allocation2 + $0x50] sm:$0xff] }
 0x298   : > { %1635 = vrot.lane.b32.xlu1 %v702_v52, %s5949_s13  ;;  %895 = vrot.lane.b32.xlu0 %v668_v17, %s5940_s6 }
 0x29c   : > { %773 = vrot.lane.b32.xlu1 %v668_v17, %s5937_s23  ;;  %977 = vrot.lane.b32.xlu0 %v668_v17, %s5942_s9 }
 0x2a0   : > { %855 = vrot.lane.b32.xlu1 %v668_v17, %s5939_s26  ;;  %1059 = vrot.lane.b32.xlu0 %v668_v17, %s12659_s10 }
 0x2a4   : > { %936 = vrot.lane.b32.xlu1 %v668_v17, %s5941_s7  ;;  %1145 = vrot.lane.b32.xlu0 %v668_v17, %s12660_s8 }
 0x2a8   : > { %1018 = vrot.lane.b32.xlu1 %v668_v17, %s5943_s11  ;;  %1316 = vrot.lane.b32.xlu0 %v668_v17, %s12661_s30 }
 0x2ac   : > { %1100 = vrot.lane.b32.xlu1 %v668_v17, %s12658_s16  ;;  %1637 = vrot.lane.b32.xlu0 %v668_v17, %s5949_s13 }
 0x2b0   : > { %777 = vrot.lane.b32.xlu1 %v705_v29, %s5937_s23  ;;  %736 = vrot.lane.b32.xlu0 %v705_v29, %s5936_s17 }
 0x2b4   : > { %859 = vrot.lane.b32.xlu1 %v705_v29, %s5939_s26  ;;  %818 = vrot.lane.b32.xlu0 %v705_v29, %s5938_s25 }
 0x2b8   : > { %940 = vrot.lane.b32.xlu1 %v705_v29, %s5941_s7  ;;  %899 = vrot.lane.b32.xlu0 %v705_v29, %s5940_s6 }
 0x2bc   : > { %1022 = vrot.lane.b32.xlu1 %v705_v29, %s5943_s11  ;;  %981 = vrot.lane.b32.xlu0 %v705_v29, %s5942_s9 }
 0x2c0   : > { %1104 = vrot.lane.b32.xlu1 %v705_v29, %s12658_s16  ;;  %1063 = vrot.lane.b32.xlu0 %v705_v29, %s12659_s10 }
 0x2c4   : > { %1151 = vrot.lane.b32.xlu1 %v705_v29, %s12660_s8  ;;  %1320 = vrot.lane.b32.xlu0 %v705_v29, %s12661_s30 }
 0x2c8   : > { %1643 = vrot.lane.b32.xlu1 %v705_v29, %s5949_s13  ;;  %779 = vrot.lane.b32.xlu0 %v6662_v58, %s5937_s23 }
 0x2cc   : > { %861 = vrot.lane.b32.xlu0 %v6662_v58, %s5939_s26  ;;  %738 = vrot.lane.b32.xlu1 %v6662_v58, %s5936_s17 }
 0x2d0   : > { %942 = vrot.lane.b32.xlu0 %v6662_v58, %s5941_s7  ;;  %820 = vrot.lane.b32.xlu1 %v6662_v58, %s5938_s25 }
 0x2d4   : > { %1024 = vrot.lane.b32.xlu0 %v6662_v58, %s5943_s11  ;;  %901 = vrot.lane.b32.xlu1 %v6662_v58, %s5940_s6 }
 0x2d8   : > { %1106 = vrot.lane.b32.xlu0 %v6662_v58, %s12658_s16  ;;  %983 = vrot.lane.b32.xlu1 %v6662_v58, %s5942_s9 }
 0x2dc   : > { %1153 = vrot.lane.b32.xlu0 %v6662_v58, %s12660_s8  ;;  %1065 = vrot.lane.b32.xlu1 %v6662_v58, %s12659_s10 }
 0x2e0   : > { %1645 = vrot.lane.b32.xlu0 %v6662_v58, %s5949_s13  ;;  %1322 = vrot.lane.b32.xlu1 %v6662_v58, %s12661_s30 }
 0x2e4   : > { %783 = vrot.lane.b32.xlu0 %v6749_v31, %s5937_s23  ;;  %742 = vrot.lane.b32.xlu1 %v6749_v31, %s5936_s17 }
 0x2e8   : > { %865 = vrot.lane.b32.xlu0 %v6749_v31, %s5939_s26  ;;  %824 = vrot.lane.b32.xlu1 %v6749_v31, %s5938_s25 }
 0x2ec   : > { %946 = vrot.lane.b32.xlu0 %v6749_v31, %s5941_s7  ;;  %905 = vrot.lane.b32.xlu1 %v6749_v31, %s5940_s6 }
 0x2ee   : > { %v6763_v38 = vpop.permute.xlu1 %730  ;;  %v6765_v39 = vpop.permute.xlu0 %771 }
 0x2ef   : > { %12662 = vst [vmem:[#allocation104_spill] sm:$0xff] %v6765_v39 }
 0x2f0   : > { %1028 = vrot.lane.b32.xlu0 %v6749_v31, %s5943_s11  ;;  %987 = vrot.lane.b32.xlu1 %v6749_v31, %s5942_s9 }
 0x2f2   : > { %v6771_v60 = vpop.permute.xlu1 %812  ;;  %v6773_v8 = vpop.permute.xlu0 %853 }
 0x2f3   : > { %12663 = vst [vmem:[#allocation105_spill] sm:$0xff] %v6771_v60  ;;  %12664 = vst [vmem:[#allocation106_spill] sm:$0xff] %v6773_v8 }
 0x2f4   : > { %1110 = vrot.lane.b32.xlu0 %v6749_v31, %s12658_s16  ;;  %1069 = vrot.lane.b32.xlu1 %v6749_v31, %s12659_s10 }
 0x2f6   : > { %v6779_v13 = vpop.permute.xlu1 %893  ;;  %v6781_v18 = vpop.permute.xlu0 %934 }
 0x2f8   : > { %1159 = vrot.lane.b32.xlu1 %v6749_v31, %s12660_s8  ;;  %744 = vrot.lane.b32.xlu0 %v6670_v37, %s5936_s17 }
 0x2fa   : > { %v6787_v58 = vpop.permute.xlu1 %975  ;;  %v6789_v52 = vpop.permute.xlu0 %1016 }
 0x2fb   : > { %12665 = vst [vmem:[#allocation107_spill] sm:$0xff] %v6787_v58 }
 0x2fc   : > { %1326 = vrot.lane.b32.xlu1 %v6749_v31, %s12661_s30  ;;  %826 = vrot.lane.b32.xlu0 %v6670_v37, %s5938_s25 }
 0x2fe   : > { %v6795_v49 = vpop.permute.xlu1 %1057  ;;  %v6797_v17 = vpop.permute.xlu0 %1098 }
 0x300   : > { %785 = vrot.lane.b32.xlu1 %v6670_v37, %s5937_s23  ;;  %907 = vrot.lane.b32.xlu0 %v6670_v37, %s5940_s6 }
 0x302   : > { %v6803_v56 = vpop.permute.xlu1 %1143  ;;  %v6805_v0 = vpop.permute.xlu0 %732 }
 0x304   : > { %867 = vrot.lane.b32.xlu1 %v6670_v37, %s5939_s26  ;;  %989 = vrot.lane.b32.xlu0 %v6670_v37, %s5942_s9 }
 0x306   : > { %v6811_v30 = vpop.permute.xlu1 %1314  ;;  %v6813_v29 = vpop.permute.xlu0 %814 }
 0x307   : > { %12666 = vst [vmem:[#allocation108_spill] sm:$0xff] %v6811_v30  ;;  %12667 = vst [vmem:[#allocation109_spill] sm:$0xff] %v6813_v29 }
 0x308   : > { %948 = vrot.lane.b32.xlu1 %v6670_v37, %s5941_s7  ;;  %1071 = vrot.lane.b32.xlu0 %v6670_v37, %s12659_s10 }
 0x30a   : > { %v6819_v8 = vpop.permute.xlu1 %1635  ;;  %v6821_v58 = vpop.permute.xlu0 %895 }
 0x30b   : > { %12668 = vst [vmem:[#allocation110_spill] sm:$0xff] %v6819_v8 }
 0x30c   : > { %1030 = vrot.lane.b32.xlu1 %v6670_v37, %s5943_s11  ;;  %1161 = vrot.lane.b32.xlu0 %v6670_v37, %s12660_s8 }
 0x30e   : > { %v6827_v45 = vpop.permute.xlu1 %773  ;;  %v6829_v30 = vpop.permute.xlu0 %977 }
 0x30f   : > { %12669 = vst [vmem:[#allocation111_spill] sm:$0xff] %v6827_v45  ;;  %12670 = vst [vmem:[#allocation112_spill] sm:$0xff] %v6829_v30 }
 0x310   : > { %1112 = vrot.lane.b32.xlu1 %v6670_v37, %s12658_s16  ;;  %1328 = vrot.lane.b32.xlu0 %v6670_v37, %s12661_s30 }
 0x312   : > { %v6835_v34 = vpop.permute.xlu1 %855  ;;  %v6837_v8 = vpop.permute.xlu0 %1059 }
 0x313   : > { %12671 = vst [vmem:[#allocation113_spill] sm:$0xff] %v6835_v34 }
 0x314   : > { %789 = vrot.lane.b32.xlu1 %v6839_v46, %s5937_s23  ;;  %748 = vrot.lane.b32.xlu0 %v6839_v46, %s5936_s17 }
 0x316   : > { %v6845_v6 = vpop.permute.xlu1 %936  ;;  %v6847_v30 = vpop.permute.xlu0 %1145 }
 0x318   : > { %871 = vrot.lane.b32.xlu1 %v6839_v46, %s5939_s26  ;;  %830 = vrot.lane.b32.xlu0 %v6839_v46, %s5938_s25 }
 0x31a   : > { %v6853_v34 = vpop.permute.xlu1 %1018  ;;  %v6855_v14 = vpop.permute.xlu0 %1316 }
 0x31b   : > { %12672 = vst [vmem:[#allocation114_spill] sm:$0xff] %v6855_v14 }
 0x31c   : > { %952 = vrot.lane.b32.xlu1 %v6839_v46, %s5941_s7  ;;  %911 = vrot.lane.b32.xlu0 %v6839_v46, %s5940_s6 }
 0x31e   : > { %v6861_v57 = vpop.permute.xlu1 %1100  ;;  %v6863_v4 = vpop.permute.xlu0 %1637 }
 0x31f   : > { %12673 = vst [vmem:[#allocation115_spill] sm:$0xff] %v6863_v4 }
 0x320   : > { %1034 = vrot.lane.b32.xlu1 %v6839_v46, %s5943_s11  ;;  %993 = vrot.lane.b32.xlu0 %v6839_v46, %s5942_s9 }
 0x322   : > { %v6869_v47 = vpop.permute.xlu1 %777  ;;  %v6871_v53 = vpop.permute.xlu0 %736 }
 0x323   : > { %12674 = vst [vmem:[#allocation116_spill] sm:$0xff] %v6869_v47 }
 0x324   : > { %1116 = vrot.lane.b32.xlu1 %v6839_v46, %s12658_s16  ;;  %1075 = vrot.lane.b32.xlu0 %v6839_v46, %s12659_s10 }
 0x326   : > { %v6877_v14 = vpop.permute.xlu1 %859  ;;  %v6879_v50 = vpop.permute.xlu0 %818 }
 0x327   : > { %12675 = vst [vmem:[#allocation117_spill] sm:$0xff] %v6877_v14  ;;  %12676 = vst [vmem:[#allocation118_spill] sm:$0xff] %v6879_v50 }
 0x328   : > { %1167 = vrot.lane.b32.xlu1 %v6839_v46, %s12660_s8  ;;  %1332 = vrot.lane.b32.xlu0 %v6839_v46, %s12661_s30 }
 0x32a   : > { %v6885_v4 = vpop.permute.xlu1 %940  ;;  %v6887_v44 = vpop.permute.xlu0 %899 }
 0x32c   : > { %791 = vrot.lane.b32.xlu0 %v6676_v40, %s5937_s23  ;;  %750 = vrot.lane.b32.xlu1 %v6676_v40, %s5936_s17 }
 0x32e   : > { %v6893_v61 = vpop.permute.xlu1 %1022  ;;  %v6895_v14 = vpop.permute.xlu0 %981 }
 0x32f   : > { %12677 = vst [vmem:[#allocation119_spill] sm:$0xff] %v6895_v14 }
 0x330   : > { %873 = vrot.lane.b32.xlu0 %v6676_v40, %s5939_s26  ;;  %832 = vrot.lane.b32.xlu1 %v6676_v40, %s5938_s25 }
 0x332   : > { %v6901_v7 = vpop.permute.xlu1 %1104  ;;  %v6903_v42 = vpop.permute.xlu0 %1063 }
 0x334   : > { %954 = vrot.lane.b32.xlu0 %v6676_v40, %s5941_s7  ;;  %913 = vrot.lane.b32.xlu1 %v6676_v40, %s5940_s6 }
 0x336   : > { %v6909_v3 = vpop.permute.xlu1 %1151  ;;  %v6911_v43 = vpop.permute.xlu0 %1320 }
 0x337   : > { %12678 = vst [vmem:[#allocation120_spill] sm:$0xff] %v6911_v43 }
 0x338   : > { %995 = vrot.lane.b32.xlu1 %v6676_v40, %s5942_s9  ;;  %1036 = vrot.lane.b32.xlu0 %v6676_v40, %s5943_s11 }
 0x33a   : > { %v6917_v14 = vpop.permute.xlu1 %1643  ;;  %v6919_v19 = vpop.permute.xlu0 %779 }
 0x33b   : > { %12679 = vst [vmem:[#allocation121_spill] sm:$0xff] %v6917_v14  ;;  %12680 = vst [vmem:[#allocation122_spill] sm:$0xff] %v6919_v19 }
 0x33c   : > { %1077 = vrot.lane.b32.xlu1 %v6676_v40, %s12659_s10  ;;  %1118 = vrot.lane.b32.xlu0 %v6676_v40, %s12658_s16 }
 0x33e   : > { %v6925_v32 = vpop.permute.xlu1 %738  ;;  %v6927_v26 = vpop.permute.xlu0 %861 }
 0x33f   : > { %12681 = vst [vmem:[#allocation123_spill] sm:$0xff] %v6927_v26 }
 0x340   : > { %1334 = vrot.lane.b32.xlu1 %v6676_v40, %s12661_s30  ;;  %1169 = vrot.lane.b32.xlu0 %v6676_v40, %s12660_s8 }
 0x342   : > { %v6933_v43 = vpop.permute.xlu1 %820  ;;  %v6935_v14 = vpop.permute.xlu0 %942 }
 0x343   : > { %12682 = vst [vmem:[#allocation124_spill] sm:$0xff] %v6933_v43  ;;  %v7169_v62 = vsel %vm958_vm7, %v6885_v4, %v6935_v14 }
 0x344   : > { %781 = vrot.lane.b32.xlu1 %v707_v5, %s5937_s23  ;;  %740 = vrot.lane.b32.xlu0 %v707_v5, %s5936_s17  ;;  %12711 = vst [vmem:[#allocation153_spill] sm:$0xff] %v7169_v62 }
 0x346   : > { %v6939_v15 = vpop.permute.xlu1 %901  ;;  %v6941_v27 = vpop.permute.xlu0 %1024 }
 0x348   : > { %863 = vrot.lane.b32.xlu1 %v707_v5, %s5939_s26  ;;  %822 = vrot.lane.b32.xlu0 %v707_v5, %s5938_s25 }
 0x34a   : > { %v6945_v26 = vpop.permute.xlu1 %983  ;;  %v6947_v28 = vpop.permute.xlu0 %1106 }
 0x34b   : > { %12683 = vst [vmem:[#allocation125_spill] sm:$0xff] %v6945_v26 }
 0x34c   : > { %944 = vrot.lane.b32.xlu1 %v707_v5, %s5941_s7  ;;  %903 = vrot.lane.b32.xlu0 %v707_v5, %s5940_s6 }
 0x34e   : > { %v6951_v1 = vpop.permute.xlu1 %1065  ;;  %v6953_v50 = vpop.permute.xlu0 %1153 }
 0x350   : > { %1026 = vrot.lane.b32.xlu1 %v707_v5, %s5943_s11  ;;  %985 = vrot.lane.b32.xlu0 %v707_v5, %s5942_s9 }
 0x352   : > { %v6957_v41 = vpop.permute.xlu1 %1322  ;;  %v6959_v60 = vpop.permute.xlu0 %1645 }
 0x353   : > { %12684 = vst [vmem:[#allocation126_spill] sm:$0xff] %v6957_v41  ;;  %12685 = vst [vmem:[#allocation127_spill] sm:$0xff] %v6959_v60 }
 0x354   : > { %1108 = vrot.lane.b32.xlu1 %v707_v5, %s12658_s16  ;;  %1067 = vrot.lane.b32.xlu0 %v707_v5, %s12659_s10 }
 0x356   : > { %v6963_v26 = vpop.permute.xlu1 %742  ;;  %v6965_v36 = vpop.permute.xlu0 %783 }
 0x357   : > { %12686 = vst [vmem:[#allocation128_spill] sm:$0xff] %v6965_v36 }
 0x358   : > { %1155 = vrot.lane.b32.xlu1 %v707_v5, %s12660_s8  ;;  %1324 = vrot.lane.b32.xlu0 %v707_v5, %s12661_s30 }
 0x35a   : > { %v6969_v23 = vpop.permute.xlu1 %824  ;;  %v6971_v43 = vpop.permute.xlu0 %865 }
 0x35b   : > { %12687 = vst [vmem:[#allocation129_spill] sm:$0xff] %v6969_v23  ;;  %12688 = vst [vmem:[#allocation130_spill] sm:$0xff] %v6971_v43 }
 0x35c   : > { %1647 = vrot.lane.b32.xlu1 %v707_v5, %s5949_s13  ;;  %775 = vrot.lane.b32.xlu0 %v704_v33, %s5937_s23 }
 0x35e   : > { %v6975_v60 = vpop.permute.xlu1 %905  ;;  %v6977_v41 = vpop.permute.xlu0 %946 }
 0x360   : > { %734 = vrot.lane.b32.xlu1 %v704_v33, %s5936_s17  ;;  %857 = vrot.lane.b32.xlu0 %v704_v33, %s5939_s26 }
 0x362   : > { %v6981_v29 = vpop.permute.xlu1 %987  ;;  %v6983_v35 = vpop.permute.xlu0 %1028 }
 0x363   : > { %12689 = vst [vmem:[#allocation131_spill] sm:$0xff] %v6981_v29 }
 0x364   : > { %816 = vrot.lane.b32.xlu1 %v704_v33, %s5938_s25  ;;  %938 = vrot.lane.b32.xlu0 %v704_v33, %s5941_s7 }
 0x366   : > { %v6987_v43 = vpop.permute.xlu1 %1069  ;;  %v6989_v5 = vpop.permute.xlu0 %1110 }
 0x368   : > { %897 = vrot.lane.b32.xlu1 %v704_v33, %s5940_s6  ;;  %1020 = vrot.lane.b32.xlu0 %v704_v33, %s5943_s11 }
 0x36a   : > { %v6993_v23 = vpop.permute.xlu1 %1159  ;;  %v6995_v36 = vpop.permute.xlu0 %744 }
 0x36c   : > { %979 = vrot.lane.b32.xlu1 %v704_v33, %s5942_s9  ;;  %1102 = vrot.lane.b32.xlu0 %v704_v33, %s12658_s16 }
 0x36e   : > { %v6999_v29 = vpop.permute.xlu1 %1326  ;;  %v7001_v24 = vpop.permute.xlu0 %826 }
 0x36f   : > { %12690 = vst [vmem:[#allocation132_spill] sm:$0xff] %v6999_v29  ;;  %12691 = vst [vmem:[#allocation133_spill] sm:$0xff] %v7001_v24 }
 0x370   : > { %1061 = vrot.lane.b32.xlu1 %v704_v33, %s12659_s10  ;;  %752 = vrot.lane.b32.xlu0 %v7003_v25, %s5936_s17 }
 0x372   : > { %v7008_v20 = vpop.permute.xlu1 %785  ;;  %v7010_v47 = vpop.permute.xlu0 %907 }
 0x373   : > { %12693 = vst [vmem:[#allocation135_spill] sm:$0xff] %v7008_v20 }
 0x374   : > { %1147 = vrot.lane.b32.xlu1 %v704_v33, %s12660_s8  ;;  %834 = vrot.lane.b32.xlu0 %v7003_v25, %s5938_s25 }
 0x376   : > { %v7015_v21 = vpop.permute.xlu1 %867  ;;  %v7017_v29 = vpop.permute.xlu0 %989 }
 0x377   : > { %12694 = vst [vmem:[#allocation136_spill] sm:$0xff] %v7015_v21  ;;  %12695 = vst [vmem:[#allocation137_spill] sm:$0xff] %v7017_v29 }
 0x378   : > { %1318 = vrot.lane.b32.xlu1 %v704_v33, %s12661_s30  ;;  %915 = vrot.lane.b32.xlu0 %v7003_v25, %s5940_s6 }
 0x37a   : > { %v7022_v24 = vpop.permute.xlu1 %948  ;;  %v7024_v39 = vpop.permute.xlu0 %1071 }
 0x37c   : > { %1639 = vrot.lane.b32.xlu1 %v704_v33, %s5949_s13  ;;  %997 = vrot.lane.b32.xlu0 %v7003_v25, %s5942_s9 }
 0x37e   : > { %v7029_v20 = vpop.permute.xlu1 %1030  ;;  %v7031_v22 = vpop.permute.xlu0 %1161 }
 0x380   : > { %793 = vrot.lane.b32.xlu1 %v7003_v25, %s5937_s23  ;;  %1079 = vrot.lane.b32.xlu0 %v7003_v25, %s12659_s10 }
 0x382   : > { %v7037_v21 = vpop.permute.xlu1 %1112  ;;  %v7039_v29 = vpop.permute.xlu0 %1328 }
 0x383   : > { %12696 = vst [vmem:[#allocation138_spill] sm:$0xff] %v7039_v29 }
 0x384   : > { %875 = vrot.lane.b32.xlu1 %v7003_v25, %s5939_s26  ;;  %1336 = vrot.lane.b32.xlu0 %v7003_v25, %s12661_s30 }
 0x386   : > { %v7045_v33 = vpop.permute.xlu1 %789  ;;  %v7047_v11 = vpop.permute.xlu0 %748 }
 0x387   : > { %12697 = vst [vmem:[#allocation139_spill] sm:$0xff] %v7045_v33 }
 0x388   : > { %956 = vrot.lane.b32.xlu1 %v7003_v25, %s5941_s7  ;;  %787 = vrot.lane.b32.xlu0 %v7049_v51, %s5937_s23 }
 0x38a   : > { %v7055_v19 = vpop.permute.xlu1 %871  ;;  %v7057_v29 = vpop.permute.xlu0 %830 }
 0x38b   : > { %12698 = vst [vmem:[#allocation140_spill] sm:$0xff] %v7055_v19  ;;  %12699 = vst [vmem:[#allocation141_spill] sm:$0xff] %v7057_v29 }
 0x38c   : > { %1038 = vrot.lane.b32.xlu1 %v7003_v25, %s5943_s11  ;;  %869 = vrot.lane.b32.xlu0 %v7049_v51, %s5939_s26  ;;  %s5955_s26 = smov 89  }
 0x38e   : > { %v7063_v33 = vpop.permute.xlu1 %952  ;;  %v7065_v16 = vpop.permute.xlu0 %911 }
 0x390   : > { %1120 = vrot.lane.b32.xlu1 %v7003_v25, %s12658_s16  ;;  %950 = vrot.lane.b32.xlu0 %v7049_v51, %s5941_s7 }
 0x392   : > { %v7071_v45 = vpop.permute.xlu1 %1034  ;;  %v7073_v19 = vpop.permute.xlu0 %993 }
 0x393   : > { %12700 = vst [vmem:[#allocation142_spill] sm:$0xff] %v7073_v19  ;;  %v7094_v19 = vsel %vm754_vm2, %v6763_v38, %v6805_v0 }
 0x394   : > { %1171 = vrot.lane.b32.xlu1 %v7003_v25, %s12660_s8  ;;  %1032 = vrot.lane.b32.xlu0 %v7049_v51, %s5943_s11  ;;  %12702 = vst [vmem:[#allocation144_spill] sm:$0xff] %v7094_v19  ;;  %v7107_v25 = vsel %vm1081_vm4, %v6795_v49, %v6837_v8 }
 0x395   : > { %12704 = vst [vmem:[#allocation146_spill] sm:$0xff] %v7107_v25 }
 0x396   : > { %v7079_v29 = vpop.permute.xlu1 %1116  ;;  %v7081_v9 = vpop.permute.xlu0 %1075 }
 0x398   : > { %746 = vrot.lane.b32.xlu1 %v7049_v51, %s5936_s17  ;;  %1114 = vrot.lane.b32.xlu0 %v7049_v51, %s12658_s16 }
 0x39a   : > { %v7087_v48 = vpop.permute.xlu1 %1167  ;;  %v7089_v12 = vpop.permute.xlu0 %1332 }
 0x39b   : > { %12701 = vst [vmem:[#allocation143_spill] sm:$0xff] %v7089_v12 }
 0x39c   : > { %828 = vrot.lane.b32.xlu1 %v7049_v51, %s5938_s25  ;;  %1344 = vrot.lane.b32.xlu0 %v7094_v19, %s12661_s30  ;;  %v7120_v19 = vsel %vm917_vm6, %v6779_v13, %v6821_v58  ;;  %s5954_s25 = smov 88  }
 0x39d   : > { %12707 = vst [vmem:[#allocation149_spill] sm:$0xff] %v7120_v19 }
 0x39e   : > { %v7100_v2 = vpop.permute.xlu1 %750  ;;  %v7102_v10 = vpop.permute.xlu0 %791 }
 0x39f   : > { %12703 = vst [vmem:[#allocation145_spill] sm:$0xff] %v7102_v10 }
 0x3a0   : > { %909 = vrot.lane.b32.xlu1 %v7049_v51, %s5940_s6  ;;  %1404 = vrot.lane.b32.xlu0 %v7107_v25, %s12661_s30  ;;  %v1176_v25 = vsel %vm1175_vm8, %v6803_v56, %v6847_v30 }
 0x3a2   : > { %v7113_v38 = vpop.permute.xlu1 %832  ;;  %v7115_v12 = vpop.permute.xlu0 %873 }
 0x3a3   : > { %12705 = vst [vmem:[#allocation147_spill] sm:$0xff] %v7113_v38  ;;  %12706 = vst [vmem:[#allocation148_spill] sm:$0xff] %v7115_v12 }
 0x3a4   : > { %991 = vrot.lane.b32.xlu1 %v7049_v51, %s5942_s9  ;;  %1464 = vrot.lane.b32.xlu0 %v7120_v19, %s12661_s30  ;;  %v1043_v19 = vsel %vm1040_vm3, %v6893_v61, %v6941_v27 }
 0x3a6   : > { %v7126_v49 = vpop.permute.xlu1 %913  ;;  %v7128_v10 = vpop.permute.xlu0 %954 }
 0x3a8   : > { %1073 = vrot.lane.b32.xlu1 %v7049_v51, %s12659_s10  ;;  %1524 = vrot.lane.b32.xlu0 %v1176_v25, %s12661_s30  ;;  %v7153_v25 = vsel %vm1122_vm5, %v6901_v7, %v6947_v28 }
 0x3a9   : > { %12709 = vst [vmem:[#allocation151_spill] sm:$0xff] %v7153_v25 }
 0x3aa   : > { %v7136_v13 = vpop.permute.xlu1 %995  ;;  %v7138_v12 = vpop.permute.xlu0 %1036 }
 0x3ab   : > { %12708 = vst [vmem:[#allocation150_spill] sm:$0xff] %v7136_v13 }
 0x3ac   : > { %1163 = vrot.lane.b32.xlu1 %v7049_v51, %s12660_s8  ;;  %1380 = vrot.lane.b32.xlu0 %v1043_v19, %s12661_s30  ;;  %v1041_v19 = vsel %vm1040_vm3, %v6789_v52, %v6853_v34  ;;  %v7186_v52 = vsel %vm754_vm2, %v6963_v26, %v6995_v36  ;;  %v7204_v26 = vsel %vm1081_vm4, %v6987_v43, %v7024_v39 }
 0x3ad   : > { %12717 = vst [vmem:[#allocation159_spill] sm:$0xff] %v7204_v26  ;;  %v7222_v43 = vsel %vm917_vm6, %v6975_v60, %v7010_v47  ;;  %v1182_v60 = vsel %vm1175_vm8, %v6993_v23, %v7031_v22 }
 0x3ae   : > { %v7146_v38 = vpop.permute.xlu1 %1077  ;;  %v7148_v56 = vpop.permute.xlu0 %1118  ;;  %12720 = vst [vmem:[#allocation162_spill] sm:$0xff] %v7222_v43 }
 0x3b0   : > { %1330 = vrot.lane.b32.xlu1 %v7049_v51, %s12661_s30  ;;  %1440 = vrot.lane.b32.xlu0 %v7153_v25, %s12661_s30 }
 0x3b2   : > { %v7159_v61 = vpop.permute.xlu1 %1334  ;;  %v7161_v13 = vpop.permute.xlu0 %1169 }
 0x3b3   : > { %12710 = vst [vmem:[#allocation152_spill] sm:$0xff] %v7159_v61  ;;  %v7181_v61 = vsel %vm1122_vm5, %v6797_v17, %v6861_v57  ;;  %v7199_v17 = vsel %vm958_vm7, %v6781_v18, %v6845_v6  ;;  %v7217_v18 = vsel %vm754_vm2, %v6871_v53, %v6925_v32  ;;  %v7235_v53 = vsel %vm1081_vm4, %v6903_v42, %v6951_v1 }
 0x3b4   : > { %1374 = vrot.lane.b32.xlu1 %v1041_v19, %s12661_s30  ;;  %1500 = vrot.lane.b32.xlu0 %v7169_v62, %s12661_s30  ;;  %12713 = vst [vmem:[#allocation155_spill] sm:$0xff] %v7181_v61  ;;  %12716 = vst [vmem:[#allocation158_spill] sm:$0xff] %v7199_v17  ;;  %v1047_v42 = vsel %vm1040_vm3, %v7071_v45, %v7138_v12 }
 0x3b5   : > { %12722 = vst [vmem:[#allocation164_spill] sm:$0xff] %v7235_v53 }
 0x3b6   : > { %v7174_v7 = vpop.permute.xlu1 %781  ;;  %v7176_v25 = vpop.permute.xlu0 %740 }
 0x3b7   : > { %12712 = vst [vmem:[#allocation154_spill] sm:$0xff] %v7174_v7 }
 0x3b8   : > { %1434 = vrot.lane.b32.xlu1 %v7181_v61, %s12661_s30  ;;  %1356 = vrot.lane.b32.xlu0 %v7186_v52, %s12661_s30 }
 0x3ba   : > { %v7192_v4 = vpop.permute.xlu1 %863  ;;  %v7194_v19 = vpop.permute.xlu0 %822 }
 0x3bb   : > { %12714 = vst [vmem:[#allocation156_spill] sm:$0xff] %v7192_v4  ;;  %12715 = vst [vmem:[#allocation157_spill] sm:$0xff] %v7194_v19 }
 0x3bc   : > { %1494 = vrot.lane.b32.xlu1 %v7199_v17, %s12661_s30  ;;  %1416 = vrot.lane.b32.xlu0 %v7204_v26, %s12661_s30 }
 0x3be   : > { %v7210_v62 = vpop.permute.xlu1 %944  ;;  %v7212_v4 = vpop.permute.xlu0 %903 }
 0x3bf   : > { %12718 = vst [vmem:[#allocation160_spill] sm:$0xff] %v7210_v62  ;;  %12719 = vst [vmem:[#allocation161_spill] sm:$0xff] %v7212_v4  ;;  %v7371_v19 = vsel %vm917_vm6, %v6939_v15, %v7212_v4 }
 0x3c0   : > { %1350 = vrot.lane.b32.xlu1 %v7217_v18, %s12661_s30  ;;  %1476 = vrot.lane.b32.xlu0 %v7222_v43, %s12661_s30 }
 0x3c2   : > { %v7228_v26 = vpop.permute.xlu1 %1026  ;;  %v7230_v17 = vpop.permute.xlu0 %985 }
 0x3c3   : > { %12721 = vst [vmem:[#allocation163_spill] sm:$0xff] %v7230_v17  ;;  %v7250_v17 = vsel %vm917_vm6, %v6887_v44, %v6939_v15  ;;  %v7268_v44 = vsel %vm1122_vm5, %v7079_v29, %v7148_v56 }
 0x3c4   : > { %1410 = vrot.lane.b32.xlu1 %v7235_v53, %s12661_s30  ;;  %1536 = vrot.lane.b32.xlu0 %v1182_v60, %s12661_s30  ;;  %12724 = vst [vmem:[#allocation166_spill] sm:$0xff] %v7250_v17  ;;  %v1179_v53 = vsel %vm1175_vm8, %v6909_v3, %v6953_v50  ;;  %12726 = vst [vmem:[#allocation168_spill] sm:$0xff] %v7268_v44  ;;  %v7283_v3 = vsel %vm958_vm7, %v7063_v33, %v7128_v10 }
 0x3c5   : > { %12728 = vst [vmem:[#allocation170_spill] sm:$0xff] %v7283_v3 }
 0x3c6   : > { %v7243_v61 = vpop.permute.xlu1 %1108  ;;  %v7245_v43 = vpop.permute.xlu0 %1067 }
 0x3c7   : > { %12723 = vst [vmem:[#allocation165_spill] sm:$0xff] %v7245_v43 }
 0x3c8   : > { %1470 = vrot.lane.b32.xlu1 %v7250_v17, %s12661_s30  ;;  %1392 = vrot.lane.b32.xlu0 %v1047_v42, %s12661_s30  ;;  %v7332_v17 = vsel %vm1081_vm4, %v7081_v9, %v7146_v38  ;;  %v7350_v9 = vsel %vm917_vm6, %v7065_v16, %v7126_v49  ;;  %v1185_v16 = vsel %vm1175_vm8, %v7087_v48, %v7161_v13 }
 0x3c9   : > { %12735 = vst [vmem:[#allocation177_spill] sm:$0xff] %v7332_v17  ;;  %12737 = vst [vmem:[#allocation179_spill] sm:$0xff] %v7350_v9 }
 0x3ca   : > { %v7258_v23 = vpop.permute.xlu1 %1155  ;;  %v7260_v60 = vpop.permute.xlu0 %1324 }
 0x3cb   : > { %12725 = vst [vmem:[#allocation167_spill] sm:$0xff] %v7260_v60  ;;  %v1045_v60 = vsel %vm1040_vm3, %v6983_v35, %v7029_v20 }
 0x3cc   : > { %1530 = vrot.lane.b32.xlu1 %v1179_v53, %s12661_s30  ;;  %1452 = vrot.lane.b32.xlu0 %v7268_v44, %s12661_s30 }
 0x3ce   : > { %v7273_v45 = vpop.permute.xlu1 %1647  ;;  %v7275_v42 = vpop.permute.xlu0 %775 }
 0x3cf   : > { %12727 = vst [vmem:[#allocation169_spill] sm:$0xff] %v7273_v45  ;;  %v7295_v45 = vsel %vm1122_vm5, %v6989_v5, %v7037_v21 }
 0x3d0   : > { %1386 = vrot.lane.b32.xlu1 %v1045_v60, %s12661_s30  ;;  %1512 = vrot.lane.b32.xlu0 %v7283_v3, %s12661_s30  ;;  %12730 = vst [vmem:[#allocation172_spill] sm:$0xff] %v7295_v45  ;;  %v7308_v60 = vsel %vm958_vm7, %v6977_v41, %v7022_v24  ;;  %v7319_v3 = vsel %vm754_vm2, %v7047_v11, %v7100_v2 }
 0x3d1   : > { %12733 = vst [vmem:[#allocation175_spill] sm:$0xff] %v7308_v60  ;;  %v7337_v11 = vsel %vm754_vm2, %v6925_v32, %v7176_v25  ;;  %v7355_v32 = vsel %vm1081_vm4, %v6951_v1, %v7245_v43 }
 0x3d2   : > { %v7288_v29 = vpop.permute.xlu1 %734  ;;  %v7290_v53 = vpop.permute.xlu0 %857  ;;  %12738 = vst [vmem:[#allocation180_spill] sm:$0xff] %v7355_v32 }
 0x3d3   : > { %12729 = vst [vmem:[#allocation171_spill] sm:$0xff] %v7290_v53 }
 0x3d4   : > { %1446 = vrot.lane.b32.xlu1 %v7295_v45, %s12661_s30  ;;  %1384 = vrot.lane.b32.xlu0 %v7228_v26, %s12661_s30 }
 0x3d6   : > { %v7301_v35 = vpop.permute.xlu1 %816  ;;  %v7303_v33 = vpop.permute.xlu0 %938 }
 0x3d7   : > { %12731 = vst [vmem:[#allocation173_spill] sm:$0xff] %v7301_v35  ;;  %12732 = vst [vmem:[#allocation174_spill] sm:$0xff] %v7303_v33 }
 0x3d8   : > { %1506 = vrot.lane.b32.xlu1 %v7308_v60, %s12661_s30  ;;  %1444 = vrot.lane.b32.xlu0 %v7243_v61, %s12661_s30 }
 0x3da   : > { %v7314_v5 = vpop.permute.xlu1 %897  ;;  %v1021_v53 = vpop.permute.xlu0 %1020 }
 0x3dc   : > { %1362 = vrot.lane.b32.xlu1 %v7319_v3, %s12661_s30  ;;  %1504 = vrot.lane.b32.xlu0 %v7210_v62, %s12661_s30 }
 0x3de   : > { %v7325_v41 = vpop.permute.xlu1 %979  ;;  %v7327_v60 = vpop.permute.xlu0 %1102 }
 0x3df   : > { %12734 = vst [vmem:[#allocation176_spill] sm:$0xff] %v7325_v41 }
 0x3e0   : > { %1422 = vrot.lane.b32.xlu1 %v7332_v17, %s12661_s30  ;;  %1352 = vrot.lane.b32.xlu0 %v7337_v11, %s12661_s30 }
 0x3e2   : > { %v7343_v44 = vpop.permute.xlu1 %1061  ;;  %v7345_v41 = vpop.permute.xlu0 %752 }
 0x3e3   : > { %12736 = vst [vmem:[#allocation178_spill] sm:$0xff] %v7343_v44 }
 0x3e4   : > { %1482 = vrot.lane.b32.xlu1 %v7350_v9, %s12661_s30  ;;  %1412 = vrot.lane.b32.xlu0 %v7355_v32, %s12661_s30  ;;  %v1180_v9 = vsel %vm1175_vm8, %v6953_v50, %v7258_v23 }
 0x3e6   : > { %v7361_v17 = vpop.permute.xlu1 %1147  ;;  %v7363_v45 = vpop.permute.xlu0 %834 }
 0x3e8   : > { %1542 = vrot.lane.b32.xlu1 %v1185_v16, %s12661_s30  ;;  %1472 = vrot.lane.b32.xlu0 %v7371_v19, %s12661_s30 }
 0x3ea   : > { %v7376_v1 = vpop.permute.xlu1 %1318  ;;  %v7378_v32 = vpop.permute.xlu0 %915 }
 0x3eb   : > { %12739 = vst [vmem:[#allocation181_spill] sm:$0xff] %v7376_v1 }
 0x3ec   : > { %1354 = vrot.lane.b32.xlu1 %v7176_v25, %s12661_s30  ;;  %1532 = vrot.lane.b32.xlu0 %v1180_v9, %s12661_s30 }
 0x3ee   : > { %v7386_v48 = vpop.permute.xlu1 %1639  ;;  %v7388_v15 = vpop.permute.xlu0 %997 }
 0x3ef   : > { %12740 = vst [vmem:[#allocation182_spill] sm:$0xff] %v7386_v48  ;;  %12741 = vst [vmem:[#allocation183_spill] sm:$0xff] %v7388_v15  ;;  %v1044_v48 = vsel %vm1040_vm3, %v6941_v27, %v7228_v26 }
 0x3f0   : > { %1348 = vrot.lane.b32.xlu0 %v7288_v29, %s12661_s30  ;;  %1414 = vrot.lane.b32.xlu1 %v7245_v43, %s12661_s30 }
 0x3f2   : > { %v7394_v16 = vpop.permute.xlu1 %793  ;;  %v7396_v1 = vpop.permute.xlu0 %1079 }
 0x3f3   : > { %12742 = vst [vmem:[#allocation184_spill] sm:$0xff] %v7394_v16  ;;  %12743 = vst [vmem:[#allocation185_spill] sm:$0xff] %v7396_v1 }
 0x3f4   : > { %1408 = vrot.lane.b32.xlu0 %v7343_v44, %s12661_s30  ;;  %1474 = vrot.lane.b32.xlu1 %v7212_v4, %s12661_s30  ;;  %v7419_v4 = vsel %vm1122_vm5, %v6947_v28, %v7243_v61  ;;  %v7438_v28 = vsel %vm1122_vm5, %v6861_v57, %v7327_v60 }
 0x3f6   : > { %v7402_v50 = vpop.permute.xlu1 %875  ;;  %v7404_v9 = vpop.permute.xlu0 %1336 }
 0x3f7   : > { %12744 = vst [vmem:[#allocation186_spill] sm:$0xff] %v7402_v50  ;;  %12745 = vst [vmem:[#allocation187_spill] sm:$0xff] %v7404_v9  ;;  %v1042_v9 = vsel %vm1040_vm3, %v6853_v34, %v1021_v53  ;;  %v7454_v50 = vsel %vm958_vm7, %v6845_v6, %v7303_v33 }
 0x3f8   : > { %1468 = vrot.lane.b32.xlu0 %v7314_v5, %s12661_s30  ;;  %1382 = vrot.lane.b32.xlu1 %v1044_v48, %s12661_s30  ;;  %v7433_v48 = vsel %vm958_vm7, %v6935_v14, %v7210_v62  ;;  %v1181_v14 = vsel %vm1175_vm8, %v7258_v23, %v6386_v55  ;;  %12751 = vst [vmem:[#allocation193_spill] sm:$0xff] %v7454_v50 }
 0x3f9   : > { %12749 = vst [vmem:[#allocation191_spill] sm:$0xff] %v7433_v48  ;;  %v1178_v62 = vsel %vm1175_vm8, %v7361_v17, %v6381_v54 }
 0x3fa   : > { %v7412_v43 = vpop.permute.xlu1 %956  ;;  %v7414_v15 = vpop.permute.xlu0 %787 }
 0x3fb   : > { %12746 = vst [vmem:[#allocation188_spill] sm:$0xff] %v7412_v43  ;;  %12747 = vst [vmem:[#allocation189_spill] sm:$0xff] %v7414_v15 }
 0x3fc   : > { %1442 = vrot.lane.b32.xlu1 %v7419_v4, %s12661_s30  ;;  %1376 = vrot.lane.b32.xlu0 %v1042_v9, %s12661_s30 }
 0x3fe   : > { %v7426_v27 = vpop.permute.xlu1 %1038  ;;  %v7428_v26 = vpop.permute.xlu0 %869 }
 0x3ff   : > { %12748 = vst [vmem:[#allocation190_spill] sm:$0xff] %v7428_v26 }
 0x400   : > { %1502 = vrot.lane.b32.xlu1 %v7433_v48, %s12661_s30  ;;  %1436 = vrot.lane.b32.xlu0 %v7438_v28, %s12661_s30 }
 0x402   : > { %v7444_v34 = vpop.permute.xlu1 %1120  ;;  %v7446_v9 = vpop.permute.xlu0 %950 }
 0x403   : > { %12750 = vst [vmem:[#allocation192_spill] sm:$0xff] %v7446_v9 }
 0x404   : > { %1534 = vrot.lane.b32.xlu1 %v1181_v14, %s12661_s30  ;;  %1496 = vrot.lane.b32.xlu0 %v7454_v50, %s12661_s30 }
 0x406   : > { %v7459_v57 = vpop.permute.xlu1 %1171  ;;  %v7461_v26 = vpop.permute.xlu0 %1032 }
 0x408   : > { %1378 = vrot.lane.b32.xlu1 %v1021_v53, %s12661_s30  ;;  %1528 = vrot.lane.b32.xlu0 %v1178_v62, %s12661_s30  ;;  %v7491_v53 = vsel %vm754_vm2, %v6805_v0, %v7288_v29  ;;  %v7509_v0 = vsel %vm754_vm2, %v7100_v2, %v7345_v41  ;;  %v7527_v2 = vsel %vm1081_vm4, %v7146_v38, %v7396_v1 }
 0x409   : > { %12760 = vst [vmem:[#allocation202_spill] sm:$0xff] %v7527_v2 }
 0x40a   : > { %v7468_v55 = vpop.permute.xlu1 %746  ;;  %v7470_v6 = vpop.permute.xlu0 %1114 }
 0x40c   : > { %1396 = vrot.lane.b32.xlu0 %v7426_v27, %s12661_s30  ;;  %1438 = vrot.lane.b32.xlu1 %v7327_v60, %s12661_s30 }
 0x40e   : > { %v7476_v23 = vpop.permute.xlu1 %828  ;;  %v7478_v14 = vpop.permute.xlu0 %1344 }
 0x40f   : > { %12752 = vst [vmem:[#allocation194_spill] sm:$0xff] %v7478_v14 }
 0x410   : > { %1456 = vrot.lane.b32.xlu0 %v7444_v34, %s12661_s30  ;;  %1498 = vrot.lane.b32.xlu1 %v7303_v33, %s12661_s30  ;;  %v7504_v33 = vsel %vm1081_vm4, %v6837_v8, %v7343_v44  ;;  %v7522_v8 = vsel %vm917_vm6, %v6821_v58, %v7314_v5  ;;  %v1177_v58 = vsel %vm1175_vm8, %v6847_v30, %v7361_v17 }
 0x411   : > { %12757 = vst [vmem:[#allocation199_spill] sm:$0xff] %v7504_v33 }
 0x412   : > { %v7484_v54 = vpop.permute.xlu1 %909  ;;  %v7486_v62 = vpop.permute.xlu0 %1404 }
 0x413   : > { %12753 = vst [vmem:[#allocation195_spill] sm:$0xff] %v7484_v54  ;;  %12754 = vst [vmem:[#allocation196_spill] sm:$0xff] %v7486_v62 }
 0x414   : > { %1516 = vrot.lane.b32.xlu0 %v7412_v43, %s12661_s30  ;;  %1346 = vrot.lane.b32.xlu1 %v7491_v53, %s12661_s30 }
 0x416   : > { %v7497_v14 = vpop.permute.xlu1 %991  ;;  %v7499_v48 = vpop.permute.xlu0 %1464 }
 0x417   : > { %12755 = vst [vmem:[#allocation197_spill] sm:$0xff] %v7497_v14  ;;  %12756 = vst [vmem:[#allocation198_spill] sm:$0xff] %v7499_v48 }
 0x418   : > { %1406 = vrot.lane.b32.xlu1 %v7504_v33, %s12661_s30  ;;  %1364 = vrot.lane.b32.xlu0 %v7509_v0, %s12661_s30 }
 0x41a   : > { %v7515_v62 = vpop.permute.xlu1 %1073  ;;  %v7517_v14 = vpop.permute.xlu0 %1524 }
 0x41b   : > { %12758 = vst [vmem:[#allocation200_spill] sm:$0xff] %v7515_v62  ;;  %12759 = vst [vmem:[#allocation201_spill] sm:$0xff] %v7517_v14  ;;  %v7543_v14 = vsel %vm917_vm6, %v7126_v49, %v7378_v32 }
 0x41c   : > { %1466 = vrot.lane.b32.xlu1 %v7522_v8, %s12661_s30  ;;  %1424 = vrot.lane.b32.xlu0 %v7527_v2, %s12661_s30  ;;  %12762 = vst [vmem:[#allocation204_spill] sm:$0xff] %v7543_v14 }
 0x41e   : > { %v7533_v44 = vpop.permute.xlu1 %1163  ;;  %v7535_v48 = vpop.permute.xlu0 %1380 }
 0x41f   : > { %12761 = vst [vmem:[#allocation203_spill] sm:$0xff] %v7535_v48  ;;  %v1186_v48 = vsel %vm1175_vm8, %v7161_v13, %v7459_v57 }
 0x420   : > { %1526 = vrot.lane.b32.xlu1 %v1177_v58, %s12661_s30  ;;  %1484 = vrot.lane.b32.xlu0 %v7543_v14, %s12661_s30 }
 0x422   : > { %v7548_v38 = vpop.permute.xlu1 %1330  ;;  %v7550_v33 = vpop.permute.xlu0 %1440 }
 0x423   : > { %12763 = vst [vmem:[#allocation205_spill] sm:$0xff] %v7548_v38  ;;  %12764 = vst [vmem:[#allocation206_spill] sm:$0xff] %v7550_v33 }
 0x424   : > { %1366 = vrot.lane.b32.xlu1 %v7345_v41, %s12661_s30  ;;  %1544 = vrot.lane.b32.xlu0 %v1186_v48, %s12661_s30 }
 0x426   : > { %v7558_v30 = vpop.permute.xlu1 %1374  ;;  %v7560_v49 = vpop.permute.xlu0 %1500 }
 0x427   : > { %12765 = vst [vmem:[#allocation207_spill] sm:$0xff] %v7558_v30  ;;  %12766 = vst [vmem:[#allocation208_spill] sm:$0xff] %v7560_v49  ;;  %v1048_v30 = vsel %vm1040_vm3, %v7138_v12, %v7426_v27 }
 0x428   : > { %1360 = vrot.lane.b32.xlu0 %v7468_v55, %s12661_s30  ;;  %1426 = vrot.lane.b32.xlu1 %v7396_v1, %s12661_s30 }
 0x42a   : > { %v7566_v17 = vpop.permute.xlu1 %1434  ;;  %v7568_v58 = vpop.permute.xlu0 %1356 }
 0x42b   : > { %12767 = vst [vmem:[#allocation209_spill] sm:$0xff] %v7566_v17  ;;  %12768 = vst [vmem:[#allocation210_spill] sm:$0xff] %v7568_v58  ;;  %v7591_v17 = vsel %vm1122_vm5, %v7148_v56, %v7444_v34  ;;  %v7611_v56 = vsel %vm1122_vm5, %v7037_v21, %v7470_v6 }
 0x42c   : > { %1420 = vrot.lane.b32.xlu0 %v7515_v62, %s12661_s30  ;;  %1486 = vrot.lane.b32.xlu1 %v7378_v32, %s12661_s30 }
 0x42e   : > { %v7574_v13 = vpop.permute.xlu1 %1494  ;;  %v7576_v48 = vpop.permute.xlu0 %1416 }
 0x42f   : > { %12769 = vst [vmem:[#allocation211_spill] sm:$0xff] %v7574_v13  ;;  %12770 = vst [vmem:[#allocation212_spill] sm:$0xff] %v7576_v48  ;;  %v1046_v13 = vsel %vm1040_vm3, %v7029_v20, %v7461_v26  ;;  %v7721_v48 = vld [vmem:[%s6113_s14 + $0x18] sm:$0xff]  ;;  %vm999_vm3 = vcmask 867328  }
 0x430   : > { %1480 = vrot.lane.b32.xlu0 %v7484_v54, %s12661_s30  ;;  %1394 = vrot.lane.b32.xlu1 %v1048_v30, %s12661_s30  ;;  %v7606_v30 = vsel %vm958_vm7, %v7128_v10, %v7412_v43  ;;  %v1187_v10 = vsel %vm1175_vm8, %v7459_v57, %v6410_v63  ;;  %v7646_v57 = vld [vmem:[#allocation2 + $0x38] sm:$0xff] }
 0x431   : > { %12775 = vst [vmem:[#allocation217_spill] sm:$0xff] %v7606_v30 }
 0x432   : > { %v7584_v1 = vpop.permute.xlu1 %1350  ;;  %v7586_v49 = vpop.permute.xlu0 %1476 }
 0x433   : > { %12771 = vst [vmem:[#allocation213_spill] sm:$0xff] %v7584_v1  ;;  %12772 = vst [vmem:[#allocation214_spill] sm:$0xff] %v7586_v49  ;;  %v7627_v49 = vsel %vm958_vm7, %v7022_v24, %v7446_v9  ;;  %v12841_v1 = vld [vmem:[#allocation135_spill] sm:$0xff] }
 0x434   : > { %1454 = vrot.lane.b32.xlu1 %v7591_v17, %s12661_s30  ;;  %1388 = vrot.lane.b32.xlu0 %v1046_v13, %s12661_s30  ;;  %12778 = vst [vmem:[#allocation220_spill] sm:$0xff] %v7627_v49 }
 0x436   : > { %v7599_v12 = vpop.permute.xlu1 %1410  ;;  %v7601_v27 = vpop.permute.xlu0 %1536 }
 0x437   : > { %12773 = vst [vmem:[#allocation215_spill] sm:$0xff] %v7599_v12  ;;  %12774 = vst [vmem:[#allocation216_spill] sm:$0xff] %v7601_v27 }
 0x438   : > { %1514 = vrot.lane.b32.xlu1 %v7606_v30, %s12661_s30  ;;  %1448 = vrot.lane.b32.xlu0 %v7611_v56, %s12661_s30 }
 0x43a   : > { %v7617_v20 = vpop.permute.xlu1 %1470  ;;  %v7619_v13 = vpop.permute.xlu0 %1392 }
 0x43b   : > { %12776 = vst [vmem:[#allocation218_spill] sm:$0xff] %v7617_v20  ;;  %12777 = vst [vmem:[#allocation219_spill] sm:$0xff] %v7619_v13  ;;  %v1184_v20 = vsel %vm1175_vm8, %v7533_v44, %v6396_v59 }
 0x43c   : > { %1546 = vrot.lane.b32.xlu1 %v1187_v10, %s12661_s30  ;;  %1508 = vrot.lane.b32.xlu0 %v7627_v49, %s12661_s30 }
 0x43e   : > { %v7632_v21 = vpop.permute.xlu1 %1530  ;;  %v7634_v12 = vpop.permute.xlu0 %1452 }
 0x43f   : > { %12779 = vst [vmem:[#allocation221_spill] sm:$0xff] %v7632_v21  ;;  %12780 = vst [vmem:[#allocation222_spill] sm:$0xff] %v7634_v12  ;;  %v7711_v21 = vld [vmem:[%s6113_s14 + $0x8] sm:$0xff] }
 0x440   : > { %1390 = vrot.lane.b32.xlu1 %v7461_v26, %s12661_s30  ;;  %1540 = vrot.lane.b32.xlu0 %v1184_v20, %s12661_s30 }
 0x442   : > { %v7642_v24 = vpop.permute.xlu1 %1386  ;;  %v7644_v63 = vpop.permute.xlu0 %1512 }
 0x443   : > { %12781 = vst [vmem:[#allocation223_spill] sm:$0xff] %v7642_v24  ;;  %12782 = vst [vmem:[#allocation224_spill] sm:$0xff] %v7644_v63  ;;  %v7667_v24 = vsel %vm754_vm2, %v6995_v36, %v7468_v55  ;;  %v7669_v63 = vld [vmem:[#allocation2 + $0x58] sm:$0xff] }
 0x444   : > { %1649 = vrot.lane.b32.xlu0 %v7646_v57, %s5949_s13  ;;  %1450 = vrot.lane.b32.xlu1 %v7470_v6, %s12661_s30 }
 0x446   : > { %v7652_v10 = vpop.permute.xlu1 %1446  ;;  %v7654_v59 = vpop.permute.xlu0 %1384 }
 0x447   : > { %12783 = vst [vmem:[#allocation225_spill] sm:$0xff] %v7652_v10  ;;  %12784 = vst [vmem:[#allocation226_spill] sm:$0xff] %v7654_v59  ;;  %v12812_v10 = vld [vmem:[#allocation37_spill] sm:$0xff] }
 0x448   : > { %1653 = vrot.lane.b32.xlu0 %v6670_v37, %s5949_s13  ;;  %1510 = vrot.lane.b32.xlu1 %v7446_v9, %s12661_s30 }
 0x44a   : > { %v7660_v26 = vpop.permute.xlu1 %1506  ;;  %v7662_v20 = vpop.permute.xlu0 %1444 }
 0x44b   : > { %12785 = vst [vmem:[#allocation227_spill] sm:$0xff] %v7660_v26  ;;  %12786 = vst [vmem:[#allocation228_spill] sm:$0xff] %v7662_v20  ;;  %v7682_v26 = vsel %vm1081_vm4, %v7024_v39, %v7515_v62  ;;  %v1183_v62 = vsel %vm1175_vm8, %v7031_v22, %v7533_v44  ;;  %vm1554_vm8 = vcmask 859136  }
 0x44c   : > { %1657 = vrot.lane.b32.xlu0 %v7669_v63, %s5949_s13  ;;  %1358 = vrot.lane.b32.xlu1 %v7667_v24, %s12661_s30  ;;  %12789 = vst [vmem:[#allocation231_spill] sm:$0xff] %v7682_v26 }
 0x44e   : > { %v7675_v37 = vpop.permute.xlu1 %1362  ;;  %v7677_v13 = vpop.permute.xlu0 %1504 }
 0x44f   : > { %12787 = vst [vmem:[#allocation229_spill] sm:$0xff] %v7675_v37  ;;  %12788 = vst [vmem:[#allocation230_spill] sm:$0xff] %v7677_v13  ;;  %v7695_v37 = vsel %vm917_vm6, %v7010_v47, %v7484_v54  ;;  %v7697_v13 = vld [vmem:[#allocation2 + $0x78] sm:$0xff] }
 0x450   : > { %1661 = vrot.lane.b32.xlu0 %v6676_v40, %s5949_s13  ;;  %1418 = vrot.lane.b32.xlu1 %v7682_v26, %s12661_s30 }
 0x452   : > { %v7688_v36 = vpop.permute.xlu1 %1422  ;;  %v7690_v59 = vpop.permute.xlu0 %1352 }
 0x453   : > { %12790 = vst [vmem:[#allocation232_spill] sm:$0xff] %v7688_v36  ;;  %12791 = vst [vmem:[#allocation233_spill] sm:$0xff] %v7690_v59 }
 0x454   : > { %1665 = vrot.lane.b32.xlu0 %v7697_v13, %s5949_s13  ;;  %1478 = vrot.lane.b32.xlu1 %v7695_v37, %s12661_s30 }
 0x456   : > { %v7703_v40 = vpop.permute.xlu1 %1482  ;;  %v7705_v39 = vpop.permute.xlu0 %1412 }
 0x457   : > { %12792 = vst [vmem:[#allocation234_spill] sm:$0xff] %v7703_v40  ;;  %12793 = vst [vmem:[#allocation235_spill] sm:$0xff] %v7705_v39  ;;  %v7756_v39 = vld [vmem:[%s6113_s14] sm:$0xff] }
 0x458   : > { %1669 = vrot.lane.b32.xlu0 %v7711_v21, %s5949_s13  ;;  %1538 = vrot.lane.b32.xlu1 %v1183_v62, %s12661_s30 }
 0x45a   : > { %v7716_v47 = vpop.permute.xlu1 %1542  ;;  %v7718_v27 = vpop.permute.xlu0 %1472 }
 0x45b   : > { %12794 = vst [vmem:[#allocation236_spill] sm:$0xff] %v7716_v47  ;;  %12795 = vst [vmem:[#allocation237_spill] sm:$0xff] %v7718_v27 }
 0x45c   : > { %1673 = vrot.lane.b32.xlu0 %v7721_v48, %s5949_s13  ;;  %1651 = vrot.lane.b32.xlu1 %v6749_v31, %s5949_s13  ;;  %v12800_v31 = vld [vmem:[#allocation36_spill] sm:$0xff] }
 0x45e   : > { %v7727_v22 = vpop.permute.xlu1 %1354  ;;  %v7729_v44 = vpop.permute.xlu0 %1532 }
 0x45f   : > { %12796 = vst [vmem:[#allocation238_spill] sm:$0xff] %v7727_v22  ;;  %12797 = vst [vmem:[#allocation239_spill] sm:$0xff] %v7729_v44 }
 0x460   : > { %1655 = vrot.lane.b32.xlu1 %v7049_v51, %s5949_s13  ;;  %1677 = vrot.lane.b32.xlu0 %v7491_v53, %s5949_s13  ;;  %v12803_v51 = vld [vmem:[#allocation134_spill] sm:$0xff] }
 0x462   : > { %v7735_v62 = vpop.permute.xlu1 %1414  ;;  %v7737_v27 = vpop.permute.xlu0 %1348 }
 0x463   : > { %12798 = vst [vmem:[#allocation240_spill] sm:$0xff] %v7735_v62  ;;  %12799 = vst [vmem:[#allocation241_spill] sm:$0xff] %v7737_v27  ;;  %v12811_v62 = vld [vmem:[#allocation144_spill] sm:$0xff]  ;;  %v12840_v27 = vld [vmem:[#allocation14_spill] sm:$0xff] }
 0x464   : > { %1659 = vrot.lane.b32.xlu1 %v6839_v46, %s5949_s13  ;;  %1681 = vrot.lane.b32.xlu0 %v12800_v31, %s5949_s13  ;;  %v12806_v46 = vld [vmem:[#allocation43_spill] sm:$0xff] }
 0x466   : > { %v7743_v40 = vpop.permute.xlu1 %1474  ;;  %v7745_v44 = vpop.permute.xlu0 %1408 }
 0x467   : > { %12801 = vst [vmem:[#allocation36_spill] sm:$0xff] %v7743_v40  ;;  %12802 = vst [vmem:[#allocation242_spill] sm:$0xff] %v7745_v44 }
 0x468   : > { %1663 = vrot.lane.b32.xlu1 %v12803_v51, %s5949_s13  ;;  %1685 = vrot.lane.b32.xlu0 %v7337_v11, %s5949_s13  ;;  %v7767_v51 = vld [vmem:[%s6113_s14 + $0x10] sm:$0xff]  ;;  %s5950_s14 = smov 44  }
 0x46a   : > { %v7751_v47 = vpop.permute.xlu1 %1382  ;;  %v7753_v36 = vpop.permute.xlu0 %1468 }
 0x46b   : > { %12804 = vst [vmem:[#allocation134_spill] sm:$0xff] %v7751_v47  ;;  %12805 = vst [vmem:[#allocation243_spill] sm:$0xff] %v7753_v36 }
 0x46c   : > { %1667 = vrot.lane.b32.xlu1 %v7756_v39, %s5949_s13  ;;  %1689 = vrot.lane.b32.xlu0 %v12806_v46, %s5949_s13 }
 0x46e   : > { %v7762_v40 = vpop.permute.xlu1 %1442  ;;  %v7764_v44 = vpop.permute.xlu0 %1376 }
 0x46f   : > { %12807 = vst [vmem:[#allocation43_spill] sm:$0xff] %v7762_v40  ;;  %12808 = vst [vmem:[#allocation244_spill] sm:$0xff] %v7764_v44  ;;  %v1208_v40 = vsel %vm754_vm2, %v7288_v29, %v12800_v31  ;;  %v12820_v31 = vld [vmem:[#allocation30_spill] sm:$0xff] }
 0x470   : > { %1671 = vrot.lane.b32.xlu1 %v7767_v51, %s5949_s13  ;;  %1693 = vrot.lane.b32.xlu0 %v7667_v24, %s5949_s13 }
 0x472   : > { %v7773_v36 = vpop.permute.xlu1 %1502  ;;  %v7775_v47 = vpop.permute.xlu0 %1436 }
 0x473   : > { %12809 = vst [vmem:[#allocation245_spill] sm:$0xff] %v7773_v36  ;;  %12810 = vst [vmem:[#allocation246_spill] sm:$0xff] %v7775_v47 }
 0x474   : > { %1675 = vrot.lane.b32.xlu1 %v12811_v62, %s5949_s13  ;;  %1697 = vrot.lane.b32.xlu0 %v12812_v10, %s5949_s13 }
 0x476   : > { %v7781_v33 = vpop.permute.xlu1 %1534  ;;  %v7783_v44 = vpop.permute.xlu0 %1496 }
 0x477   : > { %12813 = vst [vmem:[#allocation144_spill] sm:$0xff] %v7781_v33  ;;  %12814 = vst [vmem:[#allocation37_spill] sm:$0xff] %v7783_v44  ;;  %v12817_v33 = vld [vmem:[#allocation45_spill] sm:$0xff] }
 0x478   : > { %1679 = vrot.lane.b32.xlu1 %v1208_v40, %s5949_s13  ;;  %1701 = vrot.lane.b32.xlu0 %v7509_v0, %s5949_s13  ;;  %v1209_v40 = vsel %vm754_vm2, %v7176_v25, %v12806_v46  ;;  %v1210_v46 = vsel %vm754_vm2, %v7468_v55, %v12812_v10 }
 0x47a   : > { %v7791_v36 = vpop.permute.xlu1 %1378  ;;  %v7793_v47 = vpop.permute.xlu0 %1528 }
 0x47b   : > { %12815 = vst [vmem:[#allocation247_spill] sm:$0xff] %v7791_v36  ;;  %12816 = vst [vmem:[#allocation248_spill] sm:$0xff] %v7793_v47 }
 0x47c   : > { %1683 = vrot.lane.b32.xlu1 %v7217_v18, %s5949_s13  ;;  %1705 = vrot.lane.b32.xlu0 %v12817_v33, %s5949_s13 }
 0x47e   : > { %v7799_v44 = vpop.permute.xlu1 %1438  ;;  %v7801_v20 = vpop.permute.xlu0 %1396 }
 0x47f   : > { %12818 = vst [vmem:[#allocation45_spill] sm:$0xff] %v7799_v44  ;;  %12819 = vst [vmem:[#allocation249_spill] sm:$0xff] %v7801_v20  ;;  %v12823_v44 = vld [vmem:[#allocation42_spill] sm:$0xff] }
 0x480   : > { %1687 = vrot.lane.b32.xlu1 %v1209_v40, %s5949_s13  ;;  %1709 = vrot.lane.b32.xlu0 %v12820_v31, %s5949_s13  ;;  %v12826_v40 = vld [vmem:[#allocation111_spill] sm:$0xff] }
 0x482   : > { %v7809_v36 = vpop.permute.xlu1 %1498  ;;  %v7811_v47 = vpop.permute.xlu0 %1456 }
 0x483   : > { %12821 = vst [vmem:[#allocation30_spill] sm:$0xff] %v7809_v36  ;;  %12822 = vst [vmem:[#allocation250_spill] sm:$0xff] %v7811_v47  ;;  %v7827_v36 = vsel %vm795_vm15, %v12826_v40, %v7275_v42 }
 0x484   : > { %1691 = vrot.lane.b32.xlu1 %v7186_v52, %s5949_s13  ;;  %1713 = vrot.lane.b32.xlu0 %v12823_v44, %s5949_s13  ;;  %12827 = vst [vmem:[#allocation111_spill] sm:$0xff] %v7827_v36 }
 0x486   : > { %v7817_v20 = vpop.permute.xlu1 %1346  ;;  %v7819_v12 = vpop.permute.xlu0 %1516 }
 0x487   : > { %12824 = vst [vmem:[#allocation42_spill] sm:$0xff] %v7817_v20  ;;  %12825 = vst [vmem:[#allocation251_spill] sm:$0xff] %v7819_v12  ;;  %v12830_v12 = vld [vmem:[#allocation47_spill] sm:$0xff]  ;;  %v12833_v20 = vld [vmem:[#allocation122_spill] sm:$0xff] }
 0x488   : > { %1695 = vrot.lane.b32.xlu1 %v1210_v46, %s5949_s13  ;;  %1717 = vrot.lane.b32.xlu0 %v7827_v36, %s5949_s13  ;;  %v1211_v46 = vsel %vm754_vm2, %v7345_v41, %v12817_v33 }
 0x48a   : > { %v7832_v47 = vpop.permute.xlu1 %1406  ;;  %v7834_v26 = vpop.permute.xlu0 %1364 }
 0x48b   : > { %12828 = vst [vmem:[#allocation252_spill] sm:$0xff] %v7832_v47  ;;  %12829 = vst [vmem:[#allocation253_spill] sm:$0xff] %v7834_v26  ;;  %v7850_v47 = vsel %vm795_vm15, %v12833_v20, %v7174_v7 }
 0x48c   : > { %1699 = vrot.lane.b32.xlu1 %v7319_v3, %s5949_s13  ;;  %1721 = vrot.lane.b32.xlu0 %v12830_v12, %s5949_s13 }
 0x48e   : > { %v7840_v10 = vpop.permute.xlu1 %1466  ;;  %v7842_v2 = vpop.permute.xlu0 %1424 }
 0x48f   : > { %12831 = vst [vmem:[#allocation47_spill] sm:$0xff] %v7840_v10  ;;  %12832 = vst [vmem:[#allocation254_spill] sm:$0xff] %v7842_v2  ;;  %v12836_v10 = vld [vmem:[#allocation32_spill] sm:$0xff] }
 0x490   : > { %1703 = vrot.lane.b32.xlu1 %v1211_v46, %s5949_s13  ;;  %1725 = vrot.lane.b32.xlu0 %v7850_v47, %s5949_s13  ;;  %v12837_v2 = vld [vmem:[#allocation44_spill] sm:$0xff]  ;;  %v1214_v46 = vsel %vm754_vm2, %v12840_v27, %v12823_v44  ;;  %v12846_v44 = vld [vmem:[#allocation49_spill] sm:$0xff] }
 0x492   : > { %v7855_v26 = vpop.permute.xlu1 %1526  ;;  %v7857_v38 = vpop.permute.xlu0 %1484 }
 0x493   : > { %12834 = vst [vmem:[#allocation122_spill] sm:$0xff] %v7855_v26  ;;  %12835 = vst [vmem:[#allocation255_spill] sm:$0xff] %v7857_v38  ;;  %v7873_v26 = vsel %vm795_vm15, %v12841_v1, %v7414_v15 }
 0x494   : > { %1707 = vrot.lane.b32.xlu1 %v12836_v10, %s5949_s13  ;;  %1729 = vrot.lane.b32.xlu0 %v12837_v2, %s5949_s13  ;;  %12842 = vst [vmem:[#allocation135_spill] sm:$0xff] %v7873_v26 }
 0x496   : > { %v7863_v33 = vpop.permute.xlu1 %1366  ;;  %v7865_v58 = vpop.permute.xlu0 %1544 }
 0x497   : > { %12838 = vst [vmem:[#allocation32_spill] sm:$0xff] %v7863_v33  ;;  %12839 = vst [vmem:[#allocation44_spill] sm:$0xff] %v7865_v58  ;;  %v12845_v33 = vld [vmem:[#allocation104_spill] sm:$0xff] }
 0x498   : > { %1711 = vrot.lane.b32.xlu1 %v1214_v46, %s5949_s13  ;;  %1733 = vrot.lane.b32.xlu0 %v7873_v26, %s5949_s13  ;;  %v7885_v58 = vsel %vm795_vm15, %v12845_v33, %v12826_v40 }
 0x49a   : > { %v7878_v38 = vpop.permute.xlu1 %1426  ;;  %v7880_v59 = vpop.permute.xlu0 %1360 }
 0x49b   : > { %12843 = vst [vmem:[#allocation256_spill] sm:$0xff] %v7878_v38  ;;  %12844 = vst [vmem:[#allocation257_spill] sm:$0xff] %v7880_v59  ;;  %v1223_v38 = vsel %vm795_vm15, %v7275_v42, %v12830_v12  ;;  %v12849_v59 = vld [vmem:[#allocation145_spill] sm:$0xff]  ;;  %v12855_v12 = vld [vmem:[#allocation48_spill] sm:$0xff] }
 0x49c   : > { %1715 = vrot.lane.b32.xlu1 %v7885_v58, %s5949_s13  ;;  %1737 = vrot.lane.b32.xlu0 %v12846_v44, %s5949_s13  ;;  %v7901_v26 = vsel %vm795_vm15, %v12849_v59, %v7394_v16 }
 0x49d   : > { %12850 = vst [vmem:[#allocation145_spill] sm:$0xff] %v7901_v26 }
 0x49e   : > { %v7891_v22 = vpop.permute.xlu1 %1486  ;;  %v7893_v46 = vpop.permute.xlu0 %1420 }
 0x49f   : > { %12847 = vst [vmem:[#allocation104_spill] sm:$0xff] %v7891_v22  ;;  %12848 = vst [vmem:[#allocation49_spill] sm:$0xff] %v7893_v46  ;;  %v12853_v22 = vld [vmem:[#allocation116_spill] sm:$0xff] }
 0x4a0   : > { %1719 = vrot.lane.b32.xlu1 %v1223_v38, %s5949_s13  ;;  %1741 = vrot.lane.b32.xlu0 %v7901_v26, %s5949_s13  ;;  %v7913_v46 = vsel %vm795_vm15, %v12853_v22, %v12833_v20  ;;  %v12859_v26 = vld [vmem:[#allocation16_spill] sm:$0xff] }
 0x4a1   : > { %12854 = vst [vmem:[#allocation116_spill] sm:$0xff] %v7913_v46 }
 0x4a2   : > { %v7906_v40 = vpop.permute.xlu1 %1394  ;;  %v7908_v33 = vpop.permute.xlu0 %1480 }
 0x4a3   : > { %12851 = vst [vmem:[#allocation258_spill] sm:$0xff] %v7906_v40  ;;  %12852 = vst [vmem:[#allocation259_spill] sm:$0xff] %v7908_v33  ;;  %v1224_v40 = vsel %vm795_vm15, %v7174_v7, %v12837_v2  ;;  %v12858_v33 = vld [vmem:[#allocation17_spill] sm:$0xff]  ;;  %v12864_v2 = vld [vmem:[#allocation51_spill] sm:$0xff] }
 0x4a4   : > { %1723 = vrot.lane.b32.xlu1 %v7913_v46, %s5949_s13  ;;  %1745 = vrot.lane.b32.xlu0 %v12855_v12, %s5949_s13  ;;  %v7929_v27 = vsel %vm795_vm15, %v12859_v26, %v12858_v33 }
 0x4a5   : > { %12860 = vst [vmem:[#allocation17_spill] sm:$0xff] %v7929_v27 }
 0x4a6   : > { %v7919_v36 = vpop.permute.xlu1 %1454  ;;  %v7921_v38 = vpop.permute.xlu0 %1388 }
 0x4a7   : > { %12856 = vst [vmem:[#allocation48_spill] sm:$0xff] %v7919_v36  ;;  %12857 = vst [vmem:[#allocation260_spill] sm:$0xff] %v7921_v38  ;;  %v12863_v38 = vld [vmem:[#allocation128_spill] sm:$0xff] }
 0x4a8   : > { %1727 = vrot.lane.b32.xlu1 %v1224_v40, %s5949_s13  ;;  %1749 = vrot.lane.b32.xlu0 %v7929_v27, %s5949_s13  ;;  %v7941_v36 = vsel %vm795_vm15, %v12863_v38, %v12841_v1 }
 0x4aa   : > { %v7934_v20 = vpop.permute.xlu1 %1514  ;;  %v7936_v22 = vpop.permute.xlu0 %1448 }
 0x4ab   : > { %12861 = vst [vmem:[#allocation16_spill] sm:$0xff] %v7934_v20  ;;  %12862 = vst [vmem:[#allocation261_spill] sm:$0xff] %v7936_v22  ;;  %v1225_v20 = vsel %vm795_vm15, %v7414_v15, %v12846_v44  ;;  %v12867_v22 = vld [vmem:[#allocation109_spill] sm:$0xff]  ;;  %v12873_v44 = vld [vmem:[#allocation50_spill] sm:$0xff] }
 0x4ac   : > { %1731 = vrot.lane.b32.xlu1 %v7941_v36, %s5949_s13  ;;  %1753 = vrot.lane.b32.xlu0 %v12864_v2, %s5949_s13  ;;  %v7957_v1 = vsel %vm836_vm0, %v12867_v22, %v7301_v35 }
 0x4ad   : > { %12868 = vst [vmem:[#allocation109_spill] sm:$0xff] %v7957_v1 }
 0x4ae   : > { %v7947_v7 = vpop.permute.xlu1 %1546  ;;  %v7949_v40 = vpop.permute.xlu0 %1508 }
 0x4af   : > { %12865 = vst [vmem:[#allocation128_spill] sm:$0xff] %v7947_v7  ;;  %12866 = vst [vmem:[#allocation51_spill] sm:$0xff] %v7949_v40  ;;  %v12871_v40 = vld [vmem:[#allocation139_spill] sm:$0xff] }
 0x4b0   : > { %1735 = vrot.lane.b32.xlu1 %v1225_v20, %s5949_s13  ;;  %1757 = vrot.lane.b32.xlu0 %v7957_v1, %s5949_s13  ;;  %v7969_v27 = vsel %vm795_vm15, %v12871_v40, %v12849_v59  ;;  %v12877_v1 = vld [vmem:[#allocation124_spill] sm:$0xff] }
 0x4b1   : > { %12872 = vst [vmem:[#allocation139_spill] sm:$0xff] %v7969_v27 }
 0x4b2   : > { %v7962_v38 = vpop.permute.xlu1 %1390  ;;  %v7964_v7 = vpop.permute.xlu0 %1540 }
 0x4b3   : > { %12869 = vst [vmem:[#allocation262_spill] sm:$0xff] %v7962_v38  ;;  %12870 = vst [vmem:[#allocation263_spill] sm:$0xff] %v7964_v7  ;;  %v1226_v38 = vsel %vm795_vm15, %v7394_v16, %v12855_v12  ;;  %v12876_v7 = vld [vmem:[#allocation157_spill] sm:$0xff]  ;;  %v12882_v12 = vld [vmem:[#allocation52_spill] sm:$0xff] }
 0x4b4   : > { %1739 = vrot.lane.b32.xlu1 %v7969_v27, %s5949_s13  ;;  %1761 = vrot.lane.b32.xlu0 %v12873_v44, %s5949_s13  ;;  %v7985_v15 = vsel %vm836_vm0, %v12877_v1, %v12876_v7 }
 0x4b5   : > { %12878 = vst [vmem:[#allocation124_spill] sm:$0xff] %v7985_v15 }
 0x4b6   : > { %v7975_v46 = vpop.permute.xlu1 %1450  ;;  %v7977_v20 = vpop.permute.xlu0 %1649 }
 0x4b7   : > { %12874 = vst [vmem:[#allocation50_spill] sm:$0xff] %v7975_v46  ;;  %12875 = vst [vmem:[#allocation264_spill] sm:$0xff] %v7977_v20  ;;  %v12881_v20 = vld [vmem:[#allocation15_spill] sm:$0xff] }
 0x4b8   : > { %1743 = vrot.lane.b32.xlu1 %v1226_v38, %s5949_s13  ;;  %1765 = vrot.lane.b32.xlu0 %v7985_v15, %s5949_s13  ;;  %v7997_v46 = vsel %vm795_vm15, %v12881_v20, %v12859_v26 }
 0x4ba   : > { %v7990_v59 = vpop.permute.xlu1 %1510  ;;  %v7992_v40 = vpop.permute.xlu0 %1653 }
 0x4bb   : > { %12879 = vst [vmem:[#allocation265_spill] sm:$0xff] %v7990_v59  ;;  %12880 = vst [vmem:[#allocation266_spill] sm:$0xff] %v7992_v40  ;;  %v1229_v59 = vsel %vm795_vm15, %v12858_v33, %v12864_v2  ;;  %v12885_v40 = vld [vmem:[#allocation133_spill] sm:$0xff] }
 0x4bc   : > { %1747 = vrot.lane.b32.xlu1 %v7997_v46, %s5949_s13  ;;  %1769 = vrot.lane.b32.xlu0 %v12882_v12, %s5949_s13  ;;  %v8013_v15 = vsel %vm836_vm0, %v12885_v40, %v7476_v23  ;;  %v12891_v2 = vld [vmem:[#allocation53_spill] sm:$0xff] }
 0x4bd   : > { %12886 = vst [vmem:[#allocation133_spill] sm:$0xff] %v8013_v15 }
 0x4be   : > { %v8003_v16 = vpop.permute.xlu1 %1358  ;;  %v8005_v38 = vpop.permute.xlu0 %1657 }
 0x4bf   : > { %12883 = vst [vmem:[#allocation15_spill] sm:$0xff] %v8003_v16  ;;  %12884 = vst [vmem:[#allocation52_spill] sm:$0xff] %v8005_v38  ;;  %v12889_v38 = vld [vmem:[#allocation105_spill] sm:$0xff] }
 0x4c0   : > { %1751 = vrot.lane.b32.xlu1 %v1229_v59, %s5949_s13  ;;  %1773 = vrot.lane.b32.xlu0 %v8013_v15, %s5949_s13  ;;  %v8025_v16 = vsel %vm836_vm0, %v12889_v38, %v12867_v22 }
 0x4c1   : > { %12890 = vst [vmem:[#allocation105_spill] sm:$0xff] %v8025_v16 }
 0x4c2   : > { %v8018_v26 = vpop.permute.xlu1 %1418  ;;  %v8020_v20 = vpop.permute.xlu0 %1661 }
 0x4c3   : > { %12887 = vst [vmem:[#allocation267_spill] sm:$0xff] %v8018_v26  ;;  %12888 = vst [vmem:[#allocation268_spill] sm:$0xff] %v8020_v20  ;;  %v1238_v26 = vsel %vm836_vm0, %v7301_v35, %v12873_v44  ;;  %v12894_v20 = vld [vmem:[#allocation147_spill] sm:$0xff]  ;;  %v12899_v44 = vld [vmem:[#allocation54_spill] sm:$0xff] }
 0x4c4   : > { %1755 = vrot.lane.b32.xlu1 %v8025_v16, %s5949_s13  ;;  %1777 = vrot.lane.b32.xlu0 %v12891_v2, %s5949_s13  ;;  %v8041_v15 = vsel %vm836_vm0, %v12894_v20, %v7363_v45 }
 0x4c5   : > { %12895 = vst [vmem:[#allocation147_spill] sm:$0xff] %v8041_v15 }
 0x4c6   : > { %v8031_v27 = vpop.permute.xlu1 %1478  ;;  %v8033_v59 = vpop.permute.xlu0 %1665 }
 0x4c7   : > { %12892 = vst [vmem:[#allocation53_spill] sm:$0xff] %v8031_v27  ;;  %12893 = vst [vmem:[#allocation269_spill] sm:$0xff] %v8033_v59  ;;  %v12898_v59 = vld [vmem:[#allocation118_spill] sm:$0xff] }
 0x4c8   : > { %1759 = vrot.lane.b32.xlu1 %v1238_v26, %s5949_s13  ;;  %1781 = vrot.lane.b32.xlu0 %v8041_v15, %s5949_s13  ;;  %v8053_v27 = vsel %vm836_vm0, %v12898_v59, %v12877_v1  ;;  %v12903_v15 = vld [vmem:[#allocation19_spill] sm:$0xff] }
 0x4ca   : > { %v8046_v22 = vpop.permute.xlu1 %1538  ;;  %v8048_v38 = vpop.permute.xlu0 %1669 }
 0x4cb   : > { %12896 = vst [vmem:[#allocation270_spill] sm:$0xff] %v8046_v22  ;;  %12897 = vst [vmem:[#allocation271_spill] sm:$0xff] %v8048_v38  ;;  %v1239_v22 = vsel %vm836_vm0, %v12876_v7, %v12882_v12  ;;  %v12902_v38 = vld [vmem:[#allocation20_spill] sm:$0xff] }
 0x4cc   : > { %1763 = vrot.lane.b32.xlu1 %v8053_v27, %s5949_s13  ;;  %1785 = vrot.lane.b32.xlu0 %v12899_v44, %s5949_s13  ;;  %v8069_v16 = vsel %vm836_vm0, %v12903_v15, %v12902_v38  ;;  %v12908_v12 = vld [vmem:[#allocation56_spill] sm:$0xff] }
 0x4ce   : > { %v8059_v35 = vpop.permute.xlu1 %1651  ;;  %v8061_v26 = vpop.permute.xlu0 %1673 }
 0x4cf   : > { %12900 = vst [vmem:[#allocation118_spill] sm:$0xff] %v8059_v35  ;;  %12901 = vst [vmem:[#allocation54_spill] sm:$0xff] %v8061_v26  ;;  %v12906_v35 = vld [vmem:[#allocation129_spill] sm:$0xff] }
 0x4d0   : > { %1767 = vrot.lane.b32.xlu1 %v1239_v22, %s5949_s13  ;;  %1789 = vrot.lane.b32.xlu0 %v8069_v16, %s5949_s13  ;;  %v8081_v26 = vsel %vm836_vm0, %v12906_v35, %v12885_v40 }
 0x4d1   : > { %12907 = vst [vmem:[#allocation129_spill] sm:$0xff] %v8081_v26 }
 0x4d2   : > { %v8074_v1 = vpop.permute.xlu1 %1655  ;;  %v8076_v59 = vpop.permute.xlu0 %1677 }
 0x4d3   : > { %12904 = vst [vmem:[#allocation20_spill] sm:$0xff] %v8074_v1  ;;  %12905 = vst [vmem:[#allocation19_spill] sm:$0xff] %v8076_v59  ;;  %v1240_v1 = vsel %vm836_vm0, %v7476_v23, %v12891_v2  ;;  %v12913_v59 = vld [vmem:[#allocation141_spill] sm:$0xff] }
 0x4d4   : > { %1771 = vrot.lane.b32.xlu1 %v8081_v26, %s5949_s13  ;;  %1793 = vrot.lane.b32.xlu0 %v12908_v12, %s5949_s13  ;;  %v8104_v26 = vsel %vm836_vm0, %v12913_v59, %v12894_v20 }
 0x4d6   : > { %v8087_v7 = vpop.permute.xlu1 %1659  ;;  %v8089_v22 = vpop.permute.xlu0 %1681 }
 0x4d7   : > { %12909 = vst [vmem:[#allocation56_spill] sm:$0xff] %v8087_v7  ;;  %12910 = vst [vmem:[#allocation272_spill] sm:$0xff] %v8089_v22  ;;  %v12914_v7 = vld [vmem:[#allocation55_spill] sm:$0xff] }
 0x4d8   : > { %1775 = vrot.lane.b32.xlu1 %v1240_v1, %s5949_s13  ;;  %1797 = vrot.lane.b32.xlu0 %v7438_v28, %s5949_s13  ;;  %v1241_v28 = vsel %vm836_vm0, %v7363_v45, %v12899_v44 }
 0x4da   : > { %v8097_v35 = vpop.permute.xlu1 %1663  ;;  %v8099_v40 = vpop.permute.xlu0 %1685 }
 0x4db   : > { %12911 = vst [vmem:[#allocation273_spill] sm:$0xff] %v8097_v35  ;;  %12912 = vst [vmem:[#allocation274_spill] sm:$0xff] %v8099_v40  ;;  %v12919_v35 = vld [vmem:[#allocation18_spill] sm:$0xff] }
 0x4dc   : > { %1779 = vrot.lane.b32.xlu1 %v8104_v26, %s5949_s13  ;;  %1801 = vrot.lane.b32.xlu0 %v12914_v7, %s5949_s13  ;;  %v8127_v22 = vsel %vm836_vm0, %v12919_v35, %v12903_v15 }
 0x4de   : > { %v8110_v2 = vpop.permute.xlu1 %1667  ;;  %v8112_v1 = vpop.permute.xlu0 %1689 }
 0x4df   : > { %12915 = vst [vmem:[#allocation141_spill] sm:$0xff] %v8110_v2  ;;  %12916 = vst [vmem:[#allocation55_spill] sm:$0xff] %v8112_v1  ;;  %v12920_v2 = vld [vmem:[#allocation58_spill] sm:$0xff] }
 0x4e0   : > { %1783 = vrot.lane.b32.xlu1 %v1241_v28, %s5949_s13  ;;  %1805 = vrot.lane.b32.xlu0 %v7419_v4, %s5949_s13  ;;  %v1244_v4 = vsel %vm836_vm0, %v12902_v38, %v12908_v12  ;;  %v1253_v12 = vsel %vm1122_vm5, %v7327_v60, %v12914_v7  ;;  %v1254_v7 = vsel %vm1122_vm5, %v7243_v61, %v12920_v2  ;;  %v12935_v60 = vld [vmem:[#allocation38_spill] sm:$0xff] }
 0x4e2   : > { %v8120_v20 = vpop.permute.xlu1 %1671  ;;  %v8122_v59 = vpop.permute.xlu0 %1693 }
 0x4e3   : > { %12917 = vst [vmem:[#allocation275_spill] sm:$0xff] %v8120_v20  ;;  %12918 = vst [vmem:[#allocation276_spill] sm:$0xff] %v8122_v59  ;;  %v12925_v20 = vld [vmem:[#allocation155_spill] sm:$0xff] }
 0x4e4   : > { %1787 = vrot.lane.b32.xlu1 %v8127_v22, %s5949_s13  ;;  %1809 = vrot.lane.b32.xlu0 %v12920_v2, %s5949_s13 }
 0x4e6   : > { %v8133_v44 = vpop.permute.xlu1 %1675  ;;  %v8135_v28 = vpop.permute.xlu0 %1697 }
 0x4e7   : > { %12921 = vst [vmem:[#allocation18_spill] sm:$0xff] %v8133_v44  ;;  %12922 = vst [vmem:[#allocation58_spill] sm:$0xff] %v8135_v28  ;;  %v12926_v44 = vld [vmem:[#allocation57_spill] sm:$0xff] }
 0x4e8   : > { %1791 = vrot.lane.b32.xlu1 %v1244_v4, %s5949_s13  ;;  %1813 = vrot.lane.b32.xlu0 %v7611_v56, %s5949_s13  ;;  %v1255_v61 = vsel %vm1122_vm5, %v7470_v6, %v12926_v44 }
 0x4ea   : > { %v8143_v15 = vpop.permute.xlu1 %1679  ;;  %v8145_v35 = vpop.permute.xlu0 %1701 }
 0x4eb   : > { %12923 = vst [vmem:[#allocation277_spill] sm:$0xff] %v8143_v15  ;;  %12924 = vst [vmem:[#allocation278_spill] sm:$0xff] %v8145_v35  ;;  %v12932_v15 = vld [vmem:[#allocation60_spill] sm:$0xff]  ;;  %v12951_v35 = vld [vmem:[#allocation61_spill] sm:$0xff] }
 0x4ec   : > { %1795 = vrot.lane.b32.xlu1 %v12925_v20, %s5949_s13  ;;  %1817 = vrot.lane.b32.xlu0 %v12926_v44, %s5949_s13  ;;  %v12931_v20 = vld [vmem:[#allocation151_spill] sm:$0xff]  ;;  %v1256_v6 = vsel %vm1122_vm5, %v7444_v34, %v12932_v15 }
 0x4ed   : > { %v12954_v34 = vld [vmem:[#allocation31_spill] sm:$0xff] }
 0x4ee   : > { %v8151_v40 = vpop.permute.xlu1 %1683  ;;  %v8153_v1 = vpop.permute.xlu0 %1705 }
 0x4ef   : > { %12927 = vst [vmem:[#allocation155_spill] sm:$0xff] %v8151_v40  ;;  %12928 = vst [vmem:[#allocation57_spill] sm:$0xff] %v8153_v1 }
 0x4f0   : > { %1799 = vrot.lane.b32.xlu1 %v1253_v12, %s5949_s13  ;;  %1821 = vrot.lane.b32.xlu0 %v7591_v17, %s5949_s13 }
 0x4f2   : > { %v8161_v56 = vpop.permute.xlu1 %1687  ;;  %v8163_v4 = vpop.permute.xlu0 %1709 }
 0x4f3   : > { %12929 = vst [vmem:[#allocation279_spill] sm:$0xff] %v8161_v56  ;;  %12930 = vst [vmem:[#allocation280_spill] sm:$0xff] %v8163_v4  ;;  %v12939_v56 = vld [vmem:[#allocation59_spill] sm:$0xff]  ;;  %v12958_v4 = vld [vmem:[#allocation64_spill] sm:$0xff] }
 0x4f4   : > { %1803 = vrot.lane.b32.xlu1 %v12931_v20, %s5949_s13  ;;  %1825 = vrot.lane.b32.xlu0 %v12932_v15, %s5949_s13  ;;  %v12938_v20 = vld [vmem:[#allocation172_spill] sm:$0xff]  ;;  %v1259_v15 = vsel %vm1122_vm5, %v12954_v34, %v12939_v56  ;;  %vm1311_vm5 = vcmask 834560  }
 0x4f6   : > { %v8169_v40 = vpop.permute.xlu1 %1691  ;;  %v8171_v59 = vpop.permute.xlu0 %1713 }
 0x4f7   : > { %12933 = vst [vmem:[#allocation151_spill] sm:$0xff] %v8169_v40  ;;  %12934 = vst [vmem:[#allocation60_spill] sm:$0xff] %v8171_v59 }
 0x4f8   : > { %1807 = vrot.lane.b32.xlu1 %v1254_v7, %s5949_s13  ;;  %1829 = vrot.lane.b32.xlu0 %v12935_v60, %s5949_s13  ;;  %v12944_v60 = vld [vmem:[#allocation168_spill] sm:$0xff] }
 0x4fa   : > { %v8179_v17 = vpop.permute.xlu1 %1695  ;;  %v8181_v12 = vpop.permute.xlu0 %1717 }
 0x4fb   : > { %12936 = vst [vmem:[#allocation38_spill] sm:$0xff] %v8179_v17  ;;  %12937 = vst [vmem:[#allocation281_spill] sm:$0xff] %v8181_v12  ;;  %v12964_v12 = vld [vmem:[#allocation63_spill] sm:$0xff] }
 0x4fc   : > { %1811 = vrot.lane.b32.xlu1 %v12938_v20, %s5949_s13  ;;  %1833 = vrot.lane.b32.xlu0 %v12939_v56, %s5949_s13  ;;  %v12945_v20 = vld [vmem:[#allocation62_spill] sm:$0xff] }
 0x4fd   : > { %v1268_v56 = vsel %vm917_vm6, %v7314_v5, %v12945_v20 }
 0x4fe   : > { %v8187_v40 = vpop.permute.xlu1 %1699  ;;  %v8189_v28 = vpop.permute.xlu0 %1721 }
 0x4ff   : > { %12940 = vst [vmem:[#allocation172_spill] sm:$0xff] %v8187_v40  ;;  %12941 = vst [vmem:[#allocation59_spill] sm:$0xff] %v8189_v28 }
 0x500   : > { %1815 = vrot.lane.b32.xlu1 %v1255_v61, %s5949_s13  ;;  %1837 = vrot.lane.b32.xlu0 %v7522_v8, %s5949_s13 }
 0x502   : > { %v8197_v2 = vpop.permute.xlu1 %1703  ;;  %v8199_v7 = vpop.permute.xlu0 %1725 }
 0x503   : > { %12942 = vst [vmem:[#allocation282_spill] sm:$0xff] %v8197_v2  ;;  %12943 = vst [vmem:[#allocation283_spill] sm:$0xff] %v8199_v7 }
 0x504   : > { %1819 = vrot.lane.b32.xlu1 %v12944_v60, %s5949_s13  ;;  %1841 = vrot.lane.b32.xlu0 %v12945_v20, %s5949_s13  ;;  %v12950_v60 = vld [vmem:[#allocation35_spill] sm:$0xff]  ;;  %v12967_v20 = vld [vmem:[#allocation161_spill] sm:$0xff] }
 0x506   : > { %v8205_v17 = vpop.permute.xlu1 %1707  ;;  %v8207_v40 = vpop.permute.xlu0 %1729 }
 0x507   : > { %12946 = vst [vmem:[#allocation168_spill] sm:$0xff] %v8205_v17  ;;  %12947 = vst [vmem:[#allocation62_spill] sm:$0xff] %v8207_v40  ;;  %v12971_v40 = vld [vmem:[#allocation162_spill] sm:$0xff] }
 0x508   : > { %1823 = vrot.lane.b32.xlu1 %v1256_v6, %s5949_s13  ;;  %1845 = vrot.lane.b32.xlu0 %v7371_v19, %s5949_s13 }
 0x50a   : > { %v8215_v44 = vpop.permute.xlu1 %1711  ;;  %v8217_v61 = vpop.permute.xlu0 %1733 }
 0x50b   : > { %12948 = vst [vmem:[#allocation284_spill] sm:$0xff] %v8215_v44  ;;  %12949 = vst [vmem:[#allocation285_spill] sm:$0xff] %v8217_v61 }
 0x50c   : > { %1827 = vrot.lane.b32.xlu1 %v12950_v60, %s5949_s13  ;;  %1849 = vrot.lane.b32.xlu0 %v12951_v35, %s5949_s13  ;;  %v12957_v60 = vld [vmem:[#allocation149_spill] sm:$0xff] }
 0x50e   : > { %v8223_v2 = vpop.permute.xlu1 %1715  ;;  %v8225_v1 = vpop.permute.xlu0 %1737 }
 0x50f   : > { %12952 = vst [vmem:[#allocation35_spill] sm:$0xff] %v8223_v2  ;;  %12953 = vst [vmem:[#allocation61_spill] sm:$0xff] %v8225_v1  ;;  %v12963_v2 = vld [vmem:[#allocation166_spill] sm:$0xff] }
 0x510   : > { %1831 = vrot.lane.b32.xlu1 %v1259_v15, %s5949_s13  ;;  %1853 = vrot.lane.b32.xlu0 %v7695_v37, %s5949_s13 }
 0x512   : > { %v8233_v6 = vpop.permute.xlu1 %1719  ;;  %v8235_v17 = vpop.permute.xlu0 %1741 }
 0x513   : > { %12955 = vst [vmem:[#allocation31_spill] sm:$0xff] %v8233_v6  ;;  %12956 = vst [vmem:[#allocation286_spill] sm:$0xff] %v8235_v17  ;;  %v12977_v17 = vld [vmem:[#allocation179_spill] sm:$0xff] }
 0x514   : > { %1835 = vrot.lane.b32.xlu1 %v12957_v60, %s5949_s13  ;;  %1857 = vrot.lane.b32.xlu0 %v12958_v4, %s5949_s13 }
 0x516   : > { %v8241_v44 = vpop.permute.xlu1 %1723  ;;  %v8243_v59 = vpop.permute.xlu0 %1745 }
 0x517   : > { %12959 = vst [vmem:[#allocation149_spill] sm:$0xff] %v8241_v44  ;;  %12960 = vst [vmem:[#allocation64_spill] sm:$0xff] %v8243_v59  ;;  %v12968_v44 = vld [vmem:[#allocation39_spill] sm:$0xff] }
 0x518   : > { %1839 = vrot.lane.b32.xlu1 %v1268_v56, %s5949_s13  ;;  %1861 = vrot.lane.b32.xlu0 %v7543_v14, %s5949_s13  ;;  %v1269_v56 = vsel %vm917_vm6, %v12967_v20, %v12951_v35  ;;  %v1270_v35 = vsel %vm917_vm6, %v7484_v54, %v12958_v4  ;;  %v1271_v4 = vsel %vm917_vm6, %v7378_v32, %v12964_v12  ;;  %v13028_v14 = vld [vmem:[#allocation25_spill] sm:$0xff] }
 0x51a   : > { %v8251_v34 = vpop.permute.xlu1 %1727  ;;  %v8253_v15 = vpop.permute.xlu0 %1749 }
 0x51b   : > { %12961 = vst [vmem:[#allocation287_spill] sm:$0xff] %v8251_v34  ;;  %12962 = vst [vmem:[#allocation288_spill] sm:$0xff] %v8253_v15 }
 0x51c   : > { %1843 = vrot.lane.b32.xlu1 %v12963_v2, %s5949_s13  ;;  %1865 = vrot.lane.b32.xlu0 %v12964_v12, %s5949_s13  ;;  %v12988_v12 = vld [vmem:[#allocation24_spill] sm:$0xff] }
 0x51e   : > { %v8259_v6 = vpop.permute.xlu1 %1731  ;;  %v8261_v28 = vpop.permute.xlu0 %1753 }
 0x51f   : > { %12965 = vst [vmem:[#allocation166_spill] sm:$0xff] %v8259_v6  ;;  %12966 = vst [vmem:[#allocation63_spill] sm:$0xff] %v8261_v28  ;;  %v12972_v6 = vld [vmem:[#allocation66_spill] sm:$0xff]  ;;  %v12984_v28 = vld [vmem:[#allocation40_spill] sm:$0xff] }
 0x520   : > { %1847 = vrot.lane.b32.xlu1 %v1269_v56, %s5949_s13  ;;  %1869 = vrot.lane.b32.xlu0 %v12968_v44, %s5949_s13 }
 0x522   : > { %v8269_v7 = vpop.permute.xlu1 %1735  ;;  %v8271_v34 = vpop.permute.xlu0 %1757 }
 0x523   : > { %12969 = vst [vmem:[#allocation161_spill] sm:$0xff] %v8269_v7  ;;  %12970 = vst [vmem:[#allocation39_spill] sm:$0xff] %v8271_v34 }
 0x524   : > { %1851 = vrot.lane.b32.xlu1 %v12971_v40, %s5949_s13  ;;  %1873 = vrot.lane.b32.xlu0 %v12972_v6, %s5949_s13 }
 0x526   : > { %v8277_v61 = vpop.permute.xlu1 %1739  ;;  %v8279_v1 = vpop.permute.xlu0 %1761 }
 0x527   : > { %12973 = vst [vmem:[#allocation162_spill] sm:$0xff] %v8277_v61  ;;  %12974 = vst [vmem:[#allocation66_spill] sm:$0xff] %v8279_v1  ;;  %v12978_v61 = vld [vmem:[#allocation65_spill] sm:$0xff]  ;;  %v12991_v1 = vld [vmem:[#allocation158_spill] sm:$0xff] }
 0x528   : > { %1855 = vrot.lane.b32.xlu1 %v1270_v35, %s5949_s13  ;;  %1877 = vrot.lane.b32.xlu0 %v7454_v50, %s5949_s13  ;;  %v12981_v35 = vld [vmem:[#allocation191_spill] sm:$0xff] }
 0x52a   : > { %v8287_v56 = vpop.permute.xlu1 %1743  ;;  %v8289_v7 = vpop.permute.xlu0 %1765 }
 0x52b   : > { %12975 = vst [vmem:[#allocation289_spill] sm:$0xff] %v8287_v56  ;;  %12976 = vst [vmem:[#allocation290_spill] sm:$0xff] %v8289_v7 }
 0x52c   : > { %1859 = vrot.lane.b32.xlu1 %v12977_v17, %s5949_s13  ;;  %1881 = vrot.lane.b32.xlu0 %v12978_v61, %s5949_s13 }
 0x52e   : > { %v8295_v59 = vpop.permute.xlu1 %1747  ;;  %v8297_v15 = vpop.permute.xlu0 %1769 }
 0x52f   : > { %12979 = vst [vmem:[#allocation179_spill] sm:$0xff] %v8295_v59  ;;  %12980 = vst [vmem:[#allocation65_spill] sm:$0xff] %v8297_v15  ;;  %v12985_v59 = vld [vmem:[#allocation68_spill] sm:$0xff] }
 0x530   : > { %1863 = vrot.lane.b32.xlu1 %v1271_v4, %s5949_s13  ;;  %1885 = vrot.lane.b32.xlu0 %v12981_v35, %s5949_s13  ;;  %v1274_v4 = vsel %vm917_vm6, %v12988_v12, %v12972_v6  ;;  %v12995_v6 = vld [vmem:[#allocation174_spill] sm:$0xff]  ;;  %v13029_v35 = vld [vmem:[#allocation197_spill] sm:$0xff] }
 0x532   : > { %v8305_v7 = vpop.permute.xlu1 %1751  ;;  %v8307_v56 = vpop.permute.xlu0 %1773 }
 0x533   : > { %12982 = vst [vmem:[#allocation291_spill] sm:$0xff] %v8305_v7  ;;  %12983 = vst [vmem:[#allocation292_spill] sm:$0xff] %v8307_v56 }
 0x534   : > { %1867 = vrot.lane.b32.xlu1 %v12984_v28, %s5949_s13  ;;  %1889 = vrot.lane.b32.xlu0 %v12985_v59, %s5949_s13 }
 0x536   : > { %v8313_v15 = vpop.permute.xlu1 %1755  ;;  %v8315_v34 = vpop.permute.xlu0 %1777 }
 0x537   : > { %12986 = vst [vmem:[#allocation68_spill] sm:$0xff] %v8313_v15  ;;  %12987 = vst [vmem:[#allocation293_spill] sm:$0xff] %v8315_v34  ;;  %v12992_v15 = vld [vmem:[#allocation67_spill] sm:$0xff] }
 0x538   : > { %1871 = vrot.lane.b32.xlu1 %v1274_v4, %s5949_s13  ;;  %1893 = vrot.lane.b32.xlu0 %v7627_v49, %s5949_s13  ;;  %v1283_v4 = vsel %vm958_vm7, %v12995_v6, %v12978_v61  ;;  %v12998_v49 = vld [vmem:[#allocation153_spill] sm:$0xff]  ;;  %v13002_v61 = vld [vmem:[#allocation160_spill] sm:$0xff] }
 0x53a   : > { %v8323_v56 = vpop.permute.xlu1 %1759  ;;  %v8325_v7 = vpop.permute.xlu0 %1781 }
 0x53b   : > { %12989 = vst [vmem:[#allocation294_spill] sm:$0xff] %v8323_v56  ;;  %12990 = vst [vmem:[#allocation295_spill] sm:$0xff] %v8325_v7 }
 0x53c   : > { %1875 = vrot.lane.b32.xlu1 %v12991_v1, %s5949_s13  ;;  %1897 = vrot.lane.b32.xlu0 %v12992_v15, %s5949_s13 }
 0x53e   : > { %v8331_v34 = vpop.permute.xlu1 %1763  ;;  %v8333_v50 = vpop.permute.xlu0 %1785 }
 0x53f   : > { %12993 = vst [vmem:[#allocation158_spill] sm:$0xff] %v8331_v34  ;;  %12994 = vst [vmem:[#allocation67_spill] sm:$0xff] %v8333_v50  ;;  %v12999_v34 = vld [vmem:[#allocation70_spill] sm:$0xff] }
 0x540   : > { %1879 = vrot.lane.b32.xlu1 %v1283_v4, %s5949_s13  ;;  %1901 = vrot.lane.b32.xlu0 %v7606_v30, %s5949_s13  ;;  %v1284_v4 = vsel %vm958_vm7, %v13002_v61, %v12985_v59  ;;  %v1285_v59 = vsel %vm958_vm7, %v7446_v9, %v12992_v15  ;;  %v13019_v61 = vld [vmem:[#allocation163_spill] sm:$0xff] }
 0x542   : > { %v8341_v7 = vpop.permute.xlu1 %1767  ;;  %v8343_v56 = vpop.permute.xlu0 %1789 }
 0x543   : > { %12996 = vst [vmem:[#allocation174_spill] sm:$0xff] %v8341_v7  ;;  %12997 = vst [vmem:[#allocation296_spill] sm:$0xff] %v8343_v56  ;;  %v13003_v7 = vld [vmem:[#allocation46_spill] sm:$0xff] }
 0x544   : > { %1883 = vrot.lane.b32.xlu1 %v12998_v49, %s5949_s13  ;;  %1905 = vrot.lane.b32.xlu0 %v12999_v34, %s5949_s13  ;;  %v13006_v49 = vld [vmem:[#allocation175_spill] sm:$0xff] }
 0x546   : > { %v8349_v50 = vpop.permute.xlu1 %1771  ;;  %v8351_v12 = vpop.permute.xlu0 %1793 }
 0x547   : > { %13000 = vst [vmem:[#allocation70_spill] sm:$0xff] %v8349_v50  ;;  %13001 = vst [vmem:[#allocation297_spill] sm:$0xff] %v8351_v12  ;;  %v13007_v50 = vld [vmem:[#allocation69_spill] sm:$0xff] }
 0x548   : > { %1887 = vrot.lane.b32.xlu1 %v1284_v4, %s5949_s13  ;;  %1909 = vrot.lane.b32.xlu0 %v13003_v7, %s5949_s13  ;;  %v13010_v4 = vld [vmem:[#allocation176_spill] sm:$0xff] }
 0x549   : > { %v13011_v7 = vld [vmem:[#allocation112_spill] sm:$0xff] }
 0x54a   : > { %v8359_v56 = vpop.permute.xlu1 %1775  ;;  %v8361_v30 = vpop.permute.xlu0 %1797 }
 0x54b   : > { %13004 = vst [vmem:[#allocation298_spill] sm:$0xff] %v8359_v56  ;;  %13005 = vst [vmem:[#allocation299_spill] sm:$0xff] %v8361_v30  ;;  %v8377_v56 = vsel %vm999_vm3, %v13011_v7, %v13010_v4 }
 0x54c   : > { %1891 = vrot.lane.b32.xlu1 %v13006_v49, %s5949_s13  ;;  %1913 = vrot.lane.b32.xlu0 %v13007_v50, %s5949_s13  ;;  %13012 = vst [vmem:[#allocation112_spill] sm:$0xff] %v8377_v56  ;;  %v13016_v49 = vld [vmem:[#allocation72_spill] sm:$0xff] }
 0x54e   : > { %v8367_v12 = vpop.permute.xlu1 %1779  ;;  %v8369_v28 = vpop.permute.xlu0 %1801 }
 0x54f   : > { %13008 = vst [vmem:[#allocation69_spill] sm:$0xff] %v8367_v12  ;;  %13009 = vst [vmem:[#allocation300_spill] sm:$0xff] %v8369_v28  ;;  %v13015_v28 = vld [vmem:[#allocation170_spill] sm:$0xff] }
 0x550   : > { %1895 = vrot.lane.b32.xlu1 %v1285_v59, %s5949_s13  ;;  %1917 = vrot.lane.b32.xlu0 %v8377_v56, %s5949_s13  ;;  %v1286_v59 = vsel %vm958_vm7, %v7412_v43, %v12999_v34  ;;  %v13020_v56 = vld [vmem:[#allocation125_spill] sm:$0xff] }
 0x552   : > { %v8382_v30 = vpop.permute.xlu1 %1783  ;;  %v8384_v12 = vpop.permute.xlu0 %1805 }
 0x553   : > { %13013 = vst [vmem:[#allocation301_spill] sm:$0xff] %v8382_v30  ;;  %13014 = vst [vmem:[#allocation302_spill] sm:$0xff] %v8384_v12  ;;  %v8400_v30 = vsel %vm999_vm3, %v13020_v56, %v13019_v61 }
 0x554   : > { %1899 = vrot.lane.b32.xlu1 %v13015_v28, %s5949_s13  ;;  %1921 = vrot.lane.b32.xlu0 %v13016_v49, %s5949_s13  ;;  %13021 = vst [vmem:[#allocation125_spill] sm:$0xff] %v8400_v30 }
 0x556   : > { %v8390_v15 = vpop.permute.xlu1 %1787  ;;  %v8392_v9 = vpop.permute.xlu0 %1809 }
 0x557   : > { %13017 = vst [vmem:[#allocation72_spill] sm:$0xff] %v8390_v15  ;;  %13018 = vst [vmem:[#allocation303_spill] sm:$0xff] %v8392_v9  ;;  %v13024_v15 = vld [vmem:[#allocation41_spill] sm:$0xff]  ;;  %v13025_v9 = vld [vmem:[#allocation71_spill] sm:$0xff] }
 0x558   : > { %1903 = vrot.lane.b32.xlu1 %v1286_v59, %s5949_s13  ;;  %1925 = vrot.lane.b32.xlu0 %v8400_v30, %s5949_s13  ;;  %v1289_v59 = vsel %vm958_vm7, %v13028_v14, %v13007_v50  ;;  %v13030_v30 = vld [vmem:[#allocation137_spill] sm:$0xff]  ;;  %v13036_v50 = vld [vmem:[#allocation74_spill] sm:$0xff] }
 0x55a   : > { %v8405_v12 = vpop.permute.xlu1 %1791  ;;  %v8407_v28 = vpop.permute.xlu0 %1813 }
 0x55b   : > { %13022 = vst [vmem:[#allocation304_spill] sm:$0xff] %v8405_v12  ;;  %13023 = vst [vmem:[#allocation305_spill] sm:$0xff] %v8407_v28  ;;  %v8423_v12 = vsel %vm999_vm3, %v13030_v30, %v13029_v35 }
 0x55c   : > { %1907 = vrot.lane.b32.xlu1 %v13024_v15, %s5949_s13  ;;  %1929 = vrot.lane.b32.xlu0 %v13025_v9, %s5949_s13  ;;  %13031 = vst [vmem:[#allocation197_spill] sm:$0xff] %v8423_v12 }
 0x55e   : > { %v8413_v34 = vpop.permute.xlu1 %1795  ;;  %v8415_v43 = vpop.permute.xlu0 %1817 }
 0x55f   : > { %13026 = vst [vmem:[#allocation71_spill] sm:$0xff] %v8413_v34  ;;  %13027 = vst [vmem:[#allocation306_spill] sm:$0xff] %v8415_v43  ;;  %v13034_v34 = vld [vmem:[#allocation107_spill] sm:$0xff] }
 0x560   : > { %1911 = vrot.lane.b32.xlu1 %v1289_v59, %s5949_s13  ;;  %1933 = vrot.lane.b32.xlu0 %v8423_v12, %s5949_s13  ;;  %v8435_v43 = vsel %vm999_vm3, %v13034_v34, %v13011_v7  ;;  %v13040_v12 = vld [vmem:[#allocation150_spill] sm:$0xff] }
 0x561   : > { %13035 = vst [vmem:[#allocation107_spill] sm:$0xff] %v8435_v43 }
 0x562   : > { %v8428_v28 = vpop.permute.xlu1 %1799  ;;  %v8430_v15 = vpop.permute.xlu0 %1821 }
 0x563   : > { %13032 = vst [vmem:[#allocation137_spill] sm:$0xff] %v8428_v28  ;;  %13033 = vst [vmem:[#allocation307_spill] sm:$0xff] %v8430_v15  ;;  %v1298_v28 = vsel %vm999_vm3, %v13010_v4, %v13016_v49  ;;  %v13039_v15 = vld [vmem:[#allocation183_spill] sm:$0xff]  ;;  %v13046_v49 = vld [vmem:[#allocation73_spill] sm:$0xff] }
 0x564   : > { %1915 = vrot.lane.b32.xlu1 %v8435_v43, %s5949_s13  ;;  %1937 = vrot.lane.b32.xlu0 %v13036_v50, %s5949_s13  ;;  %v8451_v54 = vsel %vm999_vm3, %v13040_v12, %v13039_v15  ;;  %v13050_v43 = vld [vmem:[#allocation27_spill] sm:$0xff] }
 0x565   : > { %13041 = vst [vmem:[#allocation183_spill] sm:$0xff] %v8451_v54 }
 0x566   : > { %v8441_v14 = vpop.permute.xlu1 %1803  ;;  %v8443_v59 = vpop.permute.xlu0 %1825 }
 0x567   : > { %13037 = vst [vmem:[#allocation74_spill] sm:$0xff] %v8441_v14  ;;  %13038 = vst [vmem:[#allocation308_spill] sm:$0xff] %v8443_v59  ;;  %v13044_v14 = vld [vmem:[#allocation119_spill] sm:$0xff] }
 0x568   : > { %1919 = vrot.lane.b32.xlu1 %v1298_v28, %s5949_s13  ;;  %1941 = vrot.lane.b32.xlu0 %v8451_v54, %s5949_s13  ;;  %v8463_v59 = vsel %vm999_vm3, %v13044_v14, %v13020_v56 }
 0x569   : > { %13045 = vst [vmem:[#allocation119_spill] sm:$0xff] %v8463_v59 }
 0x56a   : > { %v8456_v7 = vpop.permute.xlu1 %1807  ;;  %v8458_v34 = vpop.permute.xlu0 %1829 }
 0x56b   : > { %13042 = vst [vmem:[#allocation150_spill] sm:$0xff] %v8456_v7  ;;  %13043 = vst [vmem:[#allocation309_spill] sm:$0xff] %v8458_v34  ;;  %v1299_v7 = vsel %vm999_vm3, %v13019_v61, %v13025_v9  ;;  %v13049_v34 = vld [vmem:[#allocation28_spill] sm:$0xff]  ;;  %v13059_v61 = vld [vmem:[#allocation142_spill] sm:$0xff] }
 0x56c   : > { %1923 = vrot.lane.b32.xlu1 %v8463_v59, %s5949_s13  ;;  %1945 = vrot.lane.b32.xlu0 %v13046_v49, %s5949_s13  ;;  %v8479_v54 = vsel %vm999_vm3, %v13050_v43, %v13049_v34  ;;  %v13054_v9 = vld [vmem:[#allocation76_spill] sm:$0xff] }
 0x56e   : > { %v8469_v4 = vpop.permute.xlu1 %1811  ;;  %v8471_v28 = vpop.permute.xlu0 %1833 }
 0x56f   : > { %13047 = vst [vmem:[#allocation73_spill] sm:$0xff] %v8469_v4  ;;  %13048 = vst [vmem:[#allocation310_spill] sm:$0xff] %v8471_v28  ;;  %v13053_v4 = vld [vmem:[#allocation131_spill] sm:$0xff] }
 0x570   : > { %1927 = vrot.lane.b32.xlu1 %v1299_v7, %s5949_s13  ;;  %1949 = vrot.lane.b32.xlu0 %v8479_v54, %s5949_s13  ;;  %v8491_v28 = vsel %vm999_vm3, %v13053_v4, %v13030_v30 }
 0x572   : > { %v8484_v14 = vpop.permute.xlu1 %1815  ;;  %v8486_v56 = vpop.permute.xlu0 %1837 }
 0x573   : > { %13051 = vst [vmem:[#allocation28_spill] sm:$0xff] %v8484_v14  ;;  %13052 = vst [vmem:[#allocation27_spill] sm:$0xff] %v8486_v56  ;;  %v1300_v14 = vsel %vm999_vm3, %v13029_v35, %v13036_v50  ;;  %v5741_v56 = vld [vmem:[#allocation2 + $0x8] sm:$0xff] }
 0x574   : > { %1931 = vrot.lane.b32.xlu1 %v8491_v28, %s5949_s13  ;;  %1953 = vrot.lane.b32.xlu0 %v13054_v9, %s5949_s13 }
 0x576   : > { %v8497_v59 = vpop.permute.xlu1 %1819  ;;  %v8499_v7 = vpop.permute.xlu0 %1841 }
 0x577   : > { %13055 = vst [vmem:[#allocation131_spill] sm:$0xff] %v8497_v59  ;;  %13056 = vst [vmem:[#allocation76_spill] sm:$0xff] %v8499_v7  ;;  %v8513_v59 = vsel %vm999_vm3, %v13059_v61, %v13040_v12  ;;  %v5742_v7 = vld [vmem:[#allocation2 + $0x18] sm:$0xff] }
 0x578   : > { %1935 = vrot.lane.b32.xlu1 %v1300_v14, %s5949_s13  ;;  %2078 = vrot.lane.b32.xlu0 %v5741_v56, %s5950_s14  ;;  %v1301_v56 = vsel %vm999_vm3, %v13039_v15, %v13046_v49 }
 0x57a   : > { %v8506_v30 = vpop.permute.xlu1 %1823  ;;  %v8508_v4 = vpop.permute.xlu0 %1845 }
 0x57b   : > { %13057 = vst [vmem:[#allocation311_spill] sm:$0xff] %v8506_v30  ;;  %13058 = vst [vmem:[#allocation312_spill] sm:$0xff] %v8508_v4  ;;  %v5743_v30 = vld [vmem:[#allocation2 + $0x28] sm:$0xff]  ;;  %v13064_v4 = vld [vmem:[#allocation26_spill] sm:$0xff] }
 0x57c   : > { %1939 = vrot.lane.b32.xlu1 %v8513_v59, %s5949_s13  ;;  %2082 = vrot.lane.b32.xlu0 %v5742_v7, %s5950_s14  ;;  %v8534_v7 = vsel %vm999_vm3, %v13064_v4, %v13050_v43 }
 0x57e   : > { %v8518_v50 = vpop.permute.xlu1 %1827  ;;  %v8520_v14 = vpop.permute.xlu0 %1849 }
 0x57f   : > { %13060 = vst [vmem:[#allocation142_spill] sm:$0xff] %v8518_v50  ;;  %13061 = vst [vmem:[#allocation313_spill] sm:$0xff] %v8520_v14  ;;  %v5744_v50 = vld [vmem:[#allocation2 + $0x48] sm:$0xff] }
 0x580   : > { %1943 = vrot.lane.b32.xlu1 %v1301_v56, %s5949_s13  ;;  %2086 = vrot.lane.b32.xlu0 %v5743_v30, %s5950_s14  ;;  %v1304_v30 = vsel %vm999_vm3, %v13049_v34, %v13054_v9  ;;  %v5746_v9 = vld [vmem:[#allocation2 + $0x10] sm:$0xff] }
 0x582   : > { %v8527_v12 = vpop.permute.xlu1 %1831  ;;  %v8529_v61 = vpop.permute.xlu0 %1853 }
 0x583   : > { %13062 = vst [vmem:[#allocation314_spill] sm:$0xff] %v8527_v12  ;;  %13063 = vst [vmem:[#allocation315_spill] sm:$0xff] %v8529_v61  ;;  %v5745_v12 = vld [vmem:[#allocation2] sm:$0xff] }
 0x584   : > { %1947 = vrot.lane.b32.xlu1 %v8534_v7, %s5949_s13  ;;  %2090 = vrot.lane.b32.xlu0 %v7646_v57, %s5950_s14  ;;  %v5748_v61 = vld [vmem:[#allocation2 + $0x20] sm:$0xff] }
 0x586   : > { %v8540_v49 = vpop.permute.xlu1 %1835  ;;  %v8542_v56 = vpop.permute.xlu0 %1857 }
 0x587   : > { %13065 = vst [vmem:[#allocation26_spill] sm:$0xff] %v8540_v49  ;;  %13066 = vst [vmem:[#allocation316_spill] sm:$0xff] %v8542_v56 }
 0x588   : > { %1951 = vrot.lane.b32.xlu1 %v1304_v30, %s5949_s13  ;;  %2094 = vrot.lane.b32.xlu0 %v5744_v50, %s5950_s14  ;;  %v5747_v30 = vld [vmem:[#allocation2 + $0x68] sm:$0xff] }
 0x58a   : > { %v8549_v43 = vpop.permute.xlu1 %1839  ;;  %v8551_v4 = vpop.permute.xlu0 %1861 }
 0x58b   : > { %13067 = vst [vmem:[#allocation317_spill] sm:$0xff] %v8549_v43  ;;  %13068 = vst [vmem:[#allocation318_spill] sm:$0xff] %v8551_v4 }
 0x58c   : > { %2076 = vrot.lane.b32.xlu1 %v5745_v12, %s5950_s14  ;;  %2098 = vrot.lane.b32.xlu0 %v7669_v63, %s5950_s14 }
 0x58e   : > { %v8556_v57 = vpop.permute.xlu1 %1843  ;;  %v8558_v49 = vpop.permute.xlu0 %1865 }
 0x58f   : > { %13069 = vst [vmem:[#allocation319_spill] sm:$0xff] %v8556_v57  ;;  %13070 = vst [vmem:[#allocation320_spill] sm:$0xff] %v8558_v49  ;;  %v5749_v57 = vld [vmem:[#allocation2 + $0x30] sm:$0xff]  ;;  %v13216_v49 = vld [vmem:[#allocation194_spill] sm:$0xff] }
 0x590   : > { %2080 = vrot.lane.b32.xlu1 %v5746_v9, %s5950_s14  ;;  %2102 = vrot.lane.b32.xlu0 %v5747_v30, %s5950_s14 }
 0x592   : > { %v8562_v50 = vpop.permute.xlu1 %1847  ;;  %v8564_v43 = vpop.permute.xlu0 %1869 }
 0x593   : > { %13071 = vst [vmem:[#allocation321_spill] sm:$0xff] %v8562_v50  ;;  %13072 = vst [vmem:[#allocation322_spill] sm:$0xff] %v8564_v43  ;;  %v5750_v50 = vld [vmem:[#allocation2 + $0x40] sm:$0xff]  ;;  %v5753_v43 = vld [vmem:[#allocation2 + $0x70] sm:$0xff] }
 0x594   : > { %2084 = vrot.lane.b32.xlu1 %v5748_v61, %s5950_s14  ;;  %2106 = vrot.lane.b32.xlu0 %v7697_v13, %s5950_s14 }
 0x596   : > { %v8569_v63 = vpop.permute.xlu1 %1851  ;;  %v8571_v12 = vpop.permute.xlu0 %1873 }
 0x597   : > { %13073 = vst [vmem:[#allocation323_spill] sm:$0xff] %v8569_v63  ;;  %13074 = vst [vmem:[#allocation324_spill] sm:$0xff] %v8571_v12  ;;  %v13079_v63 = vld [vmem:[#allocation78_spill] sm:$0xff] }
 0x598   : > { %2088 = vrot.lane.b32.xlu1 %v5749_v57, %s5950_s14  ;;  %2110 = vrot.lane.b32.xlu0 %v7711_v21, %s5950_s14  ;;  %v13080_v57 = vld [vmem:[#allocation75_spill] sm:$0xff]  ;;  %v5751_v21 = vld [vmem:[#allocation2 + $0x50] sm:$0xff] }
 0x599   : > { %v1312_v14 = vsel %vm1311_vm5, %v13080_v57, %v13079_v63 }
 0x59a   : > { %v8576_v9 = vpop.permute.xlu1 %1855  ;;  %v8578_v30 = vpop.permute.xlu0 %1877 }
 0x59b   : > { %13075 = vst [vmem:[#allocation325_spill] sm:$0xff] %v8576_v9  ;;  %13076 = vst [vmem:[#allocation326_spill] sm:$0xff] %v8578_v30  ;;  %v5752_v9 = vld [vmem:[#allocation2 + $0x60] sm:$0xff]  ;;  %v13218_v30 = vld [vmem:[#allocation126_spill] sm:$0xff] }
 0x59c   : > { %2092 = vrot.lane.b32.xlu1 %v5750_v50, %s5950_s14  ;;  %2114 = vrot.lane.b32.xlu0 %v7721_v48, %s5950_s14  ;;  %v13083_v48 = vld [vmem:[#allocation77_spill] sm:$0xff] }
 0x59e   : > { %v8583_v13 = vpop.permute.xlu1 %1859  ;;  %v8585_v61 = vpop.permute.xlu0 %1881 }
 0x59f   : > { %13077 = vst [vmem:[#allocation327_spill] sm:$0xff] %v8583_v13  ;;  %13078 = vst [vmem:[#allocation328_spill] sm:$0xff] %v8585_v61  ;;  %v13284_v61 = vld [vmem:[#allocation256_spill] sm:$0xff] }
 0x5a0   : > { %2096 = vrot.lane.b32.xlu1 %v5751_v21, %s5950_s14  ;;  %2118 = vrot.lane.b32.xlu0 %v1312_v14, %s5950_s14 }
 0x5a2   : > { %v8592_v4 = vpop.permute.xlu1 %1863  ;;  %v8594_v50 = vpop.permute.xlu0 %1885 }
 0x5a3   : > { %13081 = vst [vmem:[#allocation78_spill] sm:$0xff] %v8592_v4  ;;  %13082 = vst [vmem:[#allocation75_spill] sm:$0xff] %v8594_v50 }
 0x5a4   : > { %2100 = vrot.lane.b32.xlu1 %v5752_v9, %s5950_s14  ;;  %2122 = vrot.lane.b32.xlu0 %v13083_v48, %s5950_s14 }
 0x5a6   : > { %v8599_v13 = vpop.permute.xlu1 %1867  ;;  %v8601_v56 = vpop.permute.xlu0 %1889 }
 0x5a7   : > { %13084 = vst [vmem:[#allocation77_spill] sm:$0xff] %v8599_v13  ;;  %13085 = vst [vmem:[#allocation329_spill] sm:$0xff] %v8601_v56 }
 0x5a8   : > { %2104 = vrot.lane.b32.xlu1 %v5753_v43, %s5950_s14  ;;  %2145 = vrot.lane.b32.xlu0 %v7491_v53, %s12659_s10 }
 0x5aa   : > { %v8606_v14 = vpop.permute.xlu1 %1871  ;;  %v8608_v21 = vpop.permute.xlu0 %1893 }
 0x5ab   : > { %13086 = vst [vmem:[#allocation330_spill] sm:$0xff] %v8606_v14  ;;  %13087 = vst [vmem:[#allocation331_spill] sm:$0xff] %v8608_v21 }
 0x5ac   : > { %2108 = vrot.lane.b32.xlu1 %v7756_v39, %s5950_s14  ;;  %2149 = vrot.lane.b32.xlu0 %v7217_v18, %s12659_s10 }
 0x5ae   : > { %v8614_v9 = vpop.permute.xlu1 %1875  ;;  %v8616_v13 = vpop.permute.xlu0 %1897 }
 0x5af   : > { %13088 = vst [vmem:[#allocation332_spill] sm:$0xff] %v8614_v9  ;;  %13089 = vst [vmem:[#allocation333_spill] sm:$0xff] %v8616_v13  ;;  %v13128_v13 = vld [vmem:[#allocation139_spill] sm:$0xff] }
 0x5b0   : > { %2112 = vrot.lane.b32.xlu1 %v7767_v51, %s5950_s14  ;;  %2153 = vrot.lane.b32.xlu0 %v7176_v25, %s12659_s10  ;;  %v1313_v51 = vsel %vm1311_vm5, %v13079_v63, %v13083_v48 }
 0x5b2   : > { %v8622_v53 = vpop.permute.xlu1 %1879  ;;  %v8624_v43 = vpop.permute.xlu0 %1901 }
 0x5b3   : > { %13090 = vst [vmem:[#allocation334_spill] sm:$0xff] %v8622_v53  ;;  %13091 = vst [vmem:[#allocation335_spill] sm:$0xff] %v8624_v43  ;;  %v13136_v43 = vld [vmem:[#allocation17_spill] sm:$0xff] }
 0x5b4   : > { %2116 = vrot.lane.b32.xlu1 %v13080_v57, %s5950_s14  ;;  %2157 = vrot.lane.b32.xlu0 %v7667_v24, %s12659_s10 }
 0x5b6   : > { %v8630_v18 = vpop.permute.xlu1 %1883  ;;  %v8632_v39 = vpop.permute.xlu0 %1905 }
 0x5b7   : > { %13092 = vst [vmem:[#allocation336_spill] sm:$0xff] %v8630_v18  ;;  %13093 = vst [vmem:[#allocation337_spill] sm:$0xff] %v8632_v39  ;;  %v13115_v39 = vld [vmem:[#allocation111_spill] sm:$0xff] }
 0x5b8   : > { %2120 = vrot.lane.b32.xlu1 %v1313_v51, %s5950_s14  ;;  %2161 = vrot.lane.b32.xlu0 %v7319_v3, %s12659_s10  ;;  %v13111_v51 = vld [vmem:[#allocation14_spill] sm:$0xff] }
 0x5ba   : > { %v8640_v25 = vpop.permute.xlu1 %1887  ;;  %v8642_v21 = vpop.permute.xlu0 %1909 }
 0x5bb   : > { %13094 = vst [vmem:[#allocation338_spill] sm:$0xff] %v8640_v25  ;;  %13095 = vst [vmem:[#allocation339_spill] sm:$0xff] %v8642_v21  ;;  %v13121_v21 = vld [vmem:[#allocation154_spill] sm:$0xff] }
 0x5bc   : > { %2143 = vrot.lane.b32.xlu1 %v12811_v62, %s12659_s10  ;;  %2165 = vrot.lane.b32.xlu0 %v7345_v41, %s12659_s10 }
 0x5be   : > { %v8648_v24 = vpop.permute.xlu1 %1891  ;;  %v8650_v57 = vpop.permute.xlu0 %1913 }
 0x5bf   : > { %13096 = vst [vmem:[#allocation340_spill] sm:$0xff] %v8648_v24  ;;  %13097 = vst [vmem:[#allocation341_spill] sm:$0xff] %v8650_v57  ;;  %v13146_v57 = vld [vmem:[#allocation106_spill] sm:$0xff] }
 0x5c0   : > { %2147 = vrot.lane.b32.xlu1 %v7288_v29, %s12659_s10  ;;  %2169 = vrot.lane.b32.xlu0 %v12820_v31, %s12659_s10 }
 0x5c2   : > { %v8656_v3 = vpop.permute.xlu1 %1895  ;;  %v8658_v63 = vpop.permute.xlu0 %1917 }
 0x5c3   : > { %13098 = vst [vmem:[#allocation342_spill] sm:$0xff] %v8656_v3  ;;  %13099 = vst [vmem:[#allocation343_spill] sm:$0xff] %v8658_v63  ;;  %v13125_v3 = vld [vmem:[#allocation135_spill] sm:$0xff] }
 0x5c4   : > { %2151 = vrot.lane.b32.xlu1 %v7337_v11, %s12659_s10  ;;  %2173 = vrot.lane.b32.xlu0 %v7885_v58, %s12659_s10 }
 0x5c6   : > { %v8664_v41 = vpop.permute.xlu1 %1899  ;;  %v8666_v62 = vpop.permute.xlu0 %1921 }
 0x5c7   : > { %13100 = vst [vmem:[#allocation344_spill] sm:$0xff] %v8664_v41  ;;  %13101 = vst [vmem:[#allocation345_spill] sm:$0xff] %v8666_v62  ;;  %v13132_v41 = vld [vmem:[#allocation184_spill] sm:$0xff] }
 0x5c8   : > { %2155 = vrot.lane.b32.xlu1 %v7186_v52, %s12659_s10  ;;  %2177 = vrot.lane.b32.xlu0 %v7275_v42, %s12659_s10 }
 0x5ca   : > { %v8672_v29 = vpop.permute.xlu1 %1903  ;;  %v8674_v31 = vpop.permute.xlu0 %1925 }
 0x5cb   : > { %13102 = vst [vmem:[#allocation346_spill] sm:$0xff] %v8672_v29  ;;  %13103 = vst [vmem:[#allocation347_spill] sm:$0xff] %v8674_v31  ;;  %v13139_v29 = vld [vmem:[#allocation105_spill] sm:$0xff] }
 0x5cc   : > { %2159 = vrot.lane.b32.xlu1 %v7468_v55, %s12659_s10  ;;  %2181 = vrot.lane.b32.xlu0 %v7850_v47, %s12659_s10  ;;  %v13108_v55 = vld [vmem:[#allocation189_spill] sm:$0xff] }
 0x5ce   : > { %v8680_v11 = vpop.permute.xlu1 %1907  ;;  %v8682_v58 = vpop.permute.xlu0 %1929 }
 0x5cf   : > { %13104 = vst [vmem:[#allocation348_spill] sm:$0xff] %v8680_v11  ;;  %13105 = vst [vmem:[#allocation349_spill] sm:$0xff] %v8682_v58  ;;  %v13118_v11 = vld [vmem:[#allocation116_spill] sm:$0xff] }
 0x5d0   : > { %2163 = vrot.lane.b32.xlu1 %v7509_v0, %s12659_s10  ;;  %2185 = vrot.lane.b32.xlu0 %v7941_v36, %s12659_s10  ;;  %v13112_v0 = vld [vmem:[#allocation145_spill] sm:$0xff] }
 0x5d2   : > { %v8688_v52 = vpop.permute.xlu1 %1911  ;;  %v8690_v42 = vpop.permute.xlu0 %1933 }
 0x5d3   : > { %13106 = vst [vmem:[#allocation350_spill] sm:$0xff] %v8688_v52  ;;  %13107 = vst [vmem:[#allocation351_spill] sm:$0xff] %v8690_v42  ;;  %v13145_v52 = vld [vmem:[#allocation113_spill] sm:$0xff] }
 0x5d4   : > { %2167 = vrot.lane.b32.xlu1 %v12836_v10, %s12659_s10  ;;  %2189 = vrot.lane.b32.xlu0 %v13108_v55, %s12659_s10 }
 0x5d6   : > { %v8696_v47 = vpop.permute.xlu1 %1915  ;;  %v8698_v48 = vpop.permute.xlu0 %1937 }
 0x5d7   : > { %13109 = vst [vmem:[#allocation189_spill] sm:$0xff] %v8696_v47  ;;  %13110 = vst [vmem:[#allocation352_spill] sm:$0xff] %v8698_v48  ;;  %v13142_v48 = vld [vmem:[#allocation173_spill] sm:$0xff] }
 0x5d8   : > { %2171 = vrot.lane.b32.xlu1 %v13111_v51, %s12659_s10  ;;  %2193 = vrot.lane.b32.xlu0 %v13112_v0, %s12659_s10 }
 0x5da   : > { %v8704_v36 = vpop.permute.xlu1 %1919  ;;  %v8706_v24 = vpop.permute.xlu0 %1941 }
 0x5db   : > { %13113 = vst [vmem:[#allocation14_spill] sm:$0xff] %v8704_v36  ;;  %13114 = vst [vmem:[#allocation145_spill] sm:$0xff] %v8706_v24  ;;  %v13155_v36 = vld [vmem:[#allocation123_spill] sm:$0xff] }
 0x5dc   : > { %2175 = vrot.lane.b32.xlu1 %v13115_v39, %s12659_s10  ;;  %2197 = vrot.lane.b32.xlu0 %v7997_v46, %s12659_s10  ;;  %v13122_v39 = vld [vmem:[#allocation109_spill] sm:$0xff] }
 0x5de   : > { %v8712_v10 = vpop.permute.xlu1 %1923  ;;  %v8714_v55 = vpop.permute.xlu0 %1945 }
 0x5df   : > { %13116 = vst [vmem:[#allocation111_spill] sm:$0xff] %v8712_v10  ;;  %13117 = vst [vmem:[#allocation353_spill] sm:$0xff] %v8714_v55  ;;  %v13171_v55 = vld [vmem:[#allocation21_spill] sm:$0xff] }
 0x5e0   : > { %2179 = vrot.lane.b32.xlu1 %v13118_v11, %s12659_s10  ;;  %2201 = vrot.lane.b32.xlu0 %v12858_v33, %s12659_s10 }
 0x5e2   : > { %v8720_v51 = vpop.permute.xlu1 %1927  ;;  %v8722_v0 = vpop.permute.xlu0 %1949 }
 0x5e3   : > { %13119 = vst [vmem:[#allocation116_spill] sm:$0xff] %v8720_v51  ;;  %13120 = vst [vmem:[#allocation354_spill] sm:$0xff] %v8722_v0  ;;  %v13159_v51 = vld [vmem:[#allocation130_spill] sm:$0xff] }
 0x5e4   : > { %2183 = vrot.lane.b32.xlu1 %v13121_v21, %s12659_s10  ;;  %2205 = vrot.lane.b32.xlu0 %v13122_v39, %s12659_s10  ;;  %v13129_v21 = vld [vmem:[#allocation157_spill] sm:$0xff] }
 0x5e6   : > { %v8728_v46 = vpop.permute.xlu1 %1931  ;;  %v8730_v62 = vpop.permute.xlu0 %1953 }
 0x5e7   : > { %13123 = vst [vmem:[#allocation154_spill] sm:$0xff] %v8728_v46  ;;  %13124 = vst [vmem:[#allocation109_spill] sm:$0xff] %v8730_v62 }
 0x5e8   : > { %2187 = vrot.lane.b32.xlu1 %v13125_v3, %s12659_s10  ;;  %2209 = vrot.lane.b32.xlu0 %v8053_v27, %s12659_s10  ;;  %v13133_v3 = vld [vmem:[#allocation133_spill] sm:$0xff] }
 0x5ea   : > { %v8736_v33 = vpop.permute.xlu1 %1935  ;;  %v8738_v11 = vpop.permute.xlu0 %2078 }
 0x5eb   : > { %13126 = vst [vmem:[#allocation135_spill] sm:$0xff] %v8736_v33  ;;  %13127 = vst [vmem:[#allocation355_spill] sm:$0xff] %v8738_v11  ;;  %v13167_v33 = vld [vmem:[#allocation148_spill] sm:$0xff] }
 0x5ec   : > { %2191 = vrot.lane.b32.xlu1 %v13128_v13, %s12659_s10  ;;  %2213 = vrot.lane.b32.xlu0 %v13129_v21, %s12659_s10 }
 0x5ee   : > { %v8744_v39 = vpop.permute.xlu1 %1939  ;;  %v8746_v10 = vpop.permute.xlu0 %2082 }
 0x5ef   : > { %13130 = vst [vmem:[#allocation139_spill] sm:$0xff] %v8744_v39  ;;  %13131 = vst [vmem:[#allocation157_spill] sm:$0xff] %v8746_v10 }
 0x5f0   : > { %2195 = vrot.lane.b32.xlu1 %v13132_v41, %s12659_s10  ;;  %2217 = vrot.lane.b32.xlu0 %v13133_v3, %s12659_s10 }
 0x5f2   : > { %v8752_v27 = vpop.permute.xlu1 %1943  ;;  %v8754_v31 = vpop.permute.xlu0 %2086 }
 0x5f3   : > { %13134 = vst [vmem:[#allocation184_spill] sm:$0xff] %v8752_v27  ;;  %13135 = vst [vmem:[#allocation133_spill] sm:$0xff] %v8754_v31  ;;  %v13170_v27 = vld [vmem:[#allocation22_spill] sm:$0xff] }
 0x5f4   : > { %2199 = vrot.lane.b32.xlu1 %v13136_v43, %s12659_s10  ;;  %2221 = vrot.lane.b32.xlu0 %v8104_v26, %s12659_s10 }
 0x5f6   : > { %v8760_v13 = vpop.permute.xlu1 %1947  ;;  %v8762_v21 = vpop.permute.xlu0 %2090 }
 0x5f7   : > { %13137 = vst [vmem:[#allocation17_spill] sm:$0xff] %v8760_v13  ;;  %13138 = vst [vmem:[#allocation356_spill] sm:$0xff] %v8762_v21  ;;  %v891_v13 = vsel %vm691_vm14, %v13171_v55, %v13170_v27 }
 0x5f8   : > { %2203 = vrot.lane.b32.xlu1 %v13139_v29, %s12659_s10  ;;  %2225 = vrot.lane.b32.xlu0 %v7363_v45, %s12659_s10  ;;  %v877_v29 = vsel %vm691_vm14, %v13146_v57, %v13145_v52  ;;  %v13147_v45 = vld [vmem:[#allocation124_spill] sm:$0xff] }
 0x5f9   : > { %v13154_v57 = vld [vmem:[#allocation156_spill] sm:$0xff] }
 0x5fa   : > { %v8768_v41 = vpop.permute.xlu1 %1951  ;;  %v8770_v3 = vpop.permute.xlu0 %2094 }
 0x5fb   : > { %13140 = vst [vmem:[#allocation105_spill] sm:$0xff] %v8768_v41  ;;  %13141 = vst [vmem:[#allocation357_spill] sm:$0xff] %v8770_v3  ;;  %v13194_v3 = vld [vmem:[#allocation213_spill] sm:$0xff] }
 0x5fc   : > { %2207 = vrot.lane.b32.xlu1 %v13142_v48, %s12659_s10  ;;  %2229 = vrot.lane.b32.xlu0 %v8069_v16, %s12659_s10  ;;  %v13150_v48 = vld [vmem:[#allocation129_spill] sm:$0xff]  ;;  %v13151_v16 = vld [vmem:[#allocation171_spill] sm:$0xff] }
 0x5fe   : > { %v8776_v26 = vpop.permute.xlu1 %2076  ;;  %v8778_v43 = vpop.permute.xlu0 %2098 }
 0x5ff   : > { %13143 = vst [vmem:[#allocation173_spill] sm:$0xff] %v8776_v26  ;;  %13144 = vst [vmem:[#allocation358_spill] sm:$0xff] %v8778_v43  ;;  %v13160_v26 = vld [vmem:[#allocation147_spill] sm:$0xff]  ;;  %v13200_v43 = vld [vmem:[#allocation82_spill] sm:$0xff] }
 0x600   : > { %2211 = vrot.lane.b32.xlu1 %v13147_v45, %s12659_s10  ;;  %2233 = vrot.lane.b32.xlu0 %v877_v29, %s12659_s10  ;;  %v880_v45 = vsel %vm691_vm14, %v13155_v36, %v13154_v57 }
 0x602   : > { %v8786_v39 = vpop.permute.xlu1 %2080  ;;  %v8788_v47 = vpop.permute.xlu0 %2102 }
 0x603   : > { %13148 = vst [vmem:[#allocation113_spill] sm:$0xff] %v8786_v39  ;;  %13149 = vst [vmem:[#allocation106_spill] sm:$0xff] %v8788_v47 }
 0x604   : > { %2215 = vrot.lane.b32.xlu1 %v13150_v48, %s12659_s10  ;;  %2237 = vrot.lane.b32.xlu0 %v13151_v16, %s12659_s10  ;;  %v13158_v48 = vld [vmem:[#allocation136_spill] sm:$0xff] }
 0x605   : > { %v881_v58 = vsel %vm691_vm14, %v13159_v51, %v13158_v48  ;;  %v13166_v51 = vld [vmem:[#allocation186_spill] sm:$0xff] }
 0x606   : > { %v8794_v24 = vpop.permute.xlu1 %2084  ;;  %v8796_v63 = vpop.permute.xlu0 %2106 }
 0x607   : > { %13152 = vst [vmem:[#allocation124_spill] sm:$0xff] %v8794_v24  ;;  %13153 = vst [vmem:[#allocation129_spill] sm:$0xff] %v8796_v63 }
 0x608   : > { %2219 = vrot.lane.b32.xlu1 %v7476_v23, %s12659_s10  ;;  %2241 = vrot.lane.b32.xlu0 %v880_v45, %s12659_s10  ;;  %v13163_v23 = vld [vmem:[#allocation190_spill] sm:$0xff] }
 0x60a   : > { %v8804_v29 = vpop.permute.xlu1 %2088  ;;  %v8806_v62 = vpop.permute.xlu0 %2110 }
 0x60b   : > { %13156 = vst [vmem:[#allocation171_spill] sm:$0xff] %v8804_v29  ;;  %13157 = vst [vmem:[#allocation156_spill] sm:$0xff] %v8806_v62  ;;  %v13195_v29 = vld [vmem:[#allocation24_spill] sm:$0xff] }
 0x60c   : > { %2223 = vrot.lane.b32.xlu1 %v13160_v26, %s12659_s10  ;;  %2245 = vrot.lane.b32.xlu0 %v881_v58, %s12659_s10  ;;  %v884_v26 = vsel %vm691_vm14, %v13167_v33, %v13166_v51 }
 0x60e   : > { %v8814_v46 = vpop.permute.xlu1 %2092  ;;  %v8816_v11 = vpop.permute.xlu0 %2114 }
 0x60f   : > { %13161 = vst [vmem:[#allocation123_spill] sm:$0xff] %v8814_v46  ;;  %13162 = vst [vmem:[#allocation136_spill] sm:$0xff] %v8816_v11  ;;  %v13191_v46 = vld [vmem:[#allocation238_spill] sm:$0xff]  ;;  %v13208_v11 = vld [vmem:[#allocation187_spill] sm:$0xff] }
 0x610   : > { %2227 = vrot.lane.b32.xlu1 %v8127_v22, %s12659_s10  ;;  %2249 = vrot.lane.b32.xlu0 %v13163_v23, %s12659_s10  ;;  %v878_v22 = vsel %vm691_vm14, %v13145_v52, %v13151_v16  ;;  %v13174_v52 = vld [vmem:[#allocation23_spill] sm:$0xff] }
 0x612   : > { %v8822_v45 = vpop.permute.xlu1 %2096  ;;  %v8824_v42 = vpop.permute.xlu0 %2118 }
 0x613   : > { %13164 = vst [vmem:[#allocation130_spill] sm:$0xff] %v8822_v45  ;;  %13165 = vst [vmem:[#allocation147_spill] sm:$0xff] %v8824_v42 }
 0x614   : > { %2231 = vrot.lane.b32.xlu1 %v12902_v38, %s12659_s10  ;;  %2253 = vrot.lane.b32.xlu0 %v884_v26, %s12659_s10  ;;  %v13173_v26 = vld [vmem:[#allocation117_spill] sm:$0xff] }
 0x615   : > { %v879_v0 = vsel %vm691_vm14, %v13173_v26, %v13155_v36  ;;  %v882_v36 = vsel %vm691_vm14, %v13158_v48, %v13163_v23 }
 0x616   : > { %v8832_v58 = vpop.permute.xlu1 %2100  ;;  %v8834_v24 = vpop.permute.xlu0 %2122 }
 0x617   : > { %13168 = vst [vmem:[#allocation190_spill] sm:$0xff] %v8832_v58  ;;  %13169 = vst [vmem:[#allocation186_spill] sm:$0xff] %v8834_v24  ;;  %v13214_v24 = vld [vmem:[#allocation160_spill] sm:$0xff] }
 0x618   : > { %2235 = vrot.lane.b32.xlu1 %v878_v22, %s12659_s10  ;;  %2257 = vrot.lane.b32.xlu0 %v891_v13, %s12659_s10 }
 0x61a   : > { %v8844_v31 = vpop.permute.xlu1 %2104  ;;  %v8846_v38 = vpop.permute.xlu0 %2145 }
 0x61b   : > { %13172 = vst [vmem:[#allocation148_spill] sm:$0xff] %v8844_v31  ;;  %v13205_v31 = vld [vmem:[#allocation80_spill] sm:$0xff] }
 0x61c   : > { %2239 = vrot.lane.b32.xlu1 %v879_v0, %s12659_s10  ;;  %2261 = vrot.lane.b32.xlu0 %v13174_v52, %s12659_s10 }
 0x61e   : > { %v8854_v16 = vpop.permute.xlu1 %2108  ;;  %v8856_v55 = vpop.permute.xlu0 %2149 }
 0x61f   : > { %13175 = vst [vmem:[#allocation22_spill] sm:$0xff] %v8854_v16 }
 0x620   : > { %2243 = vrot.lane.b32.xlu1 %v13154_v57, %s12659_s10  ;;  %2265 = vrot.lane.b32.xlu0 %v7522_v8, %s12659_s10  ;;  %v13179_v57 = vld [vmem:[#allocation140_spill] sm:$0xff] }
 0x621   : > { %v883_v8 = vsel %vm691_vm14, %v13179_v57, %v13167_v33  ;;  %v892_v33 = vsel %vm691_vm14, %v13170_v27, %v13174_v52  ;;  %v13185_v52 = vld [vmem:[#allocation195_spill] sm:$0xff] }
 0x622   : > { %v8862_v13 = vpop.permute.xlu1 %2112  ;;  %v8864_v22 = vpop.permute.xlu0 %2153 }
 0x623   : > { %13176 = vst [vmem:[#allocation21_spill] sm:$0xff] %v8862_v13  ;;  %13177 = vst [vmem:[#allocation117_spill] sm:$0xff] %v8864_v22 }
 0x624   : > { %2247 = vrot.lane.b32.xlu1 %v882_v36, %s12659_s10  ;;  %2269 = vrot.lane.b32.xlu0 %v12963_v2, %s12659_s10 }
 0x626   : > { %v8872_v0 = vpop.permute.xlu1 %2116  ;;  %v8874_v26 = vpop.permute.xlu0 %2157 }
 0x627   : > { %13178 = vst [vmem:[#allocation23_spill] sm:$0xff] %v8872_v0 }
 0x628   : > { %2251 = vrot.lane.b32.xlu1 %v883_v8, %s12659_s10  ;;  %2273 = vrot.lane.b32.xlu0 %v12967_v20, %s12659_s10  ;;  %v13188_v8 = vld [vmem:[#allocation204_spill] sm:$0xff] }
 0x62a   : > { %v8882_v41 = vpop.permute.xlu1 %2120  ;;  %v8884_v48 = vpop.permute.xlu0 %2161 }
 0x62b   : > { %13180 = vst [vmem:[#allocation140_spill] sm:$0xff] %v8882_v41 }
 0x62c   : > { %2255 = vrot.lane.b32.xlu1 %v13166_v51, %s12659_s10  ;;  %2277 = vrot.lane.b32.xlu0 %v7695_v37, %s12659_s10 }
 0x62e   : > { %v8890_v2 = vpop.permute.xlu1 %2143  ;;  %v8892_v23 = vpop.permute.xlu0 %2165 }
 0x62f   : > { %13181 = vst [vmem:[#allocation359_spill] sm:$0xff] %v8892_v23 }
 0x630   : > { %2259 = vrot.lane.b32.xlu1 %v892_v33, %s12659_s10  ;;  %2281 = vrot.lane.b32.xlu0 %v12977_v17, %s12659_s10 }
 0x632   : > { %v8900_v20 = vpop.permute.xlu1 %2147  ;;  %v8902_v36 = vpop.permute.xlu0 %2169 }
 0x633   : > { %13182 = vst [vmem:[#allocation360_spill] sm:$0xff] %v8900_v20 }
 0x634   : > { %2263 = vrot.lane.b32.xlu1 %v12957_v60, %s12659_s10  ;;  %2285 = vrot.lane.b32.xlu0 %v7378_v32, %s12659_s10 }
 0x636   : > { %v8908_v37 = vpop.permute.xlu1 %2151  ;;  %v8910_v51 = vpop.permute.xlu0 %2173 }
 0x638   : > { %2267 = vrot.lane.b32.xlu1 %v7314_v5, %s12659_s10  ;;  %2289 = vrot.lane.b32.xlu0 %v12968_v44, %s12659_s10 }
 0x63a   : > { %v8916_v17 = vpop.permute.xlu1 %2155  ;;  %v8918_v27 = vpop.permute.xlu0 %2177 }
 0x63b   : > { %13183 = vst [vmem:[#allocation361_spill] sm:$0xff] %v8918_v27 }
 0x63c   : > { %2271 = vrot.lane.b32.xlu1 %v7371_v19, %s12659_s10  ;;  %2293 = vrot.lane.b32.xlu0 %v12991_v1, %s12659_s10  ;;  %v13186_v19 = vld [vmem:[#allocation191_spill] sm:$0xff] }
 0x63e   : > { %v8924_v32 = vpop.permute.xlu1 %2159  ;;  %v8926_v60 = vpop.permute.xlu0 %2181 }
 0x63f   : > { %13184 = vst [vmem:[#allocation362_spill] sm:$0xff] %v8924_v32 }
 0x640   : > { %2275 = vrot.lane.b32.xlu1 %v12971_v40, %s12659_s10  ;;  %2297 = vrot.lane.b32.xlu0 %v12995_v6, %s12659_s10  ;;  %v13189_v40 = vld [vmem:[#allocation257_spill] sm:$0xff] }
 0x642   : > { %v8932_v5 = vpop.permute.xlu1 %2163  ;;  %v8934_v44 = vpop.permute.xlu0 %2185 }
 0x644   : > { %2279 = vrot.lane.b32.xlu1 %v13185_v52, %s12659_s10  ;;  %2301 = vrot.lane.b32.xlu0 %v13186_v19, %s12659_s10  ;;  %v13192_v52 = vld [vmem:[#allocation233_spill] sm:$0xff]  ;;  %v13193_v19 = vld [vmem:[#allocation40_spill] sm:$0xff] }
 0x645   : > { %v1568_v39 = vsel %vm1554_vm8, %v13192_v52, %v13191_v46  ;;  %v1567_v58 = vsel %vm1554_vm8, %v13194_v3, %v13192_v52  ;;  %v13201_v3 = vld [vmem:[#allocation79_spill] sm:$0xff] }
 0x646   : > { %v8940_v1 = vpop.permute.xlu1 %2167  ;;  %v8942_v57 = vpop.permute.xlu0 %2189  ;;  %v1564_v52 = vsel %vm1554_vm8, %v13201_v3, %v13200_v43  ;;  %v1563_v63 = vsel %vm1554_vm8, %v13205_v31, %v13201_v3  ;;  %v13211_v31 = vld [vmem:[#allocation205_spill] sm:$0xff] }
 0x647   : > { %13187 = vst [vmem:[#allocation195_spill] sm:$0xff] %v8942_v57 }
 0x648   : > { %2283 = vrot.lane.b32.xlu1 %v13188_v8, %s12659_s10  ;;  %2399 = vrot.lane.b32.xlu0 %v13189_v40, %s12659_s10 }
 0x64a   : > { %v8948_v6 = vpop.permute.xlu1 %2171  ;;  %v8950_v33 = vpop.permute.xlu0 %2193 }
 0x64b   : > { %13190 = vst [vmem:[#allocation191_spill] sm:$0xff] %v8948_v6 }
 0x64c   : > { %2287 = vrot.lane.b32.xlu1 %v13193_v19, %s12659_s10  ;;  %2391 = vrot.lane.b32.xlu0 %v1568_v39, %s12659_s10  ;;  %v13197_v19 = vld [vmem:[#allocation193_spill] sm:$0xff] }
 0x64d   : > { %v13198_v39 = vld [vmem:[#allocation241_spill] sm:$0xff] }
 0x64e   : > { %v8958_v10 = vpop.permute.xlu1 %2175  ;;  %v2198_v8 = vpop.permute.xlu0 %2197 }
 0x650   : > { %2291 = vrot.lane.b32.xlu1 %v13195_v29, %s12659_s10  ;;  %2389 = vrot.lane.b32.xlu0 %v1567_v58, %s12659_s10  ;;  %v13202_v29 = vld [vmem:[#allocation153_spill] sm:$0xff] }
 0x652   : > { %v8966_v21 = vpop.permute.xlu1 %2179  ;;  %v8968_v47 = vpop.permute.xlu0 %2201 }
 0x653   : > { %13196 = vst [vmem:[#allocation204_spill] sm:$0xff] %v8968_v47 }
 0x654   : > { %2295 = vrot.lane.b32.xlu1 %v13197_v19, %s12659_s10  ;;  %2387 = vrot.lane.b32.xlu0 %v13198_v39, %s12659_s10  ;;  %v13204_v19 = vld [vmem:[#allocation15_spill] sm:$0xff] }
 0x655   : > { %v1570_v0 = vsel %vm1554_vm8, %v13204_v19, %v13189_v40 }
 0x656   : > { %v8974_v16 = vpop.permute.xlu1 %2183  ;;  %v2206_v45 = vpop.permute.xlu0 %2205 }
 0x657   : > { %13199 = vst [vmem:[#allocation257_spill] sm:$0xff] %v8974_v16 }
 0x658   : > { %2299 = vrot.lane.b32.xlu1 %v13202_v29, %s12659_s10  ;;  %2379 = vrot.lane.b32.xlu0 %v1564_v52, %s12659_s10  ;;  %v13207_v52 = vld [vmem:[#allocation210_spill] sm:$0xff] }
 0x659   : > { %v1569_v29 = vsel %vm1554_vm8, %v13207_v52, %v13204_v19  ;;  %v13213_v52 = vld [vmem:[#allocation42_spill] sm:$0xff] }
 0x65a   : > { %v2188_v58 = vpop.permute.xlu1 %2187  ;;  %v8982_v62 = vpop.permute.xlu0 %2209 }
 0x65b   : > { %13203 = vst [vmem:[#allocation238_spill] sm:$0xff] %v8982_v62  ;;  %v13288_v62 = vld [vmem:[#allocation49_spill] sm:$0xff] }
 0x65c   : > { %2397 = vrot.lane.b32.xlu1 %v1570_v0, %s12659_s10  ;;  %2377 = vrot.lane.b32.xlu0 %v1563_v63, %s12659_s10  ;;  %v13212_v0 = vld [vmem:[#allocation138_spill] sm:$0xff] }
 0x65d   : > { %v1560_v63 = vsel %vm1554_vm8, %v13212_v0, %v13211_v31 }
 0x65e   : > { %v2192_v42 = vpop.permute.xlu1 %2191  ;;  %v8992_v13 = vpop.permute.xlu0 %2213 }
 0x65f   : > { %13206 = vst [vmem:[#allocation233_spill] sm:$0xff] %v8992_v13 }
 0x660   : > { %2395 = vrot.lane.b32.xlu1 %v1569_v29, %s12659_s10  ;;  %2375 = vrot.lane.b32.xlu0 %v13208_v11, %s12659_s10  ;;  %v1566_v29 = vsel %vm1554_vm8, %v13213_v52, %v13198_v39 }
 0x662   : > { %v9000_v40 = vpop.permute.xlu1 %2195  ;;  %v9002_v41 = vpop.permute.xlu0 %2217 }
 0x663   : > { %13209 = vst [vmem:[#allocation40_spill] sm:$0xff] %v9000_v40  ;;  %13210 = vst [vmem:[#allocation213_spill] sm:$0xff] %v9002_v41  ;;  %v13290_v41 = vld [vmem:[#allocation209_spill] sm:$0xff] }
 0x664   : > { %2393 = vrot.lane.b32.xlu1 %v13191_v46, %s12659_s10  ;;  %2367 = vrot.lane.b32.xlu0 %v1560_v63, %s12659_s10  ;;  %v1565_v46 = vsel %vm1554_vm8, %v13216_v49, %v13213_v52  ;;  %v13217_v63 = vld [vmem:[#allocation167_spill] sm:$0xff] }
 0x665   : > { %v1558_v18 = vsel %vm1554_vm8, %v13218_v30, %v13217_v63 }
 0x666   : > { %v2200_v3 = vpop.permute.xlu1 %2199  ;;  %v9010_v19 = vpop.permute.xlu0 %2221 }
 0x667   : > { %v2888_v52 = vsel %vm1081_vm4, %v2200_v3, %v8968_v47  ;;  %v13281_v47 = vld [vmem:[#allocation87_spill] sm:$0xff] }
 0x668   : > { %2385 = vrot.lane.b32.xlu1 %v1566_v29, %s12659_s10  ;;  %2303 = vrot.lane.b32.xlu0 %v13214_v24, %s12659_s10  ;;  %v13220_v24 = vld [vmem:[#allocation120_spill] sm:$0xff] }
 0x669   : > { %v1557_v14 = vsel %vm1554_vm8, %v13220_v24, %v13218_v30  ;;  %v2887_v30 = vsel %vm1081_vm4, %v2198_v8, %v2200_v3  ;;  %v13222_v24 = vld [vmem:[#allocation152_spill] sm:$0xff]  ;;  %v2883_v3 = vsel %vm1081_vm4, %v8934_v44, %v2188_v58 }
 0x66a   : > { %v2204_v9 = vpop.permute.xlu1 %2203  ;;  %v9018_v4 = vpop.permute.xlu0 %2225 }
 0x66b   : > { %13215 = vst [vmem:[#allocation24_spill] sm:$0xff] %v9018_v4  ;;  %v2889_v49 = vsel %vm1081_vm4, %v2204_v9, %v2206_v45  ;;  %v2885_v9 = vsel %vm1081_vm4, %v2192_v42, %v8950_v33  ;;  %v2882_v42 = vsel %vm1081_vm4, %v8926_v60, %v8974_v16 }
 0x66c   : > { %2383 = vrot.lane.b32.xlu1 %v1565_v46, %s12659_s10  ;;  %2361 = vrot.lane.b32.xlu0 %v1558_v18, %s12659_s10 }
 0x66e   : > { %v9028_v39 = vpop.permute.xlu1 %2207  ;;  %v9030_v29 = vpop.permute.xlu0 %2229 }
 0x66f   : > { %13219 = vst [vmem:[#allocation193_spill] sm:$0xff] %v9028_v39  ;;  %v2890_v12 = vsel %vm1081_vm4, %v2206_v45, %v9028_v39 }
 0x670   : > { %2381 = vrot.lane.b32.xlu1 %v13200_v43, %s12659_s10  ;;  %2359 = vrot.lane.b32.xlu0 %v1557_v14, %s12659_s10  ;;  %v1562_v43 = vsel %vm1554_vm8, %v13222_v24, %v13208_v11  ;;  %v13223_v14 = vld [vmem:[#allocation181_spill] sm:$0xff]  ;;  %v2884_v11 = vsel %vm1081_vm4, %v2188_v58, %v8942_v57  ;;  %v2880_v58 = vsel %vm1081_vm4, %v8958_v10, %v8918_v27 }
 0x671   : > { %3517 = vmatprep.subr.mxu0 %v2890_v12  ;;  %v2886_v12 = vsel %vm1081_vm4, %v8950_v33, %v9000_v40  ;;  %v2881_v33 = vsel %vm1081_vm4, %v8966_v21, %v8926_v60  ;;  %v2877_v21 = vsel %vm1081_vm4, %v8940_v1, %v8902_v36  ;;  %v2873_v1 = vsel %vm1081_vm4, %v8916_v17, %v8874_v26 }
 0x672   : > { %3518 = vmatpush1.msra.mxu0 %v2889_v49  ;;  %v9041_v18 = vpop.permute.xlu1 %2211  ;;  %v9045_v46 = vpop.permute.xlu0 %2233  ;;  %v13226_v49 = vld [vmem:[#allocation143_spill] sm:$0xff]  ;;  %v2869_v17 = vsel %vm1081_vm4, %v8890_v2, %v8846_v38 }
 0x673   : > { %13221 = vst [vmem:[#allocation241_spill] sm:$0xff] %v9041_v18  ;;  %3519 = vmatprep.subr.mxu0 %v2888_v52  ;;  %v1561_v52 = vsel %vm1554_vm8, %v13226_v49, %v13222_v24  ;;  %v2879_v24 = vsel %vm1081_vm4, %v8910_v51, %v8958_v10  ;;  %v2876_v10 = vsel %vm1081_vm4, %v8932_v5, %v8892_v23  ;;  %v13235_v49 = vld [vmem:[#allocation202_spill] sm:$0xff] }
 0x674   : > { %3520 = vmatpush1.msra.mxu0 %v2887_v30  ;;  %2373 = vrot.lane.b32.xlu1 %v1562_v43, %s12659_s10 }
 0x675   : > { %2357 = vrot.lane.b32.xlu0 %v13223_v14, %s12659_s10  ;;  %3521 = vmatprep.subr.mxu0 %v2886_v12  ;;  %v2871_v12 = vsel %vm1081_vm4, %v8856_v55, %v8908_v37 }
 0x676   : > { %3522 = vmatpush1.msra.mxu0 %v2885_v9  ;;  %v9059_v45 = vpop.permute.xlu1 %2215  ;;  %v9063_v8 = vpop.permute.xlu0 %2237 }
 0x677   : > { %13224 = vst [vmem:[#allocation82_spill] sm:$0xff] %v9059_v45  ;;  %13225 = vst [vmem:[#allocation79_spill] sm:$0xff] %v9063_v8  ;;  %3523 = vmatprep.subr.mxu0 %v2884_v11 }
 0x678   : > { %3524 = vmatpush1.msra.mxu0 %v2883_v3  ;;  %2371 = vrot.lane.b32.xlu1 %v1561_v52, %s12659_s10  ;;  %v13234_v3 = vld [vmem:[#allocation34_spill] sm:$0xff] }
 0x679   : > { %2349 = vrot.lane.b32.xlu0 %v8479_v54, %s12659_s10  ;;  %3525 = vmatprep.subr.mxu0 %v2882_v42  ;;  %v2878_v54 = vsel %vm1081_vm4, %v8902_v36, %v8948_v6  ;;  %v2874_v36 = vsel %vm1081_vm4, %v8874_v26, %v8924_v32  ;;  %v13230_v26 = vld [vmem:[#allocation197_spill] sm:$0xff]  ;;  %v13237_v42 = vld [vmem:[#allocation231_spill] sm:$0xff] }
 0x67a   : > { %3526 = vmatpush1.msra.mxu0 %v2881_v33  ;;  %v9079_v44 = vpop.permute.xlu1 %2219  ;;  %v9084_v30 = vpop.permute.xlu0 %2241  ;;  %v13238_v33 = vld [vmem:[#allocation108_spill] sm:$0xff]  ;;  %v13275_v6 = vld [vmem:[#allocation175_spill] sm:$0xff] }
 0x67b   : > { %13227 = vst [vmem:[#allocation153_spill] sm:$0xff] %v9079_v44  ;;  %3527 = vmatprep.subr.mxu0 %v2880_v58  ;;  %v13239_v58 = vld [vmem:[#allocation159_spill] sm:$0xff] }
 0x67c   : > { %3528 = vmatpush1.msra.mxu0 %v2879_v24  ;;  %2369 = vrot.lane.b32.xlu1 %v13211_v31, %s12659_s10  ;;  %v2875_v31 = vsel %vm1081_vm4, %v8884_v48, %v8932_v5  ;;  %v2872_v5 = vsel %vm1081_vm4, %v8908_v37, %v8864_v22  ;;  %v13232_v37 = vld [vmem:[#allocation33_spill] sm:$0xff]  ;;  %v13241_v24 = vld [vmem:[#allocation180_spill] sm:$0xff]  ;;  %v13273_v22 = vld [vmem:[#allocation206_spill] sm:$0xff] }
 0x67d   : > { %2347 = vrot.lane.b32.xlu0 %v8534_v7, %s12659_s10  ;;  %3529 = vmatprep.subr.mxu0 %v2878_v54  ;;  %v13228_v7 = vld [vmem:[#allocation132_spill] sm:$0xff] }
 0x67e   : > { %3530 = vmatpush1.msra.mxu0 %v2877_v21  ;;  %v9099_v60 = vpop.permute.xlu1 %2223  ;;  %v9104_v51 = vpop.permute.xlu0 %2245  ;;  %v1559_v43 = vsel %vm1554_vm8, %v13228_v7, %v13212_v0  ;;  %v13242_v54 = vld [vmem:[#allocation164_spill] sm:$0xff]  ;;  %v13245_v7 = vld [vmem:[#allocation146_spill] sm:$0xff] }
 0x67f   : > { %3531 = vmatprep.subr.mxu0 %v2876_v10 }
 0x680   : > { %3532 = vmatpush1.msra.mxu0 %v2875_v31  ;;  %2365 = vrot.lane.b32.xlu1 %v1559_v43, %s12659_s10  ;;  %v13244_v31 = vld [vmem:[#allocation199_spill] sm:$0xff]  ;;  %v13246_v43 = vld [vmem:[#allocation112_spill] sm:$0xff] }
 0x681   : > { %2345 = vrot.lane.b32.xlu0 %v13039_v15, %s12659_s10  ;;  %3533 = vmatprep.subr.mxu0 %v2874_v36  ;;  %v2870_v15 = vsel %vm1081_vm4, %v8846_v38, %v8900_v20  ;;  %v13236_v38 = vld [vmem:[#allocation177_spill] sm:$0xff] }
 0x682   : > { %3534 = vmatpush1.msra.mxu0 %v2873_v1  ;;  %v9121_v48 = vpop.permute.xlu1 %2227  ;;  %v9126_v0 = vpop.permute.xlu0 %2249 }
 0x683   : > { %13229 = vst [vmem:[#allocation15_spill] sm:$0xff] %v9126_v0  ;;  %3535 = vmatprep.subr.mxu0 %v2872_v5  ;;  %v13248_v5 = vld [vmem:[#allocation183_spill] sm:$0xff] }
 0x684   : > { %3536 = vmatpush1.msra.mxu0 %v2871_v12  ;;  %2363 = vrot.lane.b32.xlu1 %v13217_v63, %s12659_s10  ;;  %v13233_v63 = vld [vmem:[#allocation114_spill] sm:$0xff]  ;;  %v13249_v12 = vld [vmem:[#allocation107_spill] sm:$0xff] }
 0x685   : > { %2337 = vrot.lane.b32.xlu0 %v13230_v26, %s12659_s10  ;;  %3537 = vmatprep.subr.mxu0 %v2870_v15  ;;  %v1556_v11 = vsel %vm1554_vm8, %v13233_v63, %v13223_v14  ;;  %v1555_v14 = vsel %vm1554_vm8, %v13238_v33, %v13233_v63  ;;  %v13252_v63 = vld [vmem:[#allocation217_spill] sm:$0xff]  ;;  %v13256_v33 = vld [vmem:[#allocation119_spill] sm:$0xff] }
 0x686   : > { %3538 = vmatpush1.msra.mxu0 %v2869_v17  ;;  %v9141_v9 = vpop.permute.xlu1 %2231  ;;  %v9143_v55 = vpop.permute.xlu0 %2253 }
 0x687   : > { %13231 = vst [vmem:[#allocation80_spill] sm:$0xff] %v9141_v9  ;;  %3539 = vmatprep.subr.mxu0 %v13232_v37 }
 0x688   : > { %3540 = vmatpush1.msra.mxu0 %v13234_v3  ;;  %2355 = vrot.lane.b32.xlu1 %v1556_v11, %s12659_s10 }
 0x689   : > { %2335 = vrot.lane.b32.xlu0 %v8491_v28, %s12659_s10  ;;  %3541 = vmatprep.subr.mxu0 %v13235_v49  ;;  %v13240_v28 = vld [vmem:[#allocation163_spill] sm:$0xff]  ;;  %v13254_v49 = vld [vmem:[#allocation125_spill] sm:$0xff] }
 0x68a   : > { %3542 = vmatpush1.msra.mxu0 %v13236_v38  ;;  %v9155_v2 = vpop.permute.xlu1 %2235  ;;  %v9157_v52 = vpop.permute.xlu0 %2257 }
 0x68b   : > { %3543 = vmatprep.subr.mxu0 %v13237_v42 }
 0x68c   : > { %3544 = vmatpush1.msra.mxu0 %v13239_v58  ;;  %2353 = vrot.lane.b32.xlu1 %v1555_v14, %s12659_s10 }
 0x68d   : > { %2333 = vrot.lane.b32.xlu0 %v13240_v28, %s12659_s10  ;;  %3545 = vmatprep.subr.mxu0 %v13241_v24  ;;  %v13259_v28 = vld [vmem:[#allocation176_spill] sm:$0xff]  ;;  %v13260_v24 = vld [vmem:[#allocation250_spill] sm:$0xff] }
 0x68e   : > { %3546 = vmatpush1.msra.mxu0 %v13242_v54  ;;  %v9169_v21 = vpop.permute.xlu1 %2239  ;;  %v9171_v10 = vpop.permute.xlu0 %2261  ;;  %v13261_v54 = vld [vmem:[#allocation48_spill] sm:$0xff] }
 0x68f   : > { %13243 = vst [vmem:[#allocation210_spill] sm:$0xff] %v9171_v10  ;;  %3547 = vmatprep.subr.mxu0 %v13244_v31  ;;  %v1602_v31 = vsel %vm1554_vm8, %v13261_v54, %v13260_v24 }
 0x690   : > { %3548 = vmatpush1.msra.mxu0 %v13245_v7  ;;  %2351 = vrot.lane.b32.xlu1 %v13049_v34, %s12659_s10  ;;  %v13250_v34 = vld [vmem:[#allocation25_spill] sm:$0xff] }
 0x691   : > { %2325 = vrot.lane.b32.xlu0 %v13246_v43, %s12659_s10 }
 0x692   : > { %v9179_v36 = vpop.permute.xlu1 %2243  ;;  %v9181_v1 = vpop.permute.xlu0 %2265 }
 0x693   : > { %13247 = vst [vmem:[#allocation187_spill] sm:$0xff] %v9179_v36 }
 0x694   : > { %2343 = vrot.lane.b32.xlu1 %v13248_v5, %s12659_s10  ;;  %v13263_v5 = vld [vmem:[#allocation46_spill] sm:$0xff] }
 0x695   : > { %2323 = vrot.lane.b32.xlu0 %v13249_v12, %s12659_s10  ;;  %v13264_v12 = vld [vmem:[#allocation222_spill] sm:$0xff] }
 0x696   : > { %v9187_v15 = vpop.permute.xlu1 %2247  ;;  %v9189_v26 = vpop.permute.xlu0 %2269 }
 0x698   : > { %2341 = vrot.lane.b32.xlu1 %v8513_v59, %s12659_s10  ;;  %v13255_v59 = vld [vmem:[#allocation170_spill] sm:$0xff] }
 0x699   : > { %2321 = vrot.lane.b32.xlu0 %v13250_v34, %s12659_s10  ;;  %v1601_v34 = vsel %vm1554_vm8, %v13264_v12, %v13261_v54  ;;  %v13269_v54 = vld [vmem:[#allocation228_spill] sm:$0xff] }
 0x69a   : > { %v9195_v17 = vpop.permute.xlu1 %2251  ;;  %v9197_v37 = vpop.permute.xlu0 %2273 }
 0x69b   : > { %13251 = vst [vmem:[#allocation205_spill] sm:$0xff] %v9197_v37 }
 0x69c   : > { %2339 = vrot.lane.b32.xlu1 %v13029_v35, %s12659_s10  ;;  %v13257_v35 = vld [vmem:[#allocation192_spill] sm:$0xff] }
 0x69d   : > { %2313 = vrot.lane.b32.xlu0 %v13252_v63, %s12659_s10 }
 0x69e   : > { %v9203_v11 = vpop.permute.xlu1 %2255  ;;  %v9205_v3 = vpop.permute.xlu0 %2277 }
 0x69f   : > { %13253 = vst [vmem:[#allocation138_spill] sm:$0xff] %v9203_v11 }
 0x6a0   : > { %2331 = vrot.lane.b32.xlu1 %v13254_v49, %s12659_s10 }
 0x6a1   : > { %2311 = vrot.lane.b32.xlu0 %v13255_v59, %s12659_s10  ;;  %v13265_v59 = vld [vmem:[#allocation41_spill] sm:$0xff] }
 0x6a2   : > { %v9211_v38 = vpop.permute.xlu1 %2259  ;;  %v9213_v42 = vpop.permute.xlu0 %2281 }
 0x6a4   : > { %2329 = vrot.lane.b32.xlu1 %v13256_v33, %s12659_s10  ;;  %v13266_v33 = vld [vmem:[#allocation50_spill] sm:$0xff] }
 0x6a5   : > { %2309 = vrot.lane.b32.xlu0 %v13257_v35, %s12659_s10 }
 0x6a6   : > { %v9219_v14 = vpop.permute.xlu1 %2263  ;;  %v9221_v58 = vpop.permute.xlu0 %2285 }
 0x6a7   : > { %13258 = vst [vmem:[#allocation42_spill] sm:$0xff] %v9221_v58 }
 0x6a8   : > { %2327 = vrot.lane.b32.xlu1 %v13259_v28, %s12659_s10 }
 0x6a9   : > { %2493 = vrot.lane.b32.xlu0 %v1602_v31, %s12659_s10  ;;  %v13268_v31 = vld [vmem:[#allocation188_spill] sm:$0xff] }
 0x6aa   : > { %v9229_v7 = vpop.permute.xlu1 %2267  ;;  %v9231_v43 = vpop.permute.xlu0 %2289 }
 0x6ab   : > { %13262 = vst [vmem:[#allocation160_spill] sm:$0xff] %v9229_v7 }
 0x6ac   : > { %2319 = vrot.lane.b32.xlu1 %v13263_v5, %s12659_s10  ;;  %v13270_v5 = vld [vmem:[#allocation43_spill] sm:$0xff] }
 0x6ad   : > { %2491 = vrot.lane.b32.xlu0 %v1601_v34, %s12659_s10  ;;  %v1598_v12 = vsel %vm1554_vm8, %v13270_v5, %v13269_v54  ;;  %v1597_v32 = vsel %vm1554_vm8, %v13273_v22, %v13270_v5  ;;  %v13278_v22 = vld [vmem:[#allocation90_spill] sm:$0xff] }
 0x6ae   : > { %v9239_v63 = vpop.permute.xlu1 %2271  ;;  %v9241_v49 = vpop.permute.xlu0 %2293  ;;  %v1593_v39 = vsel %vm1554_vm8, %v13281_v47, %v13278_v22  ;;  %v13285_v47 = vld [vmem:[#allocation101_spill] sm:$0xff] }
 0x6b0   : > { %2317 = vrot.lane.b32.xlu1 %v13265_v59, %s12659_s10  ;;  %v13272_v59 = vld [vmem:[#allocation220_spill] sm:$0xff] }
 0x6b1   : > { %2489 = vrot.lane.b32.xlu0 %v13266_v33, %s12659_s10 }
 0x6b2   : > { %v9247_v35 = vpop.permute.xlu1 %2275  ;;  %v9249_v28 = vpop.permute.xlu0 %2297 }
 0x6b3   : > { %13267 = vst [vmem:[#allocation194_spill] sm:$0xff] %v9249_v28 }
 0x6b4   : > { %2315 = vrot.lane.b32.xlu1 %v13268_v31, %s12659_s10 }
 0x6b5   : > { %2481 = vrot.lane.b32.xlu0 %v1598_v12, %s12659_s10  ;;  %v13276_v12 = vld [vmem:[#allocation45_spill] sm:$0xff] }
 0x6b6   : > { %v9257_v34 = vpop.permute.xlu1 %2279  ;;  %v9259_v20 = vpop.permute.xlu0 %2301 }
 0x6b7   : > { %13271 = vst [vmem:[#allocation167_spill] sm:$0xff] %v9257_v34 }
 0x6b8   : > { %2307 = vrot.lane.b32.xlu1 %v13272_v59, %s12659_s10  ;;  %v13277_v59 = vld [vmem:[#allocation89_spill] sm:$0xff] }
 0x6b9   : > { %2479 = vrot.lane.b32.xlu0 %v1597_v32, %s12659_s10  ;;  %v1594_v32 = vsel %vm1554_vm8, %v13278_v22, %v13277_v59 }
 0x6ba   : > { %v9267_v31 = vpop.permute.xlu1 %2283  ;;  %v9269_v23 = vpop.permute.xlu0 %2399 }
 0x6bb   : > { %13274 = vst [vmem:[#allocation126_spill] sm:$0xff] %v9269_v23 }
 0x6bc   : > { %2305 = vrot.lane.b32.xlu1 %v13275_v6, %s12659_s10  ;;  %v13280_v6 = vld [vmem:[#allocation261_spill] sm:$0xff] }
 0x6bd   : > { %2477 = vrot.lane.b32.xlu0 %v13276_v12, %s12659_s10  ;;  %v1600_v40 = vsel %vm1554_vm8, %v13280_v6, %v13266_v33 }
 0x6be   : > { %v9275_v27 = vpop.permute.xlu1 %2287  ;;  %v2392_v16 = vpop.permute.xlu0 %2391 }
 0x6c0   : > { %2495 = vrot.lane.b32.xlu1 %v13260_v24, %s12659_s10 }
 0x6c1   : > { %2469 = vrot.lane.b32.xlu0 %v1594_v32, %s12659_s10  ;;  %v13283_v32 = vld [vmem:[#allocation225_spill] sm:$0xff] }
 0x6c2   : > { %v9283_v5 = vpop.permute.xlu1 %2291  ;;  %v2390_v57 = vpop.permute.xlu0 %2389  ;;  %v1599_v53 = vsel %vm1554_vm8, %v13283_v32, %v13280_v6 }
 0x6c3   : > { %13279 = vst [vmem:[#allocation120_spill] sm:$0xff] %v9283_v5  ;;  %v2951_v44 = vsel %vm1081_vm4, %v2390_v57, %v2392_v16 }
 0x6c4   : > { %2487 = vrot.lane.b32.xlu1 %v1600_v40, %s12659_s10  ;;  %v13286_v40 = vld [vmem:[#allocation102_spill] sm:$0xff] }
 0x6c5   : > { %2467 = vrot.lane.b32.xlu0 %v1593_v39, %s12659_s10  ;;  %v1634_v39 = vsel %vm1554_vm8, %v13286_v40, %v13285_v47 }
 0x6c6   : > { %v2296_v24 = vpop.permute.xlu1 %2295  ;;  %v9293_v50 = vpop.permute.xlu0 %2387 }
 0x6c7   : > { %13282 = vst [vmem:[#allocation152_spill] sm:$0xff] %v9293_v50 }
 0x6c8   : > { %2485 = vrot.lane.b32.xlu1 %v1599_v53, %s12659_s10  ;;  %v13287_v53 = vld [vmem:[#allocation246_spill] sm:$0xff] }
 0x6c9   : > { %2465 = vrot.lane.b32.xlu0 %v13284_v61, %s12659_s10  ;;  %v1596_v6 = vsel %vm1554_vm8, %v13287_v53, %v13276_v12  ;;  %v1595_v12 = vsel %vm1554_vm8, %v13290_v41, %v13287_v53  ;;  %v13292_v41 = vld [vmem:[#allocation128_spill] sm:$0xff] }
 0x6ca   : > { %v2300_v33 = vpop.permute.xlu1 %2299  ;;  %v9301_v25 = vpop.permute.xlu0 %2379 }
 0x6cc   : > { %2483 = vrot.lane.b32.xlu1 %v13269_v54, %s12659_s10  ;;  %v13289_v54 = vld [vmem:[#allocation267_spill] sm:$0xff] }
 0x6cd   : > { %2589 = vrot.lane.b32.xlu0 %v1634_v39, %s12659_s10  ;;  %v1590_v18 = vsel %vm1554_vm8, %v13289_v54, %v13288_v62 }
 0x6ce   : > { %v2398_v22 = vpop.permute.xlu1 %2397  ;;  %v9309_v56 = vpop.permute.xlu0 %2377 }
 0x6cf   : > { %v2954_v32 = vsel %vm1081_vm4, %v2398_v22, %v9269_v23  ;;  %v13291_v23 = vld [vmem:[#allocation99_spill] sm:$0xff] }
 0x6d0   : > { %2475 = vrot.lane.b32.xlu1 %v1596_v6, %s12659_s10  ;;  %3636 = vmatprep.subr.mxu1 %v2954_v32  ;;  %v1633_v6 = vsel %vm1554_vm8, %v13291_v23, %v13286_v40  ;;  %v13293_v23 = vld [vmem:[#allocation44_spill] sm:$0xff] }
 0x6d1   : > { %2457 = vrot.lane.b32.xlu0 %v1590_v18, %s12659_s10  ;;  %v1632_v40 = vsel %vm1554_vm8, %v13293_v23, %v13292_v41 }
 0x6d2   : > { %v2396_v39 = vpop.permute.xlu1 %2395  ;;  %v9321_v13 = vpop.permute.xlu0 %2375 }
 0x6d3   : > { %v2953_v45 = vsel %vm1081_vm4, %v2396_v39, %v2398_v22  ;;  %v275_v39 = vld [vmem:[#allocation7 + $0x8] sm:$0xff] }
 0x6d4   : > { %2473 = vrot.lane.b32.xlu1 %v1595_v12, %s12659_s10  ;;  %3637 = vmatpush1.msra.mxu1 %v2953_v45  ;;  %v13295_v12 = vld [vmem:[#allocation254_spill] sm:$0xff] }
 0x6d5   : > { %2587 = vrot.lane.b32.xlu0 %v1633_v6, %s12659_s10  ;;  %3581 = vmatprep.mubr.f32.mxu0 %v275_v39  ;;  %v1592_v6 = vsel %vm1554_vm8, %v13295_v12, %v13284_v61  ;;  %v2921_v61 = vsel %vm1081_vm4, %v2300_v33, %v9259_v20 }
 0x6d6   : > { %v9332_v32 = vpop.permute.xlu1 %2393  ;;  %v9334_v18 = vpop.permute.xlu0 %2367 }
 0x6d7   : > { %v2952_v22 = vsel %vm1081_vm4, %v2392_v16, %v9332_v32 }
 0x6d8   : > { %2471 = vrot.lane.b32.xlu1 %v13277_v59, %s12659_s10  ;;  %3638 = vmatprep.subr.mxu1 %v2952_v22  ;;  %v13296_v59 = vld [vmem:[#allocation240_spill] sm:$0xff]  ;;  %v13297_v22 = vld [vmem:[#allocation235_spill] sm:$0xff] }
 0x6d9   : > { %2583 = vrot.lane.b32.xlu0 %v1632_v40, %s12659_s10  ;;  %3639 = vmatpush1.msra.mxu1 %v2951_v44  ;;  %v1588_v44 = vsel %vm1554_vm8, %v13297_v22, %v13296_v59  ;;  %v2920_v40 = vsel %vm1081_vm4, %v2296_v24, %v9249_v28 }
 0x6da   : > { %v2386_v45 = vpop.permute.xlu1 %2385  ;;  %v9345_v53 = vpop.permute.xlu0 %2303 }
 0x6db   : > { %13294 = vst [vmem:[#allocation181_spill] sm:$0xff] %v9345_v53  ;;  %v2922_v16 = vsel %vm1081_vm4, %v9259_v20, %v9345_v53  ;;  %v2950_v57 = vsel %vm1081_vm4, %v2386_v45, %v9293_v50  ;;  %v2919_v50 = vsel %vm1081_vm4, %v9241_v49, %v2296_v24  ;;  %v13299_v20 = vld [vmem:[#allocation236_spill] sm:$0xff]  ;;  %v2917_v49 = vsel %vm1081_vm4, %v9275_v27, %v9231_v43  ;;  %v13300_v27 = vld [vmem:[#allocation263_spill] sm:$0xff] }
 0x6dc   : > { %2463 = vrot.lane.b32.xlu1 %v1592_v6, %s12659_s10  ;;  %3549 = vmatprep.subr.mxu0 %v2922_v16  ;;  %v13298_v16 = vld [vmem:[#allocation232_spill] sm:$0xff]  ;;  %v1631_v33 = vsel %vm1554_vm8, %v13299_v20, %v13293_v23  ;;  %v2916_v24 = vsel %vm1081_vm4, %v9267_v31, %v9221_v58 }
 0x6dd   : > { %2451 = vrot.lane.b32.xlu0 %v1588_v44, %s12659_s10  ;;  %3640 = vmatprep.subr.mxu1 %v2950_v57  ;;  %v1591_v57 = vsel %vm1554_vm8, %v13298_v16, %v13295_v12  ;;  %v2918_v44 = vsel %vm1081_vm4, %v9231_v43, %v9283_v5  ;;  %v13301_v43 = vld [vmem:[#allocation270_spill] sm:$0xff]  ;;  %v2911_v16 = vsel %vm1081_vm4, %v9189_v26, %v9239_v63 }
 0x6de   : > { %3550 = vmatpush2.msra.mxu0 %v2921_v61  ;;  %v2384_v39 = vpop.permute.xlu1 %2383  ;;  %v9364_v53 = vpop.permute.xlu0 %2361  ;;  %v1630_v61 = vsel %vm1554_vm8, %v13301_v43, %v13300_v27  ;;  %v2909_v26 = vsel %vm1081_vm4, %v9219_v14, %v9181_v1  ;;  %v13305_v14 = vld [vmem:[#allocation216_spill] sm:$0xff] }
 0x6df   : > { %v2949_v6 = vsel %vm1081_vm4, %v2384_v39, %v2386_v45  ;;  %3551 = vmatprep.subr.mxu0 %v2920_v40  ;;  %v2915_v45 = vsel %vm1081_vm4, %v9213_v42, %v9267_v31  ;;  %v2914_v39 = vsel %vm1081_vm4, %v9205_v3, %v9257_v34  ;;  %v2913_v42 = vsel %vm1081_vm4, %v9247_v35, %v9205_v3 }
 0x6e0   : > { %3552 = vmatpush2.msra.mxu0 %v2919_v50  ;;  %2461 = vrot.lane.b32.xlu1 %v1591_v57, %s12659_s10  ;;  %v2947_v31 = vsel %vm1081_vm4, %v9309_v56, %v9301_v25  ;;  %v2912_v40 = vsel %vm1081_vm4, %v9239_v63, %v9197_v37  ;;  %v13302_v56 = vld [vmem:[#allocation242_spill] sm:$0xff]  ;;  %v2910_v57 = vsel %vm1081_vm4, %v9181_v1, %v9229_v7 }
 0x6e1   : > { %2581 = vrot.lane.b32.xlu0 %v1631_v33, %s12659_s10  ;;  %3553 = vmatprep.subr.mxu0 %v2918_v44  ;;  %v2907_v44 = vsel %vm1081_vm4, %v9157_v52, %v9211_v38  ;;  %v2905_v52 = vsel %vm1081_vm4, %v9195_v17, %v9143_v55  ;;  %v13307_v17 = vld [vmem:[#allocation239_spill] sm:$0xff] }
 0x6e2   : > { %3641 = vmatpush1.msra.mxu1 %v2949_v6  ;;  %3554 = vmatpush2.msra.mxu0 %v2917_v49  ;;  %v9383_v50 = vpop.permute.xlu1 %2381  ;;  %v9388_v23 = vpop.permute.xlu0 %2359  ;;  %v13304_v49 = vld [vmem:[#allocation212_spill] sm:$0xff] }
 0x6e3   : > { %3555 = vmatprep.subr.mxu0 %v2916_v24  ;;  %v2948_v12 = vsel %vm1081_vm4, %v9301_v25, %v9383_v50  ;;  %v13303_v25 = vld [vmem:[#allocation252_spill] sm:$0xff]  ;;  %v1589_v1 = vsel %vm1554_vm8, %v13304_v49, %v13289_v54  ;;  %v1629_v24 = vsel %vm1554_vm8, %v13305_v14, %v13301_v43  ;;  %v2904_v54 = vsel %vm1081_vm4, %v9187_v15, %v9126_v0  ;;  %v13316_v14 = vld [vmem:[#allocation241_spill] sm:$0xff] }
 0x6e4   : > { %3556 = vmatpush2.msra.mxu0 %v2915_v45  ;;  %2591 = vrot.lane.b32.xlu1 %v13285_v47, %s12659_s10  ;;  %v1586_v35 = vsel %vm1554_vm8, %v13303_v25, %v13302_v56  ;;  %v2906_v45 = vsel %vm1081_vm4, %v9143_v55, %v9203_v11  ;;  %v2903_v43 = vsel %vm1081_vm4, %v9104_v51, %v9187_v15  ;;  %v13306_v55 = vld [vmem:[#allocation144_spill] sm:$0xff] }
 0x6e5   : > { %2577 = vrot.lane.b32.xlu0 %v1630_v61, %s12659_s10  ;;  %3557 = vmatprep.subr.mxu0 %v2914_v39  ;;  %v1628_v39 = vsel %vm1554_vm8, %v13307_v17, %v13306_v55  ;;  %v2901_v51 = vsel %vm1081_vm4, %v9169_v21, %v9084_v30  ;;  %v13309_v21 = vld [vmem:[#allocation85_spill] sm:$0xff] }
 0x6e6   : > { %3642 = vmatprep.subr.mxu1 %v2948_v12  ;;  %3558 = vmatpush2.msra.mxu0 %v2913_v42  ;;  %v2374_v47 = vpop.permute.xlu1 %2373  ;;  %v2902_v42 = vsel %vm1081_vm4, %v9084_v30, %v9179_v36  ;;  %v13308_v30 = vld [vmem:[#allocation88_spill] sm:$0xff] }
 0x6e7   : > { %3643 = vmatpush1.msra.mxu1 %v2947_v31  ;;  %3559 = vmatprep.subr.mxu0 %v2912_v40  ;;  %v9414_v6 = vpop.permute.xlu0 %2357  ;;  %v2946_v3 = vsel %vm1081_vm4, %v2374_v47, %v9321_v13  ;;  %v2899_v40 = vsel %vm1081_vm4, %v9045_v46, %v9155_v2 }
 0x6e8   : > { %3560 = vmatpush2.msra.mxu0 %v2911_v16  ;;  %2459 = vrot.lane.b32.xlu1 %v13288_v62, %s12659_s10  ;;  %v2908_v62 = vsel %vm1081_vm4, %v9211_v38, %v9171_v10  ;;  %v1584_v16 = vsel %vm1554_vm8, %v13309_v21, %v13308_v30 }
 0x6e9   : > { %2445 = vrot.lane.b32.xlu0 %v1586_v35, %s12659_s10  ;;  %3561 = vmatprep.subr.mxu0 %v2910_v57  ;;  %v2895_v35 = vsel %vm1081_vm4, %v9010_v19, %v9099_v60  ;;  %v13310_v57 = vld [vmem:[#allocation215_spill] sm:$0xff]  ;;  %v13314_v19 = vld [vmem:[#allocation82_spill] sm:$0xff] }
 0x6ea   : > { %3644 = vmatprep.subr.mxu1 %v2946_v3  ;;  %3562 = vmatpush2.msra.mxu0 %v2909_v26  ;;  %v2372_v63 = vpop.permute.xlu1 %2371  ;;  %v2898_v3 = vsel %vm1081_vm4, %v9030_v29, %v9141_v9  ;;  %v1587_v26 = vsel %vm1554_vm8, %v13310_v57, %v13297_v22  ;;  %v2941_v22 = vsel %vm1081_vm4, %v9388_v23, %v9364_v53  ;;  %v13319_v23 = vld [vmem:[#allocation122_spill] sm:$0xff]  ;;  %v13449_v9 = vld [vmem:[#allocation35_spill] sm:$0xff] }
 0x6eb   : > { %v2945_v20 = vsel %vm1081_vm4, %v2372_v63, %v2374_v47  ;;  %3563 = vmatprep.subr.mxu0 %v2908_v62  ;;  %v9437_v33 = vpop.permute.xlu0 %2349  ;;  %v13312_v62 = vld [vmem:[#allocation153_spill] sm:$0xff] }
 0x6ec   : > { %3564 = vmatpush2.msra.mxu0 %v2907_v44  ;;  %2455 = vrot.lane.b32.xlu1 %v1589_v1, %s12659_s10  ;;  %v13315_v1 = vld [vmem:[#allocation233_spill] sm:$0xff] }
 0x6ed   : > { %2575 = vrot.lane.b32.xlu0 %v1629_v24, %s12659_s10  ;;  %3565 = vmatprep.subr.mxu0 %v2906_v45  ;;  %v2892_v24 = vsel %vm1081_vm4, %v13316_v14, %v13315_v1 }
 0x6ee   : > { %3645 = vmatpush1.msra.mxu1 %v2945_v20  ;;  %3566 = vmatpush2.msra.mxu0 %v2905_v52  ;;  %v9456_v38 = vpop.permute.xlu1 %2369  ;;  %v13313_v20 = vld [vmem:[#allocation213_spill] sm:$0xff]  ;;  %v13317_v52 = vld [vmem:[#allocation238_spill] sm:$0xff] }
 0x6ef   : > { %3567 = vmatprep.subr.mxu0 %v2904_v54  ;;  %v9461_v12 = vpop.permute.xlu0 %2347  ;;  %v2944_v61 = vsel %vm1081_vm4, %v9334_v18, %v9456_v38  ;;  %v2894_v44 = vsel %vm1081_vm4, %v13313_v20, %v13312_v62  ;;  %v2891_v54 = vsel %vm1081_vm4, %v13317_v52, %v13316_v14  ;;  %v13329_v52 = vld [vmem:[#allocation98_spill] sm:$0xff] }
 0x6f0   : > { %3568 = vmatpush2.msra.mxu0 %v2903_v43  ;;  %2585 = vrot.lane.b32.xlu1 %v13292_v41, %s12659_s10  ;;  %v2900_v41 = vsel %vm1081_vm4, %v9155_v2, %v9063_v8  ;;  %v2896_v2 = vsel %vm1081_vm4, %v9099_v60, %v9018_v4  ;;  %v2893_v60 = vsel %vm1081_vm4, %v13314_v19, %v13313_v20  ;;  %v13327_v19 = vld [vmem:[#allocation260_spill] sm:$0xff]  ;;  %v13448_v4 = vld [vmem:[#allocation281_spill] sm:$0xff] }
 0x6f1   : > { %2571 = vrot.lane.b32.xlu0 %v1628_v39, %s12659_s10  ;;  %3569 = vmatprep.subr.mxu0 %v2902_v42 }
 0x6f2   : > { %3646 = vmatprep.subr.mxu1 %v2944_v61  ;;  %3570 = vmatpush2.msra.mxu0 %v2901_v51  ;;  %v2366_v15 = vpop.permute.xlu1 %2365  ;;  %v274_v61 = vld [vmem:[#allocation7] sm:$0xff] }
 0x6f3   : > { %v2943_v31 = vsel %vm1081_vm4, %v2366_v15, %v9334_v18  ;;  %3571 = vmatprep.subr.mxu0 %v2900_v41  ;;  %v9486_v47 = vpop.permute.xlu0 %2345  ;;  %v2897_v18 = vsel %vm1081_vm4, %v9121_v48, %v9030_v29  ;;  %v13311_v48 = vld [vmem:[#allocation221_spill] sm:$0xff]  ;;  %v13321_v41 = vld [vmem:[#allocation258_spill] sm:$0xff] }
 0x6f4   : > { %3572 = vmatpush2.msra.mxu0 %v2899_v40  ;;  %2453 = vrot.lane.b32.xlu1 %v13296_v59, %s12659_s10  ;;  %v1627_v63 = vsel %vm1554_vm8, %v13311_v48, %v13307_v17  ;;  %v13320_v15 = vld [vmem:[#allocation249_spill] sm:$0xff] }
 0x6f5   : > { %2439 = vrot.lane.b32.xlu0 %v1584_v16, %s12659_s10  ;;  %3573 = vmatprep.subr.mxu0 %v2898_v3  ;;  %v13322_v16 = vld [vmem:[#allocation196_spill] sm:$0xff] }
 0x6f6   : > { %3647 = vmatpush1.msra.mxu1 %v2943_v31  ;;  %3574 = vmatpush2.msra.mxu0 %v2897_v18  ;;  %v9503_v46 = vpop.permute.xlu1 %2363  ;;  %v1585_v3 = vsel %vm1554_vm8, %v13322_v16, %v13303_v25  ;;  %v13333_v16 = vld [vmem:[#allocation134_spill] sm:$0xff] }
 0x6f7   : > { %3575 = vmatprep.subr.mxu0 %v2896_v2  ;;  %v9508_v59 = vpop.permute.xlu0 %2337  ;;  %v2942_v29 = vsel %vm1081_vm4, %v9364_v53, %v9503_v46  ;;  %v13318_v53 = vld [vmem:[#allocation248_spill] sm:$0xff]  ;;  %v13323_v2 = vld [vmem:[#allocation201_spill] sm:$0xff] }
 0x6f8   : > { %3576 = vmatpush2.msra.mxu0 %v2895_v35  ;;  %2449 = vrot.lane.b32.xlu1 %v1587_v26, %s12659_s10  ;;  %v1626_v17 = vsel %vm1554_vm8, %v13319_v23, %v13318_v53  ;;  %v1625_v35 = vsel %vm1554_vm8, %v13323_v2, %v13319_v23  ;;  %v13330_v23 = vld [vmem:[#allocation251_spill] sm:$0xff] }
 0x6f9   : > { %2569 = vrot.lane.b32.xlu0 %v1627_v63, %s12659_s10  ;;  %3577 = vmatprep.subr.mxu0 %v2894_v44  ;;  %v13326_v44 = vld [vmem:[#allocation262_spill] sm:$0xff] }
 0x6fa   : > { %3648 = vmatprep.subr.mxu1 %v2942_v29  ;;  %3578 = vmatpush2.msra.mxu0 %v2893_v60  ;;  %v2356_v49 = vpop.permute.xlu1 %2355  ;;  %v13324_v29 = vld [vmem:[#allocation100_spill] sm:$0xff]  ;;  %v1580_v60 = vsel %vm1554_vm8, %v13327_v19, %v13326_v44 }
 0x6fb   : > { %3649 = vmatpush1.msra.mxu1 %v2941_v22  ;;  %3579 = vmatprep.subr.mxu0 %v2892_v24  ;;  %v2336_v45 = vpop.permute.xlu0 %2335  ;;  %v2940_v43 = vsel %vm1081_vm4, %v2356_v49, %v9414_v6 }
 0x6fc   : > { %3580 = vmatpush2.msra.mxu0 %v2891_v54  ;;  %2579 = vrot.lane.b32.xlu1 %v13300_v27, %s12659_s10  ;;  %v1582_v27 = vsel %vm1554_vm8, %v13321_v41, %v13320_v15 }
 0x6fd   : > { %2565 = vrot.lane.b32.xlu0 %v1626_v17, %s12659_s10  ;;  %3650 = vmatprep.subr.mxu1 %v2940_v43 }
 0x6fe   : > { %v2354_v39 = vpop.permute.xlu1 %2353  ;;  %3582 = vmatmul.mubr.f32.vlgmr.msra.gmra.mxu0 %v274_v61 }
 0x6ff   : > { %v2939_v42 = vsel %vm1081_vm4, %v2354_v39, %v2356_v49  ;;  %v9548_v51 = vpop.permute.xlu0 %2333  ;;  %v13328_v49 = vld [vmem:[#allocation86_spill] sm:$0xff] }
 0x700   : > { %2447 = vrot.lane.b32.xlu1 %v13302_v56, %s12659_s10  ;;  %3651 = vmatpush1.msra.mxu1 %v2939_v42  ;;  %v2937_v56 = vsel %vm1081_vm4, %v9461_v12, %v9437_v33  ;;  %v1583_v14 = vsel %vm1554_vm8, %v13328_v49, %v13309_v21 }
 0x701   : > { %2433 = vrot.lane.b32.xlu0 %v1582_v27, %s12659_s10  ;;  %v13332_v27 = vld [vmem:[#allocation226_spill] sm:$0xff] }
 0x702   : > { %v9556_v31 = vpop.permute.xlu1 %2351 }
 0x703   : > { %v2326_v40 = vpop.permute.xlu0 %2325  ;;  %v2938_v18 = vsel %vm1081_vm4, %v9437_v33, %v9556_v31  ;;  %v13325_v33 = vld [vmem:[#allocation97_spill] sm:$0xff] }
 0x704   : > { %2443 = vrot.lane.b32.xlu1 %v1585_v3, %s12659_s10  ;;  %3652 = vmatprep.subr.mxu1 %v2938_v18  ;;  %v1624_v12 = vsel %vm1554_vm8, %v13325_v33, %v13324_v29  ;;  %v1623_v54 = vsel %vm1554_vm8, %v13329_v52, %v13325_v33  ;;  %v1578_v3 = vsel %vm1554_vm8, %v13333_v16, %v13332_v27 }
 0x705   : > { %2563 = vrot.lane.b32.xlu0 %v1625_v35, %s12659_s10  ;;  %3653 = vmatpush1.msra.mxu1 %v2937_v56  ;;  %v13334_v56 = vld [vmem:[#allocation219_spill] sm:$0xff] }
 0x706   : > { %v2344_v57 = vpop.permute.xlu1 %2343  ;;  %v1581_v2 = vsel %vm1554_vm8, %v13334_v56, %v13321_v41 }
 0x707   : > { %v2324_v25 = vpop.permute.xlu0 %2323  ;;  %v2936_v26 = vsel %vm1081_vm4, %v2344_v57, %v9486_v47 }
 0x708   : > { %2573 = vrot.lane.b32.xlu1 %v13306_v55, %s12659_s10  ;;  %3654 = vmatprep.subr.mxu1 %v2936_v26 }
 0x709   : > { %2559 = vrot.lane.b32.xlu0 %v1624_v12, %s12659_s10 }
 0x70a   : > { %v2342_v48 = vpop.permute.xlu1 %2341 }
 0x70b   : > { %v2935_v63 = vsel %vm1081_vm4, %v2342_v48, %v2344_v57  ;;  %v9581_v20 = vpop.permute.xlu0 %2321  ;;  %v2929_v57 = vsel %vm1081_vm4, %v2324_v25, %v2326_v40  ;;  %v13336_v48 = vld [vmem:[#allocation265_spill] sm:$0xff] }
 0x70c   : > { %2441 = vrot.lane.b32.xlu1 %v13308_v30, %s12659_s10  ;;  %3655 = vmatpush1.msra.mxu1 %v2935_v63  ;;  %v2933_v30 = vsel %vm1081_vm4, %v2336_v45, %v9508_v59 }
 0x70d   : > { %2427 = vrot.lane.b32.xlu0 %v1580_v60, %s12659_s10 }
 0x70e   : > { %v9589_v55 = vpop.permute.xlu1 %2339 }
 0x70f   : > { %v2314_v22 = vpop.permute.xlu0 %2313  ;;  %v2934_v24 = vsel %vm1081_vm4, %v9508_v59, %v9589_v55  ;;  %v13331_v59 = vld [vmem:[#allocation16_spill] sm:$0xff] }
 0x710   : > { %2437 = vrot.lane.b32.xlu1 %v1583_v14, %s12659_s10  ;;  %3656 = vmatprep.subr.mxu1 %v2934_v24  ;;  %v1622_v45 = vsel %vm1554_vm8, %v13331_v59, %v13330_v23  ;;  %v13338_v14 = vld [vmem:[#allocation247_spill] sm:$0xff]  ;;  %v13339_v24 = vld [vmem:[#allocation244_spill] sm:$0xff] }
 0x711   : > { %2557 = vrot.lane.b32.xlu0 %v1623_v54, %s12659_s10  ;;  %3657 = vmatpush1.msra.mxu1 %v2933_v30  ;;  %v1576_v30 = vsel %vm1554_vm8, %v13339_v24, %v13338_v14  ;;  %v13340_v54 = vld [vmem:[#allocation223_spill] sm:$0xff] }
 0x712   : > { %v2332_v43 = vpop.permute.xlu1 %2331 }
 0x713   : > { %v2312_v61 = vpop.permute.xlu0 %2311  ;;  %v2932_v21 = vsel %vm1081_vm4, %v2332_v43, %v9548_v51 }
 0x714   : > { %2567 = vrot.lane.b32.xlu1 %v13318_v53, %s12659_s10  ;;  %3658 = vmatprep.subr.mxu1 %v2932_v21 }
 0x715   : > { %2553 = vrot.lane.b32.xlu0 %v1622_v45, %s12659_s10 }
 0x716   : > { %v2330_v17 = vpop.permute.xlu1 %2329 }
 0x717   : > { %v2931_v39 = vsel %vm1081_vm4, %v2330_v17, %v2332_v43  ;;  %v9613_v42 = vpop.permute.xlu0 %2309  ;;  %v1579_v43 = vsel %vm1554_vm8, %v13340_v54, %v13327_v19 }
 0x718   : > { %2435 = vrot.lane.b32.xlu1 %v13320_v15, %s12659_s10  ;;  %3659 = vmatpush1.msra.mxu1 %v2931_v39  ;;  %v13335_v15 = vld [vmem:[#allocation224_spill] sm:$0xff] }
 0x719   : > { %2421 = vrot.lane.b32.xlu0 %v1578_v3, %s12659_s10  ;;  %v1621_v26 = vsel %vm1554_vm8, %v13335_v15, %v13331_v59  ;;  %v2925_v59 = vsel %vm1081_vm4, %v2312_v61, %v2314_v22  ;;  %v13342_v3 = vld [vmem:[#allocation230_spill] sm:$0xff]  ;;  %v13345_v15 = vld [vmem:[#allocation84_spill] sm:$0xff] }
 0x71a   : > { %v9621_v53 = vpop.permute.xlu1 %2327 }
 0x71b   : > { %v2494_v18 = vpop.permute.xlu0 %2493  ;;  %v2930_v35 = vsel %vm1081_vm4, %v2326_v40, %v9621_v53  ;;  %v13337_v40 = vld [vmem:[#allocation51_spill] sm:$0xff] }
 0x71c   : > { %2431 = vrot.lane.b32.xlu1 %v1581_v2, %s12659_s10  ;;  %3660 = vmatprep.subr.mxu1 %v2930_v35  ;;  %v1620_v25 = vsel %vm1554_vm8, %v13337_v40, %v13336_v48 }
 0x71d   : > { %2551 = vrot.lane.b32.xlu0 %v1621_v26, %s12659_s10  ;;  %3661 = vmatpush1.msra.mxu1 %v2929_v57  ;;  %v13344_v57 = vld [vmem:[#allocation83_spill] sm:$0xff] }
 0x71e   : > { %v2320_v33 = vpop.permute.xlu1 %2319  ;;  %v1574_v26 = vsel %vm1554_vm8, %v13345_v15, %v13344_v57 }
 0x71f   : > { %v2492_v12 = vpop.permute.xlu0 %2491  ;;  %v2928_v41 = vsel %vm1081_vm4, %v2320_v33, %v9581_v20 }
 0x720   : > { %2561 = vrot.lane.b32.xlu1 %v13324_v29, %s12659_s10  ;;  %3662 = vmatprep.subr.mxu1 %v2928_v41  ;;  %v13346_v41 = vld [vmem:[#allocation203_spill] sm:$0xff] }
 0x721   : > { %2547 = vrot.lane.b32.xlu0 %v1620_v25, %s12659_s10 }
 0x722   : > { %v2318_v63 = vpop.permute.xlu1 %2317 }
 0x723   : > { %v2927_v60 = vsel %vm1081_vm4, %v2318_v63, %v2320_v33  ;;  %v9643_v49 = vpop.permute.xlu0 %2489  ;;  %v2985_v63 = vsel %vm1081_vm4, %v2492_v12, %v2494_v18 }
 0x724   : > { %2429 = vrot.lane.b32.xlu1 %v13326_v44, %s12659_s10  ;;  %3663 = vmatpush1.msra.mxu1 %v2927_v60  ;;  %v13341_v44 = vld [vmem:[#allocation227_spill] sm:$0xff] }
 0x725   : > { %2415 = vrot.lane.b32.xlu0 %v1576_v30, %s12659_s10  ;;  %v1619_v45 = vsel %vm1554_vm8, %v13341_v44, %v13337_v40  ;;  %v1577_v40 = vsel %vm1554_vm8, %v13346_v41, %v13333_v16 }
 0x726   : > { %v9651_v29 = vpop.permute.xlu1 %2315 }
 0x727   : > { %v2482_v52 = vpop.permute.xlu0 %2481  ;;  %v2926_v21 = vsel %vm1081_vm4, %v2314_v22, %v9651_v29  ;;  %v13343_v22 = vld [vmem:[#allocation245_spill] sm:$0xff] }
 0x728   : > { %2425 = vrot.lane.b32.xlu1 %v1579_v43, %s12659_s10  ;;  %3664 = vmatprep.subr.mxu1 %v2926_v21  ;;  %v1618_v61 = vsel %vm1554_vm8, %v13343_v22, %v13342_v3  ;;  %v13348_v43 = vld [vmem:[#allocation30_spill] sm:$0xff] }
 0x729   : > { %2545 = vrot.lane.b32.xlu0 %v1619_v45, %s12659_s10  ;;  %3665 = vmatpush1.msra.mxu1 %v2925_v59  ;;  %v13350_v45 = vld [vmem:[#allocation32_spill] sm:$0xff] }
 0x72a   : > { %v2308_v17 = vpop.permute.xlu1 %2307 }
 0x72b   : > { %v2480_v39 = vpop.permute.xlu0 %2479  ;;  %v2924_v19 = vsel %vm1081_vm4, %v2308_v17, %v9613_v42 }
 0x72c   : > { %2555 = vrot.lane.b32.xlu1 %v13330_v23, %s12659_s10  ;;  %3666 = vmatprep.subr.mxu1 %v2924_v19 }
 0x72d   : > { %2541 = vrot.lane.b32.xlu0 %v1618_v61, %s12659_s10  ;;  %v13352_v61 = vld [vmem:[#allocation207_spill] sm:$0xff] }
 0x72e   : > { %v2306_v56 = vpop.permute.xlu1 %2305 }
 0x72f   : > { %v2923_v2 = vsel %vm1081_vm4, %v2306_v56, %v2308_v17  ;;  %v9673_v35 = vpop.permute.xlu0 %2477  ;;  %v13351_v17 = vld [vmem:[#allocation253_spill] sm:$0xff]  ;;  %v1575_v56 = vsel %vm1554_vm8, %v13352_v61, %v13339_v24 }
 0x730   : > { %2423 = vrot.lane.b32.xlu1 %v13332_v27, %s12659_s10  ;;  %3667 = vmatpush1.msra.mxu1 %v2923_v2  ;;  %v13347_v27 = vld [vmem:[#allocation208_spill] sm:$0xff]  ;;  %v1572_v19 = vsel %vm1554_vm8, %v13351_v17, %v13350_v45 }
 0x731   : > { %2409 = vrot.lane.b32.xlu0 %v1574_v26, %s12659_s10  ;;  %v1617_v60 = vsel %vm1554_vm8, %v13347_v27, %v13343_v22  ;;  %v2981_v26 = vsel %vm1081_vm4, %v2480_v39, %v2482_v52 }
 0x732   : > { %v9681_v23 = vpop.permute.xlu1 %2495 }
 0x733   : > { %v2470_v33 = vpop.permute.xlu0 %2469  ;;  %v2986_v25 = vsel %vm1081_vm4, %v2494_v18, %v9681_v23  ;;  %v13349_v18 = vld [vmem:[#allocation37_spill] sm:$0xff] }
 0x734   : > { %2419 = vrot.lane.b32.xlu1 %v1577_v40, %s12659_s10  ;;  %3668 = vmatprep.subr.mxu1 %v2986_v25  ;;  %v1616_v12 = vsel %vm1554_vm8, %v13349_v18, %v13348_v43 }
 0x735   : > { %2539 = vrot.lane.b32.xlu0 %v1617_v60, %s12659_s10  ;;  %3669 = vmatpush2.msra.mxu1 %v2985_v63  ;;  %v13354_v63 = vld [vmem:[#allocation95_spill] sm:$0xff] }
 0x736   : > { %v2488_v30 = vpop.permute.xlu1 %2487 }
 0x737   : > { %v2468_v54 = vpop.permute.xlu0 %2467  ;;  %v2984_v16 = vsel %vm1081_vm4, %v2488_v30, %v9643_v49 }
 0x738   : > { %2549 = vrot.lane.b32.xlu1 %v13336_v48, %s12659_s10  ;;  %3670 = vmatprep.subr.mxu1 %v2984_v16  ;;  %v13356_v16 = vld [vmem:[#allocation93_spill] sm:$0xff]  ;;  %v2977_v61 = vsel %vm1081_vm4, %v2468_v54, %v2470_v33 }
 0x739   : > { %2535 = vrot.lane.b32.xlu0 %v1616_v12, %s12659_s10  ;;  %v13357_v12 = vld [vmem:[#allocation81_spill] sm:$0xff] }
 0x73a   : > { %v2486_v21 = vpop.permute.xlu1 %2485 }
 0x73b   : > { %v2983_v59 = vsel %vm1081_vm4, %v2486_v21, %v2488_v30  ;;  %v9703_v44 = vpop.permute.xlu0 %2465  ;;  %v1573_v21 = vsel %vm1554_vm8, %v13357_v12, %v13345_v15 }
 0x73c   : > { %2417 = vrot.lane.b32.xlu1 %v13338_v14, %s12659_s10  ;;  %3671 = vmatpush2.msra.mxu1 %v2983_v59  ;;  %v13353_v14 = vld [vmem:[#allocation211_spill] sm:$0xff] }
 0x73d   : > { %2403 = vrot.lane.b32.xlu0 %v1572_v19, %s12659_s10  ;;  %v1615_v41 = vsel %vm1554_vm8, %v13353_v14, %v13349_v18 }
 0x73e   : > { %v9711_v48 = vpop.permute.xlu1 %2483 }
 0x73f   : > { %v2590_v22 = vpop.permute.xlu0 %2589  ;;  %v2982_v2 = vsel %vm1081_vm4, %v2482_v52, %v9711_v48  ;;  %v13355_v52 = vld [vmem:[#allocation96_spill] sm:$0xff] }
 0x740   : > { %2413 = vrot.lane.b32.xlu1 %v1575_v56, %s12659_s10  ;;  %3672 = vmatprep.subr.mxu1 %v2982_v2  ;;  %v1614_v39 = vsel %vm1554_vm8, %v13355_v52, %v13354_v63  ;;  %v1613_v18 = vsel %vm1554_vm8, %v13356_v16, %v13355_v52  ;;  %v13358_v56 = vld [vmem:[#allocation329_spill] sm:$0xff]  ;;  %v13362_v52 = vld [vmem:[#allocation234_spill] sm:$0xff] }
 0x741   : > { %2533 = vrot.lane.b32.xlu0 %v1615_v41, %s12659_s10  ;;  %3673 = vmatpush2.msra.mxu1 %v2981_v26 }
 0x742   : > { %v2476_v40 = vpop.permute.xlu1 %2475 }
 0x743   : > { %v2458_v25 = vpop.permute.xlu0 %2457  ;;  %v2980_v24 = vsel %vm1081_vm4, %v2476_v40, %v9673_v35 }
 0x744   : > { %2543 = vrot.lane.b32.xlu1 %v13342_v3, %s12659_s10  ;;  %3674 = vmatprep.subr.mxu1 %v2980_v24  ;;  %v13361_v24 = vld [vmem:[#allocation255_spill] sm:$0xff] }
 0x745   : > { %2529 = vrot.lane.b32.xlu0 %v1614_v39, %s12659_s10  ;;  %v1611_v39 = vsel %vm1554_vm8, %v13362_v52, %v13361_v24  ;;  %v13369_v52 = vld [vmem:[#allocation53_spill] sm:$0xff] }
 0x746   : > { %v2474_v27 = vpop.permute.xlu1 %2473 }
 0x747   : > { %v2979_v60 = vsel %vm1081_vm4, %v2474_v27, %v2476_v40  ;;  %v2588_v30 = vpop.permute.xlu0 %2587 }
 0x748   : > { %2411 = vrot.lane.b32.xlu1 %v13344_v57, %s12659_s10  ;;  %3675 = vmatpush2.msra.mxu1 %v2979_v60  ;;  %v13359_v57 = vld [vmem:[#allocation338_spill] sm:$0xff]  ;;  %v13364_v60 = vld [vmem:[#allocation229_spill] sm:$0xff]  ;;  %v3017_v12 = vsel %vm1081_vm4, %v2588_v30, %v2590_v22 }
 0x749   : > { %2527 = vrot.lane.b32.xlu0 %v1613_v18, %s12659_s10  ;;  %v2051_v2 = vsel %vm1955_vm9, %v13359_v57, %v13358_v56  ;;  %v1571_v16 = vsel %vm1554_vm8, %v13364_v60, %v13351_v17 }
 0x74a   : > { %v9739_v3 = vpop.permute.xlu1 %2471 }
 0x74b   : > { %v2584_v59 = vpop.permute.xlu0 %2583  ;;  %v2978_v19 = vsel %vm1081_vm4, %v2470_v33, %v9739_v3  ;;  %v13360_v33 = vld [vmem:[#allocation104_spill] sm:$0xff] }
 0x74c   : > { %2407 = vrot.lane.b32.xlu1 %v1573_v21, %s12659_s10  ;;  %3676 = vmatprep.subr.mxu1 %v2978_v19  ;;  %v13366_v21 = vld [vmem:[#allocation334_spill] sm:$0xff] }
 0x74d   : > { %2783 = vrot.lane.b32.xlu0 %v2051_v2, %s12659_s10  ;;  %3677 = vmatpush2.msra.mxu1 %v2977_v61  ;;  %v277_v2 = vld [vmem:[#allocation7 + $0x18] sm:$0xff] }
 0x74e   : > { %v2464_v26 = vpop.permute.xlu1 %2463  ;;  %3700 = vmatprep.mubr.f32.mxu1 %v277_v2  ;;  %v13374_v2 = vld [vmem:[#allocation336_spill] sm:$0xff] }
 0x74f   : > { %v2452_v14 = vpop.permute.xlu0 %2451  ;;  %v2976_v15 = vsel %vm1081_vm4, %v2464_v26, %v9703_v44 }
 0x750   : > { %2537 = vrot.lane.b32.xlu1 %v13348_v43, %s12659_s10  ;;  %3678 = vmatprep.subr.mxu1 %v2976_v15 }
 0x751   : > { %2525 = vrot.lane.b32.xlu0 %v13360_v33, %s12659_s10 }
 0x752   : > { %v2462_v54 = vpop.permute.xlu1 %2461 }
 0x753   : > { %v2975_v41 = vsel %vm1081_vm4, %v2462_v54, %v2464_v26  ;;  %v2582_v40 = vpop.permute.xlu0 %2581  ;;  %v13368_v54 = vld [vmem:[#allocation75_spill] sm:$0xff] }
 0x754   : > { %2405 = vrot.lane.b32.xlu1 %v13350_v45, %s12659_s10  ;;  %3679 = vmatpush2.msra.mxu1 %v2975_v41  ;;  %v13365_v45 = vld [vmem:[#allocation328_spill] sm:$0xff]  ;;  %v2050_v41 = vsel %vm1955_vm9, %v13368_v54, %v13359_v57  ;;  %v3015_v57 = vsel %vm1081_vm4, %v2582_v40, %v2584_v59 }
 0x755   : > { %2521 = vrot.lane.b32.xlu0 %v1611_v39, %s12659_s10  ;;  %v2048_v19 = vsel %vm1955_vm9, %v13366_v21, %v13365_v45  ;;  %v13370_v39 = vld [vmem:[#allocation214_spill] sm:$0xff]  ;;  %v13375_v40 = vld [vmem:[#allocation36_spill] sm:$0xff] }
 0x756   : > { %v9765_v27 = vpop.permute.xlu1 %2591  ;;  %v1609_v60 = vsel %vm1554_vm8, %v13370_v39, %v13369_v52  ;;  %v13373_v45 = vld [vmem:[#allocation330_spill] sm:$0xff] }
 0x757   : > { %13363 = vst [vmem:[#allocation143_spill] sm:$0xff] %v9765_v27  ;;  %v2578_v43 = vpop.permute.xlu0 %2577  ;;  %v3018_v18 = vsel %vm1081_vm4, %v2590_v22, %v9765_v27  ;;  %v13367_v22 = vld [vmem:[#allocation259_spill] sm:$0xff]  ;;  %v13376_v39 = vld [vmem:[#allocation326_spill] sm:$0xff] }
 0x758   : > { %2401 = vrot.lane.b32.xlu1 %v1571_v16, %s12659_s10  ;;  %3755 = vmatprep.subr.mxu0 %v3018_v18 }
 0x759   : > { %2777 = vrot.lane.b32.xlu0 %v2048_v19, %s12659_s10  ;;  %3756 = vmatpush1.msra.mxu0 %v3017_v12  ;;  %v13372_v12 = vld [vmem:[#allocation324_spill] sm:$0xff] }
 0x75a   : > { %v9778_v61 = vpop.permute.xlu1 %2459  ;;  %v2045_v19 = vsel %vm1955_vm9, %v13373_v45, %v13372_v12 }
 0x75b   : > { %v2446_v56 = vpop.permute.xlu0 %2445  ;;  %v2974_v17 = vsel %vm1081_vm4, %v2458_v25, %v9778_v61 }
 0x75c   : > { %2531 = vrot.lane.b32.xlu1 %v13354_v63, %s12659_s10  ;;  %3680 = vmatprep.subr.mxu1 %v2974_v17 }
 0x75d   : > { %2519 = vrot.lane.b32.xlu0 %v13367_v22, %s12659_s10 }
 0x75e   : > { %v2456_v30 = vpop.permute.xlu1 %2455 }
 0x75f   : > { %v2973_v26 = vsel %vm1081_vm4, %v2456_v30, %v2458_v25  ;;  %v2576_v15 = vpop.permute.xlu0 %2575  ;;  %v1612_v25 = vsel %vm1554_vm8, %v13361_v24, %v13360_v33  ;;  %v2049_v33 = vsel %vm1955_vm9, %v13374_v2, %v13368_v54  ;;  %v13377_v54 = vld [vmem:[#allocation237_spill] sm:$0xff]  ;;  %v13380_v2 = vld [vmem:[#allocation320_spill] sm:$0xff] }
 0x760   : > { %2781 = vrot.lane.b32.xlu1 %v2050_v41, %s12659_s10  ;;  %3681 = vmatpush2.msra.mxu1 %v2973_v26 }
 0x761   : > { %2515 = vrot.lane.b32.xlu0 %v1609_v60, %s12659_s10  ;;  %v2047_v60 = vsel %vm1955_vm9, %v13376_v39, %v13366_v21  ;;  %v3013_v21 = vsel %vm1081_vm4, %v2576_v15, %v2578_v43  ;;  %v13383_v15 = vld [vmem:[#allocation243_spill] sm:$0xff] }
 0x762   : > { %v9795_v63 = vpop.permute.xlu1 %2585 }
 0x763   : > { %13371 = vst [vmem:[#allocation132_spill] sm:$0xff] %v9795_v63  ;;  %v2572_v16 = vpop.permute.xlu0 %2571  ;;  %v3016_v18 = vsel %vm1081_vm4, %v2584_v59, %v9795_v63 }
 0x764   : > { %2523 = vrot.lane.b32.xlu1 %v1612_v25, %s12659_s10  ;;  %3757 = vmatprep.subr.mxu0 %v3016_v18  ;;  %v13378_v25 = vld [vmem:[#allocation218_spill] sm:$0xff] }
 0x765   : > { %2771 = vrot.lane.b32.xlu0 %v2045_v19, %s12659_s10  ;;  %3758 = vmatpush1.msra.mxu0 %v3015_v57  ;;  %v1607_v18 = vsel %vm1554_vm8, %v13378_v25, %v13377_v54 }
 0x766   : > { %v9808_v17 = vpop.permute.xlu1 %2453 }
 0x767   : > { %v2440_v24 = vpop.permute.xlu0 %2439  ;;  %v2972_v59 = vsel %vm1081_vm4, %v2452_v14, %v9808_v17 }
 0x768   : > { %2779 = vrot.lane.b32.xlu1 %v2049_v33, %s12659_s10  ;;  %3682 = vmatprep.subr.mxu1 %v2972_v59  ;;  %v13381_v33 = vld [vmem:[#allocation78_spill] sm:$0xff] }
 0x769   : > { %2513 = vrot.lane.b32.xlu0 %v13375_v40, %s12659_s10  ;;  %v2042_v59 = vsel %vm1955_vm9, %v13381_v33, %v13380_v2 }
 0x76a   : > { %v2450_v30 = vpop.permute.xlu1 %2449 }
 0x76b   : > { %v2971_v26 = vsel %vm1081_vm4, %v2450_v30, %v2452_v14  ;;  %v2570_v41 = vpop.permute.xlu0 %2569  ;;  %v1610_v14 = vsel %vm1554_vm8, %v13369_v52, %v13367_v22 }
 0x76c   : > { %2775 = vrot.lane.b32.xlu1 %v2047_v60, %s12659_s10  ;;  %3683 = vmatpush2.msra.mxu1 %v2971_v26  ;;  %v13382_v26 = vld [vmem:[#allocation332_spill] sm:$0xff] }
 0x76d   : > { %2509 = vrot.lane.b32.xlu0 %v1607_v18, %s12659_s10  ;;  %v2046_v22 = vsel %vm1955_vm9, %v13382_v26, %v13376_v39  ;;  %v13385_v39 = vld [vmem:[#allocation47_spill] sm:$0xff] }
 0x76e   : > { %v9827_v57 = vpop.permute.xlu1 %2579 }
 0x76f   : > { %13379 = vst [vmem:[#allocation197_spill] sm:$0xff] %v9827_v57  ;;  %v2566_v12 = vpop.permute.xlu0 %2565  ;;  %v3014_v19 = vsel %vm1081_vm4, %v2578_v43, %v9827_v57  ;;  %v13403_v57 = vld [vmem:[#allocation68_spill] sm:$0xff] }
 0x770   : > { %2517 = vrot.lane.b32.xlu1 %v1610_v14, %s12659_s10  ;;  %3759 = vmatprep.subr.mxu0 %v3014_v19  ;;  %v13384_v14 = vld [vmem:[#allocation322_spill] sm:$0xff] }
 0x771   : > { %2765 = vrot.lane.b32.xlu0 %v2042_v59, %s12659_s10  ;;  %3760 = vmatpush1.msra.mxu0 %v3013_v21  ;;  %v2044_v19 = vsel %vm1955_vm9, %v13384_v14, %v13373_v45  ;;  %v13386_v21 = vld [vmem:[#allocation198_spill] sm:$0xff]  ;;  %v3011_v45 = vsel %vm1081_vm4, %v2570_v41, %v2572_v16 }
 0x772   : > { %v9840_v30 = vpop.permute.xlu1 %2447  ;;  %v1605_v2 = vsel %vm1554_vm8, %v13386_v21, %v13385_v39  ;;  %v13390_v21 = vld [vmem:[#allocation77_spill] sm:$0xff]  ;;  %v13391_v41 = vld [vmem:[#allocation94_spill] sm:$0xff] }
 0x773   : > { %v2434_v52 = vpop.permute.xlu0 %2433  ;;  %v2970_v43 = vsel %vm1081_vm4, %v2446_v56, %v9840_v30 }
 0x774   : > { %2773 = vrot.lane.b32.xlu1 %v2046_v22, %s12659_s10  ;;  %3684 = vmatprep.subr.mxu1 %v2970_v43  ;;  %v13388_v43 = vld [vmem:[#allocation316_spill] sm:$0xff] }
 0x775   : > { %2507 = vrot.lane.b32.xlu0 %v13383_v15, %s12659_s10 }
 0x776   : > { %v2444_v60 = vpop.permute.xlu1 %2443 }
 0x777   : > { %v2969_v25 = vsel %vm1081_vm4, %v2444_v60, %v2446_v56  ;;  %v2564_v18 = vpop.permute.xlu0 %2563  ;;  %v1608_v56 = vsel %vm1554_vm8, %v13377_v54, %v13375_v40  ;;  %v13389_v60 = vld [vmem:[#allocation325_spill] sm:$0xff]  ;;  %v2043_v40 = vsel %vm1955_vm9, %v13390_v21, %v13384_v14  ;;  %v13393_v14 = vld [vmem:[#allocation91_spill] sm:$0xff] }
 0x778   : > { %2769 = vrot.lane.b32.xlu1 %v2044_v19, %s12659_s10  ;;  %3685 = vmatpush2.msra.mxu1 %v2969_v25  ;;  %v2039_v25 = vsel %vm1955_vm9, %v13389_v60, %v13388_v43 }
 0x779   : > { %2503 = vrot.lane.b32.xlu0 %v1605_v2, %s12659_s10 }
 0x77a   : > { %v9859_v59 = vpop.permute.xlu1 %2573 }
 0x77b   : > { %13387 = vst [vmem:[#allocation33_spill] sm:$0xff] %v9859_v59  ;;  %v2560_v26 = vpop.permute.xlu0 %2559  ;;  %v3012_v22 = vsel %vm1081_vm4, %v2572_v16, %v9859_v59  ;;  %v13397_v59 = vld [vmem:[#allocation321_spill] sm:$0xff] }
 0x77c   : > { %2511 = vrot.lane.b32.xlu1 %v1608_v56, %s12659_s10  ;;  %3761 = vmatprep.subr.mxu0 %v3012_v22 }
 0x77d   : > { %2759 = vrot.lane.b32.xlu0 %v2039_v25, %s12659_s10  ;;  %3762 = vmatpush1.msra.mxu0 %v3011_v45  ;;  %v13392_v45 = vld [vmem:[#allocation318_spill] sm:$0xff]  ;;  %v13394_v25 = vld [vmem:[#allocation92_spill] sm:$0xff] }
 0x77e   : > { %v9872_v19 = vpop.permute.xlu1 %2441  ;;  %v2041_v43 = vsel %vm1955_vm9, %v13392_v45, %v13381_v33  ;;  %v1603_v21 = vsel %vm1554_vm8, %v13394_v25, %v13393_v14  ;;  %v3009_v33 = vsel %vm1081_vm4, %v2564_v18, %v2566_v12  ;;  %v13399_v18 = vld [vmem:[#allocation66_spill] sm:$0xff] }
 0x77f   : > { %v2428_v54 = vpop.permute.xlu0 %2427  ;;  %v2968_v16 = vsel %vm1081_vm4, %v2440_v24, %v9872_v19 }
 0x780   : > { %2767 = vrot.lane.b32.xlu1 %v2043_v40, %s12659_s10  ;;  %3686 = vmatprep.subr.mxu1 %v2968_v16 }
 0x781   : > { %2501 = vrot.lane.b32.xlu0 %v13391_v41, %s12659_s10 }
 0x782   : > { %v2438_v2 = vpop.permute.xlu1 %2437 }
 0x783   : > { %v2967_v56 = vsel %vm1081_vm4, %v2438_v2, %v2440_v24  ;;  %v2558_v22 = vpop.permute.xlu0 %2557  ;;  %v1606_v24 = vsel %vm1554_vm8, %v13385_v39, %v13383_v15 }
 0x784   : > { %2763 = vrot.lane.b32.xlu1 %v2041_v43, %s12659_s10  ;;  %3687 = vmatpush2.msra.mxu1 %v2967_v56  ;;  %v13396_v43 = vld [vmem:[#allocation313_spill] sm:$0xff] }
 0x785   : > { %2497 = vrot.lane.b32.xlu0 %v1603_v21, %s12659_s10  ;;  %v2036_v56 = vsel %vm1955_vm9, %v13397_v59, %v13396_v43  ;;  %v13398_v21 = vld [vmem:[#allocation327_spill] sm:$0xff] }
 0x786   : > { %v9891_v40 = vpop.permute.xlu1 %2567  ;;  %v2040_v15 = vsel %vm1955_vm9, %v13398_v21, %v13392_v45  ;;  %v13402_v21 = vld [vmem:[#allocation39_spill] sm:$0xff] }
 0x787   : > { %13395 = vst [vmem:[#allocation114_spill] sm:$0xff] %v9891_v40  ;;  %v2554_v16 = vpop.permute.xlu0 %2553  ;;  %v3010_v2 = vsel %vm1081_vm4, %v2566_v12, %v9891_v40  ;;  %v13401_v40 = vld [vmem:[#allocation315_spill] sm:$0xff]  ;;  %v2001_v63 = vsel %vm1955_vm9, %v13403_v57, %v13402_v21  ;;  %v13405_v57 = vld [vmem:[#allocation76_spill] sm:$0xff] }
 0x788   : > { %2505 = vrot.lane.b32.xlu1 %v1606_v24, %s12659_s10  ;;  %3763 = vmatprep.subr.mxu0 %v3010_v2  ;;  %v13400_v24 = vld [vmem:[#allocation294_spill] sm:$0xff]  ;;  %v2038_v45 = vsel %vm1955_vm9, %v13401_v40, %v13389_v60  ;;  %v3007_v60 = vsel %vm1081_vm4, %v2558_v22, %v2560_v26  ;;  %v13408_v22 = vld [vmem:[#allocation63_spill] sm:$0xff] }
 0x789   : > { %2753 = vrot.lane.b32.xlu0 %v2036_v56, %s12659_s10  ;;  %3764 = vmatpush1.msra.mxu0 %v3009_v33  ;;  %v2003_v43 = vsel %vm1955_vm9, %v13400_v24, %v13399_v18 }
 0x78a   : > { %v9904_v25 = vpop.permute.xlu1 %2435 }
 0x78b   : > { %v2422_v39 = vpop.permute.xlu0 %2421  ;;  %v2966_v12 = vsel %vm1081_vm4, %v2434_v52, %v9904_v25 }
 0x78c   : > { %2761 = vrot.lane.b32.xlu1 %v2040_v15, %s12659_s10  ;;  %3688 = vmatprep.subr.mxu1 %v2966_v12 }
 0x78d   : > { %2687 = vrot.lane.b32.xlu0 %v2003_v43, %s12659_s10  ;;  %v13406_v43 = vld [vmem:[#allocation317_spill] sm:$0xff] }
 0x78e   : > { %v2432_v2 = vpop.permute.xlu1 %2431 }
 0x78f   : > { %v2965_v33 = vsel %vm1081_vm4, %v2432_v2, %v2434_v52  ;;  %v2552_v56 = vpop.permute.xlu0 %2551  ;;  %v1604_v52 = vsel %vm1554_vm8, %v13393_v14, %v13391_v41  ;;  %v2033_v2 = vsel %vm1955_vm9, %v13406_v43, %v13405_v57 }
 0x790   : > { %2757 = vrot.lane.b32.xlu1 %v2038_v45, %s12659_s10  ;;  %3689 = vmatpush2.msra.mxu1 %v2965_v33  ;;  %v13407_v33 = vld [vmem:[#allocation323_spill] sm:$0xff] }
 0x791   : > { %2683 = vrot.lane.b32.xlu0 %v2001_v63, %s12659_s10  ;;  %v2037_v41 = vsel %vm1955_vm9, %v13407_v33, %v13401_v40  ;;  %v13409_v45 = vld [vmem:[#allocation291_spill] sm:$0xff]  ;;  %v13411_v33 = vld [vmem:[#allocation288_spill] sm:$0xff] }
 0x792   : > { %v9925_v15 = vpop.permute.xlu1 %2561 }
 0x793   : > { %13404 = vst [vmem:[#allocation34_spill] sm:$0xff] %v9925_v15  ;;  %v2548_v12 = vpop.permute.xlu0 %2547  ;;  %v3008_v18 = vsel %vm1081_vm4, %v2560_v26, %v9925_v15  ;;  %v13412_v15 = vld [vmem:[#allocation179_spill] sm:$0xff] }
 0x794   : > { %2499 = vrot.lane.b32.xlu1 %v1604_v52, %s12659_s10  ;;  %3765 = vmatprep.subr.mxu0 %v3008_v18  ;;  %v2000_v52 = vsel %vm1955_vm9, %v13409_v45, %v13408_v22  ;;  %v1998_v27 = vsel %vm1955_vm9, %v13412_v15, %v13411_v33  ;;  %v13414_v15 = vld [vmem:[#allocation310_spill] sm:$0xff] }
 0x795   : > { %2747 = vrot.lane.b32.xlu0 %v2033_v2, %s12659_s10  ;;  %3766 = vmatpush1.msra.mxu0 %v3007_v60  ;;  %v13410_v2 = vld [vmem:[#allocation312_spill] sm:$0xff] }
 0x796   : > { %v9938_v63 = vpop.permute.xlu1 %2429  ;;  %v2035_v40 = vsel %vm1955_vm9, %v13410_v2, %v13397_v59  ;;  %v3005_v59 = vsel %vm1081_vm4, %v2552_v56, %v2554_v16  ;;  %v13417_v56 = vld [vmem:[#allocation64_spill] sm:$0xff] }
 0x797   : > { %v2416_v14 = vpop.permute.xlu0 %2415  ;;  %v2964_v26 = vsel %vm1081_vm4, %v2428_v54, %v9938_v63 }
 0x798   : > { %2755 = vrot.lane.b32.xlu1 %v2037_v41, %s12659_s10  ;;  %3690 = vmatprep.subr.mxu1 %v2964_v26 }
 0x799   : > { %2681 = vrot.lane.b32.xlu0 %v2000_v52, %s12659_s10  ;;  %v13415_v52 = vld [vmem:[#allocation314_spill] sm:$0xff] }
 0x79a   : > { %v2426_v18 = vpop.permute.xlu1 %2425 }
 0x79b   : > { %v2963_v60 = vsel %vm1081_vm4, %v2426_v18, %v2428_v54  ;;  %v2546_v57 = vpop.permute.xlu0 %2545  ;;  %v2002_v54 = vsel %vm1955_vm9, %v13402_v21, %v13400_v24  ;;  %v2030_v18 = vsel %vm1955_vm9, %v13415_v52, %v13414_v15 }
 0x79c   : > { %2751 = vrot.lane.b32.xlu1 %v2035_v40, %s12659_s10  ;;  %3691 = vmatpush2.msra.mxu1 %v2963_v60  ;;  %v13416_v60 = vld [vmem:[#allocation319_spill] sm:$0xff]  ;;  %v13418_v40 = vld [vmem:[#allocation289_spill] sm:$0xff] }
 0x79d   : > { %2677 = vrot.lane.b32.xlu0 %v1998_v27, %s12659_s10  ;;  %v2034_v24 = vsel %vm1955_vm9, %v13416_v60, %v13410_v2  ;;  %v13420_v60 = vld [vmem:[#allocation286_spill] sm:$0xff] }
 0x79e   : > { %v9959_v41 = vpop.permute.xlu1 %2555 }
 0x79f   : > { %13413 = vst [vmem:[#allocation202_spill] sm:$0xff] %v9959_v41  ;;  %v2542_v26 = vpop.permute.xlu0 %2541  ;;  %v3006_v22 = vsel %vm1081_vm4, %v2554_v16, %v9959_v41  ;;  %v13421_v41 = vld [vmem:[#allocation162_spill] sm:$0xff] }
 0x7a0   : > { %2685 = vrot.lane.b32.xlu1 %v2002_v54, %s12659_s10  ;;  %3767 = vmatprep.subr.mxu0 %v3006_v22  ;;  %v1997_v54 = vsel %vm1955_vm9, %v13418_v40, %v13417_v56  ;;  %v1995_v1 = vsel %vm1955_vm9, %v13421_v41, %v13420_v60  ;;  %v13423_v41 = vld [vmem:[#allocation308_spill] sm:$0xff] }
 0x7a1   : > { %2741 = vrot.lane.b32.xlu0 %v2030_v18, %s12659_s10  ;;  %3768 = vmatpush1.msra.mxu0 %v3005_v59  ;;  %v13419_v18 = vld [vmem:[#allocation27_spill] sm:$0xff] }
 0x7a2   : > { %v9972_v27 = vpop.permute.xlu1 %2423  ;;  %v2032_v2 = vsel %vm1955_vm9, %v13419_v18, %v13406_v43  ;;  %v3003_v43 = vsel %vm1081_vm4, %v2546_v57, %v2548_v12  ;;  %v13426_v57 = vld [vmem:[#allocation61_spill] sm:$0xff] }
 0x7a3   : > { %v2410_v21 = vpop.permute.xlu0 %2409  ;;  %v2962_v16 = vsel %vm1081_vm4, %v2422_v39, %v9972_v27 }
 0x7a4   : > { %2749 = vrot.lane.b32.xlu1 %v2034_v24, %s12659_s10  ;;  %3692 = vmatprep.subr.mxu1 %v2962_v16 }
 0x7a5   : > { %2675 = vrot.lane.b32.xlu0 %v1997_v54, %s12659_s10  ;;  %v13424_v54 = vld [vmem:[#allocation311_spill] sm:$0xff] }
 0x7a6   : > { %v2420_v22 = vpop.permute.xlu1 %2419 }
 0x7a7   : > { %v2961_v59 = vsel %vm1081_vm4, %v2420_v22, %v2422_v39  ;;  %v2540_v15 = vpop.permute.xlu0 %2539  ;;  %v1999_v39 = vsel %vm1955_vm9, %v13411_v33, %v13409_v45  ;;  %v2027_v22 = vsel %vm1955_vm9, %v13424_v54, %v13423_v41 }
 0x7a8   : > { %2745 = vrot.lane.b32.xlu1 %v2032_v2, %s12659_s10  ;;  %3693 = vmatpush2.msra.mxu1 %v2961_v59  ;;  %v13425_v59 = vld [vmem:[#allocation26_spill] sm:$0xff]  ;;  %v13427_v2 = vld [vmem:[#allocation161_spill] sm:$0xff] }
 0x7a9   : > { %2671 = vrot.lane.b32.xlu0 %v1995_v1, %s12659_s10  ;;  %v2031_v45 = vsel %vm1955_vm9, %v13425_v59, %v13419_v18  ;;  %v13429_v59 = vld [vmem:[#allocation285_spill] sm:$0xff] }
 0x7aa   : > { %v9993_v24 = vpop.permute.xlu1 %2549 }
 0x7ab   : > { %13422 = vst [vmem:[#allocation177_spill] sm:$0xff] %v9993_v24  ;;  %v2536_v16 = vpop.permute.xlu0 %2535  ;;  %v3004_v56 = vsel %vm1081_vm4, %v2548_v12, %v9993_v24  ;;  %v13430_v24 = vld [vmem:[#allocation166_spill] sm:$0xff] }
 0x7ac   : > { %2679 = vrot.lane.b32.xlu1 %v1999_v39, %s12659_s10  ;;  %3769 = vmatprep.subr.mxu0 %v3004_v56  ;;  %v1994_v39 = vsel %vm1955_vm9, %v13427_v2, %v13426_v57  ;;  %v1992_v62 = vsel %vm1955_vm9, %v13430_v24, %v13429_v59  ;;  %v13432_v24 = vld [vmem:[#allocation306_spill] sm:$0xff] }
 0x7ad   : > { %2735 = vrot.lane.b32.xlu0 %v2027_v22, %s12659_s10  ;;  %3770 = vmatpush1.msra.mxu0 %v3003_v43  ;;  %v13428_v22 = vld [vmem:[#allocation309_spill] sm:$0xff] }
 0x7ae   : > { %v10006_v1 = vpop.permute.xlu1 %2417  ;;  %v2029_v18 = vsel %vm1955_vm9, %v13428_v22, %v13415_v52  ;;  %v3001_v52 = vsel %vm1081_vm4, %v2540_v15, %v2542_v26  ;;  %v13435_v15 = vld [vmem:[#allocation62_spill] sm:$0xff] }
 0x7af   : > { %v2404_v33 = vpop.permute.xlu0 %2403  ;;  %v2960_v12 = vsel %vm1081_vm4, %v2416_v14, %v10006_v1 }
 0x7b0   : > { %2743 = vrot.lane.b32.xlu1 %v2031_v45, %s12659_s10  ;;  %3694 = vmatprep.subr.mxu1 %v2960_v12 }
 0x7b1   : > { %2669 = vrot.lane.b32.xlu0 %v1994_v39, %s12659_s10  ;;  %v13433_v39 = vld [vmem:[#allocation28_spill] sm:$0xff] }
 0x7b2   : > { %v2414_v56 = vpop.permute.xlu1 %2413 }
 0x7b3   : > { %v2959_v43 = vsel %vm1081_vm4, %v2414_v56, %v2416_v14  ;;  %v2534_v41 = vpop.permute.xlu0 %2533  ;;  %v1996_v14 = vsel %vm1955_vm9, %v13420_v60, %v13418_v40  ;;  %v2024_v56 = vsel %vm1955_vm9, %v13433_v39, %v13432_v24 }
 0x7b4   : > { %2739 = vrot.lane.b32.xlu1 %v2029_v18, %s12659_s10  ;;  %3695 = vmatpush2.msra.mxu1 %v2959_v43  ;;  %v13434_v43 = vld [vmem:[#allocation142_spill] sm:$0xff]  ;;  %v13436_v18 = vld [vmem:[#allocation287_spill] sm:$0xff] }
 0x7b5   : > { %2665 = vrot.lane.b32.xlu0 %v1992_v62, %s12659_s10  ;;  %v2028_v40 = vsel %vm1955_vm9, %v13434_v43, %v13428_v22  ;;  %v13437_v22 = vld [vmem:[#allocation307_spill] sm:$0xff] }
 0x7b6   : > { %v10027_v45 = vpop.permute.xlu1 %2543  ;;  %v13438_v43 = vld [vmem:[#allocation283_spill] sm:$0xff] }
 0x7b7   : > { %13431 = vst [vmem:[#allocation231_spill] sm:$0xff] %v10027_v45  ;;  %v2530_v12 = vpop.permute.xlu0 %2529  ;;  %v3002_v57 = vsel %vm1081_vm4, %v2542_v26, %v10027_v45  ;;  %v13439_v45 = vld [vmem:[#allocation149_spill] sm:$0xff] }
 0x7b8   : > { %2673 = vrot.lane.b32.xlu1 %v1996_v14, %s12659_s10  ;;  %3771 = vmatprep.subr.mxu0 %v3002_v57  ;;  %v1991_v14 = vsel %vm1955_vm9, %v13436_v18, %v13435_v15 }
 0x7b9   : > { %2729 = vrot.lane.b32.xlu0 %v2024_v56, %s12659_s10  ;;  %3772 = vmatpush1.msra.mxu0 %v3001_v52  ;;  %v2026_v56 = vsel %vm1955_vm9, %v13437_v22, %v13424_v54 }
 0x7ba   : > { %v10040_v62 = vpop.permute.xlu1 %2411 }
 0x7bb   : > { %v2528_v60 = vpop.permute.xlu0 %2527  ;;  %v2958_v26 = vsel %vm1081_vm4, %v2410_v21, %v10040_v62 }
 0x7bc   : > { %2737 = vrot.lane.b32.xlu1 %v2028_v40, %s12659_s10  ;;  %3696 = vmatprep.subr.mxu1 %v2958_v26  ;;  %v1989_v40 = vsel %vm1955_vm9, %v13439_v45, %v13438_v43  ;;  %v13442_v45 = vld [vmem:[#allocation303_spill] sm:$0xff] }
 0x7bd   : > { %2663 = vrot.lane.b32.xlu0 %v1991_v14, %s12659_s10  ;;  %v2999_v14 = vsel %vm1081_vm4, %v2534_v41, %v2536_v16  ;;  %v13445_v41 = vld [vmem:[#allocation59_spill] sm:$0xff] }
 0x7be   : > { %v2408_v57 = vpop.permute.xlu1 %2407 }
 0x7bf   : > { %v2957_v52 = vsel %vm1081_vm4, %v2408_v57, %v2410_v21  ;;  %v10053_v24 = vpop.permute.xlu0 %2783  ;;  %v1993_v21 = vsel %vm1955_vm9, %v13429_v59, %v13427_v2  ;;  %v13443_v57 = vld [vmem:[#allocation150_spill] sm:$0xff] }
 0x7c0   : > { %2733 = vrot.lane.b32.xlu1 %v2026_v56, %s12659_s10  ;;  %3697 = vmatpush2.msra.mxu1 %v2957_v52  ;;  %v2021_v52 = vsel %vm1955_vm9, %v13443_v57, %v13442_v45 }
 0x7c1   : > { %2659 = vrot.lane.b32.xlu0 %v1989_v40, %s12659_s10  ;;  %v13444_v40 = vld [vmem:[#allocation131_spill] sm:$0xff] }
 0x7c2   : > { %v10063_v26 = vpop.permute.xlu1 %2537  ;;  %v2025_v2 = vsel %vm1955_vm9, %v13444_v40, %v13437_v22  ;;  %v13447_v22 = vld [vmem:[#allocation305_spill] sm:$0xff] }
 0x7c3   : > { %13440 = vst [vmem:[#allocation108_spill] sm:$0xff] %v10063_v26  ;;  %v10065_v15 = vpop.permute.xlu0 %2525  ;;  %v3000_v54 = vsel %vm1081_vm4, %v2536_v16, %v10063_v26  ;;  %v2023_v40 = vsel %vm1955_vm9, %v13447_v22, %v13433_v39 }
 0x7c4   : > { %13441 = vst [vmem:[#allocation159_spill] sm:$0xff] %v10065_v15  ;;  %2667 = vrot.lane.b32.xlu1 %v1993_v21, %s12659_s10  ;;  %3773 = vmatprep.subr.mxu0 %v3000_v54  ;;  %v13446_v21 = vld [vmem:[#allocation31_spill] sm:$0xff] }
 0x7c5   : > { %2723 = vrot.lane.b32.xlu0 %v2021_v52, %s12659_s10  ;;  %3774 = vmatpush1.msra.mxu0 %v2999_v14  ;;  %v1988_v45 = vsel %vm1955_vm9, %v13446_v21, %v13445_v41  ;;  %v276_v14 = vld [vmem:[#allocation7 + $0x10] sm:$0xff] }
 0x7c6   : > { %v10078_v56 = vpop.permute.xlu1 %2405 }
 0x7c7   : > { %v2522_v59 = vpop.permute.xlu0 %2521  ;;  %v2956_v16 = vsel %vm1081_vm4, %v2404_v33, %v10078_v56 }
 0x7c8   : > { %2731 = vrot.lane.b32.xlu1 %v2025_v2, %s12659_s10  ;;  %3698 = vmatprep.subr.mxu1 %v2956_v16  ;;  %v1986_v2 = vsel %vm1955_vm9, %v13449_v9, %v13448_v4  ;;  %v13452_v9 = vld [vmem:[#allocation300_spill] sm:$0xff] }
 0x7c9   : > { %2657 = vrot.lane.b32.xlu0 %v1988_v45, %s12659_s10  ;;  %v2997_v45 = vsel %vm1081_vm4, %v2528_v60, %v2530_v12  ;;  %v13456_v60 = vld [vmem:[#allocation284_spill] sm:$0xff] }
 0x7ca   : > { %v2402_v54 = vpop.permute.xlu1 %2401 }
 0x7cb   : > { %v2955_v52 = vsel %vm1081_vm4, %v2402_v54, %v2404_v33  ;;  %v10091_v26 = vpop.permute.xlu0 %2777  ;;  %v1990_v33 = vsel %vm1955_vm9, %v13438_v43, %v13436_v18  ;;  %v13453_v54 = vld [vmem:[#allocation137_spill] sm:$0xff] }
 0x7cc   : > { %2727 = vrot.lane.b32.xlu1 %v2023_v40, %s12659_s10  ;;  %3699 = vmatpush2.msra.mxu1 %v2955_v52  ;;  %v2018_v52 = vsel %vm1955_vm9, %v13453_v54, %v13452_v9  ;;  %v13454_v40 = vld [vmem:[#allocation73_spill] sm:$0xff]  ;;  %v13457_v9 = vld [vmem:[#allocation302_spill] sm:$0xff] }
 0x7cd   : > { %2653 = vrot.lane.b32.xlu0 %v1986_v2, %s12659_s10  ;;  %3701 = vmatmul.mubr.f32.vlgmr.msra.gmra.mxu1 %v276_v14  ;;  %v2022_v18 = vsel %vm1955_vm9, %v13454_v40, %v13447_v22  ;;  %v2020_v22 = vsel %vm1955_vm9, %v13457_v9, %v13443_v57  ;;  %v1987_v57 = vsel %vm1955_vm9, %v13448_v4, %v13446_v21  ;;  %v13464_v4 = vld [vmem:[#allocation57_spill] sm:$0xff]  ;;  %v13465_v21 = vld [vmem:[#allocation282_spill] sm:$0xff] }
 0x7ce   : > { %v10101_v16 = vpop.permute.xlu1 %2531 }
 0x7cf   : > { %13450 = vst [vmem:[#allocation163_spill] sm:$0xff] %v10101_v16  ;;  %v10103_v41 = vpop.permute.xlu0 %2519  ;;  %v2998_v39 = vsel %vm1081_vm4, %v2530_v12, %v10101_v16  ;;  %v13455_v12 = vld [vmem:[#allocation60_spill] sm:$0xff] }
 0x7d0   : > { %13451 = vst [vmem:[#allocation180_spill] sm:$0xff] %v10103_v41  ;;  %2661 = vrot.lane.b32.xlu1 %v1990_v33, %s12659_s10  ;;  %3775 = vmatprep.subr.mxu0 %v2998_v39  ;;  %v1985_v33 = vsel %vm1955_vm9, %v13456_v60, %v13455_v12  ;;  %v13459_v16 = vld [vmem:[#allocation168_spill] sm:$0xff] }
 0x7d1   : > { %2717 = vrot.lane.b32.xlu0 %v2018_v52, %s12659_s10  ;;  %3776 = vmatpush1.msra.mxu0 %v2997_v45 }
 0x7d2   : > { %v2782_v14 = vpop.permute.xlu1 %2781 }
 0x7d3   : > { %v2516_v43 = vpop.permute.xlu0 %2515  ;;  %v3082_v2 = vsel %vm1081_vm4, %v2782_v14, %v10053_v24 }
 0x7d4   : > { %2725 = vrot.lane.b32.xlu1 %v2022_v18, %s12659_s10  ;;  %3874 = vmatprep.subr.mxu1 %v3082_v2  ;;  %v13458_v18 = vld [vmem:[#allocation280_spill] sm:$0xff] }
 0x7d5   : > { %2651 = vrot.lane.b32.xlu0 %v1985_v33, %s12659_s10  ;;  %v1983_v8 = vsel %vm1955_vm9, %v13459_v16, %v13458_v18 }
 0x7d6   : > { %v2524_v39 = vpop.permute.xlu1 %2523 }
 0x7d7   : > { %v10126_v45 = vpop.permute.xlu0 %2771  ;;  %v2996_v52 = vsel %vm1081_vm4, %v2524_v39, %v10065_v15  ;;  %v2995_v40 = vsel %vm1081_vm4, %v2522_v59, %v2524_v39  ;;  %v13461_v59 = vld [vmem:[#allocation297_spill] sm:$0xff]  ;;  %v13462_v39 = vld [vmem:[#allocation304_spill] sm:$0xff] }
 0x7d8   : > { %2721 = vrot.lane.b32.xlu1 %v2020_v22, %s12659_s10  ;;  %3777 = vmatprep.subr.mxu0 %v2996_v52  ;;  %v2015_v16 = vsel %vm1955_vm9, %v13462_v39, %v13461_v59  ;;  %v13463_v22 = vld [vmem:[#allocation74_spill] sm:$0xff]  ;;  %v13466_v59 = vld [vmem:[#allocation299_spill] sm:$0xff]  ;;  %v13468_v15 = vld [vmem:[#allocation172_spill] sm:$0xff] }
 0x7d9   : > { %2647 = vrot.lane.b32.xlu0 %v1983_v8, %s12659_s10  ;;  %3778 = vmatpush1.msra.mxu0 %v2995_v40 }
 0x7da   : > { %v2780_v2 = vpop.permute.xlu1 %2779 }
 0x7db   : > { %v3081_v12 = vsel %vm1081_vm4, %v2780_v2, %v2782_v14  ;;  %v10140_v33 = vpop.permute.xlu0 %2513  ;;  %v2019_v14 = vsel %vm1955_vm9, %v13463_v22, %v13457_v9  ;;  %v1982_v2 = vsel %vm1955_vm9, %v13465_v21, %v13464_v4  ;;  %v2017_v9 = vsel %vm1955_vm9, %v13466_v59, %v13453_v54 }
 0x7dc   : > { %13460 = vst [vmem:[#allocation164_spill] sm:$0xff] %v10140_v33  ;;  %2655 = vrot.lane.b32.xlu1 %v1987_v57, %s12659_s10  ;;  %3875 = vmatpush1.msra.mxu1 %v3081_v12  ;;  %v1984_v54 = vsel %vm1955_vm9, %v13458_v18, %v13456_v60  ;;  %v13473_v60 = vld [vmem:[#allocation58_spill] sm:$0xff] }
 0x7dd   : > { %2711 = vrot.lane.b32.xlu0 %v2015_v16, %s12659_s10  ;;  %v13474_v18 = vld [vmem:[#allocation38_spill] sm:$0xff] }
 0x7de   : > { %v2776_v8 = vpop.permute.xlu1 %2775 }
 0x7df   : > { %v2510_v52 = vpop.permute.xlu0 %2509  ;;  %v3080_v40 = vsel %vm1081_vm4, %v2776_v8, %v10091_v26 }
 0x7e0   : > { %2719 = vrot.lane.b32.xlu1 %v2019_v14, %s12659_s10  ;;  %3876 = vmatprep.subr.mxu1 %v3080_v40  ;;  %v13467_v14 = vld [vmem:[#allocation278_spill] sm:$0xff] }
 0x7e1   : > { %2645 = vrot.lane.b32.xlu0 %v1982_v2, %s12659_s10  ;;  %v1980_v36 = vsel %vm1955_vm9, %v13468_v15, %v13467_v14 }
 0x7e2   : > { %v2518_v12 = vpop.permute.xlu1 %2517 }
 0x7e3   : > { %v10160_v57 = vpop.permute.xlu0 %2765  ;;  %v2994_v16 = vsel %vm1081_vm4, %v2518_v12, %v10103_v41  ;;  %v2993_v22 = vsel %vm1081_vm4, %v2516_v43, %v2518_v12  ;;  %v13470_v43 = vld [vmem:[#allocation67_spill] sm:$0xff]  ;;  %v13471_v12 = vld [vmem:[#allocation301_spill] sm:$0xff] }
 0x7e4   : > { %2715 = vrot.lane.b32.xlu1 %v2017_v9, %s12659_s10  ;;  %3779 = vmatprep.subr.mxu0 %v2994_v16  ;;  %v2012_v15 = vsel %vm1955_vm9, %v13471_v12, %v13470_v43  ;;  %v13472_v9 = vld [vmem:[#allocation71_spill] sm:$0xff]  ;;  %v13475_v43 = vld [vmem:[#allocation296_spill] sm:$0xff] }
 0x7e5   : > { %2641 = vrot.lane.b32.xlu0 %v1980_v36, %s12659_s10  ;;  %3780 = vmatpush1.msra.mxu0 %v2993_v22  ;;  %v13477_v41 = vld [vmem:[#allocation151_spill] sm:$0xff] }
 0x7e6   : > { %v2774_v40 = vpop.permute.xlu1 %2773 }
 0x7e7   : > { %v3079_v4 = vsel %vm1081_vm4, %v2774_v40, %v2776_v8  ;;  %v10174_v2 = vpop.permute.xlu0 %2507  ;;  %v2016_v8 = vsel %vm1955_vm9, %v13472_v9, %v13466_v59  ;;  %v1979_v40 = vsel %vm1955_vm9, %v13474_v18, %v13473_v60  ;;  %v2014_v59 = vsel %vm1955_vm9, %v13475_v43, %v13462_v39 }
 0x7e8   : > { %13469 = vst [vmem:[#allocation199_spill] sm:$0xff] %v10174_v2  ;;  %2649 = vrot.lane.b32.xlu1 %v1984_v54, %s12659_s10  ;;  %3877 = vmatpush1.msra.mxu1 %v3079_v4  ;;  %v1981_v39 = vsel %vm1955_vm9, %v13467_v14, %v13465_v21  ;;  %v13482_v21 = vld [vmem:[#allocation55_spill] sm:$0xff] }
 0x7e9   : > { %2705 = vrot.lane.b32.xlu0 %v2012_v15, %s12659_s10  ;;  %v13483_v14 = vld [vmem:[#allocation279_spill] sm:$0xff] }
 0x7ea   : > { %v2770_v36 = vpop.permute.xlu1 %2769 }
 0x7eb   : > { %v2504_v16 = vpop.permute.xlu0 %2503  ;;  %v3078_v22 = vsel %vm1081_vm4, %v2770_v36, %v10126_v45 }
 0x7ec   : > { %2713 = vrot.lane.b32.xlu1 %v2016_v8, %s12659_s10  ;;  %3878 = vmatprep.subr.mxu1 %v3078_v22  ;;  %v13476_v8 = vld [vmem:[#allocation276_spill] sm:$0xff] }
 0x7ed   : > { %2639 = vrot.lane.b32.xlu0 %v1979_v40, %s12659_s10  ;;  %v1977_v0 = vsel %vm1955_vm9, %v13477_v41, %v13476_v8 }
 0x7ee   : > { %v2512_v4 = vpop.permute.xlu1 %2511 }
 0x7ef   : > { %v10194_v54 = vpop.permute.xlu0 %2759  ;;  %v2992_v15 = vsel %vm1081_vm4, %v2512_v4, %v10140_v33  ;;  %v2991_v9 = vsel %vm1081_vm4, %v2510_v52, %v2512_v4  ;;  %v13479_v52 = vld [vmem:[#allocation293_spill] sm:$0xff]  ;;  %v13480_v4 = vld [vmem:[#allocation298_spill] sm:$0xff]  ;;  %v13486_v33 = vld [vmem:[#allocation155_spill] sm:$0xff] }
 0x7f0   : > { %2709 = vrot.lane.b32.xlu1 %v2014_v59, %s12659_s10  ;;  %3781 = vmatprep.subr.mxu0 %v2992_v15  ;;  %v2009_v41 = vsel %vm1955_vm9, %v13480_v4, %v13479_v52  ;;  %v13481_v59 = vld [vmem:[#allocation72_spill] sm:$0xff]  ;;  %v13484_v52 = vld [vmem:[#allocation295_spill] sm:$0xff] }
 0x7f1   : > { %2635 = vrot.lane.b32.xlu0 %v1977_v0, %s12659_s10  ;;  %3782 = vmatpush1.msra.mxu0 %v2991_v9 }
 0x7f2   : > { %v2768_v22 = vpop.permute.xlu1 %2767 }
 0x7f3   : > { %v3077_v60 = vsel %vm1081_vm4, %v2768_v22, %v2770_v36  ;;  %v10208_v40 = vpop.permute.xlu0 %2501  ;;  %v2013_v36 = vsel %vm1955_vm9, %v13481_v59, %v13475_v43  ;;  %v1976_v22 = vsel %vm1955_vm9, %v13483_v14, %v13482_v21  ;;  %v2011_v43 = vsel %vm1955_vm9, %v13484_v52, %v13471_v12 }
 0x7f4   : > { %13478 = vst [vmem:[#allocation146_spill] sm:$0xff] %v10208_v40  ;;  %2643 = vrot.lane.b32.xlu1 %v1981_v39, %s12659_s10  ;;  %3879 = vmatpush1.msra.mxu1 %v3077_v60  ;;  %v1978_v12 = vsel %vm1955_vm9, %v13476_v8, %v13474_v18  ;;  %v13491_v18 = vld [vmem:[#allocation272_spill] sm:$0xff]  ;;  %v13492_v8 = vld [vmem:[#allocation277_spill] sm:$0xff] }
 0x7f5   : > { %2699 = vrot.lane.b32.xlu0 %v2009_v41, %s12659_s10 }
 0x7f6   : > { %v2764_v0 = vpop.permute.xlu1 %2763 }
 0x7f7   : > { %v2498_v15 = vpop.permute.xlu0 %2497  ;;  %v3076_v9 = vsel %vm1081_vm4, %v2764_v0, %v10160_v57 }
 0x7f8   : > { %2707 = vrot.lane.b32.xlu1 %v2013_v36, %s12659_s10  ;;  %3880 = vmatprep.subr.mxu1 %v3076_v9  ;;  %v13485_v36 = vld [vmem:[#allocation274_spill] sm:$0xff] }
 0x7f9   : > { %2633 = vrot.lane.b32.xlu0 %v1976_v22, %s12659_s10  ;;  %v1974_v11 = vsel %vm1955_vm9, %v13486_v33, %v13485_v36 }
 0x7fa   : > { %v2506_v60 = vpop.permute.xlu1 %2505 }
 0x7fb   : > { %v10228_v39 = vpop.permute.xlu0 %2753  ;;  %v2990_v41 = vsel %vm1081_vm4, %v2506_v60, %v10174_v2  ;;  %v2989_v59 = vsel %vm1081_vm4, %v2504_v16, %v2506_v60  ;;  %v13488_v16 = vld [vmem:[#allocation65_spill] sm:$0xff]  ;;  %v13489_v60 = vld [vmem:[#allocation174_spill] sm:$0xff] }
 0x7fc   : > { %2703 = vrot.lane.b32.xlu1 %v2011_v43, %s12659_s10  ;;  %3783 = vmatprep.subr.mxu0 %v2990_v41  ;;  %v2006_v33 = vsel %vm1955_vm9, %v13489_v60, %v13488_v16  ;;  %v13490_v43 = vld [vmem:[#allocation69_spill] sm:$0xff]  ;;  %v13494_v16 = vld [vmem:[#allocation292_spill] sm:$0xff]  ;;  %v13496_v2 = vld [vmem:[#allocation18_spill] sm:$0xff] }
 0x7fd   : > { %2629 = vrot.lane.b32.xlu0 %v1974_v11, %s12659_s10  ;;  %3784 = vmatpush1.msra.mxu0 %v2989_v59 }
 0x7fe   : > { %v2762_v9 = vpop.permute.xlu1 %2761 }
 0x7ff   : > { %v3075_v21 = vsel %vm1081_vm4, %v2762_v9, %v2764_v0  ;;  %v10242_v22 = vpop.permute.xlu0 %2687  ;;  %v2010_v0 = vsel %vm1955_vm9, %v13490_v43, %v13484_v52  ;;  %v1973_v9 = vsel %vm1955_vm9, %v13492_v8, %v13491_v18  ;;  %v2008_v52 = vsel %vm1955_vm9, %v13494_v16, %v13480_v4 }
 0x800   : > { %13487 = vst [vmem:[#allocation112_spill] sm:$0xff] %v10242_v22  ;;  %2637 = vrot.lane.b32.xlu1 %v1978_v12, %s12659_s10  ;;  %3881 = vmatpush1.msra.mxu1 %v3075_v21 }
 0x801   : > { %2693 = vrot.lane.b32.xlu0 %v2006_v33, %s12659_s10 }
 0x802   : > { %v2758_v11 = vpop.permute.xlu1 %2757 }
 0x803   : > { %v2684_v41 = vpop.permute.xlu0 %2683  ;;  %v3074_v59 = vsel %vm1081_vm4, %v2758_v11, %v10194_v54 }
 0x804   : > { %2701 = vrot.lane.b32.xlu1 %v2010_v0, %s12659_s10  ;;  %3882 = vmatprep.subr.mxu1 %v3074_v59  ;;  %v13495_v0 = vld [vmem:[#allocation19_spill] sm:$0xff] }
 0x805   : > { %2627 = vrot.lane.b32.xlu0 %v1973_v9, %s12659_s10  ;;  %v1971_v10 = vsel %vm1955_vm9, %v13496_v2, %v13495_v0  ;;  %v13498_v9 = vld [vmem:[#allocation186_spill] sm:$0xff]  ;;  %v13499_v2 = vld [vmem:[#allocation140_spill] sm:$0xff] }
 0x806   : > { %v2500_v21 = vpop.permute.xlu1 %2499 }
 0x807   : > { %v10262_v12 = vpop.permute.xlu0 %2747  ;;  %v2988_v33 = vsel %vm1081_vm4, %v2500_v21, %v10208_v40  ;;  %v2987_v43 = vsel %vm1081_vm4, %v2498_v15, %v2500_v21  ;;  %v1975_v15 = vsel %vm1955_vm9, %v13485_v36, %v13483_v14  ;;  %v2142_v21 = vsel %vm2124_vm10, %v13499_v2, %v13498_v9  ;;  %v13501_v14 = vld [vmem:[#allocation54_spill] sm:$0xff]  ;;  %v13502_v36 = vld [vmem:[#allocation275_spill] sm:$0xff]  ;;  %v13506_v40 = vld [vmem:[#allocation141_spill] sm:$0xff] }
 0x808   : > { %13493 = vst [vmem:[#allocation183_spill] sm:$0xff] %v10262_v12  ;;  %2697 = vrot.lane.b32.xlu1 %v2008_v52, %s12659_s10  ;;  %3785 = vmatprep.subr.mxu0 %v2988_v33  ;;  %v13500_v52 = vld [vmem:[#allocation70_spill] sm:$0xff] }
 0x809   : > { %2623 = vrot.lane.b32.xlu0 %v1971_v10, %s12659_s10  ;;  %3786 = vmatpush1.msra.mxu0 %v2987_v43  ;;  %v13504_v9 = vld [vmem:[#allocation290_spill] sm:$0xff] }
 0x80a   : > { %v2756_v59 = vpop.permute.xlu1 %2755 }
 0x80b   : > { %v3073_v18 = vsel %vm1081_vm4, %v2756_v59, %v2758_v11  ;;  %v10276_v4 = vpop.permute.xlu0 %2681  ;;  %v2007_v11 = vsel %vm1955_vm9, %v13500_v52, %v13494_v16  ;;  %v1970_v59 = vsel %vm1955_vm9, %v13502_v36, %v13501_v14  ;;  %v2005_v16 = vsel %vm1955_vm9, %v13504_v9, %v13489_v60 }
 0x80c   : > { %13497 = vst [vmem:[#allocation107_spill] sm:$0xff] %v10276_v4  ;;  %2631 = vrot.lane.b32.xlu1 %v1975_v15, %s12659_s10  ;;  %3883 = vmatpush1.msra.mxu1 %v3073_v18  ;;  %v1972_v60 = vsel %vm1955_vm9, %v13495_v0, %v13492_v8  ;;  %v13511_v8 = vld [vmem:[#allocation269_spill] sm:$0xff] }
 0x80d   : > { %2867 = vrot.lane.b32.xlu0 %v2142_v21, %s12659_s10  ;;  %v13512_v0 = vld [vmem:[#allocation273_spill] sm:$0xff] }
 0x80e   : > { %v2752_v10 = vpop.permute.xlu1 %2751 }
 0x80f   : > { %v2678_v33 = vpop.permute.xlu0 %2677  ;;  %v3072_v43 = vsel %vm1081_vm4, %v2752_v10, %v10228_v39 }
 0x810   : > { %2695 = vrot.lane.b32.xlu1 %v2007_v11, %s12659_s10  ;;  %3884 = vmatprep.subr.mxu1 %v3072_v43  ;;  %v13505_v11 = vld [vmem:[#allocation271_spill] sm:$0xff] }
 0x811   : > { %2621 = vrot.lane.b32.xlu0 %v1970_v59, %s12659_s10  ;;  %v1968_v7 = vsel %vm1955_vm9, %v13506_v40, %v13505_v11 }
 0x812   : > { %v2686_v18 = vpop.permute.xlu1 %2685 }
 0x813   : > { %v10296_v15 = vpop.permute.xlu0 %2741  ;;  %v3050_v21 = vsel %vm1081_vm4, %v2686_v18, %v10242_v22  ;;  %v3049_v52 = vsel %vm1081_vm4, %v2684_v41, %v2686_v18  ;;  %v13508_v41 = vld [vmem:[#allocation136_spill] sm:$0xff]  ;;  %v13509_v18 = vld [vmem:[#allocation21_spill] sm:$0xff] }
 0x814   : > { %13503 = vst [vmem:[#allocation25_spill] sm:$0xff] %v10296_v15  ;;  %2691 = vrot.lane.b32.xlu1 %v2005_v16, %s12659_s10  ;;  %3787 = vmatprep.subr.mxu0 %v3050_v21  ;;  %v2139_v40 = vsel %vm2124_vm10, %v13509_v18, %v13508_v41  ;;  %v13510_v16 = vld [vmem:[#allocation158_spill] sm:$0xff]  ;;  %v13514_v41 = vld [vmem:[#allocation147_spill] sm:$0xff]  ;;  %v13516_v22 = vld [vmem:[#allocation56_spill] sm:$0xff] }
 0x815   : > { %2617 = vrot.lane.b32.xlu0 %v1968_v7, %s12659_s10  ;;  %3788 = vmatpush2.msra.mxu0 %v3049_v52 }
 0x816   : > { %v2750_v43 = vpop.permute.xlu1 %2749 }
 0x817   : > { %v3071_v14 = vsel %vm1081_vm4, %v2750_v43, %v2752_v10  ;;  %v10310_v59 = vpop.permute.xlu0 %2675  ;;  %v2004_v10 = vsel %vm1955_vm9, %v13510_v16, %v13504_v9  ;;  %v1967_v43 = vsel %vm1955_vm9, %v13512_v0, %v13511_v8  ;;  %v2141_v9 = vsel %vm2124_vm10, %v13514_v41, %v13499_v2 }
 0x818   : > { %13507 = vst [vmem:[#allocation217_spill] sm:$0xff] %v10310_v59  ;;  %2625 = vrot.lane.b32.xlu1 %v1972_v60, %s12659_s10  ;;  %3885 = vmatpush1.msra.mxu1 %v3071_v14  ;;  %v1969_v2 = vsel %vm1955_vm9, %v13505_v11, %v13502_v36  ;;  %v13521_v36 = vld [vmem:[#allocation52_spill] sm:$0xff] }
 0x819   : > { %2861 = vrot.lane.b32.xlu0 %v2139_v40, %s12659_s10  ;;  %v13522_v11 = vld [vmem:[#allocation20_spill] sm:$0xff] }
 0x81a   : > { %v2746_v7 = vpop.permute.xlu1 %2745 }
 0x81b   : > { %v2672_v21 = vpop.permute.xlu0 %2671  ;;  %v3070_v52 = vsel %vm1081_vm4, %v2746_v7, %v10262_v12 }
 0x81c   : > { %2689 = vrot.lane.b32.xlu1 %v2004_v10, %s12659_s10  ;;  %3886 = vmatprep.subr.mxu1 %v3070_v52  ;;  %v13515_v10 = vld [vmem:[#allocation268_spill] sm:$0xff] }
 0x81d   : > { %2615 = vrot.lane.b32.xlu0 %v1967_v43, %s12659_s10  ;;  %v1965_v37 = vsel %vm1955_vm9, %v13516_v22, %v13515_v10 }
 0x81e   : > { %v2680_v14 = vpop.permute.xlu1 %2679 }
 0x81f   : > { %v10330_v60 = vpop.permute.xlu0 %2735  ;;  %v3048_v40 = vsel %vm1081_vm4, %v2680_v14, %v10276_v4  ;;  %v3047_v16 = vsel %vm1081_vm4, %v2678_v33, %v2680_v14  ;;  %v13518_v33 = vld [vmem:[#allocation129_spill] sm:$0xff]  ;;  %v13519_v14 = vld [vmem:[#allocation148_spill] sm:$0xff] }
 0x820   : > { %13513 = vst [vmem:[#allocation125_spill] sm:$0xff] %v10330_v60  ;;  %2865 = vrot.lane.b32.xlu1 %v2141_v9, %s12659_s10  ;;  %3789 = vmatprep.subr.mxu0 %v3048_v40  ;;  %v2136_v22 = vsel %vm2124_vm10, %v13519_v14, %v13518_v33  ;;  %v13520_v9 = vld [vmem:[#allocation23_spill] sm:$0xff]  ;;  %v282_v33 = vld [vmem:[#allocation7 + $0x40] sm:$0xff] }
 0x821   : > { %2611 = vrot.lane.b32.xlu0 %v1965_v37, %s12659_s10  ;;  %3790 = vmatpush2.msra.mxu0 %v3047_v16 }
 0x822   : > { %v2744_v52 = vpop.permute.xlu1 %2743 }
 0x823   : > { %v3069_v8 = vsel %vm1081_vm4, %v2744_v52, %v2746_v7  ;;  %v10344_v43 = vpop.permute.xlu0 %2669  ;;  %v2140_v7 = vsel %vm2124_vm10, %v13520_v9, %v13514_v41  ;;  %v1964_v52 = vsel %vm1955_vm9, %v13522_v11, %v13521_v36  ;;  %v13524_v41 = vld [vmem:[#allocation156_spill] sm:$0xff]  ;;  %v13525_v36 = vld [vmem:[#allocation266_spill] sm:$0xff] }
 0x824   : > { %13517 = vst [vmem:[#allocation170_spill] sm:$0xff] %v10344_v43  ;;  %2619 = vrot.lane.b32.xlu1 %v1969_v2, %s12659_s10  ;;  %3887 = vmatpush1.msra.mxu1 %v3069_v8  ;;  %v283_v2 = vld [vmem:[#allocation7 + $0x48] sm:$0xff]  ;;  %v2138_v9 = vsel %vm2124_vm10, %v13524_v41, %v13509_v18  ;;  %v290_v18 = vld [vmem:[#allocation7 + $0x80] sm:$0xff] }
 0x825   : > { %2855 = vrot.lane.b32.xlu0 %v2136_v22, %s12659_s10  ;;  %3587 = vmatprep.mubr.f32.mxu0 %v283_v2 }
 0x826   : > { %v2740_v37 = vpop.permute.xlu1 %2739  ;;  %3588 = vmatmul.mubr.f32.gmra.mxu0 %v282_v33  ;;  %v13529_v33 = vld [vmem:[#allocation130_spill] sm:$0xff] }
 0x827   : > { %v2666_v40 = vpop.permute.xlu0 %2665  ;;  %v3068_v16 = vsel %vm1081_vm4, %v2740_v37, %v10296_v15 }
 0x828   : > { %2863 = vrot.lane.b32.xlu1 %v2140_v7, %s12659_s10  ;;  %3888 = vmatprep.subr.mxu1 %v3068_v16  ;;  %v13526_v16 = vld [vmem:[#allocation118_spill] sm:$0xff] }
 0x829   : > { %2609 = vrot.lane.b32.xlu0 %v1964_v52, %s12659_s10  ;;  %v1962_v34 = vsel %vm1955_vm9, %v13526_v16, %v13525_v36  ;;  %v291_v52 = vld [vmem:[#allocation7 + $0x88] sm:$0xff] }
 0x82a   : > { %v2674_v8 = vpop.permute.xlu1 %2673  ;;  %3593 = vmatprep.mubr.f32.mxu0 %v291_v52  ;;  %v13531_v52 = vld [vmem:[#allocation264_spill] sm:$0xff] }
 0x82b   : > { %v10364_v22 = vpop.permute.xlu0 %2729  ;;  %v3046_v7 = vsel %vm1081_vm4, %v2674_v8, %v10310_v59  ;;  %v3045_v4 = vsel %vm1081_vm4, %v2672_v21, %v2674_v8  ;;  %v1966_v21 = vsel %vm1955_vm9, %v13515_v10, %v13512_v0  ;;  %3594 = vmatmul.mubr.f32.gmra.mxu0 %v290_v18  ;;  %v13528_v8 = vld [vmem:[#allocation358_spill] sm:$0xff] }
 0x82c   : > { %13523 = vst [vmem:[#allocation119_spill] sm:$0xff] %v10364_v22  ;;  %2859 = vrot.lane.b32.xlu1 %v2138_v9, %s12659_s10  ;;  %3791 = vmatprep.subr.mxu0 %v3046_v7  ;;  %v2133_v9 = vsel %vm2124_vm10, %v13529_v33, %v13528_v8  ;;  %v298_v10 = vld [vmem:[#allocation7 + $0xc0] sm:$0xff] }
 0x82d   : > { %2605 = vrot.lane.b32.xlu0 %v1962_v34, %s12659_s10  ;;  %3792 = vmatpush2.msra.mxu0 %v3045_v4  ;;  %v299_v34 = vld [vmem:[#allocation7 + $0xc8] sm:$0xff] }
 0x82e   : > { %v2738_v2 = vpop.permute.xlu1 %2737  ;;  %3599 = vmatprep.mubr.f32.mxu0 %v299_v34 }
 0x82f   : > { %v3067_v58 = vsel %vm1081_vm4, %v2738_v2, %v2740_v37  ;;  %v10378_v59 = vpop.permute.xlu0 %2663  ;;  %v13530_v37 = vld [vmem:[#allocation22_spill] sm:$0xff]  ;;  %v13532_v2 = vld [vmem:[#allocation169_spill] sm:$0xff]  ;;  %3600 = vmatmul.mubr.f32.gmra.mxu0 %v298_v10 }
 0x830   : > { %13527 = vst [vmem:[#allocation192_spill] sm:$0xff] %v10378_v59  ;;  %2613 = vrot.lane.b32.xlu1 %v1966_v21, %s12659_s10  ;;  %3889 = vmatpush1.msra.mxu1 %v3067_v58  ;;  %v2137_v7 = vsel %vm2124_vm10, %v13530_v37, %v13524_v41  ;;  %v1961_v18 = vsel %vm1955_vm9, %v13532_v2, %v13531_v52  ;;  %v307_v58 = vld [vmem:[#allocation7 + $0x108] sm:$0xff]  ;;  %v13534_v41 = vld [vmem:[#allocation106_spill] sm:$0xff] }
 0x831   : > { %2849 = vrot.lane.b32.xlu0 %v2133_v9, %s12659_s10  ;;  %3605 = vmatprep.mubr.f32.mxu0 %v307_v58  ;;  %v2135_v9 = vsel %vm2124_vm10, %v13534_v41, %v13519_v14  ;;  %v306_v52 = vld [vmem:[#allocation7 + $0x100] sm:$0xff] }
 0x832   : > { %v2734_v4 = vpop.permute.xlu1 %2733 }
 0x833   : > { %v2660_v16 = vpop.permute.xlu0 %2659  ;;  %v3066_v0 = vsel %vm1081_vm4, %v2734_v4, %v10330_v60  ;;  %3606 = vmatmul.mubr.f32.gmra.mxu0 %v306_v52 }
 0x834   : > { %2857 = vrot.lane.b32.xlu1 %v2137_v7, %s12659_s10  ;;  %3890 = vmatprep.subr.mxu1 %v3066_v0  ;;  %v13535_v7 = vld [vmem:[#allocation127_spill] sm:$0xff]  ;;  %v13536_v0 = vld [vmem:[#allocation121_spill] sm:$0xff] }
 0x835   : > { %2603 = vrot.lane.b32.xlu0 %v1961_v18, %s12659_s10  ;;  %v1959_v10 = vsel %vm1955_vm9, %v13536_v0, %v13535_v7  ;;  %v315_v18 = vld [vmem:[#allocation7 + $0x148] sm:$0xff] }
 0x836   : > { %v2668_v21 = vpop.permute.xlu1 %2667  ;;  %3611 = vmatprep.mubr.f32.mxu0 %v315_v18  ;;  %v13541_v18 = vld [vmem:[#allocation103_spill] sm:$0xff] }
 0x837   : > { %v10398_v8 = vpop.permute.xlu0 %2723  ;;  %v3044_v34 = vsel %vm1081_vm4, %v2668_v21, %v10344_v43  ;;  %v3043_v37 = vsel %vm1081_vm4, %v2666_v40, %v2668_v21  ;;  %v1963_v40 = vsel %vm1955_vm9, %v13525_v36, %v13522_v11  ;;  %v314_v21 = vld [vmem:[#allocation7 + $0x140] sm:$0xff] }
 0x838   : > { %13533 = vst [vmem:[#allocation176_spill] sm:$0xff] %v10398_v8  ;;  %2853 = vrot.lane.b32.xlu1 %v2135_v9, %s12659_s10  ;;  %3793 = vmatprep.subr.mxu0 %v3044_v34  ;;  %v13538_v9 = vld [vmem:[#allocation356_spill] sm:$0xff]  ;;  %v13539_v34 = vld [vmem:[#allocation171_spill] sm:$0xff]  ;;  %v322_v36 = vld [vmem:[#allocation7 + $0x180] sm:$0xff] }
 0x839   : > { %2599 = vrot.lane.b32.xlu0 %v1959_v10, %s12659_s10  ;;  %3794 = vmatpush2.msra.mxu0 %v3043_v37  ;;  %v2130_v0 = vsel %vm2124_vm10, %v13539_v34, %v13538_v9  ;;  %v323_v37 = vld [vmem:[#allocation7 + $0x188] sm:$0xff]  ;;  %v330_v43 = vld [vmem:[#allocation7 + $0x1c0] sm:$0xff] }
 0x83a   : > { %v2732_v58 = vpop.permute.xlu1 %2731  ;;  %3612 = vmatmul.mubr.f32.gmra.mxu0 %v314_v21  ;;  %v331_v9 = vld [vmem:[#allocation7 + $0x1c8] sm:$0xff] }
 0x83b   : > { %v3065_v14 = vsel %vm1081_vm4, %v2732_v58, %v2734_v4  ;;  %v10412_v5 = vpop.permute.xlu0 %2657  ;;  %v13540_v4 = vld [vmem:[#allocation190_spill] sm:$0xff]  ;;  %3617 = vmatprep.mubr.f32.mxu0 %v323_v37 }
 0x83c   : > { %13537 = vst [vmem:[#allocation250_spill] sm:$0xff] %v10412_v5  ;;  %2607 = vrot.lane.b32.xlu1 %v1963_v40, %s12659_s10  ;;  %3891 = vmatpush1.msra.mxu1 %v3065_v14  ;;  %v2134_v10 = vsel %vm2124_vm10, %v13540_v4, %v13534_v41  ;;  %v13542_v40 = vld [vmem:[#allocation182_spill] sm:$0xff]  ;;  %v13544_v41 = vld [vmem:[#allocation357_spill] sm:$0xff] }
 0x83d   : > { %2843 = vrot.lane.b32.xlu0 %v2130_v0, %s12659_s10  ;;  %v1958_v14 = vsel %vm1955_vm9, %v13542_v40, %v13541_v18  ;;  %v2132_v4 = vsel %vm2124_vm10, %v13544_v41, %v13529_v33  ;;  %v13546_v18 = vld [vmem:[#allocation110_spill] sm:$0xff] }
 0x83e   : > { %v2728_v52 = vpop.permute.xlu1 %2727  ;;  %3618 = vmatmul.mubr.f32.gmra.mxu0 %v322_v36  ;;  %v339_v36 = vld [vmem:[#allocation7 + $0x208] sm:$0xff] }
 0x83f   : > { %v2654_v58 = vpop.permute.xlu0 %2653  ;;  %v3064_v11 = vsel %vm1081_vm4, %v2728_v52, %v10364_v22  ;;  %3623 = vmatprep.mubr.f32.mxu0 %v331_v9  ;;  %v338_v9 = vld [vmem:[#allocation7 + $0x200] sm:$0xff] }
 0x840   : > { %2851 = vrot.lane.b32.xlu1 %v2134_v10, %s12659_s10  ;;  %3892 = vmatprep.subr.mxu1 %v3064_v11  ;;  %v13545_v11 = vld [vmem:[#allocation115_spill] sm:$0xff] }
 0x841   : > { %2597 = vrot.lane.b32.xlu0 %v1958_v14, %s12659_s10  ;;  %v1956_v14 = vsel %vm1955_vm9, %v13546_v18, %v13545_v11 }
 0x842   : > { %v2662_v21 = vpop.permute.xlu1 %2661  ;;  %3624 = vmatmul.mubr.f32.gmra.mxu0 %v330_v43  ;;  %v279_v43 = vld [vmem:[#allocation7 + $0x28] sm:$0xff] }
 0x843   : > { %v10432_v0 = vpop.permute.xlu0 %2717  ;;  %v3042_v37 = vsel %vm1081_vm4, %v2662_v21, %v10378_v59  ;;  %v3041_v10 = vsel %vm1081_vm4, %v2660_v16, %v2662_v21  ;;  %v1960_v16 = vsel %vm1955_vm9, %v13535_v7, %v13532_v2  ;;  %3629 = vmatprep.mubr.f32.mxu0 %v339_v36  ;;  %v13548_v21 = vld [vmem:[#allocation157_spill] sm:$0xff] }
 0x844   : > { %13543 = vst [vmem:[#allocation48_spill] sm:$0xff] %v10432_v0  ;;  %2847 = vrot.lane.b32.xlu1 %v2132_v4, %s12659_s10  ;;  %3795 = vmatprep.subr.mxu0 %v3042_v37  ;;  %v13549_v4 = vld [vmem:[#allocation113_spill] sm:$0xff] }
 0x845   : > { %2593 = vrot.lane.b32.xlu0 %v1956_v14, %s12659_s10  ;;  %3796 = vmatpush2.msra.mxu0 %v3041_v10  ;;  %v2127_v37 = vsel %vm2124_vm10, %v13549_v4, %v13548_v21  ;;  %v13551_v7 = vld [vmem:[#allocation105_spill] sm:$0xff]  ;;  %v13552_v14 = vld [vmem:[#allocation354_spill] sm:$0xff] }
 0x846   : > { %v2726_v28 = vpop.permute.xlu1 %2725  ;;  %3630 = vmatmul.mubr.f32.gmra.mxu0 %v338_v9  ;;  %v2074_v36 = vsel %vm1955_vm9, %v13552_v14, %v13551_v7  ;;  %v13554_v9 = vld [vmem:[#allocation133_spill] sm:$0xff] }
 0x847   : > { %v3063_v33 = vsel %vm1081_vm4, %v2726_v28, %v2728_v52  ;;  %v10446_v59 = vpop.permute.xlu0 %2651  ;;  %v13550_v28 = vld [vmem:[#allocation123_spill] sm:$0xff]  ;;  %3819 = vmatprep.mubr.f32.mxu0 %v279_v43  ;;  %v13555_v43 = vld [vmem:[#allocation17_spill] sm:$0xff] }
 0x848   : > { %13547 = vst [vmem:[#allocation46_spill] sm:$0xff] %v10446_v59  ;;  %2601 = vrot.lane.b32.xlu1 %v1960_v16, %s12659_s10  ;;  %3893 = vmatpush1.msra.mxu1 %v3063_v33  ;;  %v2131_v52 = vsel %vm2124_vm10, %v13550_v28, %v13544_v41  ;;  %v2129_v41 = vsel %vm2124_vm10, %v13554_v9, %v13539_v34 }
 0x849   : > { %2837 = vrot.lane.b32.xlu0 %v2127_v37, %s12659_s10  ;;  %v2073_v28 = vsel %vm1955_vm9, %v13555_v43, %v13552_v14  ;;  %v10488_v14 = vld [vmem:[#allocation7 + $0x50] sm:$0xff] }
 0x84a   : > { %v2722_v10 = vpop.permute.xlu1 %2721 }
 0x84b   : > { %v2648_v18 = vpop.permute.xlu0 %2647  ;;  %v3062_v2 = vsel %vm1081_vm4, %v2722_v10, %v10398_v8 }
 0x84c   : > { %2845 = vrot.lane.b32.xlu1 %v2131_v52, %s12659_s10  ;;  %3894 = vmatprep.subr.mxu1 %v3062_v2  ;;  %v10479_v2 = vld [vmem:[#allocation7 + $0x58] sm:$0xff] }
 0x84d   : > { %2829 = vrot.lane.b32.xlu0 %v2074_v36, %s12659_s10  ;;  %3706 = vmatprep.mubr.f32.mxu1 %v10479_v2 }
 0x84e   : > { %v2656_v33 = vpop.permute.xlu1 %2655  ;;  %3707 = vmatmul.mubr.f32.gmra.mxu1 %v10488_v14 }
 0x84f   : > { %v10466_v16 = vpop.permute.xlu0 %2711  ;;  %v3040_v21 = vsel %vm1081_vm4, %v2656_v33, %v10412_v5  ;;  %v3039_v37 = vsel %vm1081_vm4, %v2654_v58, %v2656_v33  ;;  %v1957_v58 = vsel %vm1955_vm9, %v13545_v11, %v13542_v40  ;;  %v13557_v33 = vld [vmem:[#allocation353_spill] sm:$0xff]  ;;  %v13559_v40 = vld [vmem:[#allocation124_spill] sm:$0xff]  ;;  %v13563_v5 = vld [vmem:[#allocation355_spill] sm:$0xff] }
 0x850   : > { %13553 = vst [vmem:[#allocation222_spill] sm:$0xff] %v10466_v16  ;;  %2841 = vrot.lane.b32.xlu1 %v2129_v41, %s12659_s10  ;;  %3797 = vmatprep.subr.mxu0 %v3040_v21  ;;  %v13558_v41 = vld [vmem:[#allocation184_spill] sm:$0xff]  ;;  %v2128_v11 = vsel %vm2124_vm10, %v13559_v40, %v13554_v9 }
 0x851   : > { %2827 = vrot.lane.b32.xlu0 %v2073_v28, %s12659_s10  ;;  %3798 = vmatpush2.msra.mxu0 %v3039_v37  ;;  %v2072_v21 = vsel %vm1955_vm9, %v13558_v41, %v13557_v33  ;;  %v10496_v37 = vld [vmem:[#allocation7 + $0x98] sm:$0xff] }
 0x852   : > { %v2720_v52 = vpop.permute.xlu1 %2719  ;;  %3712 = vmatprep.mubr.f32.mxu1 %v10496_v37 }
 0x853   : > { %v3061_v34 = vsel %vm1081_vm4, %v2720_v52, %v2722_v10  ;;  %v10482_v36 = vpop.permute.xlu0 %2645  ;;  %v10504_v52 = vld [vmem:[#allocation7 + $0x90] sm:$0xff] }
 0x854   : > { %13556 = vst [vmem:[#allocation41_spill] sm:$0xff] %v10482_v36  ;;  %2595 = vrot.lane.b32.xlu1 %v1957_v58, %s12659_s10  ;;  %3895 = vmatpush1.msra.mxu1 %v3061_v34  ;;  %v13560_v34 = vld [vmem:[#allocation135_spill] sm:$0xff] }
 0x855   : > { %2825 = vrot.lane.b32.xlu0 %v2072_v21, %s12659_s10  ;;  %v13561_v58 = vld [vmem:[#allocation351_spill] sm:$0xff]  ;;  %3713 = vmatmul.mubr.f32.gmra.mxu1 %v10504_v52  ;;  %v10512_v21 = vld [vmem:[#allocation7 + $0xd8] sm:$0xff] }
 0x856   : > { %v2716_v10 = vpop.permute.xlu1 %2715  ;;  %v2068_v33 = vsel %vm1955_vm9, %v13561_v58, %v13560_v34  ;;  %3718 = vmatprep.mubr.f32.mxu1 %v10512_v21 }
 0x857   : > { %v2642_v43 = vpop.permute.xlu0 %2641  ;;  %v3060_v28 = vsel %vm1081_vm4, %v2716_v10, %v10432_v0  ;;  %v2126_v0 = vsel %vm2124_vm10, %v13563_v5, %v13549_v4 }
 0x858   : > { %2839 = vrot.lane.b32.xlu1 %v2128_v11, %s12659_s10  ;;  %3896 = vmatprep.subr.mxu1 %v3060_v28  ;;  %v10523_v28 = vld [vmem:[#allocation7 + $0xd0] sm:$0xff] }
 0x859   : > { %2817 = vrot.lane.b32.xlu0 %v2068_v33, %s12659_s10  ;;  %v13564_v33 = vld [vmem:[#allocation154_spill] sm:$0xff]  ;;  %3719 = vmatmul.mubr.f32.gmra.mxu1 %v10523_v28 }
 0x85a   : > { %v2650_v9 = vpop.permute.xlu1 %2649  ;;  %v2067_v22 = vsel %vm1955_vm9, %v13564_v33, %v13561_v58  ;;  %v13572_v33 = vld [vmem:[#allocation109_spill] sm:$0xff] }
 0x85b   : > { %v10514_v40 = vpop.permute.xlu0 %2705  ;;  %v3038_v11 = vsel %vm1081_vm4, %v2650_v9, %v10446_v59  ;;  %v3037_v8 = vsel %vm1081_vm4, %v2648_v18, %v2650_v9  ;;  %v10531_v59 = vld [vmem:[#allocation7 + $0x118] sm:$0xff] }
 0x85c   : > { %13562 = vst [vmem:[#allocation50_spill] sm:$0xff] %v10514_v40  ;;  %2835 = vrot.lane.b32.xlu1 %v2126_v0, %s12659_s10  ;;  %3799 = vmatprep.subr.mxu0 %v3038_v11  ;;  %13565 = vst [vmem:[#allocation188_spill] sm:$0xff] %v10531_v59  ;;  %v13566_v18 = vld [vmem:[#allocation173_spill] sm:$0xff]  ;;  %v10540_v0 = vld [vmem:[#allocation7 + $0x110] sm:$0xff] }
 0x85d   : > { %2815 = vrot.lane.b32.xlu0 %v2067_v22, %s12659_s10  ;;  %3800 = vmatpush2.msra.mxu0 %v3037_v8  ;;  %v2125_v9 = vsel %vm2124_vm10, %v13566_v18, %v13563_v5  ;;  %13568 = vst [vmem:[#allocation43_spill] sm:$0xff] %v10540_v0  ;;  %v13569_v22 = vld [vmem:[#allocation349_spill] sm:$0xff]  ;;  %v13570_v8 = vld [vmem:[#allocation116_spill] sm:$0xff] }
 0x85e   : > { %v2714_v4 = vpop.permute.xlu1 %2713  ;;  %3724 = vmatprep.mubr.f32.mxu1 %v10531_v59  ;;  %v2066_v58 = vsel %vm1955_vm9, %v13570_v8, %v13569_v22  ;;  %v10548_v5 = vld [vmem:[#allocation7 + $0x158] sm:$0xff]  ;;  %v13575_v22 = vld [vmem:[#allocation343_spill] sm:$0xff] }
 0x85f   : > { %v3059_v60 = vsel %vm1081_vm4, %v2714_v4, %v2716_v10  ;;  %v10537_v15 = vpop.permute.xlu0 %2639  ;;  %3725 = vmatmul.mubr.f32.gmra.mxu1 %v10540_v0  ;;  %13571 = vst [vmem:[#allocation220_spill] sm:$0xff] %v10548_v5  ;;  %v2075_v4 = vsel %vm1955_vm9, %v13551_v7, %v13572_v33  ;;  %v10564_v7 = vld [vmem:[#allocation7 + $0x198] sm:$0xff] }
 0x860   : > { %13567 = vst [vmem:[#allocation228_spill] sm:$0xff] %v10537_v15  ;;  %2833 = vrot.lane.b32.xlu1 %v2125_v9, %s12659_s10  ;;  %3897 = vmatpush1.msra.mxu1 %v3059_v60  ;;  %v10556_v9 = vld [vmem:[#allocation7 + $0x150] sm:$0xff]  ;;  %v13574_v60 = vld [vmem:[#allocation14_spill] sm:$0xff]  ;;  %13576 = vst [vmem:[#allocation175_spill] sm:$0xff] %v10564_v7 }
 0x861   : > { %2813 = vrot.lane.b32.xlu0 %v2066_v58, %s12659_s10  ;;  %3730 = vmatprep.mubr.f32.mxu1 %v10548_v5  ;;  %13573 = vst [vmem:[#allocation206_spill] sm:$0xff] %v10556_v9  ;;  %v2062_v58 = vsel %vm1955_vm9, %v13575_v22, %v13574_v60 }
 0x862   : > { %v2710_v11 = vpop.permute.xlu1 %2709 }
 0x863   : > { %v2636_v10 = vpop.permute.xlu0 %2635  ;;  %v3058_v18 = vsel %vm1081_vm4, %v2710_v11, %v10466_v16  ;;  %3731 = vmatmul.mubr.f32.gmra.mxu1 %v10556_v9  ;;  %v13577_v16 = vld [vmem:[#allocation145_spill] sm:$0xff] }
 0x864   : > { %2831 = vrot.lane.b32.xlu1 %v2075_v4, %s12659_s10  ;;  %3898 = vmatprep.subr.mxu1 %v3058_v18  ;;  %v2071_v5 = vsel %vm1955_vm9, %v13577_v16, %v13558_v41  ;;  %v10575_v18 = vld [vmem:[#allocation7 + $0x190] sm:$0xff] }
 0x865   : > { %2805 = vrot.lane.b32.xlu0 %v2062_v58, %s12659_s10  ;;  %3736 = vmatprep.mubr.f32.mxu1 %v10564_v7  ;;  %13578 = vst [vmem:[#allocation45_spill] sm:$0xff] %v10575_v18  ;;  %v13579_v58 = vld [vmem:[#allocation189_spill] sm:$0xff] }
 0x866   : > { %v2644_v0 = vpop.permute.xlu1 %2643  ;;  %v2061_v9 = vsel %vm1955_vm9, %v13579_v58, %v13575_v22  ;;  %v13587_v58 = vld [vmem:[#allocation352_spill] sm:$0xff] }
 0x867   : > { %v10566_v33 = vpop.permute.xlu0 %2699  ;;  %v3036_v4 = vsel %vm1081_vm4, %v2644_v0, %v10482_v36  ;;  %v3035_v59 = vsel %vm1081_vm4, %v2642_v43, %v2644_v0  ;;  %3737 = vmatmul.mubr.f32.gmra.mxu1 %v10575_v18  ;;  %v10583_v36 = vld [vmem:[#allocation7 + $0x1d8] sm:$0xff]  ;;  %v13581_v43 = vld [vmem:[#allocation139_spill] sm:$0xff]  ;;  %v13592_v18 = vld [vmem:[#allocation344_spill] sm:$0xff] }
 0x868   : > { %2823 = vrot.lane.b32.xlu1 %v2071_v5, %s12659_s10  ;;  %3801 = vmatprep.subr.mxu0 %v3036_v4  ;;  %13580 = vst [vmem:[#allocation89_spill] sm:$0xff] %v10583_v36  ;;  %v2070_v0 = vsel %vm1955_vm9, %v13581_v43, %v13577_v16  ;;  %v10592_v5 = vld [vmem:[#allocation7 + $0x1d0] sm:$0xff]  ;;  %v10600_v16 = vld [vmem:[#allocation7 + $0x218] sm:$0xff] }
 0x869   : > { %2803 = vrot.lane.b32.xlu0 %v2061_v9, %s12659_s10  ;;  %3802 = vmatpush2.msra.mxu0 %v3035_v59  ;;  %13583 = vst [vmem:[#allocation261_spill] sm:$0xff] %v10592_v5  ;;  %v13584_v59 = vld [vmem:[#allocation341_spill] sm:$0xff]  ;;  %v13585_v9 = vld [vmem:[#allocation350_spill] sm:$0xff]  ;;  %13586 = vst [vmem:[#allocation87_spill] sm:$0xff] %v10600_v16 }
 0x86a   : > { %v2708_v41 = vpop.permute.xlu1 %2707  ;;  %3742 = vmatprep.mubr.f32.mxu1 %v10583_v36  ;;  %v2060_v22 = vsel %vm1955_vm9, %v13585_v9, %v13584_v59  ;;  %v13590_v59 = vld [vmem:[#allocation335_spill] sm:$0xff] }
 0x86b   : > { %v3057_v7 = vsel %vm1081_vm4, %v2708_v41, %v2710_v11  ;;  %v10589_v12 = vpop.permute.xlu0 %2633  ;;  %3743 = vmatmul.mubr.f32.gmra.mxu1 %v10592_v5  ;;  %v2069_v41 = vsel %vm1955_vm9, %v13560_v34, %v13587_v58  ;;  %v13591_v58 = vld [vmem:[#allocation347_spill] sm:$0xff] }
 0x86c   : > { %13582 = vst [vmem:[#allocation90_spill] sm:$0xff] %v10589_v12  ;;  %2821 = vrot.lane.b32.xlu1 %v2070_v0, %s12659_s10  ;;  %3899 = vmatpush1.msra.mxu1 %v3057_v7  ;;  %v10608_v0 = vld [vmem:[#allocation7 + $0x210] sm:$0xff]  ;;  %v13589_v7 = vld [vmem:[#allocation346_spill] sm:$0xff] }
 0x86d   : > { %2801 = vrot.lane.b32.xlu0 %v2060_v22, %s12659_s10  ;;  %3748 = vmatprep.mubr.f32.mxu1 %v10600_v16  ;;  %13588 = vst [vmem:[#allocation225_spill] sm:$0xff] %v10608_v0  ;;  %v2056_v22 = vsel %vm1955_vm9, %v13590_v59, %v13589_v7  ;;  %v2065_v16 = vsel %vm1955_vm9, %v13591_v58, %v13570_v8 }
 0x86e   : > { %v2704_v4 = vpop.permute.xlu1 %2703 }
 0x86f   : > { %v2630_v11 = vpop.permute.xlu0 %2629  ;;  %v3056_v43 = vsel %vm1081_vm4, %v2704_v4, %v10514_v40  ;;  %3749 = vmatmul.mubr.f32.gmra.mxu1 %v10608_v0  ;;  %v13593_v0 = vld [vmem:[#allocation111_spill] sm:$0xff] }
 0x870   : > { %2819 = vrot.lane.b32.xlu1 %v2069_v41, %s12659_s10  ;;  %3900 = vmatprep.subr.mxu1 %v3056_v43  ;;  %v2055_v43 = vsel %vm1955_vm9, %v13592_v18, %v13590_v59  ;;  %v2064_v8 = vsel %vm1955_vm9, %v13593_v0, %v13591_v58  ;;  %v13597_v59 = vld [vmem:[#allocation345_spill] sm:$0xff] }
 0x871   : > { %2793 = vrot.lane.b32.xlu0 %v2056_v22, %s12659_s10 }
 0x872   : > { %v2638_v5 = vpop.permute.xlu1 %2637 }
 0x873   : > { %v10616_v34 = vpop.permute.xlu0 %2693  ;;  %v3034_v36 = vsel %vm1081_vm4, %v2638_v5, %v10537_v15  ;;  %v3033_v41 = vsel %vm1081_vm4, %v2636_v10, %v2638_v5  ;;  %v13595_v10 = vld [vmem:[#allocation333_spill] sm:$0xff]  ;;  %v13596_v5 = vld [vmem:[#allocation342_spill] sm:$0xff] }
 0x874   : > { %2811 = vrot.lane.b32.xlu1 %v2065_v16, %s12659_s10  ;;  %3803 = vmatprep.subr.mxu0 %v3034_v36  ;;  %v2054_v18 = vsel %vm1955_vm9, %v13596_v5, %v13595_v10  ;;  %v13599_v10 = vld [vmem:[#allocation348_spill] sm:$0xff] }
 0x875   : > { %2791 = vrot.lane.b32.xlu0 %v2055_v43, %s12659_s10  ;;  %3804 = vmatpush2.msra.mxu0 %v3033_v41  ;;  %v2063_v41 = vsel %vm1955_vm9, %v13574_v60, %v13597_v59  ;;  %v13598_v43 = vld [vmem:[#allocation339_spill] sm:$0xff] }
 0x876   : > { %v2702_v22 = vpop.permute.xlu1 %2701 }
 0x877   : > { %v3055_v40 = vsel %vm1081_vm4, %v2702_v22, %v2704_v4  ;;  %v10633_v15 = vpop.permute.xlu0 %2627 }
 0x878   : > { %13594 = vst [vmem:[#allocation256_spill] sm:$0xff] %v10633_v15  ;;  %2809 = vrot.lane.b32.xlu1 %v2064_v8, %s12659_s10  ;;  %3901 = vmatpush1.msra.mxu1 %v3055_v40  ;;  %v2059_v40 = vsel %vm1955_vm9, %v13598_v43, %v13585_v9  ;;  %v10662_v9 = vld [vmem:[#allocation7 + $0x38] sm:$0xff] }
 0x879   : > { %2789 = vrot.lane.b32.xlu0 %v2054_v18, %s12659_s10  ;;  %v2058_v18 = vsel %vm1955_vm9, %v13599_v10, %v13598_v43  ;;  %13601 = vst [vmem:[#allocation102_spill] sm:$0xff] %v10662_v9  ;;  %5407 = vmatprep.mubr.msk.f32.mxu1 %vm3489_vm11, %v10662_v9 }
 0x87a   : > { %v2698_v36 = vpop.permute.xlu1 %2697 }
 0x87b   : > { %v2624_v16 = vpop.permute.xlu0 %2623  ;;  %v3054_v4 = vsel %vm1081_vm4, %v2698_v36, %v10566_v33 }
 0x87c   : > { %2807 = vrot.lane.b32.xlu1 %v2063_v41, %s12659_s10  ;;  %3902 = vmatprep.subr.mxu1 %v3054_v4 }
 0x87e   : > { %v2632_v0 = vpop.permute.xlu1 %2631 }
 0x87f   : > { %v10646_v58 = vpop.permute.xlu0 %2867  ;;  %v3032_v22 = vsel %vm1081_vm4, %v2632_v0, %v10589_v12  ;;  %v3031_v8 = vsel %vm1081_vm4, %v2630_v11, %v2632_v0  ;;  %v13602_v0 = vld [vmem:[#allocation337_spill] sm:$0xff] }
 0x880   : > { %2799 = vrot.lane.b32.xlu1 %v2059_v40, %s12659_s10  ;;  %3805 = vmatprep.subr.mxu0 %v3032_v22  ;;  %v2057_v40 = vsel %vm1955_vm9, %v13589_v7, %v13602_v0 }
 0x881   : > { %3806 = vmatpush2.msra.mxu0 %v3031_v8  ;;  %v13603_v8 = vld [vmem:[#allocation331_spill] sm:$0xff] }
 0x882   : > { %v2696_v60 = vpop.permute.xlu1 %2695 }
 0x883   : > { %v3053_v59 = vsel %vm1081_vm4, %v2696_v60, %v2698_v36  ;;  %v10659_v41 = vpop.permute.xlu0 %2621  ;;  %v2053_v60 = vsel %vm1955_vm9, %v13603_v8, %v13596_v5 }
 0x884   : > { %13600 = vst [vmem:[#allocation101_spill] sm:$0xff] %v10659_v41  ;;  %2797 = vrot.lane.b32.xlu1 %v2058_v18, %s12659_s10  ;;  %3903 = vmatpush1.msra.mxu1 %v3053_v59  ;;  %v13604_v59 = vld [vmem:[#allocation340_spill] sm:$0xff] }
 0x885   : > { %v2052_v0 = vsel %vm1955_vm9, %v13604_v59, %v13603_v8 }
 0x886   : > { %v2692_v11 = vpop.permute.xlu1 %2691 }
 0x887   : > { %v2618_v4 = vpop.permute.xlu0 %2617  ;;  %v3052_v36 = vsel %vm1081_vm4, %v2692_v11, %v10616_v34 }
 0x888   : > { %2795 = vrot.lane.b32.xlu1 %v2057_v40, %s12659_s10  ;;  %3904 = vmatprep.subr.mxu1 %v3052_v36 }
 0x88a   : > { %v2626_v43 = vpop.permute.xlu1 %2625 }
 0x88b   : > { %v10672_v22 = vpop.permute.xlu0 %2861  ;;  %v3030_v10 = vsel %vm1081_vm4, %v2626_v43, %v10633_v15  ;;  %v3029_v18 = vsel %vm1081_vm4, %v2624_v16, %v2626_v43 }
 0x88c   : > { %2787 = vrot.lane.b32.xlu1 %v2053_v60, %s12659_s10  ;;  %3807 = vmatprep.subr.mxu0 %v3030_v10 }
 0x88d   : > { %3808 = vmatpush2.msra.mxu0 %v3029_v18 }
 0x88e   : > { %v2690_v7 = vpop.permute.xlu1 %2689 }
 0x88f   : > { %v3051_v40 = vsel %vm1081_vm4, %v2690_v7, %v2692_v11  ;;  %v10685_v36 = vpop.permute.xlu0 %2615 }
 0x890   : > { %13605 = vst [vmem:[#allocation246_spill] sm:$0xff] %v10685_v36  ;;  %2785 = vrot.lane.b32.xlu1 %v2052_v0, %s12659_s10  ;;  %3905 = vmatpush1.msra.mxu1 %v3051_v40  ;;  %s5956_s10 = smov [#allocation10]  }
 0x891   : > { %s5860_s8 = sshll.u32 %s5956_s10, 4  ;;  %s5861_s8 = int_to_ptr.vmem [resolvable:$false] %s5860_s8 }
 0x892   : > { %v2866_v5 = vpop.permute.xlu1 %2865  ;;  %s5862_s14 = scalar_lea.vmem %s5861_s8, 8448 }
 0x893   : > { %v2612_v15 = vpop.permute.xlu0 %2611  ;;  %v3110_v16 = vsel %vm1081_vm4, %v2866_v5, %v10646_v58 }
 0x894   : > { %3910 = vmatprep.subr.mxu1 %v3110_v16 }
 0x896   : > { %v2620_v43 = vpop.permute.xlu1 %2619 }
 0x897   : > { %v10690_v60 = vpop.permute.xlu0 %2855  ;;  %v3028_v10 = vsel %vm1081_vm4, %v2620_v43, %v10659_v41  ;;  %v3027_v8 = vsel %vm1081_vm4, %v2618_v4, %v2620_v43 }
 0x898   : > { %13606 = vst [vmem:[#allocation49_spill] sm:$0xff] %v10690_v60  ;;  %3809 = vmatprep.subr.mxu0 %v3028_v10 }
 0x899   : > { %3810 = vmatpush2.msra.mxu0 %v3027_v8 }
 0x89a   : > { %v2864_v11 = vpop.permute.xlu1 %2863 }
 0x89b   : > { %v3109_v18 = vsel %vm1081_vm4, %v2864_v11, %v2866_v5  ;;  %v10696_v7 = vpop.permute.xlu0 %2609 }
 0x89c   : > { %13607 = vst [vmem:[#allocation267_spill] sm:$0xff] %v10696_v7  ;;  %3911 = vmatpush2.msra.mxu1 %v3109_v18 }
 0x89e   : > { %v2860_v59 = vpop.permute.xlu1 %2859 }
 0x89f   : > { %v2606_v0 = vpop.permute.xlu0 %2605  ;;  %v3108_v40 = vsel %vm1081_vm4, %v2860_v59, %v10672_v22 }
 0x8a0   : > { %3912 = vmatprep.subr.mxu1 %v3108_v40 }
 0x8a2   : > { %v2614_v16 = vpop.permute.xlu1 %2613 }
 0x8a3   : > { %v10700_v12 = vpop.permute.xlu0 %2849  ;;  %v3026_v4 = vsel %vm1081_vm4, %v2614_v16, %v10685_v36  ;;  %v3025_v43 = vsel %vm1081_vm4, %v2612_v15, %v2614_v16 }
 0x8a4   : > { %13608 = vst [vmem:[#allocation209_spill] sm:$0xff] %v10700_v12  ;;  %3811 = vmatprep.subr.mxu0 %v3026_v4 }
 0x8a5   : > { %3812 = vmatpush2.msra.mxu0 %v3025_v43 }
 0x8a6   : > { %v2858_v5 = vpop.permute.xlu1 %2857 }
 0x8a7   : > { %v3107_v10 = vsel %vm1081_vm4, %v2858_v5, %v2860_v59  ;;  %v10706_v8 = vpop.permute.xlu0 %2603 }
 0x8a8   : > { %13609 = vst [vmem:[#allocation99_spill] sm:$0xff] %v10706_v8  ;;  %3913 = vmatpush2.msra.mxu1 %v3107_v10 }
 0x8aa   : > { %v2854_v11 = vpop.permute.xlu1 %2853 }
 0x8ab   : > { %v2600_v18 = vpop.permute.xlu0 %2599  ;;  %v3106_v40 = vsel %vm1081_vm4, %v2854_v11, %v10690_v60 }
 0x8ac   : > { %3914 = vmatprep.subr.mxu1 %v3106_v40 }
 0x8ae   : > { %v2608_v41 = vpop.permute.xlu1 %2607 }
 0x8af   : > { %v10710_v9 = vpop.permute.xlu0 %2843  ;;  %v3024_v15 = vsel %vm1081_vm4, %v2608_v41, %v10696_v7  ;;  %v3023_v16 = vsel %vm1081_vm4, %v2606_v0, %v2608_v41 }
 0x8b0   : > { %3813 = vmatprep.subr.mxu0 %v3024_v15 }
 0x8b1   : > { %3814 = vmatpush2.msra.mxu0 %v3023_v16 }
 0x8b2   : > { %v2852_v59 = vpop.permute.xlu1 %2851 }
 0x8b3   : > { %v3105_v4 = vsel %vm1081_vm4, %v2852_v59, %v2854_v11  ;;  %v10716_v43 = vpop.permute.xlu0 %2597 }
 0x8b4   : > { %3915 = vmatpush2.msra.mxu1 %v3105_v4 }
 0x8b6   : > { %v2848_v5 = vpop.permute.xlu1 %2847 }
 0x8b7   : > { %v2594_v10 = vpop.permute.xlu0 %2593  ;;  %v3104_v40 = vsel %vm1081_vm4, %v2848_v5, %v10700_v12 }
 0x8b8   : > { %3916 = vmatprep.subr.mxu1 %v3104_v40 }
 0x8ba   : > { %v2602_v36 = vpop.permute.xlu1 %2601 }
 0x8bb   : > { %v10720_v60 = vpop.permute.xlu0 %2837  ;;  %v3022_v41 = vsel %vm1081_vm4, %v2602_v36, %v10706_v8  ;;  %v3021_v0 = vsel %vm1081_vm4, %v2600_v18, %v2602_v36  ;;  %v10731_v36 = vld [vmem:[#allocation7 + $0x20] sm:$0xff] }
 0x8bc   : > { %3815 = vmatprep.subr.mxu0 %v3022_v41 }
 0x8bd   : > { %3816 = vmatpush2.msra.mxu0 %v3021_v0 }
 0x8be   : > { %v2846_v11 = vpop.permute.xlu1 %2845 }
 0x8bf   : > { %v3103_v15 = vsel %vm1081_vm4, %v2846_v11, %v2848_v5  ;;  %v2830_v16 = vpop.permute.xlu0 %2829  ;;  %v10735_v5 = vld [vmem:[#allocation7 + $0x68] sm:$0xff]  ;;  %v13610_v11 = vld [vmem:[#allocation126_spill] sm:$0xff] }
 0x8c0   : > { %3917 = vmatpush2.msra.mxu1 %v3103_v15 }
 0x8c2   : > { %v2842_v59 = vpop.permute.xlu1 %2841 }
 0x8c3   : > { %v2828_v4 = vpop.permute.xlu0 %2827  ;;  %v3102_v40 = vsel %vm1081_vm4, %v2842_v59, %v10710_v9 }
 0x8c4   : > { %3918 = vmatprep.subr.mxu1 %v3102_v40  ;;  %v10767_v40 = vld [vmem:[#allocation7 + $0xe0] sm:$0xff] }
 0x8c6   : > { %v2596_v7 = vpop.permute.xlu1 %2595 }
 0x8c7   : > { %v3020_v12 = vsel %vm1081_vm4, %v2596_v7, %v10716_v43  ;;  %v3019_v8 = vsel %vm1081_vm4, %v2594_v10, %v2596_v7  ;;  %v10733_v18 = vpop.permute.xlu0 %2825  ;;  %v10742_v7 = vld [vmem:[#allocation7 + $0x60] sm:$0xff] }
 0x8c8   : > { %3817 = vmatprep.subr.mxu0 %v3020_v12  ;;  %v10745_v12 = vld [vmem:[#allocation7 + $0xa8] sm:$0xff] }
 0x8c9   : > { %3818 = vmatpush2.msra.mxu0 %v3019_v8 }
 0x8ca   : > { %v2840_v41 = vpop.permute.xlu1 %2839  ;;  %3820 = vmatmul.mubr.f32.vlgmr.msra.gmra.mxu0 %v10731_v36  ;;  %5502 = vmatprep.subr.mxu0 %v9681_v23  ;;  %v13611_v23 = vld [vmem:[#allocation152_spill] sm:$0xff] }
 0x8cb   : > { %v3101_v0 = vsel %vm1081_vm4, %v2840_v41, %v2842_v59  ;;  %5503 = vmatpush3.msra.mxu0 %v13610_v11  ;;  %3825 = vmatprep.mubr.f32.mxu0 %v10735_v5  ;;  %v10748_v8 = vpop.permute.xlu0 %2817  ;;  %v10756_v59 = vld [vmem:[#allocation7 + $0xa0] sm:$0xff] }
 0x8cc   : > { %3919 = vmatpush2.msra.mxu1 %v3101_v0  ;;  %5504 = vmatprep.subr.mxu0 %v9643_v49 }
 0x8cd   : > { %5505 = vmatpush3.msra.mxu0 %v9332_v32  ;;  %v10759_v32 = vld [vmem:[#allocation7 + $0xe8] sm:$0xff] }
 0x8ce   : > { %v2836_v10 = vpop.permute.xlu1 %2835  ;;  %3826 = vmatmul.mubr.f32.gmra.mxu0 %v10742_v7  ;;  %5506 = vmatprep.subr.mxu0 %v9711_v48 }
 0x8cf   : > { %5507 = vmatpush3.msra.mxu0 %v13611_v23  ;;  %v3100_v15 = vsel %vm1081_vm4, %v2836_v10, %v10720_v60  ;;  %3831 = vmatprep.mubr.f32.mxu0 %v10745_v12  ;;  %v2816_v41 = vpop.permute.xlu0 %2815 }
 0x8d0   : > { %3920 = vmatprep.subr.mxu1 %v3100_v15  ;;  %5508 = vmatprep.subr.mxu0 %v9673_v35  ;;  %v10770_v35 = vld [vmem:[#allocation7 + $0x128] sm:$0xff]  ;;  %v5755_v15 = vld [vmem:[#allocation7 + $0x10] sm:$0xff] }
 0x8d1   : > { %5509 = vmatpush3.msra.mxu0 %v9383_v50 }
 0x8d2   : > { %v2834_v49 = vpop.permute.xlu1 %2833  ;;  %3832 = vmatmul.mubr.f32.gmra.mxu0 %v10756_v59  ;;  %5510 = vmatprep.subr.mxu0 %v9739_v3  ;;  %v10781_v3 = vld [vmem:[#allocation7 + $0x120] sm:$0xff] }
 0x8d3   : > { %v3099_v48 = vsel %vm1081_vm4, %v2834_v49, %v2836_v10  ;;  %5511 = vmatpush3.msra.mxu0 %v9321_v13  ;;  %3837 = vmatprep.mubr.f32.mxu0 %v10759_v32 }
 0x8d4   : > { %3921 = vmatpush2.msra.mxu1 %v3099_v48  ;;  %5512 = vmatprep.subr.mxu0 %v9703_v44  ;;  %v3097_v44 = vsel %vm1081_vm4, %v2828_v4, %v2830_v16 }
 0x8d5   : > { %5513 = vmatpush3.msra.mxu0 %v9456_v38  ;;  %v10785_v38 = vld [vmem:[#allocation7 + $0x168] sm:$0xff] }
 0x8d6   : > { %v10773_v50 = vpop.permute.xlu1 %2831  ;;  %3838 = vmatmul.mubr.f32.gmra.mxu0 %v10767_v40  ;;  %5514 = vmatprep.subr.mxu0 %v9778_v61  ;;  %v10788_v61 = vpop.permute.xlu0 %2813 }
 0x8d7   : > { %5515 = vmatpush3.msra.mxu0 %v9503_v46  ;;  %v3098_v13 = vsel %vm1081_vm4, %v2830_v16, %v10773_v50  ;;  %3843 = vmatprep.mubr.f32.mxu0 %v10770_v35 }
 0x8d8   : > { %3922 = vmatprep.subr.mxu1 %v3098_v13  ;;  %5516 = vmatprep.subr.mxu0 %v9808_v17  ;;  %v10796_v17 = vld [vmem:[#allocation7 + $0x160] sm:$0xff]  ;;  %v13616_v13 = vld [vmem:[#allocation43_spill] sm:$0xff] }
 0x8d9   : > { %3923 = vmatpush2.msra.mxu1 %v3097_v44  ;;  %5517 = vmatpush3.msra.mxu0 %v9414_v6  ;;  %v10799_v6 = vld [vmem:[#allocation7 + $0x1a8] sm:$0xff]  ;;  %v13617_v44 = vld [vmem:[#allocation125_spill] sm:$0xff] }
 0x8da   : > { %v2824_v46 = vpop.permute.xlu1 %2823  ;;  %3844 = vmatmul.mubr.f32.gmra.mxu0 %v10781_v3  ;;  %5518 = vmatprep.subr.mxu0 %v9840_v30  ;;  %v10807_v30 = vld [vmem:[#allocation7 + $0x1a0] sm:$0xff]  ;;  %v2806_v0 = vpop.permute.xlu0 %2805 }
 0x8db   : > { %5519 = vmatpush3.msra.mxu0 %v9556_v31  ;;  %v3096_v16 = vsel %vm1081_vm4, %v2824_v46, %v10733_v18  ;;  %3849 = vmatprep.mubr.f32.mxu0 %v10785_v38 }
 0x8dc   : > { %3924 = vmatprep.subr.mxu1 %v3096_v16  ;;  %5520 = vmatprep.subr.mxu0 %v9872_v19  ;;  %v10810_v19 = vld [vmem:[#allocation7 + $0x1e8] sm:$0xff]  ;;  %v13618_v16 = vld [vmem:[#allocation220_spill] sm:$0xff] }
 0x8dd   : > { %5521 = vmatpush3.msra.mxu0 %v9486_v47 }
 0x8de   : > { %v2822_v4 = vpop.permute.xlu1 %2821  ;;  %3850 = vmatmul.mubr.f32.gmra.mxu0 %v10796_v17  ;;  %5522 = vmatprep.subr.mxu0 %v9904_v25  ;;  %v10822_v25 = vld [vmem:[#allocation7 + $0x1e0] sm:$0xff] }
 0x8df   : > { %v3095_v31 = vsel %vm1081_vm4, %v2822_v4, %v2824_v46  ;;  %5523 = vmatpush3.msra.mxu0 %v9589_v55  ;;  %3855 = vmatprep.mubr.f32.mxu0 %v10799_v6 }
 0x8e0   : > { %3925 = vmatpush2.msra.mxu1 %v3095_v31  ;;  %5524 = vmatprep.subr.mxu0 %v9938_v63  ;;  %v3093_v63 = vsel %vm1081_vm4, %v2816_v41, %v10748_v8  ;;  %v13619_v31 = vld [vmem:[#allocation119_spill] sm:$0xff] }
 0x8e1   : > { %5525 = vmatpush3.msra.mxu0 %v9548_v51  ;;  %v10827_v51 = vld [vmem:[#allocation7 + $0x228] sm:$0xff] }
 0x8e2   : > { %v10813_v47 = vpop.permute.xlu1 %2819  ;;  %3856 = vmatmul.mubr.f32.gmra.mxu0 %v10807_v30  ;;  %5526 = vmatprep.subr.mxu0 %v9972_v27 }
 0x8e3   : > { %5527 = vmatpush3.msra.mxu0 %v9621_v53  ;;  %v3094_v55 = vsel %vm1081_vm4, %v10748_v8, %v10813_v47  ;;  %3861 = vmatprep.mubr.f32.mxu0 %v10810_v19  ;;  %v2804_v53 = vpop.permute.xlu0 %2803  ;;  %v10836_v8 = vld [vmem:[#allocation7 + $0x220] sm:$0xff] }
 0x8e4   : > { %3926 = vmatprep.subr.mxu1 %v3094_v55  ;;  %5528 = vmatprep.subr.mxu0 %v10006_v1  ;;  %v13612_v1 = vmov 0.0   ;;  %v10895_v55 = vld [vmem:[#allocation7 + $0x30] sm:$0xff] }
 0x8e5   : > { %3927 = vmatpush2.msra.mxu1 %v3093_v63  ;;  %5529 = vmatpush3.msra.mxu0 %v9581_v20  ;;  %v13620_v63 = vld [vmem:[#allocation206_spill] sm:$0xff] }
 0x8e6   : > { %v2812_v27 = vpop.permute.xlu1 %2811  ;;  %3862 = vmatmul.mubr.f32.gmra.mxu0 %v10822_v25  ;;  %5530 = vmatprep.subr.mxu0 %v10040_v62 }
 0x8e7   : > { %5531 = vmatpush3.msra.mxu0 %v9651_v29  ;;  %v3092_v11 = vsel %vm1081_vm4, %v2812_v27, %v10788_v61  ;;  %3867 = vmatprep.mubr.f32.mxu0 %v10827_v51  ;;  %v5754_v29 = vld [vmem:[#allocation7 + $0x18] sm:$0xff]  ;;  %v10843_v10 = vpop.permute.xlu0 %2801 }
 0x8e8   : > { %3928 = vmatprep.subr.mxu1 %v3092_v11  ;;  %5532 = vmatprep.subr.mxu0 %v10078_v56  ;;  %v3089_v56 = vsel %vm1081_vm4, %v2804_v53, %v2806_v0  ;;  %v13622_v11 = vld [vmem:[#allocation175_spill] sm:$0xff] }
 0x8e9   : > { %5533 = vmatpush3.msra.mxu0 %v9613_v42 }
 0x8ea   : > { %v2810_v20 = vpop.permute.xlu1 %2809  ;;  %3868 = vmatmul.mubr.f32.gmra.mxu0 %v10836_v8  ;;  %4323 = vmatprep.subr.mxu0 %v13612_v1 }
 0x8eb   : > { %v3091_v62 = vsel %vm1081_vm4, %v2810_v20, %v2812_v27  ;;  %4167 = vmatprep.mubr.f32.mxu0 %v5754_v29  ;;  %v2794_v49 = vpop.permute.xlu0 %2793  ;;  %v13621_v27 = vld [vmem:[#allocation176_spill] sm:$0xff]  ;;  %v13624_v29 = vld [vmem:[#allocation181_spill] sm:$0xff] }
 0x8ec   : > { %3929 = vmatpush2.msra.mxu1 %v3091_v62  ;;  %v13623_v62 = vld [vmem:[#allocation48_spill] sm:$0xff] }
 0x8ee   : > { %v10845_v23 = vpop.permute.xlu1 %2807  ;;  %4168 = vmatmul.mubr.f32.vlgmr.msra.gmra.mxu0 %v5755_v15  ;;  %v10908_v15 = vld [vmem:[#allocation7 + $0x78] sm:$0xff] }
 0x8ef   : > { %4324 = vmatpush1.msra.mxu0 %v10053_v24  ;;  %v3090_v42 = vsel %vm1081_vm4, %v2806_v0, %v10845_v23  ;;  %4172 = vmatprep.mubr.f32.mxu0 %v10479_v2 }
 0x8f0   : > { %4325 = vmatprep.subr.mxu0 %v13612_v1  ;;  %3930 = vmatprep.subr.mxu1 %v3090_v42  ;;  %v13625_v42 = vld [vmem:[#allocation193_spill] sm:$0xff] }
 0x8f1   : > { %4326 = vmatpush1.msra.mxu0 %v10091_v26  ;;  %3931 = vmatpush2.msra.mxu1 %v3089_v56  ;;  %v13626_v56 = vld [vmem:[#allocation222_spill] sm:$0xff] }
 0x8f2   : > { %4327 = vmatprep.subr.mxu0 %v13612_v1  ;;  %v2800_v48 = vpop.permute.xlu1 %2799  ;;  %4173 = vmatmul.mubr.f32.gmra.mxu0 %v10488_v14  ;;  %v13613_v14 = vld [vmem:[#allocation183_spill] sm:$0xff] }
 0x8f3   : > { %4328 = vmatpush1.msra.mxu0 %v10126_v45  ;;  %v3088_v24 = vsel %vm1081_vm4, %v2800_v48, %v10843_v10  ;;  %4177 = vmatprep.mubr.f32.mxu0 %v10496_v37  ;;  %v2792_v45 = vpop.permute.xlu0 %2791 }
 0x8f4   : > { %4329 = vmatprep.subr.mxu0 %v13612_v1  ;;  %3932 = vmatprep.subr.mxu1 %v3088_v24 }
 0x8f5   : > { %4330 = vmatpush1.msra.mxu0 %v10160_v57 }
 0x8f6   : > { %4331 = vmatprep.subr.mxu0 %v13612_v1  ;;  %v2798_v26 = vpop.permute.xlu1 %2797  ;;  %4178 = vmatmul.mubr.f32.gmra.mxu0 %v10504_v52  ;;  %v3085_v52 = vsel %vm1081_vm4, %v2792_v45, %v2794_v49  ;;  %v13630_v45 = vld [vmem:[#allocation120_spill] sm:$0xff] }
 0x8f7   : > { %v3087_v2 = vsel %vm1081_vm4, %v2798_v26, %v2800_v48  ;;  %4332 = vmatpush1.msra.mxu0 %v10194_v54  ;;  %4182 = vmatprep.mubr.f32.mxu0 %v10512_v21  ;;  %v13614_v54 = vld [vmem:[#allocation188_spill] sm:$0xff]  ;;  %v10879_v21 = vpop.f32.mrf.mxu0  ;;  %v10882_v41 = vpop.permute.xlu0 %2789  ;;  %v13627_v48 = vld [vmem:[#allocation194_spill] sm:$0xff] }
 0x8f8   : > { %4333 = vmatprep.subr.mxu0 %v13612_v1  ;;  %3933 = vmatpush2.msra.mxu1 %v3087_v2  ;;  %v13628_v26 = vld [vmem:[#allocation204_spill] sm:$0xff]  ;;  %v13629_v2 = vld [vmem:[#allocation50_spill] sm:$0xff] }
 0x8f9   : > { %4334 = vmatpush1.msra.mxu0 %v10228_v39  ;;  %v13615_v39 = vld [vmem:[#allocation25_spill] sm:$0xff]  ;;  %v10891_v4 = vpop.f32.mrf.mxu0 }
 0x8fa   : > { %4335 = vmatprep.subr.mxu0 %v13612_v1  ;;  %v10870_v57 = vpop.permute.xlu1 %2795  ;;  %4183 = vmatmul.mubr.f32.gmra.mxu0 %v10523_v28 }
 0x8fb   : > { %4336 = vmatpush1.msra.mxu0 %v13613_v14  ;;  %v3086_v37 = vsel %vm1081_vm4, %v2794_v49, %v10870_v57  ;;  %4187 = vmatprep.mubr.f32.mxu0 %v13614_v54  ;;  %v10902_v20 = vpop.f32.mrf.mxu0  ;;  %v10912_v49 = vld [vmem:[#allocation7 + $0x70] sm:$0xff]  ;;  %v10925_v14 = vld [vmem:[#allocation7 + $0xb8] sm:$0xff] }
 0x8fc   : > { %4337 = vmatprep.subr.mxu0 %v13612_v1  ;;  %3934 = vmatprep.subr.mxu1 %v3086_v37  ;;  %v13631_v37 = vld [vmem:[#allocation40_spill] sm:$0xff] }
 0x8fd   : > { %4338 = vmatpush1.msra.mxu0 %v13615_v39  ;;  %3935 = vmatpush2.msra.mxu1 %v3085_v52  ;;  %v10916_v24 = vpop.f32.mrf.mxu0  ;;  %v10929_v54 = vld [vmem:[#allocation7 + $0xb0] sm:$0xff]  ;;  %v13632_v39 = vld [vmem:[#allocation42_spill] sm:$0xff] }
 0x8fe   : > { %4339 = vmatprep.subr.mxu0 %v13612_v1  ;;  %v2788_v28 = vpop.permute.xlu1 %2787  ;;  %4188 = vmatmul.mubr.f32.gmra.mxu0 %v13616_v13  ;;  %v10940_v13 = vpop.f32.mrf.mxu1 }
 0x8ff   : > { %4340 = vmatpush1.msra.mxu0 %v13617_v44  ;;  %v3084_v46 = vsel %vm1081_vm4, %v2788_v28, %v10882_v41  ;;  %4192 = vmatprep.mubr.f32.mxu0 %v13618_v16  ;;  %v10931_v52 = vpop.f32.mrf.mxu0  ;;  %v10944_v44 = vld [vmem:[#allocation7 + $0xf8] sm:$0xff] }
 0x900   : > { %4341 = vmatprep.subr.mxu0 %v13612_v1  ;;  %3936 = vmatprep.subr.mxu1 %v3084_v46  ;;  %v13635_v16 = vld [vmem:[#allocation257_spill] sm:$0xff] }
 0x901   : > { %4342 = vmatpush1.msra.mxu0 %v13619_v31  ;;  %v10946_v46 = vpop.f32.mrf.mxu0  ;;  %v10950_v31 = vld [vmem:[#allocation7 + $0xf0] sm:$0xff] }
 0x902   : > { %4343 = vmatprep.subr.mxu0 %v13612_v1  ;;  %v2786_v0 = vpop.permute.xlu1 %2785  ;;  %4193 = vmatmul.mubr.f32.gmra.mxu0 %v13620_v63  ;;  %v10957_v63 = vpop.f32.mrf.mxu1 }
 0x903   : > { %v3083_v53 = vsel %vm1081_vm4, %v2786_v0, %v2788_v28  ;;  %4344 = vmatpush1.msra.mxu0 %v13621_v27  ;;  %4197 = vmatprep.mubr.f32.mxu0 %v13622_v11  ;;  %v13633_v28 = vld [vmem:[#allocation195_spill] sm:$0xff]  ;;  %v13636_v0 = vld [vmem:[#allocation205_spill] sm:$0xff]  ;;  %vm4928_vm4 = vcmask 728064  }
 0x904   : > { %4345 = vmatprep.subr.mxu0 %v13612_v1  ;;  %3937 = vmatpush2.msra.mxu1 %v3083_v53  ;;  %v10961_v53 = vpop.f32.mrf.mxu0  ;;  %v10965_v27 = vld [vmem:[#allocation7 + $0x138] sm:$0xff] }
 0x905   : > { %4346 = vmatpush1.msra.mxu0 %v13623_v62  ;;  %3939 = vmatmul.mubr.f32.vlgmr.msra.gmra.mxu1 %v10895_v55  ;;  %v13639_v62 = vld [vmem:[#allocation191_spill] sm:$0xff] }
 0x906   : > { %5443 = vmatprep.subr.mxu1 %v13624_v29  ;;  %4347 = vmatprep.subr.mxu0 %v13612_v1  ;;  %v13640_v29 = vld [vmem:[#allocation49_spill] sm:$0xff] }
 0x907   : > { %5444 = vmatpush3.msra.mxu1 %v13625_v42  ;;  %4348 = vmatpush1.msra.mxu0 %v13626_v56  ;;  %v10971_v42 = vld [vmem:[#allocation7 + $0x130] sm:$0xff]  ;;  %v13641_v56 = vld [vmem:[#allocation210_spill] sm:$0xff] }
 0x908   : > { %5445 = vmatprep.subr.mxu1 %v13627_v48  ;;  %4349 = vmatprep.subr.mxu0 %v13612_v1  ;;  %v13642_v48 = vld [vmem:[#allocation359_spill] sm:$0xff] }
 0x909   : > { %5408 = vmatprep.mubr.msk.f32.mxu1 %vm3489_vm11, %v10908_v15  ;;  %5446 = vmatpush3.msra.mxu1 %v13628_v26  ;;  %v10980_v26 = vpop.f32.mrf.mxu0 }
 0x90a   : > { %4350 = vmatpush1.msra.mxu0 %v13629_v2  ;;  %3945 = vmatmul.mubr.f32.gmra.mxu1 %v10912_v49  ;;  %13643 = vst [vmem:[#allocation128_spill] sm:$0xff] %v10980_v26  ;;  %v13644_v2 = vld [vmem:[#allocation209_spill] sm:$0xff]  ;;  %v13657_v26 = vld [vmem:[#allocation24_spill] sm:$0xff] }
 0x90b   : > { %5447 = vmatprep.subr.mxu1 %v13630_v45  ;;  %4351 = vmatprep.subr.mxu0 %v13612_v1 }
 0x90c   : > { %5448 = vmatpush3.msra.mxu1 %v13631_v37  ;;  %4352 = vmatpush1.msra.mxu0 %v10566_v33  ;;  %v13634_v33 = vld [vmem:[#allocation167_spill] sm:$0xff]  ;;  %v13645_v37 = vld [vmem:[#allocation138_spill] sm:$0xff] }
 0x90d   : > { %5449 = vmatprep.subr.mxu1 %v13632_v39  ;;  %4353 = vmatprep.subr.mxu0 %v13612_v1  ;;  %v10988_v39 = vld [vmem:[#allocation7 + $0x178] sm:$0xff] }
 0x90e   : > { %5409 = vmatprep.mubr.msk.f32.mxu1 %vm3489_vm11, %v10925_v14  ;;  %5450 = vmatpush3.msra.mxu1 %v13633_v28  ;;  %v10967_v11 = vpop.f32.mrf.mxu1  ;;  %v13646_v28 = vld [vmem:[#allocation362_spill] sm:$0xff] }
 0x90f   : > { %4354 = vmatpush1.msra.mxu0 %v10616_v34  ;;  %3951 = vmatmul.mubr.f32.gmra.mxu1 %v10929_v54  ;;  %v13637_v34 = vld [vmem:[#allocation361_spill] sm:$0xff] }
 0x910   : > { %5451 = vmatprep.subr.mxu1 %v13634_v33  ;;  %4359 = vmatprep.subr.mxu0 %v13612_v1  ;;  %v10992_v33 = vld [vmem:[#allocation7 + $0x170] sm:$0xff] }
 0x911   : > { %5452 = vmatpush3.msra.mxu1 %v13635_v16  ;;  %4360 = vmatpush2.msra.mxu0 %v10646_v58  ;;  %v13638_v58 = vld [vmem:[#allocation160_spill] sm:$0xff] }
 0x912   : > { %5453 = vmatprep.subr.mxu1 %v13636_v0  ;;  %4361 = vmatprep.subr.mxu0 %v13612_v1  ;;  %v13647_v0 = vld [vmem:[#allocation15_spill] sm:$0xff] }
 0x913   : > { %5410 = vmatprep.mubr.msk.f32.mxu1 %vm3489_vm11, %v10944_v44  ;;  %5454 = vmatpush3.msra.mxu1 %v13637_v34  ;;  %v3607_v34 = vpop.f32.mrf.mxu0 }
 0x914   : > { %4362 = vmatpush2.msra.mxu0 %v10672_v22  ;;  %3957 = vmatmul.mubr.f32.gmra.mxu1 %v10950_v31  ;;  %v10975_v22 = vpop.f32.mrf.mxu1 }
 0x915   : > { %5455 = vmatprep.subr.mxu1 %v13638_v58  ;;  %4363 = vmatprep.subr.mxu0 %v13612_v1  ;;  %v13648_v58 = vld [vmem:[#allocation117_spill] sm:$0xff] }
 0x916   : > { %5456 = vmatpush3.msra.mxu1 %v13639_v62  ;;  %4364 = vmatpush2.msra.mxu0 %v13640_v29  ;;  %v10984_v45 = vpop.f32.mrf.mxu1  ;;  %v11007_v29 = vld [vmem:[#allocation7 + $0x1b8] sm:$0xff] }
 0x917   : > { %5457 = vmatprep.subr.mxu1 %v13641_v56  ;;  %4365 = vmatprep.subr.mxu0 %v13612_v1  ;;  %v13650_v56 = vld [vmem:[#allocation360_spill] sm:$0xff] }
 0x918   : > { %5411 = vmatprep.mubr.msk.f32.mxu1 %vm3489_vm11, %v10965_v27  ;;  %5458 = vmatpush3.msra.mxu1 %v13642_v48  ;;  %v10994_v16 = vpop.f32.mrf.mxu1  ;;  %v11011_v48 = vld [vmem:[#allocation7 + $0x1b0] sm:$0xff] }
 0x919   : > { %4366 = vmatpush2.msra.mxu0 %v13644_v2  ;;  %3963 = vmatmul.mubr.f32.gmra.mxu1 %v10971_v42  ;;  %v3609_v2 = vpop.f32.mrf.mxu0 }
 0x91a   : > { %5459 = vmatprep.subr.mxu1 %v13645_v37  ;;  %4367 = vmatprep.subr.mxu0 %v13612_v1  ;;  %v11003_v62 = vpop.f32.mrf.mxu1 }
 0x91b   : > { %5460 = vmatpush3.msra.mxu1 %v13646_v28  ;;  %4368 = vmatpush2.msra.mxu0 %v10710_v9  ;;  %v13649_v9 = vld [vmem:[#allocation187_spill] sm:$0xff]  ;;  %v13653_v28 = vld [vmem:[#allocation29_spill] sm:$0xff] }
 0x91c   : > { %5461 = vmatprep.subr.mxu1 %v13647_v0  ;;  %4369 = vmatprep.subr.mxu0 %v13612_v1  ;;  %v11013_v37 = vpop.f32.mrf.mxu1 }
 0x91d   : > { %5412 = vmatprep.mubr.msk.f32.mxu1 %vm3489_vm11, %v10988_v39  ;;  %5462 = vmatpush3.msra.mxu1 %v13648_v58  ;;  %13651 = vst [vmem:[#allocation44_spill] sm:$0xff] %v11013_v37  ;;  %v13654_v58 = vld [vmem:[#allocation80_spill] sm:$0xff]  ;;  %v13656_v37 = vld [vmem:[#allocation185_spill] sm:$0xff] }
 0x91e   : > { %4370 = vmatpush2.msra.mxu0 %v10720_v60  ;;  %3969 = vmatmul.mubr.f32.gmra.mxu1 %v10992_v33  ;;  %v13652_v60 = vld [vmem:[#allocation79_spill] sm:$0xff] }
 0x91f   : > { %5463 = vmatprep.subr.mxu1 %v13649_v9  ;;  %4371 = vmatprep.subr.mxu0 %v13612_v1  ;;  %v3726_v0 = vpop.f32.mrf.mxu1  ;;  %v11026_v9 = vld [vmem:[#allocation7 + $0x1f8] sm:$0xff] }
 0x920   : > { %5464 = vmatpush3.msra.mxu1 %v13650_v56  ;;  %4372 = vmatpush2.msra.mxu0 %v10773_v50  ;;  %v11022_v50 = vadd.f32 %v3726_v0, %v3607_v34  ;;  %v11028_v56 = vpop.f32.mrf.mxu0  ;;  %v13659_v0 = vld [vmem:[#allocation200_spill] sm:$0xff] }
 0x921   : > { %5465 = vmatprep.subr.mxu1 %v13652_v60  ;;  %4373 = vmatprep.subr.mxu0 %v13612_v1  ;;  %13655 = vst [vmem:[#allocation254_spill] sm:$0xff] %v11028_v56  ;;  %v3728_v60 = vpop.f32.mrf.mxu1  ;;  %v5759_v56 = vld [vmem:[#allocation7 + $0x40] sm:$0xff] }
 0x922   : > { %5413 = vmatprep.mubr.msk.f32.mxu1 %vm3489_vm11, %v11007_v29  ;;  %5466 = vmatpush3.msra.mxu1 %v13653_v28  ;;  %v11032_v28 = vld [vmem:[#allocation7 + $0x1f0] sm:$0xff] }
 0x923   : > { %4374 = vmatpush2.msra.mxu0 %v10733_v18  ;;  %3975 = vmatmul.mubr.f32.gmra.mxu1 %v11011_v48  ;;  %v11034_v18 = vadd.f32 %v3728_v60, %v3609_v2  ;;  %v11038_v34 = vpop.f32.mrf.mxu1  ;;  %v13661_v60 = vld [vmem:[#allocation165_spill] sm:$0xff] }
 0x924   : > { %5467 = vmatprep.subr.mxu1 %v13654_v58  ;;  %4375 = vmatprep.subr.mxu0 %v13612_v1  ;;  %13658 = vst [vmem:[#allocation240_spill] sm:$0xff] %v11038_v34  ;;  %v13660_v58 = vld [vmem:[#allocation153_spill] sm:$0xff]  ;;  %v11053_v34 = vld [vmem:[#allocation7 + $0x230] sm:$0xff] }
 0x925   : > { %5468 = vmatpush3.msra.mxu1 %v13656_v37  ;;  %4376 = vmatpush2.msra.mxu0 %v10813_v47  ;;  %v3615_v47 = vpop.f32.mrf.mxu0  ;;  %v3734_v37 = vpop.f32.mrf.mxu1 }
 0x926   : > { %5469 = vmatprep.subr.mxu1 %v13657_v26  ;;  %4377 = vmatprep.subr.mxu0 %v13612_v1  ;;  %v11047_v26 = vld [vmem:[#allocation7 + $0x238] sm:$0xff]  ;;  %v11049_v2 = vadd.f32 %v3734_v37, %v3615_v47  ;;  %v13664_v47 = vld [vmem:[#allocation112_spill] sm:$0xff] }
 0x927   : > { %5414 = vmatprep.mubr.msk.f32.mxu1 %vm3489_vm11, %v11026_v9  ;;  %5470 = vmatpush3.msra.mxu1 %v13659_v0  ;;  %v13662_v0 = vld [vmem:[#allocation233_spill] sm:$0xff] }
 0x928   : > { %4378 = vmatpush2.msra.mxu0 %v10788_v61  ;;  %3981 = vmatmul.mubr.f32.gmra.mxu1 %v11032_v28  ;;  %v13663_v61 = vld [vmem:[#allocation178_spill] sm:$0xff]  ;;  %v13665_v37 = vld [vmem:[#allocation45_spill] sm:$0xff] }
 0x929   : > { %5471 = vmatprep.subr.mxu1 %v13660_v58  ;;  %4379 = vmatprep.subr.mxu0 %v13612_v1  ;;  %v5757_v58 = vld [vmem:[#allocation7] sm:$0xff] }
 0x92a   : > { %5472 = vmatpush3.msra.mxu1 %v13661_v60  ;;  %4380 = vmatpush2.msra.mxu0 %v10845_v23  ;;  %v5756_v23 = vld [vmem:[#allocation7 + $0x8] sm:$0xff] }
 0x92b   : > { %5473 = vmatprep.subr.mxu1 %v13662_v0  ;;  %4381 = vmatprep.subr.mxu0 %v13612_v1  ;;  %v13666_v60 = vld [vmem:[#allocation143_spill] sm:$0xff] }
 0x92c   : > { %5415 = vmatprep.mubr.msk.f32.mxu1 %vm3489_vm11, %v11047_v26  ;;  %5474 = vmatpush3.msra.mxu1 %v13663_v61  ;;  %v13667_v0 = vld [vmem:[#allocation107_spill] sm:$0xff]  ;;  %v13668_v61 = vld [vmem:[#allocation89_spill] sm:$0xff] }
 0x92d   : > { %4382 = vmatpush2.msra.mxu0 %v10843_v10  ;;  %3987 = vmatmul.mubr.f32.gmra.mxu1 %v11053_v34  ;;  %v5758_v10 = vld [vmem:[#allocation7 + $0x48] sm:$0xff] }
 0x92e   : > { %5561 = vmatprep.subr.mxu1 %v13664_v47  ;;  %4383 = vmatprep.subr.mxu0 %v13612_v1  ;;  %v13669_v47 = vld [vmem:[#allocation132_spill] sm:$0xff] }
 0x92f   : > { %4384 = vmatpush2.msra.mxu0 %v10870_v57  ;;  %4057 = vmatprep.mubr.f32.mxu1 %v5756_v23  ;;  %v13670_v57 = vld [vmem:[#allocation261_spill] sm:$0xff] }
 0x930   : > { %4385 = vmatprep.subr.mxu0 %v13612_v1  ;;  %4198 = vmatmul.mubr.f32.gmra.mxu0 %v13665_v37  ;;  %v13671_v23 = vld [vmem:[#allocation217_spill] sm:$0xff] }
 0x931   : > { %4386 = vmatpush2.msra.mxu0 %v10882_v41  ;;  %4058 = vmatmul.mubr.f32.vlgmr.msra.gmra.mxu1 %v5757_v58  ;;  %v13672_v37 = vld [vmem:[#allocation197_spill] sm:$0xff]  ;;  %v5760_v41 = vld [vmem:[#allocation7 + $0x88] sm:$0xff]  ;;  %v13673_v58 = vld [vmem:[#allocation170_spill] sm:$0xff] }
 0x932   : > { %5562 = vmatpush3.msra.mxu1 %v13666_v60  ;;  %4062 = vmatprep.mubr.f32.mxu1 %v5758_v10  ;;  %v13674_v60 = vld [vmem:[#allocation87_spill] sm:$0xff]  ;;  %v13675_v10 = vld [vmem:[#allocation33_spill] sm:$0xff] }
 0x933   : > { %5563 = vmatprep.subr.mxu1 %v13667_v0  ;;  %4202 = vmatprep.mubr.f32.mxu0 %v13668_v61  ;;  %v13676_v0 = vld [vmem:[#allocation225_spill] sm:$0xff]  ;;  %v13677_v61 = vld [vmem:[#allocation192_spill] sm:$0xff] }
 0x934   : > { %5564 = vmatpush3.msra.mxu1 %v13669_v47  ;;  %4203 = vmatmul.mubr.f32.gmra.mxu0 %v13670_v57  ;;  %v5761_v47 = vld [vmem:[#allocation7 + $0x80] sm:$0xff] }
 0x935   : > { %5565 = vmatprep.subr.mxu1 %v13671_v23  ;;  %4063 = vmatmul.mubr.f32.gmra.mxu1 %v5759_v56  ;;  %v13678_v57 = vld [vmem:[#allocation114_spill] sm:$0xff]  ;;  %v5762_v23 = vld [vmem:[#allocation7 + $0xc8] sm:$0xff] }
 0x936   : > { %5566 = vmatpush3.msra.mxu1 %v13672_v37  ;;  %4067 = vmatprep.mubr.f32.mxu1 %v5760_v41  ;;  %v13679_v56 = vld [vmem:[#allocation250_spill] sm:$0xff] }
 0x937   : > { %5567 = vmatprep.subr.mxu1 %v13673_v58  ;;  %4207 = vmatprep.mubr.f32.mxu0 %v13674_v60  ;;  %v13680_v37 = vld [vmem:[#allocation102_spill] sm:$0xff] }
 0x938   : > { %5568 = vmatpush3.msra.mxu1 %v13675_v10  ;;  %4208 = vmatmul.mubr.f32.gmra.mxu0 %v13676_v0  ;;  %v13681_v41 = vld [vmem:[#allocation34_spill] sm:$0xff]  ;;  %v5764_v0 = vld [vmem:[#allocation7 + $0x108] sm:$0xff] }
 0x939   : > { %5569 = vmatprep.subr.mxu1 %v13677_v61  ;;  %4068 = vmatmul.mubr.f32.gmra.mxu1 %v5761_v47  ;;  %v13682_v58 = vld [vmem:[#allocation46_spill] sm:$0xff]  ;;  %v13684_v61 = vld [vmem:[#allocation41_spill] sm:$0xff] }
 0x93a   : > { %5570 = vmatpush3.msra.mxu1 %v13678_v57  ;;  %4072 = vmatprep.mubr.f32.mxu1 %v5762_v23  ;;  %v5763_v60 = vld [vmem:[#allocation7 + $0xc0] sm:$0xff]  ;;  %v13685_v47 = vld [vmem:[#allocation177_spill] sm:$0xff]  ;;  %v13686_v57 = vld [vmem:[#allocation228_spill] sm:$0xff] }
 0x93b   : > { %5571 = vmatprep.subr.mxu1 %v13679_v56  ;;  %5416 = vmatprep.mubr.msk.f32.mxu0 %vm3489_vm11, %v13680_v37  ;;  %v13683_v10 = vld [vmem:[#allocation202_spill] sm:$0xff]  ;;  %v13687_v23 = vld [vmem:[#allocation231_spill] sm:$0xff] }
 0x93c   : > { %5572 = vmatpush3.msra.mxu1 %v13681_v41  ;;  %4388 = vmatmul.mubr.f32.vlgmr.msra.gmra.mxu0 %v10895_v55  ;;  %v5765_v55 = vld [vmem:[#allocation7 + $0x100] sm:$0xff]  ;;  %v5766_v56 = vld [vmem:[#allocation7 + $0x148] sm:$0xff]  ;;  %v13689_v41 = vld [vmem:[#allocation108_spill] sm:$0xff] }
 0x93d   : > { %5573 = vmatprep.subr.mxu1 %v13682_v58  ;;  %4073 = vmatmul.mubr.f32.gmra.mxu1 %v5763_v60  ;;  %v13688_v37 = vld [vmem:[#allocation90_spill] sm:$0xff]  ;;  %v13691_v58 = vld [vmem:[#allocation163_spill] sm:$0xff] }
 0x93e   : > { %5574 = vmatpush3.msra.mxu1 %v13683_v10  ;;  %4077 = vmatprep.mubr.f32.mxu1 %v5764_v0  ;;  %v5768_v60 = vld [vmem:[#allocation7 + $0x188] sm:$0xff]  ;;  %v13692_v10 = vld [vmem:[#allocation101_spill] sm:$0xff] }
 0x93f   : > { %5575 = vmatprep.subr.mxu1 %v13684_v61  ;;  %5417 = vmatprep.mubr.msk.f32.mxu0 %vm3489_vm11, %v10908_v15  ;;  %v13690_v15 = vld [vmem:[#allocation256_spill] sm:$0xff]  ;;  %v13693_v0 = vld [vmem:[#allocation159_spill] sm:$0xff] }
 0x940   : > { %5576 = vmatpush3.msra.mxu1 %v13685_v47  ;;  %4393 = vmatmul.mubr.f32.gmra.mxu0 %v10912_v49  ;;  %v5767_v49 = vld [vmem:[#allocation7 + $0x140] sm:$0xff]  ;;  %v13695_v61 = vld [vmem:[#allocation180_spill] sm:$0xff]  ;;  %v5770_v47 = vld [vmem:[#allocation7 + $0x1c8] sm:$0xff] }
 0x941   : > { %5577 = vmatprep.subr.mxu1 %v13686_v57  ;;  %4078 = vmatmul.mubr.f32.gmra.mxu1 %v5765_v55  ;;  %v13696_v57 = vld [vmem:[#allocation267_spill] sm:$0xff]  ;;  %v13697_v55 = vld [vmem:[#allocation164_spill] sm:$0xff] }
 0x942   : > { %5578 = vmatpush3.msra.mxu1 %v13687_v23  ;;  %4082 = vmatprep.mubr.f32.mxu1 %v5766_v56  ;;  %v13699_v23 = vld [vmem:[#allocation199_spill] sm:$0xff] }
 0x943   : > { %5579 = vmatprep.subr.mxu1 %v13688_v37  ;;  %5418 = vmatprep.mubr.msk.f32.mxu0 %vm3489_vm11, %v10925_v14  ;;  %v13694_v14 = vld [vmem:[#allocation246_spill] sm:$0xff]  ;;  %v5772_v56 = vld [vmem:[#allocation7 + $0x208] sm:$0xff] }
 0x944   : > { %5580 = vmatpush3.msra.mxu1 %v13689_v41  ;;  %4398 = vmatmul.mubr.f32.gmra.mxu0 %v10929_v54  ;;  %v5769_v54 = vld [vmem:[#allocation7 + $0x180] sm:$0xff]  ;;  %v11189_v41 = vpop.f32.mrf.mxu1 }
 0x945   : > { %5581 = vmatprep.subr.mxu1 %v13690_v15  ;;  %4083 = vmatmul.mubr.f32.gmra.mxu1 %v5767_v49  ;;  %v13700_v37 = vld [vmem:[#allocation146_spill] sm:$0xff] }
 0x946   : > { %5582 = vmatpush3.msra.mxu1 %v13691_v58  ;;  %4087 = vmatprep.mubr.f32.mxu1 %v5768_v60  ;;  %v11195_v49 = vpop.f32.mrf.mxu1 }
 0x947   : > { %5583 = vmatprep.subr.mxu1 %v13692_v10  ;;  %5419 = vmatprep.mubr.msk.f32.mxu0 %vm3489_vm11, %v10944_v44  ;;  %v13698_v44 = vld [vmem:[#allocation99_spill] sm:$0xff] }
 0x948   : > { %5584 = vmatpush3.msra.mxu1 %v13693_v0  ;;  %4403 = vmatmul.mubr.f32.gmra.mxu0 %v10950_v31  ;;  %v5771_v31 = vld [vmem:[#allocation7 + $0x1c0] sm:$0xff]  ;;  %v11201_v10 = vpop.f32.mrf.mxu1 }
 0x949   : > { %5585 = vmatprep.subr.mxu1 %v13694_v14  ;;  %4088 = vmatmul.mubr.f32.gmra.mxu1 %v5769_v54 }
 0x94a   : > { %5586 = vmatpush3.msra.mxu1 %v13695_v61  ;;  %4092 = vmatprep.mubr.f32.mxu1 %v5770_v47  ;;  %v11207_v54 = vpop.f32.mrf.mxu1 }
 0x94b   : > { %5587 = vmatprep.subr.mxu1 %v13696_v57  ;;  %5420 = vmatprep.mubr.msk.f32.mxu0 %vm3489_vm11, %v10965_v27  ;;  %v5773_v27 = vld [vmem:[#allocation7 + $0x200] sm:$0xff] }
 0x94c   : > { %5588 = vmatpush3.msra.mxu1 %v13697_v55  ;;  %4408 = vmatmul.mubr.f32.gmra.mxu0 %v10971_v42  ;;  %v5774_v42 = vld [vmem:[#allocation7 + $0x28] sm:$0xff]  ;;  %v11211_v57 = vpop.f32.mrf.mxu1 }
 0x94d   : > { %5589 = vmatprep.subr.mxu1 %v13698_v44  ;;  %4093 = vmatmul.mubr.f32.gmra.mxu1 %v5771_v31  ;;  %v3703_v31 = vadd.f32 %v10940_v13, %v10879_v21 }
 0x94e   : > { %5590 = vmatpush3.msra.mxu1 %v13699_v23  ;;  %4097 = vmatprep.mubr.f32.mxu1 %v5772_v56  ;;  %v11217_v23 = vpop.f32.mrf.mxu1  ;;  %v3705_v56 = vadd.f32 %v10957_v63, %v10891_v4  ;;  %v3715_v4 = vadd.f32 %v10984_v45, %v10931_v52 }
 0x94f   : > { %5591 = vmatprep.subr.mxu1 %v10716_v43  ;;  %5421 = vmatprep.mubr.msk.f32.mxu0 %vm3489_vm11, %v10988_v39  ;;  %v11147_v43 = vpop.f32.mrf.mxu0 }
 0x950   : > { %5592 = vmatpush3.msra.mxu1 %v13700_v37  ;;  %4413 = vmatmul.mubr.f32.gmra.mxu0 %v10992_v33 }
 0x951   : > { %4098 = vmatmul.mubr.f32.gmra.mxu1 %v5773_v27  ;;  %5422 = vmatprep.mubr.msk.f32.mxu0 %vm3489_vm11, %v11007_v29  ;;  %v3709_v27 = vadd.f32 %v10967_v11, %v10902_v20 }
 0x952   : > { %4277 = vmatprep.mubr.f32.mxu1 %v5774_v42  ;;  %5162 = vmatprep.subr.mxu0 %v13612_v1 }
 0x954   : > { %4418 = vmatmul.mubr.f32.gmra.mxu0 %v11011_v48 }
 0x955   : > { %4278 = vmatmul.mubr.f32.vlgmr.msra.gmra.mxu1 %v10731_v36  ;;  %5423 = vmatprep.mubr.msk.f32.mxu0 %vm3489_vm11, %v11026_v9  ;;  %v11150_v36 = vpop.f32.mrf.mxu0 }
 0x956   : > { %4282 = vmatprep.mubr.f32.mxu1 %v10735_v5 }
 0x957   : > { %v11152_v5 = vpop.f32.mrf.mxu0 }
 0x958   : > { %4423 = vmatmul.mubr.f32.gmra.mxu0 %v11032_v28 }
 0x959   : > { %4283 = vmatmul.mubr.f32.gmra.mxu1 %v10742_v7  ;;  %5424 = vmatprep.mubr.msk.f32.mxu0 %vm3489_vm11, %v11047_v26  ;;  %v11154_v7 = vpop.f32.mrf.mxu0 }
 0x95a   : > { %4287 = vmatprep.mubr.f32.mxu1 %v10745_v12 }
 0x95b   : > { %v11156_v12 = vpop.f32.mrf.mxu0 }
 0x95c   : > { %4428 = vmatmul.mubr.f32.gmra.mxu0 %v11053_v34 }
 0x95d   : > { %4288 = vmatmul.mubr.f32.gmra.mxu1 %v10756_v59  ;;  %v11158_v59 = vpop.f32.mrf.mxu0 }
 0x95e   : > { %4292 = vmatprep.mubr.f32.mxu1 %v10759_v32 }
 0x961   : > { %4293 = vmatmul.mubr.f32.gmra.mxu1 %v10767_v40 }
 0x962   : > { %4297 = vmatprep.mubr.f32.mxu1 %v10770_v35 }
 0x965   : > { %4298 = vmatmul.mubr.f32.gmra.mxu1 %v10781_v3 }
 0x966   : > { %4302 = vmatprep.mubr.f32.mxu1 %v10785_v38 }
 0x969   : > { %4303 = vmatmul.mubr.f32.gmra.mxu1 %v10796_v17 }
 0x96a   : > { %4307 = vmatprep.mubr.f32.mxu1 %v10799_v6 }
 0x96d   : > { %4308 = vmatmul.mubr.f32.gmra.mxu1 %v10807_v30 }
 0x96e   : > { %4312 = vmatprep.mubr.f32.mxu1 %v10810_v19 }
 0x971   : > { %4313 = vmatmul.mubr.f32.gmra.mxu1 %v10822_v25 }
 0x972   : > { %4317 = vmatprep.mubr.f32.mxu1 %v10827_v51 }
 0x975   : > { %4318 = vmatmul.mubr.f32.gmra.mxu1 %v10836_v8 }
 0x98a   : > { %v3821_v32 = vpop.f32.mrf.mxu0 }
 0x98b   : > { %v3822_v37 = vadd.f32 %v3821_v32, %v3703_v31 }
 0x98c   : > { %v3823_v40 = vpop.f32.mrf.mxu0 }
 0x98e   : > { %v3827_v35 = vpop.f32.mrf.mxu0 }
 0x98f   : > { %v3828_v13 = vadd.f32 %v3827_v35, %v3709_v27  ;;  %v3721_v35 = vadd.f32 %v11003_v62, %v10961_v53  ;;  %v13702_v27 = vld [vmem:[#allocation44_spill] sm:$0xff] }
 0x990   : > { %v3829_v3 = vpop.f32.mrf.mxu0 }
 0x992   : > { %v3833_v38 = vpop.f32.mrf.mxu0 }
 0x994   : > { %v3835_v17 = vpop.f32.mrf.mxu0 }
 0x996   : > { %v11160_v6 = vpop.f32.mrf.mxu0 }
 0x998   : > { %v11162_v30 = vpop.f32.mrf.mxu0 }
 0x99a   : > { %v3845_v19 = vpop.f32.mrf.mxu0 }
 0x99b   : > { %v11165_v25 = vadd.f32 %v3845_v19, %v11022_v50  ;;  %v3824_v19 = vadd.f32 %v3823_v40, %v3705_v56  ;;  %v3717_v40 = vadd.f32 %v10994_v16, %v10946_v46  ;;  %v3840_v16 = vadd.f32 %v11160_v6, %v3721_v35  ;;  %v13704_v6 = vld [vmem:[#allocation240_spill] sm:$0xff] }
 0x99c   : > { %v3847_v51 = vpop.f32.mrf.mxu0 }
 0x99d   : > { %v11168_v8 = vadd.f32 %v3847_v51, %v11034_v18  ;;  %v3836_v45 = vadd.f32 %v3835_v17, %v3717_v40  ;;  %v11247_v17 = vld [vmem:[#allocation4 + $0x8] sm:$0xff] }
 0x99e   : > { %v11170_v39 = vpop.f32.mrf.mxu0 }
 0x9a0   : > { %v3853_v33 = vpop.f32.mrf.mxu0 }
 0x9a1   : > { %v11173_v29 = vadd.f32 %v3853_v33, %v11049_v2  ;;  %v3711_v33 = vadd.f32 %v10975_v22, %v10916_v24  ;;  %v3834_v22 = vadd.f32 %v3833_v38, %v3715_v4  ;;  %v13703_v4 = vld [vmem:[#allocation254_spill] sm:$0xff] }
 0x9a2   : > { %v11175_v48 = vpop.f32.mrf.mxu0 }
 0x9a3   : > { %v3830_v32 = vadd.f32 %v3829_v3, %v3711_v33 }
 0x9a4   : > { %v11177_v9 = vpop.f32.mrf.mxu0 }
 0x9a6   : > { %v11179_v28 = vpop.f32.mrf.mxu0 }
 0x9a8   : > { %v11181_v34 = vpop.f32.mrf.mxu0 }
 0x9aa   : > { %v11183_v50 = vpop.f32.mrf.mxu0 }
 0x9ac   : > { %v11185_v26 = vpop.f32.mrf.mxu0 }
 0x9ae   : > { %v11187_v18 = vpop.f32.mrf.mxu0 }
 0x9b0   : > { %v11191_v15 = vpop.f32.mrf.mxu0 }
 0x9b2   : > { %v11193_v2 = vpop.f32.mrf.mxu0 }
 0x9b4   : > { %v11197_v58 = vpop.f32.mrf.mxu0 }
 0x9b6   : > { %v11199_v60 = vpop.f32.mrf.mxu0 }
 0x9b8   : > { %v11203_v0 = vpop.f32.mrf.mxu0 }
 0x9ba   : > { %v11205_v14 = vpop.f32.mrf.mxu0 }
 0x9bc   : > { %v11209_v61 = vpop.f32.mrf.mxu0 }
 0x9be   : > { %v5546_v47 = vpop.f32.mrf.mxu0 }
 0x9c0   : > { %v5547_v55 = vpop.f32.mrf.mxu0 }
 0x9c1   : > { %v11213_v44 = vadd.f32 %v5547_v55, %v5546_v47  ;;  %v4433_v55 = vlaneseq }
 0x9c3   : > { %v4434_v11 = vshrl.u32 %v4433_v55, 7 }
 0x9c5   : > { %v3940_v42 = vpop.f32.mrf.mxu1  ;;  %v11235_v52 = vsub.s32 0, %v4434_v11 }
 0x9c6   : > { %v3941_v51 = vadd.f32 %v3940_v42, %v3822_v37  ;;  %v13701_v37 = vld [vmem:[#allocation128_spill] sm:$0xff] }
 0x9c7   : > { %v3942_v47 = vpop.f32.mrf.mxu1  ;;  %v3723_v42 = vadd.f32 %v13702_v27, %v13701_v37 }
 0x9c8   : > { %5249 = vst [vmem:[%s6550_s12 + $0x30] sm:$0xff] %v3941_v51  ;;  %v3943_v21 = vadd.f32 %v3942_v47, %v3824_v19  ;;  %v11241_v51 = vld [vmem:[#allocation4] sm:$0xff]  ;;  %v4440_v47 = vrot.slane %v11247_v17, %v11235_v52 }
 0x9c9   : > { %v4436_v38 = vrot.slane %v11241_v51, %v11235_v52  ;;  %v3842_v62 = vadd.f32 %v11162_v30, %v3723_v42 }
 0x9ca   : > { %5250 = vst [vmem:[%s6550_s12 + $0x38] sm:$0xff] %v3943_v21  ;;  %v3946_v63 = vpop.f32.mrf.mxu1 }
 0x9cb   : > { %v3947_v20 = vadd.f32 %v3946_v63, %v3828_v13  ;;  %v3733_v63 = vadd.f32 %v13704_v6, %v13703_v4 }
 0x9cc   : > { %v3948_v31 = vpop.f32.mrf.mxu1 }
 0x9cd   : > { %5252 = vst [vmem:[%s6550_s12 + $0x48] sm:$0xff] %v3947_v20  ;;  %v3949_v24 = vadd.f32 %v3948_v31, %v3830_v32 }
 0x9cf   : > { %5253 = vst [vmem:[%s6550_s12 + $0x50] sm:$0xff] %v3949_v24  ;;  %v3952_v56 = vpop.f32.mrf.mxu1  ;;  %v3852_v24 = vadd.f32 %v11170_v39, %v3733_v63  ;;  %v3745_v39 = vadd.f32 %v11201_v10, %v11152_v5  ;;  %v3751_v5 = vadd.f32 %v11211_v57, %v11156_v12 }
 0x9d0   : > { %v3953_v3 = vadd.f32 %v3952_v56, %v3834_v22  ;;  %v3739_v22 = vadd.f32 %v11189_v41, %v11147_v43 }
 0x9d1   : > { %v3954_v19 = vpop.f32.mrf.mxu1 }
 0x9d2   : > { %5255 = vst [vmem:[%s6550_s12 + $0x60] sm:$0xff] %v3953_v3  ;;  %v3955_v46 = vadd.f32 %v3954_v19, %v3836_v45 }
 0x9d4   : > { %5256 = vst [vmem:[%s6550_s12 + $0x68] sm:$0xff] %v3955_v46  ;;  %v3958_v53 = vpop.f32.mrf.mxu1  ;;  %v11281_v46 = vpop.f32.mrf.mxu0 }
 0x9d5   : > { %v3959_v33 = vadd.f32 %v3958_v53, %v3840_v16 }
 0x9d6   : > { %v3960_v55 = vpop.f32.mrf.mxu1  ;;  %v11288_v53 = vpop.f32.mrf.mxu0 }
 0x9d7   : > { %v4445_v21 = vmul.f32 %v4436_v38, %v3959_v33  ;;  %v3961_v13 = vadd.f32 %v3960_v55, %v3842_v62 }
 0x9d9   : > { %v4446_v32 = vmul.f32 %v4440_v47, %v3961_v13  ;;  %v3964_v20 = vpop.f32.mrf.mxu1  ;;  %4463 = vrot.lane.b32.xlu0 %v4445_v21, %s5934_s15 }
 0x9da   : > { %v3965_v11 = vadd.f32 %v3964_v20, %v11165_v25  ;;  %v3741_v25 = vadd.f32 %v11195_v49, %v11150_v36  ;;  %v3747_v36 = vadd.f32 %v11207_v54, %v11154_v7  ;;  %v3753_v7 = vadd.f32 %v11217_v23, %v11158_v59 }
 0x9db   : > { %v3966_v40 = vpop.f32.mrf.mxu1  ;;  %4465 = vrot.lane.b32.xlu1 %v4446_v32, %s5934_s15 }
 0x9dc   : > { %v11256_v30 = vmul.f32 %v4436_v38, %v3965_v11  ;;  %v3967_v31 = vadd.f32 %v3966_v40, %v11168_v8  ;;  %v3858_v8 = vadd.f32 %v11175_v48, %v3739_v22  ;;  %v3860_v41 = vadd.f32 %v11177_v9, %v3741_v25 }
 0x9dd   : > { %v3864_v48 = vadd.f32 %v11179_v28, %v3745_v39  ;;  %v3866_v9 = vadd.f32 %v11181_v34, %v3747_v36  ;;  %v3870_v28 = vadd.f32 %v11183_v50, %v3751_v5  ;;  %v3872_v57 = vadd.f32 %v11185_v26, %v3753_v7 }
 0x9de   : > { %v11262_v35 = vmul.f32 %v4440_v47, %v3967_v31  ;;  %v3970_v56 = vpop.f32.mrf.mxu1 }
 0x9df   : > { %v3971_v45 = vadd.f32 %v3970_v56, %v3852_v24 }
 0x9e0   : > { %v3972_v3 = vpop.f32.mrf.mxu1 }
 0x9e1   : > { %v4451_v37 = vmul.f32 %v4436_v38, %v3971_v45  ;;  %v3973_v27 = vadd.f32 %v3972_v3, %v11173_v29 }
 0x9e3   : > { %v11270_v42 = vmul.f32 %v4440_v47, %v3973_v27  ;;  %v3976_v43 = vpop.f32.mrf.mxu1  ;;  %4475 = vrot.lane.b32.xlu1 %v4451_v37, %s5934_s15 }
 0x9e4   : > { %v3977_v19 = vadd.f32 %v3976_v43, %v3858_v8 }
 0x9e5   : > { %v3978_v49 = vpop.f32.mrf.mxu1 }
 0x9e6   : > { %5267 = vst [vmem:[%s6550_s12 + $0xc0] sm:$0xff] %v3977_v19  ;;  %v3979_v29 = vadd.f32 %v3978_v49, %v3860_v41 }
 0x9e8   : > { %5268 = vst [vmem:[%s6550_s12 + $0xc8] sm:$0xff] %v3979_v29  ;;  %v3982_v10 = vpop.f32.mrf.mxu1 }
 0x9e9   : > { %v3983_v16 = vadd.f32 %v3982_v10, %v3864_v48 }
 0x9ea   : > { %v3984_v54 = vpop.f32.mrf.mxu1 }
 0x9eb   : > { %5270 = vst [vmem:[%s6550_s12 + $0xd8] sm:$0xff] %v3983_v16  ;;  %v3985_v38 = vadd.f32 %v3984_v54, %v3866_v9 }
 0x9ed   : > { %5271 = vst [vmem:[%s6550_s12 + $0xe0] sm:$0xff] %v3985_v38  ;;  %v3988_v12 = vpop.f32.mrf.mxu1  ;;  %v5536_v38 = vadd.f32 %v11191_v15, %v11187_v18 }
 0x9ee   : > { %v3989_v62 = vadd.f32 %v3988_v12, %v3870_v28 }
 0x9ef   : > { %v3990_v33 = vpop.f32.mrf.mxu1 }
 0x9f0   : > { %5273 = vst [vmem:[%s6550_s12 + $0xf0] sm:$0xff] %v3989_v62  ;;  %v3991_v34 = vadd.f32 %v3990_v33, %v3872_v57  ;;  %v11293_v47 = vpop.f32.mrf.mxu0  ;;  %v5539_v33 = vadd.f32 %v11197_v58, %v11193_v2 }
 0x9f1   : > { %v5475_v55 = vpop.f32.mrf.mxu1 }
 0x9f2   : > { %5274 = vst [vmem:[%s6550_s12 + $0xf8] sm:$0xff] %v3991_v34  ;;  %v11296_v59 = vpop.f32.mrf.mxu0 }
 0x9f3   : > { %v5476_v23 = vpop.f32.mrf.mxu1 }
 0x9f4   : > { %v11298_v21 = vpop.f32.mrf.mxu0  ;;  %v5477_v16 = vadd.f32 %v5476_v23, %v5475_v55  ;;  %v5542_v23 = vadd.f32 %v11203_v0, %v11199_v60 }
 0x9f5   : > { %v5478_v50 = vpop.f32.mrf.mxu1 }
 0x9f6   : > { %v11300_v13 = vpop.f32.mrf.mxu0  ;;  %v4170_v57 = vadd.f32 %v5536_v38, %v5477_v16 }
 0x9f7   : > { %v5479_v4 = vpop.f32.mrf.mxu1 }
 0x9f8   : > { %v11302_v6 = vpop.f32.mrf.mxu0  ;;  %v5480_v62 = vadd.f32 %v5479_v4, %v5478_v50  ;;  %v5545_v4 = vadd.f32 %v11209_v61, %v11205_v14 }
 0x9f9   : > { %v5481_v26 = vpop.f32.mrf.mxu1 }
 0x9fa   : > { %v11304_v63 = vpop.f32.mrf.mxu0 }
 0x9fb   : > { %v5482_v32 = vpop.f32.mrf.mxu1 }
 0x9fc   : > { %v4389_v20 = vpop.f32.mrf.mxu0  ;;  %v5483_v18 = vadd.f32 %v5482_v32, %v5481_v26 }
 0x9fd   : > { %v5484_v11 = vpop.f32.mrf.mxu1 }
 0x9fe   : > { %v4391_v40 = vpop.f32.mrf.mxu0  ;;  %v4180_v38 = vadd.f32 %v5542_v23, %v5483_v18 }
 0x9ff   : > { %v5485_v31 = vpop.f32.mrf.mxu1 }
 0xa00   : > { %v4394_v24 = vpop.f32.mrf.mxu0  ;;  %v5486_v60 = vadd.f32 %v5485_v31, %v5484_v11 }
 0xa01   : > { %v11306_v22 = vpop.f32.mrf.mxu1 }
 0xa02   : > { %v4396_v56 = vpop.f32.mrf.mxu0 }
 0xa03   : > { %v5488_v45 = vpop.f32.mrf.mxu1 }
 0xa04   : > { %v4399_v25 = vpop.f32.mrf.mxu0  ;;  %v5489_v11 = vadd.f32 %v5488_v45, %v11306_v22 }
 0xa05   : > { %v5490_v3 = vpop.f32.mrf.mxu1 }
 0xa06   : > { %v4401_v37 = vpop.f32.mrf.mxu0  ;;  %v4190_v18 = vadd.f32 %v11213_v44, %v5489_v11 }
 0xa07   : > { %v5491_v27 = vpop.f32.mrf.mxu1 }
 0xa08   : > { %v4404_v8 = vpop.f32.mrf.mxu0  ;;  %v5492_v31 = vadd.f32 %v5491_v27, %v5490_v3  ;;  %v5557_v3 = vadd.f32 %v11300_v13, %v11298_v21 }
 0xa09   : > { %v11308_v39 = vpop.f32.mrf.mxu1 }
 0xa0a   : > { %v4406_v43 = vpop.f32.mrf.mxu0 }
 0xa0b   : > { %v11310_v41 = vpop.f32.mrf.mxu1 }
 0xa0c   : > { %v11312_v19 = vpop.f32.mrf.mxu0 }
 0xa0d   : > { %v11314_v36 = vpop.f32.mrf.mxu1 }
 0xa0e   : > { %v4411_v49 = vpop.f32.mrf.mxu0 }
 0xa0f   : > { %v11316_v29 = vpop.f32.mrf.mxu1  ;;  %v4175_v49 = vadd.f32 %v5539_v33, %v5480_v62 }
 0xa10   : > { %v11318_v48 = vpop.f32.mrf.mxu0 }
 0xa11   : > { %v11320_v5 = vpop.f32.mrf.mxu1 }
 0xa12   : > { %v4416_v10 = vpop.f32.mrf.mxu0 }
 0xa13   : > { %v11322_v9 = vpop.f32.mrf.mxu1 }
 0xa14   : > { %v11324_v7 = vpop.f32.mrf.mxu0  ;;  %v5501_v21 = vadd.f32 %v11322_v9, %v11320_v5 }
 0xa15   : > { %v5593_v54 = vpop.f32.mrf.mxu1 }
 0xa16   : > { %v4421_v28 = vpop.f32.mrf.mxu0 }
 0xa17   : > { %v5594_v12 = vpop.f32.mrf.mxu1 }
 0xa18   : > { %v5595_v34 = vadd.f32 %v5594_v12, %v5593_v54  ;;  %v11330_v40 = vpop.f32.mrf.mxu0 }
 0xa19   : > { %v5596_v56 = vpop.f32.mrf.mxu1 }
 0xa1a   : > { %v4280_v37 = vadd.f32 %v5595_v34, %v4170_v57  ;;  %v4426_v55 = vpop.f32.mrf.mxu0 }
 0xa1b   : > { %v5597_v43 = vpop.f32.mrf.mxu1 }
 0xa1c   : > { %v4390_v15 = vadd.f32 %v4389_v20, %v4280_v37  ;;  %v5598_v10 = vadd.f32 %v5597_v43, %v5596_v56  ;;  %v11334_v16 = vpop.f32.mrf.mxu0  ;;  %v4185_v20 = vadd.f32 %v5545_v4, %v5486_v60  ;;  %v11344_v56 = vld [vmem:[#allocation4 + $0x10] sm:$0xff]  ;;  %v5554_v43 = vadd.f32 %v11296_v59, %v11293_v47 }
 0xa1d   : > { %v5599_v50 = vpop.f32.mrf.mxu1  ;;  %v4444_v14 = vrot.slane %v11344_v56, %v11235_v52  ;;  %v5495_v52 = vadd.f32 %v11310_v41, %v11308_v39 }
 0xa1e   : > { %5251 = vst.msk [vmem:[%s6550_s12 + $0x40] sm:$0xff] %vm5244_vm12, %v4390_v15  ;;  %v4285_v2 = vadd.f32 %v5598_v10, %v4175_v49  ;;  %v4431_v58 = vpop.f32.mrf.mxu0 }
 0xa1f   : > { %v5600_v54 = vpop.f32.mrf.mxu1  ;;  %v4200_v59 = vadd.f32 %v5554_v43, %v5495_v52 }
 0xa20   : > { %v4395_v0 = vadd.f32 %v4394_v24, %v4285_v2  ;;  %v5601_v28 = vadd.f32 %v5600_v54, %v5599_v50  ;;  %v5551_v24 = vadd.f32 %v11288_v53, %v11281_v46  ;;  %v5498_v53 = vadd.f32 %v11316_v29, %v11314_v36 }
 0xa21   : > { %v5602_v12 = vpop.f32.mrf.mxu1  ;;  %v5560_v36 = vadd.f32 %v11304_v63, %v11302_v6 }
 0xa22   : > { %5254 = vst.msk [vmem:[%s6550_s12 + $0x58] sm:$0xff] %vm5244_vm12, %v4395_v0  ;;  %v4290_v26 = vadd.f32 %v5601_v28, %v4180_v38  ;;  %v4195_v15 = vadd.f32 %v5551_v24, %v5492_v31  ;;  %v4205_v2 = vadd.f32 %v5557_v3, %v5498_v53  ;;  %v4516_v24 = vld [vmem:[#allocation3 + $0x58] sm:$0xff] }
 0xa23   : > { %v5603_v32 = vpop.f32.mrf.mxu1  ;;  %v4210_v63 = vadd.f32 %v5560_v36, %v5501_v21 }
 0xa24   : > { %v4400_v57 = vadd.f32 %v4399_v25, %v4290_v26  ;;  %v5604_v62 = vadd.f32 %v5603_v32, %v5602_v12 }
 0xa25   : > { %v5605_v33 = vpop.f32.mrf.mxu1 }
 0xa26   : > { %5257 = vst.msk [vmem:[%s6550_s12 + $0x70] sm:$0xff] %vm5244_vm12, %v4400_v57  ;;  %v4295_v34 = vadd.f32 %v5604_v62, %v4185_v20 }
 0xa27   : > { %v5606_v61 = vpop.f32.mrf.mxu1 }
 0xa28   : > { %v4405_v37 = vadd.f32 %v4404_v8, %v4295_v34  ;;  %v5607_v23 = vadd.f32 %v5606_v61, %v5605_v33 }
 0xa29   : > { %v5608_v55 = vpop.f32.mrf.mxu1 }
 0xa2a   : > { %v4447_v25 = vmul.f32 %v4444_v14, %v4405_v37  ;;  %v4300_v45 = vadd.f32 %v5607_v23, %v4190_v18  ;;  %v4515_v37 = vld [vmem:[#allocation3 + $0x38] sm:$0xff] }
 0xa2b   : > { %v5609_v49 = vpop.f32.mrf.mxu1 }
 0xa2c   : > { %v5610_v10 = vadd.f32 %v5609_v49, %v5608_v55  ;;  %4467 = vrot.lane.b32.xlu0 %v4447_v25, %s5934_s15  ;;  %v4410_v39 = vadd.f32 %v11312_v19, %v4300_v45 }
 0xa2d   : > { %v5611_v22 = vpop.f32.mrf.mxu1 }
 0xa2e   : > { %v4305_v46 = vadd.f32 %v5610_v10, %v4195_v15  ;;  %v4450_v19 = vmul.f32 %v4444_v14, %v4410_v39 }
 0xa2f   : > { %v5612_v47 = vpop.f32.mrf.mxu1 }
 0xa30   : > { %v4415_v44 = vadd.f32 %v11318_v48, %v4305_v46  ;;  %v5613_v27 = vadd.f32 %v5612_v47, %v5611_v22  ;;  %4477 = vrot.lane.b32.xlu0 %v11270_v42, %s5934_s15 }
 0xa31   : > { %v5614_v8 = vpop.f32.mrf.mxu1 }
 0xa32   : > { %v4453_v41 = vmul.f32 %v4444_v14, %v4415_v44  ;;  %v4310_v50 = vadd.f32 %v5613_v27, %v4200_v59 }
 0xa33   : > { %v5615_v29 = vpop.f32.mrf.mxu1 }
 0xa34   : > { %v5616_v13 = vadd.f32 %v5615_v29, %v5614_v8  ;;  %v4420_v48 = vadd.f32 %v11324_v7, %v4310_v50  ;;  %4479 = vrot.lane.b32.xlu1 %v4453_v41, %s5934_s15  ;;  %4469 = vrot.lane.b32.xlu0 %v11256_v30, %s5934_s15 }
 0xa35   : > { %v5617_v42 = vpop.f32.mrf.mxu1 }
 0xa36   : > { %5269 = vst.msk [vmem:[%s6550_s12 + $0xd0] sm:$0xff] %vm5244_vm12, %v4420_v48  ;;  %v4315_v58 = vadd.f32 %v5616_v13, %v4205_v2 }
 0xa37   : > { %v5618_v6 = vpop.f32.mrf.mxu1 }
 0xa38   : > { %v5619_v4 = vadd.f32 %v5618_v6, %v5617_v42  ;;  %v4425_v54 = vadd.f32 %v11330_v40, %v4315_v58  ;;  %4471 = vrot.lane.b32.xlu1 %v11262_v35, %s5934_s15  ;;  %4473 = vrot.lane.b32.xlu0 %v4450_v19, %s5934_s15  ;;  %s5951_s15 = smov 39  }
 0xa3a   : > { %5272 = vst.msk [vmem:[%s6550_s12 + $0xe8] sm:$0xff] %vm5244_vm12, %v4425_v54  ;;  %v4320_v5 = vadd.f32 %v5619_v4, %v4210_v63 }
 0xa3c   : > { %v4430_v30 = vadd.f32 %v11334_v16, %v4320_v5 }
 0xa3e   : > { %5275 = vst.msk [vmem:[%s6550_s12 + $0x100] sm:$0xff] %vm5244_vm12, %v4430_v30 }
 0xa4b   : > { %v4464_v9 = vpop.permute.xlu0 %4463 }
 0xa4c   : > { %4496 = vst.msk [vmem:[#allocation3] sm:$0xff] %vm688_vm13, %v4464_v9 }
 0xa4d   : > { %v4466_v7 = vpop.permute.xlu1 %4465 }
 0xa4e   : > { %v11386_v38 = vsel %vm352_vm1, %v4464_v9, %v4466_v7 }
 0xa4f   : > { %4624 = vrot.lane.b32.xlu1 %v11386_v38, %s5942_s9 }
 0xa53   : > { %v11390_v35 = vld [vmem:[#allocation3] sm:$0xff] }
 0xa54   : > { %4622 = vrot.lane.b32.xlu1 %v11390_v35, %s5942_s9 }
 0xa55   : > { %v4476_v40 = vpop.permute.xlu1 %4475 }
 0xa56   : > { %4502 = vst.msk [vmem:[#allocation3 + $0x40] sm:$0xff] %vm688_vm13, %v4476_v40 }
 0xa5d   : > { %v11416_v61 = vld [vmem:[#allocation3 + $0x40] sm:$0xff] }
 0xa9e   : > { %v4468_v16 = vpop.permute.xlu0 %4467 }
 0xa9f   : > { %v4482_v60 = vsel %vm352_vm1, %v4466_v7, %v4468_v16 }
 0xaa0   : > { %4498 = vst.msk [vmem:[#allocation3 + $0x10] sm:$0xff] %vm691_vm14, %v4482_v60 }
 0xaa2   : > { %v4478_v0 = vpop.permute.xlu0 %4477 }
 0xaa3   : > { %v11398_v28 = vsel %vm352_vm1, %v4476_v40, %v4478_v0 }
 0xaa6   : > { %v4480_v12 = vpop.permute.xlu1 %4479  ;;  %v4470_v26 = vpop.permute.xlu0 %4469 }
 0xaa7   : > { %v4486_v32 = vsel %vm352_vm1, %v4478_v0, %v4480_v12  ;;  %4499 = vst.msk [vmem:[#allocation3 + $0x20] sm:$0xff] %vm688_vm13, %v4470_v26  ;;  %v11402_v20 = vld [vmem:[#allocation3 + $0x10] sm:$0xff]  ;;  %vm5069_vm13 = vcmask 785408  }
 0xaa8   : > { %4504 = vst.msk [vmem:[#allocation3 + $0x50] sm:$0xff] %vm691_vm14, %v4486_v32  ;;  %4626 = vrot.lane.b32.xlu0 %v11402_v20, %s5942_s9 }
 0xaaa   : > { %v4472_v57 = vpop.permute.xlu1 %4471  ;;  %v4474_v62 = vpop.permute.xlu0 %4473 }
 0xaab   : > { %v11408_v33 = vsel %vm352_vm1, %v4470_v26, %v4472_v57  ;;  %v4484_v34 = vsel %vm352_vm1, %v4472_v57, %v4474_v62  ;;  %vm4757_vm1 = vcmask 318464  }
 0xaac   : > { %4501 = vst.msk [vmem:[#allocation3 + $0x30] sm:$0xff] %vm691_vm14, %v4484_v34  ;;  %4612 = vrot.lane.b32.xlu0 %v11398_v28, %s5941_s7 }
 0xaae   : > { %v11428_v31 = vld [vmem:[#allocation3 + $0x20] sm:$0xff] }
 0xaaf   : > { %v11414_v14 = vld [vmem:[#allocation3 + $0x50] sm:$0xff] }
 0xab0   : > { %4614 = vrot.lane.b32.xlu1 %v11414_v14, %s5941_s7  ;;  %4610 = vrot.lane.b32.xlu0 %v11416_v61, %s5941_s7 }
 0xab3   : > { %v11422_v11 = vld [vmem:[#allocation3 + $0x30] sm:$0xff] }
 0xab4   : > { %4606 = vrot.lane.b32.xlu1 %v11408_v33, %s5941_s7  ;;  %4608 = vrot.lane.b32.xlu0 %v11422_v11, %s5941_s7 }
 0xab8   : > { %4604 = vrot.lane.b32.xlu1 %v11428_v31, %s5941_s7  ;;  %4600 = vrot.lane.b32.xlu0 %v11386_v38, %s5941_s7 }
 0xabc   : > { %4602 = vrot.lane.b32.xlu1 %v11402_v20, %s5941_s7  ;;  %4598 = vrot.lane.b32.xlu0 %v11390_v35, %s5941_s7  ;;  %s5290_s7 = sshll.u32 %s6550_s12, 4  ;;  %s12068_s7 = int_to_ptr.vmem [resolvable:$true] %s5290_s7 }
 0xabd   : > { %s5856_s16 = scalar_lea.vmem %s12068_s7, 4224  ;;  %p5863_p7 = scmp.lt.s32.totalorder %s12068_s7, %s5861_s8 }
 0xabe   : > { %p5857_p10 = scmp.ne.s32.totalorder %s12068_s7, %s5856_s16  ;;  %p5864_p8 = scmp.lt.s32.totalorder %s5862_s14, %s5856_s16 }
 0xac0   : > { %4588 = vrot.lane.b32.xlu1 %v11398_v28, %s5940_s6  ;;  %4590 = vrot.lane.b32.xlu0 %v11414_v14, %s5940_s6  ;;  %p5858_p2 = pnand %p5857_p10, %p13706_p12  ;;  %p5865_p11 = por %p5864_p8, %p5863_p7 }
 0xac2   : > { %p5859_p4 = pneg %p5858_p2 }
 0xac4   : > { %4586 = vrot.lane.b32.xlu1 %v11416_v61, %s5940_s6  ;;  %4582 = vrot.lane.b32.xlu0 %v11408_v33, %s5940_s6  ;;  %p5866_p0 = pnand %p5865_p11, %p5859_p4 }
 0xac8   : > { %4584 = vrot.lane.b32.xlu1 %v11422_v11, %s5940_s6  ;;  %4580 = vrot.lane.b32.xlu0 %v11428_v31, %s5940_s6 }
 0xacc   : > { %4576 = vrot.lane.b32.xlu1 %v11386_v38, %s5940_s6  ;;  %4578 = vrot.lane.b32.xlu0 %v11402_v20, %s5940_s6 }
 0xad0   : > { %4574 = vrot.lane.b32.xlu1 %v11390_v35, %s5940_s6  ;;  %4564 = vrot.lane.b32.xlu0 %v11398_v28, %s5937_s23  ;;  %s5634_s6 = smul.u32 4224, %s6010_s22  ;;  %s13705_s22 = sand.u32 1, %s5916_s19  }
 0xad1   : > { %s12074_s30 = scalar_lea.sflag [#allocation6], %s13705_s22 }
 0xad2   : > { %s12066_s13 = scalar_lea.hbm %s12119_s5, %s5634_s6 }
 0xad4   : > { %4566 = vrot.lane.b32.xlu1 %v11414_v14, %s5937_s23  ;;  %4562 = vrot.lane.b32.xlu0 %v11416_v61, %s5937_s23 }
 0xad8   : > { %4558 = vrot.lane.b32.xlu1 %v11408_v33, %s5937_s23  ;;  %4560 = vrot.lane.b32.xlu0 %v11422_v11, %s5937_s23 }
 0xadc   : > { %4556 = vrot.lane.b32.xlu1 %v11428_v31, %s5937_s23  ;;  %4552 = vrot.lane.b32.xlu0 %v11386_v38, %s5937_s23 }
 0xae0   : > { %4554 = vrot.lane.b32.xlu1 %v11402_v20, %s5937_s23  ;;  %4550 = vrot.lane.b32.xlu0 %v11390_v35, %s5937_s23  ;;  %s5952_s23 = smov 86  }
 0xae4   : > { %4540 = vrot.lane.b32.xlu1 %v11398_v28, %s5936_s17  ;;  %4542 = vrot.lane.b32.xlu0 %v11414_v14, %s5936_s17 }
 0xae8   : > { %4538 = vrot.lane.b32.xlu1 %v11416_v61, %s5936_s17  ;;  %4534 = vrot.lane.b32.xlu0 %v11408_v33, %s5936_s17 }
 0xaec   : > { %4536 = vrot.lane.b32.xlu1 %v11422_v11, %s5936_s17  ;;  %4532 = vrot.lane.b32.xlu0 %v11428_v31, %s5936_s17 }
 0xaf0   : > { %4528 = vrot.lane.b32.xlu1 %v11386_v38, %s5936_s17  ;;  %4530 = vrot.lane.b32.xlu0 %v11402_v20, %s5936_s17 }
 0xaf4   : > { %4526 = vrot.lane.b32.xlu1 %v11390_v35, %s5936_s17  ;;  %4751 = vrot.lane.b32.xlu0 %v11241_v51, %s5951_s15  ;;  %v4514_v51 = vld [vmem:[#allocation3 + $0x18] sm:$0xff]  ;;  %s5953_s17 = smov 87  }
 0xaf8   : > { %4753 = vrot.lane.b32.xlu1 %v11247_v17, %s5951_s15  ;;  %4755 = vrot.lane.b32.xlu0 %v11344_v56, %s5951_s15  ;;  %v11506_v17 = vpop.permute.xlu1 %4624 }
 0xafc   : > { %4735 = vrot.lane.b32.xlu1 %v11398_v28, %s5952_s23  ;;  %4737 = vrot.lane.b32.xlu0 %v11414_v14, %s5952_s23  ;;  %v4623_v55 = vpop.permute.xlu1 %4622 }
 0xafd   : > { %v4640_v19 = vsel %vm999_vm3, %v4623_v55, %v11506_v17 }
 0xb00   : > { %4739 = vrot.lane.b32.xlu1 %v4516_v24, %s5952_s23  ;;  %4733 = vrot.lane.b32.xlu0 %v11416_v61, %s5952_s23 }
 0xb04   : > { %4727 = vrot.lane.b32.xlu1 %v11408_v33, %s5952_s23  ;;  %4729 = vrot.lane.b32.xlu0 %v11422_v11, %s5952_s23 }
 0xb08   : > { %4731 = vrot.lane.b32.xlu1 %v4515_v37, %s5952_s23  ;;  %4725 = vrot.lane.b32.xlu0 %v11428_v31, %s5952_s23 }
 0xb0c   : > { %4719 = vrot.lane.b32.xlu1 %v11386_v38, %s5952_s23  ;;  %4721 = vrot.lane.b32.xlu0 %v11402_v20, %s5952_s23 }
 0xb10   : > { %4723 = vrot.lane.b32.xlu1 %v4514_v51, %s5952_s23  ;;  %4717 = vrot.lane.b32.xlu0 %v11390_v35, %s5952_s23 }
 0xb14   : > { %4701 = vrot.lane.b32.xlu1 %v11398_v28, %s5953_s17  ;;  %4703 = vrot.lane.b32.xlu0 %v11414_v14, %s5953_s17 }
 0xb18   : > { %4705 = vrot.lane.b32.xlu1 %v4516_v24, %s5953_s17  ;;  %4699 = vrot.lane.b32.xlu0 %v11416_v61, %s5953_s17 }
 0xb1a   : > { %v4627_v56 = vpop.permute.xlu0 %4626 }
 0xb1b   : > { %v4641_v13 = vsel %vm999_vm3, %v11506_v17, %v4627_v56 }
 0xb1c   : > { %4693 = vrot.lane.b32.xlu1 %v11408_v33, %s5953_s17  ;;  %4695 = vrot.lane.b32.xlu0 %v11422_v11, %s5953_s17 }
 0xb1e   : > { %v11511_v25 = vpop.permute.xlu0 %4612 }
 0xb20   : > { %4697 = vrot.lane.b32.xlu1 %v4515_v37, %s5953_s17  ;;  %4691 = vrot.lane.b32.xlu0 %v11428_v31, %s5953_s17 }
 0xb22   : > { %v4615_v23 = vpop.permute.xlu1 %4614  ;;  %v4611_v43 = vpop.permute.xlu0 %4610 }
 0xb23   : > { %v4621_v58 = vsel %vm958_vm7, %v11511_v25, %v4615_v23  ;;  %v4620_v4 = vsel %vm958_vm7, %v4611_v43, %v11511_v25 }
 0xb24   : > { %4685 = vrot.lane.b32.xlu1 %v11386_v38, %s5953_s17  ;;  %4687 = vrot.lane.b32.xlu0 %v11402_v20, %s5953_s17 }
 0xb26   : > { %v11516_v49 = vpop.permute.xlu1 %4606  ;;  %v4609_v18 = vpop.permute.xlu0 %4608 }
 0xb27   : > { %v4619_v30 = vsel %vm958_vm7, %v11516_v49, %v4609_v18 }
 0xb28   : > { %4689 = vrot.lane.b32.xlu1 %v4514_v51, %s5953_s17  ;;  %4683 = vrot.lane.b32.xlu0 %v11390_v35, %s5953_s17 }
 0xb2a   : > { %v4605_v15 = vpop.permute.xlu1 %4604  ;;  %v11519_v52 = vpop.permute.xlu0 %4600 }
 0xb2b   : > { %v4618_v40 = vsel %vm958_vm7, %v4605_v15, %v11516_v49 }
 0xb2c   : > { %4667 = vrot.lane.b32.xlu1 %v11398_v28, %s5954_s25  ;;  %4669 = vrot.lane.b32.xlu0 %v11414_v14, %s5954_s25 }
 0xb2e   : > { %v11523_v10 = vpop.permute.xlu1 %4602  ;;  %v4599_v22 = vpop.permute.xlu0 %4598 }
 0xb2f   : > { %v4617_v16 = vsel %vm958_vm7, %v11519_v52, %v11523_v10  ;;  %v4616_v12 = vsel %vm958_vm7, %v4599_v22, %v11519_v52  ;;  %vm4673_vm7 = vcmask 719872  }
 0xb30   : > { %4671 = vrot.lane.b32.xlu1 %v4516_v24, %s5954_s25  ;;  %4665 = vrot.lane.b32.xlu0 %v11416_v61, %s5954_s25 }
 0xb32   : > { %v11526_v45 = vpop.permute.xlu1 %4588  ;;  %v11528_v46 = vpop.permute.xlu0 %4590 }
 0xb33   : > { %v4597_v57 = vsel %vm917_vm6, %v11526_v45, %v11528_v46 }
 0xb34   : > { %4659 = vrot.lane.b32.xlu1 %v11408_v33, %s5954_s25  ;;  %4661 = vrot.lane.b32.xlu0 %v11422_v11, %s5954_s25 }
 0xb36   : > { %v11532_v53 = vpop.permute.xlu1 %4586  ;;  %v11534_v3 = vpop.permute.xlu0 %4582 }
 0xb37   : > { %v4596_v24 = vsel %vm917_vm6, %v11532_v53, %v11526_v45 }
 0xb38   : > { %4663 = vrot.lane.b32.xlu1 %v4515_v37, %s5954_s25  ;;  %4657 = vrot.lane.b32.xlu0 %v11428_v31, %s5954_s25 }
 0xb3a   : > { %v11537_v47 = vpop.permute.xlu1 %4584  ;;  %v11539_v59 = vpop.permute.xlu0 %4580 }
 0xb3b   : > { %v4595_v37 = vsel %vm917_vm6, %v11534_v3, %v11537_v47 }
 0xb3c   : > { %4651 = vrot.lane.b32.xlu1 %v11386_v38, %s5954_s25  ;;  %4653 = vrot.lane.b32.xlu0 %v11402_v20, %s5954_s25 }
 0xb3e   : > { %v11543_v44 = vpop.permute.xlu1 %4576  ;;  %v11545_v27 = vpop.permute.xlu0 %4578 }
 0xb40   : > { %4655 = vrot.lane.b32.xlu1 %v4514_v51, %s5954_s25  ;;  %4649 = vrot.lane.b32.xlu0 %v11390_v35, %s5954_s25 }
 0xb42   : > { %v11548_v8 = vpop.permute.xlu1 %4574  ;;  %v11550_v39 = vpop.permute.xlu0 %4564 }
 0xb44   : > { %4636 = vrot.lane.b32.xlu1 %v11398_v28, %s5942_s9  ;;  %4638 = vrot.lane.b32.xlu0 %v11414_v14, %s5942_s9 }
 0xb46   : > { %v11556_v41 = vpop.permute.xlu1 %4566  ;;  %v11558_v50 = vpop.permute.xlu0 %4562 }
 0xb47   : > { %v4573_v15 = vsel %vm795_vm15, %v11550_v39, %v11556_v41  ;;  %v4572_v22 = vsel %vm795_vm15, %v11558_v50, %v11550_v39 }
 0xb48   : > { %4634 = vrot.lane.b32.xlu1 %v11416_v61, %s5942_s9  ;;  %4630 = vrot.lane.b32.xlu0 %v11408_v33, %s5942_s9 }
 0xb4a   : > { %v11564_v2 = vpop.permute.xlu1 %4558  ;;  %v11566_v36 = vpop.permute.xlu0 %4560 }
 0xb4b   : > { %v4571_v53 = vsel %vm795_vm15, %v11564_v2, %v11566_v36 }
 0xb4c   : > { %4632 = vrot.lane.b32.xlu1 %v11422_v11, %s5942_s9  ;;  %4628 = vrot.lane.b32.xlu0 %v11428_v31, %s5942_s9 }
 0xb4e   : > { %v11572_v29 = vpop.permute.xlu1 %4556  ;;  %v11574_v21 = vpop.permute.xlu0 %4552 }
 0xb50   : > { %4852 = vrot.lane.b32.xlu1 %v4641_v13, %s5955_s26  ;;  %4854 = vrot.lane.b32.xlu0 %v4627_v56, %s5955_s26  ;;  %v4594_v56 = vsel %vm917_vm6, %v11539_v59, %v11534_v3  ;;  %v4570_v59 = vsel %vm795_vm15, %v11572_v29, %v11564_v2 }
 0xb52   : > { %v11580_v48 = vpop.permute.xlu1 %4554  ;;  %v11582_v42 = vpop.permute.xlu0 %4550 }
 0xb53   : > { %v4568_v39 = vsel %vm795_vm15, %v11582_v42, %v11574_v21 }
 0xb54   : > { %4850 = vrot.lane.b32.xlu1 %v4640_v19, %s5955_s26  ;;  %4846 = vrot.lane.b32.xlu0 %v4621_v58, %s5955_s26 }
 0xb56   : > { %v11590_v6 = vpop.permute.xlu1 %4540  ;;  %v11592_v63 = vpop.permute.xlu0 %4542 }
 0xb57   : > { %v4549_v2 = vsel %vm754_vm2, %v11590_v6, %v11592_v63 }
 0xb58   : > { %4848 = vrot.lane.b32.xlu1 %v4615_v23, %s5955_s26  ;;  %4844 = vrot.lane.b32.xlu0 %v4620_v4, %s5955_s26  ;;  %v4593_v23 = vsel %vm917_vm6, %v11543_v44, %v11545_v27 }
 0xb5a   : > { %v11598_v54 = vpop.permute.xlu1 %4538  ;;  %v11600_v5 = vpop.permute.xlu0 %4534 }
 0xb5c   : > { %4840 = vrot.lane.b32.xlu1 %v4619_v30, %s5955_s26  ;;  %4842 = vrot.lane.b32.xlu0 %v4609_v18, %s5955_s26  ;;  %v4592_v18 = vsel %vm917_vm6, %v11548_v8, %v11543_v44  ;;  %v4569_v44 = vsel %vm795_vm15, %v11574_v21, %v11580_v48  ;;  %v4548_v21 = vsel %vm754_vm2, %v11598_v54, %v11590_v6  ;;  %vm4707_vm6 = vcmask 711680  }
 0xb5e   : > { %v11606_v9 = vpop.permute.xlu1 %4536  ;;  %v11608_v7 = vpop.permute.xlu0 %4532 }
 0xb5f   : > { %v4547_v13 = vsel %vm754_vm2, %v11600_v5, %v11606_v9  ;;  %v4546_v19 = vsel %vm754_vm2, %v11608_v7, %v11600_v5 }
 0xb60   : > { %4838 = vrot.lane.b32.xlu1 %v4618_v40, %s5955_s26  ;;  %4834 = vrot.lane.b32.xlu0 %v4617_v16, %s5955_s26 }
 0xb62   : > { %v11617_v60 = vpop.permute.xlu1 %4528  ;;  %v11619_v0 = vpop.permute.xlu0 %4530 }
 0xb64   : > { %4836 = vrot.lane.b32.xlu1 %v11523_v10, %s5955_s26  ;;  %4832 = vrot.lane.b32.xlu0 %v4616_v12, %s5955_s26 }
 0xb66   : > { %v11626_v26 = vpop.permute.xlu1 %4526  ;;  %v11628_v32 = vpop.permute.xlu0 %4751 }
 0xb67   : > { %v4544_v5 = vsel %vm754_vm2, %v11626_v26, %v11617_v60 }
 0xb68   : > { %4828 = vrot.lane.b32.xlu1 %v4597_v57, %s5955_s26  ;;  %4830 = vrot.lane.b32.xlu0 %v11528_v46, %s5955_s26 }
 0xb6a   : > { %v11636_v62 = vpop.permute.xlu1 %4753  ;;  %v11638_v34 = vpop.permute.xlu0 %4755 }
 0xb6c   : > { %4826 = vrot.lane.b32.xlu1 %v4596_v24, %s5955_s26  ;;  %4822 = vrot.lane.b32.xlu0 %v4595_v37, %s5955_s26 }
 0xb6e   : > { %v11648_v51 = vpop.permute.xlu1 %4735  ;;  %v11650_v17 = vpop.permute.xlu0 %4737 }
 0xb70   : > { %4824 = vrot.lane.b32.xlu1 %v11537_v47, %s5955_s26  ;;  %4820 = vrot.lane.b32.xlu0 %v4594_v56, %s5955_s26 }
 0xb72   : > { %v11658_v55 = vpop.permute.xlu1 %4739  ;;  %v11660_v25 = vpop.permute.xlu0 %4733 }
 0xb74   : > { %4816 = vrot.lane.b32.xlu1 %v4593_v23, %s5955_s26  ;;  %4818 = vrot.lane.b32.xlu0 %v11545_v27, %s5955_s26 }
 0xb76   : > { %v11668_v43 = vpop.permute.xlu1 %4727  ;;  %v11670_v49 = vpop.permute.xlu0 %4729 }
 0xb78   : > { %4814 = vrot.lane.b32.xlu1 %v4592_v18, %s5955_s26  ;;  %4810 = vrot.lane.b32.xlu0 %v4573_v15, %s5955_s26 }
 0xb7a   : > { %v11680_v52 = vpop.permute.xlu1 %4731  ;;  %v11682_v10 = vpop.permute.xlu0 %4725 }
 0xb7c   : > { %4812 = vrot.lane.b32.xlu1 %v11556_v41, %s5955_s26  ;;  %4808 = vrot.lane.b32.xlu0 %v4572_v22, %s5955_s26 }
 0xb7e   : > { %v11690_v45 = vpop.permute.xlu1 %4719  ;;  %v11692_v46 = vpop.permute.xlu0 %4721 }
 0xb80   : > { %4804 = vrot.lane.b32.xlu1 %v4571_v53, %s5955_s26  ;;  %4806 = vrot.lane.b32.xlu0 %v11566_v36, %s5955_s26 }
 0xb82   : > { %v11700_v3 = vpop.permute.xlu1 %4723  ;;  %v11702_v47 = vpop.permute.xlu0 %4717 }
 0xb84   : > { %4802 = vrot.lane.b32.xlu1 %v4570_v59, %s5955_s26  ;;  %4798 = vrot.lane.b32.xlu0 %v4569_v44, %s5955_s26 }
 0xb86   : > { %v11712_v27 = vpop.permute.xlu1 %4701  ;;  %v11714_v8 = vpop.permute.xlu0 %4703 }
 0xb87   : > { %v4715_v22 = vsel %vm4707_vm6, %v11712_v27, %v11714_v8 }
 0xb88   : > { %4800 = vrot.lane.b32.xlu1 %v11580_v48, %s5955_s26  ;;  %4796 = vrot.lane.b32.xlu0 %v4568_v39, %s5955_s26 }
 0xb8a   : > { %v11722_v41 = vpop.permute.xlu1 %4705  ;;  %v11724_v50 = vpop.permute.xlu0 %4699 }
 0xb8b   : > { %v4714_v53 = vsel %vm4707_vm6, %v11724_v50, %v11712_v27 }
 0xb8c   : > { %4792 = vrot.lane.b32.xlu1 %v4549_v2, %s5955_s26  ;;  %4794 = vrot.lane.b32.xlu0 %v11592_v63, %s5955_s26  ;;  %v4545_v63 = vsel %vm754_vm2, %v11617_v60, %v11619_v0  ;;  %vm4741_vm2 = vcmask 703488  }
 0xb8d   : > { %v4750_v26 = vsel %vm4741_vm2, %v11650_v17, %v11658_v55  ;;  %v4748_v57 = vsel %vm4741_vm2, %v11660_v25, %v11648_v51  ;;  %v4746_v24 = vsel %vm4741_vm2, %v11668_v43, %v11670_v49  ;;  %v4743_v56 = vsel %vm4741_vm2, %v11690_v45, %v11692_v46 }
 0xb8e   : > { %v11732_v36 = vpop.permute.xlu1 %4693  ;;  %v11734_v29 = vpop.permute.xlu0 %4695  ;;  %v4744_v23 = vsel %vm4741_vm2, %v11692_v46, %v11700_v3 }
 0xb90   : > { %4790 = vrot.lane.b32.xlu1 %v4548_v21, %s5955_s26  ;;  %4786 = vrot.lane.b32.xlu0 %v4547_v13, %s5955_s26 }
 0xb92   : > { %v11744_v48 = vpop.permute.xlu1 %4697  ;;  %v11746_v42 = vpop.permute.xlu0 %4691 }
 0xb93   : > { %v4713_v27 = vsel %vm4707_vm6, %v11734_v29, %v11744_v48  ;;  %v4711_v39 = vsel %vm4707_vm6, %v11746_v42, %v11732_v36 }
 0xb94   : > { %4788 = vrot.lane.b32.xlu1 %v11606_v9, %s5955_s26  ;;  %4784 = vrot.lane.b32.xlu0 %v4546_v19, %s5955_s26 }
 0xb96   : > { %v11754_v58 = vpop.permute.xlu1 %4685  ;;  %v11756_v6 = vpop.permute.xlu0 %4687 }
 0xb98   : > { %4780 = vrot.lane.b32.xlu1 %v4545_v63, %s5955_s26  ;;  %4782 = vrot.lane.b32.xlu0 %v11619_v0, %s5955_s26 }
 0xb9a   : > { %v11764_v4 = vpop.permute.xlu1 %4689  ;;  %v11766_v54 = vpop.permute.xlu0 %4683 }
 0xb9b   : > { %v4708_v42 = vsel %vm4707_vm6, %v11766_v54, %v11754_v58 }
 0xb9c   : > { %4778 = vrot.lane.b32.xlu1 %v4544_v5, %s5955_s26  ;;  %4774 = vrot.lane.b32.xlu0 %v11398_v28, %s5955_s26 }
 0xb9e   : > { %v11774_v30 = vpop.permute.xlu1 %4667  ;;  %v11776_v9 = vpop.permute.xlu0 %4669 }
 0xb9f   : > { %v4681_v63 = vsel %vm4673_vm7, %v11774_v30, %v11776_v9 }
 0xba0   : > { %4776 = vrot.lane.b32.xlu1 %v11414_v14, %s5955_s26  ;;  %4772 = vrot.lane.b32.xlu0 %v11416_v61, %s5955_s26 }
 0xba2   : > { %v11782_v7 = vpop.permute.xlu1 %4671  ;;  %v11784_v40 = vpop.permute.xlu0 %4665 }
 0xba3   : > { %v4680_v54 = vsel %vm4673_vm7, %v11784_v40, %v11774_v30 }
 0xba4   : > { %4768 = vrot.lane.b32.xlu1 %v11408_v33, %s5955_s26  ;;  %4770 = vrot.lane.b32.xlu0 %v11422_v11, %s5955_s26 }
 0xba6   : > { %v11790_v28 = vpop.permute.xlu1 %4659  ;;  %v11792_v16 = vpop.permute.xlu0 %4661 }
 0xba8   : > { %4766 = vrot.lane.b32.xlu1 %v11428_v31, %s5955_s26  ;;  %4762 = vrot.lane.b32.xlu0 %v11386_v38, %s5955_s26  ;;  %v4759_v31 = vsel %vm4757_vm1, %v11636_v62, %v11638_v34  ;;  %v4758_v38 = vsel %vm4757_vm1, %v11628_v32, %v11636_v62  ;;  %v4747_v34 = vsel %vm4741_vm2, %v11670_v49, %v11680_v52 }
 0xba9   : > { %v4742_v49 = vsel %vm4741_vm2, %v11702_v47, %v11690_v45  ;;  %v4716_v52 = vsel %vm4707_vm6, %v11714_v8, %v11722_v41  ;;  %v4712_v47 = vsel %vm4707_vm6, %v11732_v36, %v11734_v29  ;;  %v4710_v29 = vsel %vm4707_vm6, %v11756_v6, %v11764_v4 }
 0xbaa   : > { %v11798_v14 = vpop.permute.xlu1 %4663  ;;  %v11800_v61 = vpop.permute.xlu0 %4657  ;;  %v4709_v36 = vsel %vm4707_vm6, %v11754_v58, %v11756_v6  ;;  %v4682_v58 = vsel %vm4673_vm7, %v11776_v9, %v11782_v7  ;;  %v4678_v9 = vsel %vm4673_vm7, %v11790_v28, %v11792_v16 }
 0xbab   : > { %v4679_v30 = vsel %vm4673_vm7, %v11792_v16, %v11798_v14 }
 0xbac   : > { %4764 = vrot.lane.b32.xlu1 %v11402_v20, %s5955_s26  ;;  %4760 = vrot.lane.b32.xlu0 %v11390_v35, %s5955_s26  ;;  %v4749_v35 = vsel %vm4741_vm2, %v11648_v51, %v11650_v17  ;;  %v4745_v17 = vsel %vm4741_vm2, %v11682_v10, %v11668_v43 }
 0xbae   : > { %v11806_v33 = vpop.permute.xlu1 %4651  ;;  %v11808_v11 = vpop.permute.xlu0 %4653 }
 0xbb0   : > { %4924 = vrot.lane.b32.xlu1 %v4758_v38, %s5955_s26  ;;  %4926 = vrot.lane.b32.xlu0 %v4759_v31, %s5955_s26 }
 0xbb2   : > { %v11816_v60 = vpop.permute.xlu1 %4655  ;;  %v11818_v20 = vpop.permute.xlu0 %4649 }
 0xbb4   : > { %4922 = vrot.lane.b32.xlu1 %v11628_v32, %s5955_s26  ;;  %4918 = vrot.lane.b32.xlu0 %v4749_v35, %s5955_s26 }
 0xbb6   : > { %v11826_v0 = vpop.permute.xlu1 %4636  ;;  %v11828_v12 = vpop.permute.xlu0 %4638 }
 0xbb8   : > { %4920 = vrot.lane.b32.xlu1 %v4750_v26, %s5955_s26  ;;  %4916 = vrot.lane.b32.xlu0 %v4748_v57, %s5955_s26  ;;  %v4677_v57 = vsel %vm4673_vm7, %v11800_v61, %v11790_v28  ;;  %v4676_v28 = vsel %vm4673_vm7, %v11808_v11, %v11816_v60  ;;  %v4674_v61 = vsel %vm4673_vm7, %v11818_v20, %v11806_v33 }
 0xbba   : > { %v11838_v62 = vpop.permute.xlu1 %4634  ;;  %v11840_v32 = vpop.permute.xlu0 %4630 }
 0xbbc   : > { %4914 = vrot.lane.b32.xlu0 %v4747_v34, %s5955_s26  ;;  %4912 = vrot.lane.b32.xlu1 %v4746_v24, %s5955_s26  ;;  %v4675_v34 = vsel %vm4673_vm7, %v11806_v33, %v11808_v11  ;;  %v4645_v33 = vsel %vm999_vm3, %v11826_v0, %v11828_v12 }
 0xbbe   : > { %v11850_v37 = vpop.permute.xlu1 %4632  ;;  %v11852_v51 = vpop.permute.xlu0 %4628 }
 0xbc0   : > { %4910 = vrot.lane.b32.xlu1 %v4745_v17, %s5955_s26  ;;  %4906 = vrot.lane.b32.xlu0 %v4743_v56, %s5955_s26 }
 0xbc2   : > { %v4853_v55 = vpop.permute.xlu1 %4852  ;;  %v4855_v25 = vpop.permute.xlu0 %4854 }
 0xbc3   : > { %5163 = vmatpush1.msra.mxu0 %v4855_v25  ;;  %v4960_v43 = vsel %vm4928_vm4, %v4853_v55, %v4855_v25 }
 0xbc4   : > { %4908 = vrot.lane.b32.xlu1 %v4744_v23, %s5955_s26  ;;  %4904 = vrot.lane.b32.xlu0 %v4742_v49, %s5955_s26  ;;  %v4644_v49 = vsel %vm999_vm3, %v11838_v62, %v11826_v0  ;;  %v4642_v0 = vsel %vm999_vm3, %v11852_v51, %v11840_v32 }
 0xbc5   : > { %5079 = vmatprep.subr.mxu1 %v4960_v43  ;;  %5164 = vmatprep.subr.mxu0 %v13612_v1  ;;  %v4643_v43 = vsel %vm999_vm3, %v11840_v32, %v11850_v37 }
 0xbc6   : > { %v4851_v18 = vpop.permute.xlu1 %4850  ;;  %v4847_v15 = vpop.permute.xlu0 %4846 }
 0xbc7   : > { %v4959_v10 = vsel %vm4928_vm4, %v4851_v18, %v4853_v55  ;;  %v347_v55 = vld [vmem:[#allocation9 + $0x8] sm:$0xff] }
 0xbc8   : > { %4902 = vrot.lane.b32.xlu0 %v4716_v52, %s5955_s26  ;;  %4900 = vrot.lane.b32.xlu1 %v4715_v22, %s5955_s26 }
 0xbc9   : > { %5080 = vmatpush1.msra.mxu1 %v4959_v10  ;;  %5425 = vmatprep.mubr.msk.f32.mxu1 %vm5069_vm13, %v347_v55 }
 0xbca   : > { %v4849_v45 = vpop.permute.xlu1 %4848  ;;  %v4845_v46 = vpop.permute.xlu0 %4844  ;;  %5428 = vmatprep.mubr.msk.f32.mxu0 %vm5069_vm13, %v347_v55 }
 0xbcb   : > { %v4957_v3 = vsel %vm4928_vm4, %v4845_v46, %v4847_v15  ;;  %5165 = vmatpush1.msra.mxu0 %v4849_v45  ;;  %v4958_v59 = vsel %vm4928_vm4, %v4847_v15, %v4849_v45 }
 0xbcc   : > { %4898 = vrot.lane.b32.xlu1 %v4714_v53, %s5955_s26  ;;  %4894 = vrot.lane.b32.xlu0 %v4712_v47, %s5955_s26 }
 0xbcd   : > { %5081 = vmatprep.subr.mxu1 %v4958_v59  ;;  %5166 = vmatprep.subr.mxu0 %v13612_v1 }
 0xbce   : > { %5082 = vmatpush1.msra.mxu1 %v4957_v3  ;;  %v4841_v44 = vpop.permute.xlu1 %4840  ;;  %v4843_v8 = vpop.permute.xlu0 %4842 }
 0xbcf   : > { %5167 = vmatpush1.msra.mxu0 %v4843_v8  ;;  %v4956_v41 = vsel %vm4928_vm4, %v4841_v44, %v4843_v8 }
 0xbd0   : > { %4896 = vrot.lane.b32.xlu1 %v4713_v27, %s5955_s26  ;;  %4892 = vrot.lane.b32.xlu0 %v4711_v39, %s5955_s26 }
 0xbd1   : > { %5083 = vmatprep.subr.mxu1 %v4956_v41  ;;  %5168 = vmatprep.subr.mxu0 %v13612_v1 }
 0xbd2   : > { %v4839_v50 = vpop.permute.xlu1 %4838  ;;  %v4835_v2 = vpop.permute.xlu0 %4834 }
 0xbd3   : > { %v4955_v21 = vsel %vm4928_vm4, %v4839_v50, %v4841_v44 }
 0xbd4   : > { %4890 = vrot.lane.b32.xlu0 %v4710_v29, %s5955_s26  ;;  %4888 = vrot.lane.b32.xlu1 %v4709_v36, %s5955_s26 }
 0xbd5   : > { %5084 = vmatpush1.msra.mxu1 %v4955_v21 }
 0xbd6   : > { %v4837_v13 = vpop.permute.xlu1 %4836  ;;  %v4833_v48 = vpop.permute.xlu0 %4832 }
 0xbd7   : > { %v4953_v19 = vsel %vm4928_vm4, %v4833_v48, %v4835_v2  ;;  %5169 = vmatpush1.msra.mxu0 %v4837_v13  ;;  %v4954_v6 = vsel %vm4928_vm4, %v4835_v2, %v4837_v13 }
 0xbd8   : > { %4886 = vrot.lane.b32.xlu1 %v4708_v42, %s5955_s26  ;;  %4882 = vrot.lane.b32.xlu0 %v4681_v63, %s5955_s26 }
 0xbd9   : > { %5085 = vmatprep.subr.mxu1 %v4954_v6  ;;  %5170 = vmatprep.subr.mxu0 %v13612_v1 }
 0xbda   : > { %5086 = vmatpush1.msra.mxu1 %v4953_v19  ;;  %v4829_v4 = vpop.permute.xlu1 %4828  ;;  %v4831_v5 = vpop.permute.xlu0 %4830 }
 0xbdb   : > { %5171 = vmatpush1.msra.mxu0 %v4831_v5  ;;  %v4952_v31 = vsel %vm4928_vm4, %v4829_v4, %v4831_v5 }
 0xbdc   : > { %4884 = vrot.lane.b32.xlu1 %v4682_v58, %s5955_s26  ;;  %4880 = vrot.lane.b32.xlu0 %v4680_v54, %s5955_s26 }
 0xbdd   : > { %5087 = vmatprep.subr.mxu1 %v4952_v31  ;;  %5172 = vmatprep.subr.mxu0 %v13612_v1 }
 0xbde   : > { %v4827_v38 = vpop.permute.xlu1 %4826  ;;  %v4823_v35 = vpop.permute.xlu0 %4822 }
 0xbdf   : > { %v4951_v7 = vsel %vm4928_vm4, %v4827_v38, %v4829_v4 }
 0xbe0   : > { %4878 = vrot.lane.b32.xlu0 %v4679_v30, %s5955_s26  ;;  %4876 = vrot.lane.b32.xlu1 %v4678_v9, %s5955_s26 }
 0xbe1   : > { %5088 = vmatpush1.msra.mxu1 %v4951_v7 }
 0xbe2   : > { %v4825_v40 = vpop.permute.xlu1 %4824  ;;  %v4821_v26 = vpop.permute.xlu0 %4820 }
 0xbe3   : > { %v4949_v24 = vsel %vm4928_vm4, %v4821_v26, %v4823_v35  ;;  %5173 = vmatpush1.msra.mxu0 %v4825_v40  ;;  %v4950_v16 = vsel %vm4928_vm4, %v4823_v35, %v4825_v40 }
 0xbe4   : > { %4874 = vrot.lane.b32.xlu1 %v4677_v57, %s5955_s26  ;;  %4870 = vrot.lane.b32.xlu0 %v4675_v34, %s5955_s26 }
 0xbe5   : > { %5089 = vmatprep.subr.mxu1 %v4950_v16  ;;  %5174 = vmatprep.subr.mxu0 %v13612_v1 }
 0xbe6   : > { %5090 = vmatpush1.msra.mxu1 %v4949_v24  ;;  %v4817_v14 = vpop.permute.xlu1 %4816  ;;  %v4819_v17 = vpop.permute.xlu0 %4818 }
 0xbe7   : > { %5175 = vmatpush1.msra.mxu0 %v4819_v17  ;;  %v4948_v56 = vsel %vm4928_vm4, %v4817_v14, %v4819_v17 }
 0xbe8   : > { %4872 = vrot.lane.b32.xlu1 %v4676_v28, %s5955_s26  ;;  %4868 = vrot.lane.b32.xlu0 %v4674_v61, %s5955_s26 }
 0xbe9   : > { %5091 = vmatprep.subr.mxu1 %v4948_v56  ;;  %5176 = vmatprep.subr.mxu0 %v13612_v1 }
 0xbea   : > { %v4815_v25 = vpop.permute.xlu1 %4814  ;;  %v4811_v23 = vpop.permute.xlu0 %4810 }
 0xbeb   : > { %v4947_v11 = vsel %vm4928_vm4, %v4815_v25, %v4817_v14 }
 0xbec   : > { %4864 = vrot.lane.b32.xlu1 %v4645_v33, %s5955_s26  ;;  %4866 = vrot.lane.b32.xlu0 %v11828_v12, %s5955_s26 }
 0xbed   : > { %5092 = vmatpush1.msra.mxu1 %v4947_v11 }
 0xbee   : > { %v4813_v60 = vpop.permute.xlu1 %4812  ;;  %v4809_v20 = vpop.permute.xlu0 %4808 }
 0xbef   : > { %v4945_v18 = vsel %vm4928_vm4, %v4809_v20, %v4811_v23  ;;  %5177 = vmatpush1.msra.mxu0 %v4813_v60  ;;  %v4946_v15 = vsel %vm4928_vm4, %v4811_v23, %v4813_v60 }
 0xbf0   : > { %4862 = vrot.lane.b32.xlu1 %v4644_v49, %s5955_s26  ;;  %4858 = vrot.lane.b32.xlu0 %v4643_v43, %s5955_s26 }
 0xbf1   : > { %5093 = vmatprep.subr.mxu1 %v4946_v15  ;;  %5178 = vmatprep.subr.mxu0 %v13612_v1 }
 0xbf2   : > { %5094 = vmatpush1.msra.mxu1 %v4945_v18  ;;  %v4805_v12 = vpop.permute.xlu1 %4804  ;;  %v4807_v52 = vpop.permute.xlu0 %4806 }
 0xbf3   : > { %5179 = vmatpush1.msra.mxu0 %v4807_v52  ;;  %v4944_v62 = vsel %vm4928_vm4, %v4805_v12, %v4807_v52 }
 0xbf4   : > { %4860 = vrot.lane.b32.xlu1 %v11850_v37, %s5955_s26  ;;  %4856 = vrot.lane.b32.xlu0 %v4642_v0, %s5955_s26 }
 0xbf5   : > { %5095 = vmatprep.subr.mxu1 %v4944_v62  ;;  %5180 = vmatprep.subr.mxu0 %v13612_v1 }
 0xbf6   : > { %v4803_v10 = vpop.permute.xlu1 %4802  ;;  %v4799_v22 = vpop.permute.xlu0 %4798 }
 0xbf7   : > { %v4943_v45 = vsel %vm4928_vm4, %v4803_v10, %v4805_v12 }
 0xbf8   : > { %5096 = vmatpush1.msra.mxu1 %v4943_v45 }
 0xbfa   : > { %v4801_v46 = vpop.permute.xlu1 %4800  ;;  %v4797_v53 = vpop.permute.xlu0 %4796 }
 0xbfb   : > { %v4941_v32 = vsel %vm4928_vm4, %v4797_v53, %v4799_v22  ;;  %5181 = vmatpush1.msra.mxu0 %v4801_v46  ;;  %v4942_v51 = vsel %vm4928_vm4, %v4799_v22, %v4801_v46 }
 0xbfc   : > { %5097 = vmatprep.subr.mxu1 %v4942_v51  ;;  %5182 = vmatprep.subr.mxu0 %v13612_v1 }
 0xbfd   : > { %5098 = vmatpush1.msra.mxu1 %v4941_v32 }
 0xbfe   : > { %v4793_v37 = vpop.permute.xlu1 %4792  ;;  %v4795_v3 = vpop.permute.xlu0 %4794 }
 0xbff   : > { %5183 = vmatpush1.msra.mxu0 %v4795_v3  ;;  %v4940_v47 = vsel %vm4928_vm4, %v4793_v37, %v4795_v3 }
 0xc00   : > { %5099 = vmatprep.subr.mxu1 %v4940_v47  ;;  %5184 = vmatprep.subr.mxu0 %v13612_v1 }
 0xc02   : > { %v4791_v59 = vpop.permute.xlu1 %4790  ;;  %v4787_v44 = vpop.permute.xlu0 %4786 }
 0xc03   : > { %v4939_v8 = vsel %vm4928_vm4, %v4791_v59, %v4793_v37 }
 0xc04   : > { %5100 = vmatpush1.msra.mxu1 %v4939_v8 }
 0xc06   : > { %v4789_v27 = vpop.permute.xlu1 %4788  ;;  %v4785_v39 = vpop.permute.xlu0 %4784 }
 0xc07   : > { %v4937_v41 = vsel %vm4928_vm4, %v4785_v39, %v4787_v44  ;;  %5185 = vmatpush1.msra.mxu0 %v4789_v27  ;;  %v4938_v50 = vsel %vm4928_vm4, %v4787_v44, %v4789_v27 }
 0xc08   : > { %5101 = vmatprep.subr.mxu1 %v4938_v50  ;;  %5186 = vmatprep.subr.mxu0 %v13612_v1 }
 0xc09   : > { %5102 = vmatpush1.msra.mxu1 %v4937_v41 }
 0xc0a   : > { %v4781_v2 = vpop.permute.xlu1 %4780  ;;  %v4783_v29 = vpop.permute.xlu0 %4782 }
 0xc0b   : > { %5187 = vmatpush1.msra.mxu0 %v4783_v29  ;;  %v4936_v21 = vsel %vm4928_vm4, %v4781_v2, %v4783_v29 }
 0xc0c   : > { %5103 = vmatprep.subr.mxu1 %v4936_v21  ;;  %5188 = vmatprep.subr.mxu0 %v13612_v1 }
 0xc0e   : > { %v4779_v36 = vpop.permute.xlu1 %4778  ;;  %v4775_v13 = vpop.permute.xlu0 %4774 }
 0xc0f   : > { %v4935_v48 = vsel %vm4928_vm4, %v4779_v36, %v4781_v2 }
 0xc10   : > { %5104 = vmatpush1.msra.mxu1 %v4935_v48 }
 0xc12   : > { %v4777_v42 = vpop.permute.xlu1 %4776  ;;  %v4773_v19 = vpop.permute.xlu0 %4772 }
 0xc13   : > { %v4933_v63 = vsel %vm4928_vm4, %v4773_v19, %v4775_v13  ;;  %5189 = vmatpush1.msra.mxu0 %v4777_v42  ;;  %v4934_v6 = vsel %vm4928_vm4, %v4775_v13, %v4777_v42 }
 0xc14   : > { %5105 = vmatprep.subr.mxu1 %v4934_v6  ;;  %5190 = vmatprep.subr.mxu0 %v13612_v1 }
 0xc15   : > { %5106 = vmatpush1.msra.mxu1 %v4933_v63 }
 0xc16   : > { %v4769_v4 = vpop.permute.xlu1 %4768  ;;  %v4771_v5 = vpop.permute.xlu0 %4770 }
 0xc17   : > { %5191 = vmatpush1.msra.mxu0 %v4771_v5  ;;  %v4932_v58 = vsel %vm4928_vm4, %v4769_v4, %v4771_v5 }
 0xc18   : > { %5107 = vmatprep.subr.mxu1 %v4932_v58  ;;  %5192 = vmatprep.subr.mxu0 %v13612_v1 }
 0xc1a   : > { %v4767_v54 = vpop.permute.xlu1 %4766  ;;  %v4763_v31 = vpop.permute.xlu0 %4762 }
 0xc1b   : > { %v4931_v38 = vsel %vm4928_vm4, %v4767_v54, %v4769_v4  ;;  %v346_v54 = vld [vmem:[#allocation9] sm:$0xff] }
 0xc1c   : > { %5108 = vmatpush1.msra.mxu1 %v4931_v38 }
 0xc1e   : > { %v4765_v35 = vpop.permute.xlu1 %4764  ;;  %v4761_v9 = vpop.permute.xlu0 %4760 }
 0xc1f   : > { %v4929_v30 = vsel %vm4928_vm4, %v4761_v9, %v4763_v31  ;;  %5193 = vmatpush1.msra.mxu0 %v4765_v35  ;;  %v4930_v7 = vsel %vm4928_vm4, %v4763_v31, %v4765_v35  ;;  %v349_v35 = vld [vmem:[#allocation9 + $0x18] sm:$0xff] }
 0xc20   : > { %5109 = vmatprep.subr.mxu1 %v4930_v7  ;;  %5202 = vmatprep.subr.mxu0 %v13612_v1  ;;  %v348_v7 = vld [vmem:[#allocation9 + $0x10] sm:$0xff] }
 0xc21   : > { %5110 = vmatpush1.msra.mxu1 %v4929_v30 }
 0xc22   : > { %v4925_v40 = vpop.permute.xlu1 %4924  ;;  %v4927_v26 = vpop.permute.xlu0 %4926 }
 0xc23   : > { %5203 = vmatpush2.msra.mxu0 %v4927_v26  ;;  %v4984_v57 = vsel %vm4928_vm4, %v4925_v40, %v4927_v26 }
 0xc24   : > { %5119 = vmatprep.subr.mxu1 %v4984_v57  ;;  %5204 = vmatprep.subr.mxu0 %v13612_v1 }
 0xc26   : > { %v4923_v34 = vpop.permute.xlu1 %4922  ;;  %v4919_v24 = vpop.permute.xlu0 %4918 }
 0xc27   : > { %v4983_v16 = vsel %vm4928_vm4, %v4923_v34, %v4925_v40  ;;  %v350_v40 = vld [vmem:[#allocation9 + $0x20] sm:$0xff] }
 0xc28   : > { %5120 = vmatpush2.msra.mxu1 %v4983_v16 }
 0xc2a   : > { %v4921_v14 = vpop.permute.xlu1 %4920  ;;  %v4917_v17 = vpop.permute.xlu0 %4916 }
 0xc2b   : > { %v4981_v28 = vsel %vm4928_vm4, %v4917_v17, %v4919_v24  ;;  %5205 = vmatpush2.msra.mxu0 %v4921_v14  ;;  %v4982_v61 = vsel %vm4928_vm4, %v4919_v24, %v4921_v14 }
 0xc2c   : > { %5121 = vmatprep.subr.mxu1 %v4982_v61  ;;  %5206 = vmatprep.subr.mxu0 %v13612_v1 }
 0xc2d   : > { %5122 = vmatpush2.msra.mxu1 %v4981_v28 }
 0xc2e   : > { %v4913_v56 = vpop.permute.xlu1 %4912  ;;  %v4915_v55 = vpop.permute.xlu0 %4914 }
 0xc2f   : > { %5207 = vmatpush2.msra.mxu0 %v4915_v55  ;;  %v4980_v25 = vsel %vm4928_vm4, %v4913_v56, %v4915_v55 }
 0xc30   : > { %5123 = vmatprep.subr.mxu1 %v4980_v25  ;;  %5208 = vmatprep.subr.mxu0 %v13612_v1 }
 0xc32   : > { %v4911_v23 = vpop.permute.xlu1 %4910  ;;  %v4907_v33 = vpop.permute.xlu0 %4906 }
 0xc33   : > { %v4979_v11 = vsel %vm4928_vm4, %v4911_v23, %v4913_v56 }
 0xc34   : > { %5124 = vmatpush2.msra.mxu1 %v4979_v11 }
 0xc36   : > { %v4909_v60 = vpop.permute.xlu1 %4908  ;;  %v4905_v20 = vpop.permute.xlu0 %4904 }
 0xc37   : > { %v4977_v49 = vsel %vm4928_vm4, %v4905_v20, %v4907_v33  ;;  %5209 = vmatpush2.msra.mxu0 %v4909_v60  ;;  %v4978_v43 = vsel %vm4928_vm4, %v4907_v33, %v4909_v60 }
 0xc38   : > { %5125 = vmatprep.subr.mxu1 %v4978_v43  ;;  %5210 = vmatprep.subr.mxu0 %v13612_v1 }
 0xc39   : > { %5126 = vmatpush2.msra.mxu1 %v4977_v49 }
 0xc3a   : > { %v4901_v18 = vpop.permute.xlu1 %4900  ;;  %v4903_v15 = vpop.permute.xlu0 %4902 }
 0xc3b   : > { %5211 = vmatpush2.msra.mxu0 %v4903_v15  ;;  %v4976_v12 = vsel %vm4928_vm4, %v4901_v18, %v4903_v15 }
 0xc3c   : > { %5127 = vmatprep.subr.mxu1 %v4976_v12  ;;  %5212 = vmatprep.subr.mxu0 %v13612_v1 }
 0xc3e   : > { %v4899_v52 = vpop.permute.xlu1 %4898  ;;  %v4895_v0 = vpop.permute.xlu0 %4894 }
 0xc3f   : > { %v4975_v62 = vsel %vm4928_vm4, %v4899_v52, %v4901_v18 }
 0xc40   : > { %5128 = vmatpush2.msra.mxu1 %v4975_v62 }
 0xc42   : > { %v4897_v10 = vpop.permute.xlu1 %4896  ;;  %v4893_v22 = vpop.permute.xlu0 %4892 }
 0xc43   : > { %v4973_v45 = vsel %vm4928_vm4, %v4893_v22, %v4895_v0  ;;  %5213 = vmatpush2.msra.mxu0 %v4897_v10  ;;  %v4974_v46 = vsel %vm4928_vm4, %v4895_v0, %v4897_v10 }
 0xc44   : > { %5129 = vmatprep.subr.mxu1 %v4974_v46  ;;  %5214 = vmatprep.subr.mxu0 %v13612_v1 }
 0xc45   : > { %5130 = vmatpush2.msra.mxu1 %v4973_v45 }
 0xc46   : > { %v4889_v53 = vpop.permute.xlu1 %4888  ;;  %v4891_v32 = vpop.permute.xlu0 %4890 }
 0xc47   : > { %5215 = vmatpush2.msra.mxu0 %v4891_v32  ;;  %v4972_v51 = vsel %vm4928_vm4, %v4889_v53, %v4891_v32 }
 0xc48   : > { %5131 = vmatprep.subr.mxu1 %v4972_v51  ;;  %5216 = vmatprep.subr.mxu0 %v13612_v1 }
 0xc4a   : > { %v4887_v37 = vpop.permute.xlu1 %4886  ;;  %v4883_v3 = vpop.permute.xlu0 %4882 }
 0xc4b   : > { %v4971_v47 = vsel %vm4928_vm4, %v4887_v37, %v4889_v53 }
 0xc4c   : > { %5132 = vmatpush2.msra.mxu1 %v4971_v47 }
 0xc4e   : > { %v4885_v59 = vpop.permute.xlu1 %4884  ;;  %v4881_v44 = vpop.permute.xlu0 %4880 }
 0xc4f   : > { %v4969_v8 = vsel %vm4928_vm4, %v4881_v44, %v4883_v3  ;;  %5217 = vmatpush2.msra.mxu0 %v4885_v59  ;;  %v4970_v27 = vsel %vm4928_vm4, %v4883_v3, %v4885_v59 }
 0xc50   : > { %5133 = vmatprep.subr.mxu1 %v4970_v27  ;;  %5218 = vmatprep.subr.mxu0 %v13612_v1 }
 0xc51   : > { %5134 = vmatpush2.msra.mxu1 %v4969_v8 }
 0xc52   : > { %v4877_v39 = vpop.permute.xlu1 %4876  ;;  %v4879_v41 = vpop.permute.xlu0 %4878 }
 0xc53   : > { %5219 = vmatpush2.msra.mxu0 %v4879_v41  ;;  %v4968_v50 = vsel %vm4928_vm4, %v4877_v39, %v4879_v41 }
 0xc54   : > { %5135 = vmatprep.subr.mxu1 %v4968_v50  ;;  %5220 = vmatprep.subr.mxu0 %v13612_v1 }
 0xc56   : > { %v4875_v2 = vpop.permute.xlu1 %4874  ;;  %v4871_v29 = vpop.permute.xlu0 %4870 }
 0xc57   : > { %v4967_v21 = vsel %vm4928_vm4, %v4875_v2, %v4877_v39 }
 0xc58   : > { %5136 = vmatpush2.msra.mxu1 %v4967_v21 }
 0xc5a   : > { %v4873_v36 = vpop.permute.xlu1 %4872  ;;  %v4869_v13 = vpop.permute.xlu0 %4868 }
 0xc5b   : > { %v4965_v48 = vsel %vm4928_vm4, %v4869_v13, %v4871_v29  ;;  %5221 = vmatpush2.msra.mxu0 %v4873_v36  ;;  %v4966_v42 = vsel %vm4928_vm4, %v4871_v29, %v4873_v36 }
 0xc5c   : > { %5137 = vmatprep.subr.mxu1 %v4966_v42  ;;  %5222 = vmatprep.subr.mxu0 %v13612_v1 }
 0xc5d   : > { %5138 = vmatpush2.msra.mxu1 %v4965_v48 }
 0xc5e   : > { %v4865_v19 = vpop.permute.xlu1 %4864  ;;  %v4867_v63 = vpop.permute.xlu0 %4866 }
 0xc5f   : > { %5223 = vmatpush2.msra.mxu0 %v4867_v63  ;;  %v4964_v6 = vsel %vm4928_vm4, %v4865_v19, %v4867_v63 }
 0xc60   : > { %5139 = vmatprep.subr.mxu1 %v4964_v6  ;;  %5224 = vmatprep.subr.mxu0 %v13612_v1  ;;  %v351_v1 = vld [vmem:[#allocation9 + $0x28] sm:$0xff] }
 0xc62   : > { %v4863_v4 = vpop.permute.xlu1 %4862  ;;  %v4859_v5 = vpop.permute.xlu0 %4858 }
 0xc63   : > { %v4963_v58 = vsel %vm4928_vm4, %v4863_v4, %v4865_v19 }
 0xc64   : > { %5140 = vmatpush2.msra.mxu1 %v4963_v58 }
 0xc66   : > { %v4861_v31 = vpop.permute.xlu1 %4860  ;;  %v4857_v38 = vpop.permute.xlu0 %4856 }
 0xc67   : > { %v4961_v9 = vsel %vm4928_vm4, %v4857_v38, %v4859_v5  ;;  %5225 = vmatpush2.msra.mxu0 %v4861_v31  ;;  %v4962_v30 = vsel %vm4928_vm4, %v4859_v5, %v4861_v31 }
 0xc68   : > { %5141 = vmatprep.subr.mxu1 %v4962_v30  ;;  %5227 = vmatmul.mubr.f32.vlgmr.msra.gmra.mxu0 %v346_v54 }
 0xc69   : > { %5142 = vmatpush2.msra.mxu1 %v4961_v9  ;;  %5429 = vmatprep.mubr.msk.f32.mxu0 %vm5069_vm13, %v349_v35 }
 0xc6a   : > { %5144 = vmatmul.mubr.f32.vlgmr.msra.gmra.mxu1 %v346_v54 }
 0xc6b   : > { %5426 = vmatprep.mubr.msk.f32.mxu1 %vm5069_vm13, %v349_v35 }
 0xc6c   : > { %5232 = vmatmul.mubr.f32.gmra.mxu0 %v348_v7 }
 0xc6d   : > { %5430 = vmatprep.mubr.msk.f32.mxu0 %vm5069_vm13, %v351_v1 }
 0xc6e   : > { %5150 = vmatmul.mubr.f32.gmra.mxu1 %v348_v7 }
 0xc6f   : > { %5427 = vmatprep.mubr.msk.f32.mxu1 %vm5069_vm13, %v351_v1 }
 0xc70   : > { %5237 = vmatmul.mubr.f32.gmra.mxu0 %v350_v40 }
 0xc72   : > { %5156 = vmatmul.mubr.f32.gmra.mxu1 %v350_v40 }
 0xd28   : > { %v5228_v26 = vpop.f32.mrf.mxu0 }
 0xd29   : > { %5260 = vst.msk [vmem:[%s6550_s12 + $0x88] sm:$0xff] %vm5244_vm12, %v5228_v26 }
 0xd2a   : > { %v5145_v57 = vpop.f32.mrf.mxu1  ;;  %v5230_v34 = vpop.f32.mrf.mxu0 }
 0xd2b   : > { %5258 = vst [vmem:[%s6550_s12 + $0x78] sm:$0xff] %v5145_v57 }
 0xd2c   : > { %v5147_v24 = vpop.f32.mrf.mxu1  ;;  %v5233_v16 = vpop.f32.mrf.mxu0 }
 0xd2d   : > { %5259 = vst [vmem:[%s6550_s12 + $0x80] sm:$0xff] %v5147_v24  ;;  %5263 = vst.msk [vmem:[%s6550_s12 + $0xa0] sm:$0xff] %vm5244_vm12, %v5233_v16 }
 0xd2e   : > { %v5151_v14 = vpop.f32.mrf.mxu1  ;;  %v5235_v17 = vpop.f32.mrf.mxu0 }
 0xd2f   : > { %5261 = vst [vmem:[%s6550_s12 + $0x90] sm:$0xff] %v5151_v14 }
 0xd30   : > { %v5153_v28 = vpop.f32.mrf.mxu1  ;;  %v5238_v61 = vpop.f32.mrf.mxu0 }
 0xd31   : > { %5262 = vst [vmem:[%s6550_s12 + $0x98] sm:$0xff] %v5153_v28  ;;  %5266 = vst.msk [vmem:[%s6550_s12 + $0xb8] sm:$0xff] %vm5244_vm12, %v5238_v61 }
 0xd32   : > { %v5157_v56 = vpop.f32.mrf.mxu1  ;;  %v5240_v55 = vpop.f32.mrf.mxu0 }
 0xd33   : > { %5264 = vst [vmem:[%s6550_s12 + $0xa8] sm:$0xff] %v5157_v56 }
 0xd34   : > { %v5159_v25 = vpop.f32.mrf.mxu1 }
 0xd35   : > { %5265 = vst [vmem:[%s6550_s12 + $0xb0] sm:$0xff] %v5159_v25 }
 0xd36   : > { %5869 = shalt.err (!%p5866_p0)
}
 0xd37   : > { %s5870_s12 = scalar_lea.hbm %s12066_s13, 4224  ;;  %s5874_s17 = scalar_lea.hbm %s12119_s5, 8448 }
 0xd38   : > { %p5871_p6 = scmp.ne.s32.totalorder %s12066_s13, %s5870_s12  ;;  %p5875_p5 = scmp.lt.s32.totalorder %s12066_s13, %s12119_s5 }
 0xd39   : > { %p5876_p1 = scmp.lt.s32.totalorder %s5874_s17, %s5870_s12 }
 0xd3a   : > { %p5872_p9 = pnand %p5871_p6, %p13706_p12 }
 0xd3b   : > { %p5877_p3 = por %p5876_p1, %p5875_p5 }
 0xd3c   : > { %p5873_p13 = pneg %p5872_p9 }
 0xd3e   : > { %p5878_p10 = pnand %p5877_p3, %p5873_p13 }
 0xd40   : > { %5881 = shalt.err (!%p5878_p10)
}
 0xd41   : > { %s5957_s6 = smov 384   ;;  %s5958_s9 = smov 24  }
 0xd42   : > { %5647 = dma.vmem_to_hbm [thread:$0]  (%p13706_p12), %s12068_s7, 4224, %s12066_s13, %s12074_s30, %s5957_s6, %s5957_s6, %s5958_s9  }
 0xd43 PF: > { %p5669_p2 = scmp.ge.s32.totalorder %s5924_s21, 2  ;;  %s5305_s11 = sand.u32 1, %s5912_s18  }
 0xd44   : > { %p13707_p4 = scmp.ne.s32.totalorder %s12560_s29, 0  ;;  %s5306_s22 = scalar_lea.sflag [#allocation6], %s5305_s11 }
 0xd46   : > { %p5660_p7 = pnand %p5669_p2, %p13707_p4 }
 0xd48   : > { %p5661_p8 = pneg %p5660_p7 }
 0xd4a   : > { %5907 = dma.done.wait (%p5661_p8), %s5306_s22, 4224  }
 0xd4b   : > { %5909 = vsyncadd (%p5661_p8), %s5306_s22, 4294963072  ;;  %p17_p11 = scmp.ge.s32.totalorder %s6014_s24, 4   ;;  %s13708_s18 = smov %s5916_s19 }
 0xd4c   : > { %s13709_s19 = smov %s5920_s20  ;;  %s13710_s20 = smov %s6025_s27 }
 0xd4d   : > { %s13711_s21 = smov %s6014_s24  ;;  %19 = sbr.rel (!%p17_p11) target bundleno = 5 (0x5), region = 88 }
 0xd52   :  { %5311 = vsyncpa [#allocation5], 1 }
 0xd53   :  { %5313 = vsyncpa [#allocation5 + $0x1], 1 }
 0xd54   :  { %5314 = vsyncpa [#allocation8], 1 }
 0xd55   :  { %5315 = vsyncpa [#allocation6], 1 }
 0xd56   :  { %5317 = vsyncpa [#allocation6 + $0x1], 1 }

</bundles_post_ra>
